<compile_context>
chip_gen: v7x
topology: tpu7x:2x2x1
jax: 0.10.0
libtpu: 0.0.40
codegen_flags: <defaults>
</compile_context>

<pallas_src>
import jax
import jax.numpy as jnp
import numpy as np
from jax import lax
from jax.experimental import pallas as pl
from jax.experimental.pallas import tpu as pltpu

HS_CHANNELS = 31
CPAD = 32  # channel dim zero-padded 31 -> 32 (lane-friendly)


# ------------------------------- fused kernel -------------------------------

def _spat_kernel(h_ref, x_ref, y_ref,
                 w1_ref, b1_ref, w2_ref, b2_ref,
                 wt1_ref, bt1_ref, wt2_ref, bt2_ref,
                 scal_ref,
                 out_ref,
                 pad_scr, col9_scr, blk_scr, col16_scr):
    """Fused SpatDataIntegrity forward for one batch element.

    h_ref, x_ref : (S, S, C)        y_ref : (So*So, C)
    w1_ref, wt2_ref : (9*C, C)      K-fused 3x3 taps, row = (ky*3+kx)*C + ci
    w2_ref  : (16*C, C)             K-fused 4x4 taps, row = (ky*4+kx)*C + ci
    wt1_ref : (C, 16*C)             N-fused ConvT taps, col = (ky*4+kx)*C + co
    b1/b2/bt2 : (1, C)   bt1 : (1, 16*C) (tiled)
    scal_ref : SMEM (4,) = [a_d, a_dt, alpha, beta]
    out_ref : (S, S, C)
    pad_scr   : VMEM (S+2, S+2, C)   zero-halo image scratch (both 3x3 convs)
    col9_scr  : VMEM (S*S, 9*C)      im2col for the 3x3 convs (K = 288)
    blk_scr   : VMEM (So, 4, So, 4, C)  4x4 block-layout scratch (reused)
    col16_scr : VMEM (So*So, 16*C)   4x4 im2col / space-to-depth (512 lanes)
    """
    S = h_ref.shape[0]
    C = h_ref.shape[2]
    So = S // 4

    # hoist scalars once per grid step
    a_d = scal_ref[0]
    a_dt = scal_ref[1]
    alpha = scal_ref[2]
    beta = scal_ref[3]

    # zero ONLY the 1-pixel halo ring (interior is always fully overwritten)
    zero_row = jnp.zeros((1, S + 2, C), jnp.float32)
    zero_col = jnp.zeros((S + 2, 1, C), jnp.float32)
    pad_scr[0:1, :, :] = zero_row
    pad_scr[S + 1:S + 2, :, :] = zero_row
    pad_scr[:, 0:1, :] = zero_col
    pad_scr[:, S + 1:S + 2, :] = zero_col

    def conv3x3(w_ref, b_ref):
        """K-fused 3x3/p1 conv of the image currently in pad_scr's interior."""
        for k in range(9):
            ky, kx = k // 3, k % 3
            col9_scr[:, k * C:(k + 1) * C] = (
                pad_scr[ky:ky + S, kx:kx + S, :].reshape(S * S, C))
        return jnp.dot(col9_scr[...], w_ref[...],
                       preferred_element_type=jnp.float32) + b_ref[...]

    # ---- D, layer 1: Conv2d(3, s1, p1) + PReLU ----
    pad_scr[1:S + 1, 1:S + 1, :] = h_ref[...]
    t1 = conv3x3(w1_ref, b1_ref)
    t1 = jnp.where(t1 >= 0.0, t1, a_d * t1)

    # ---- D, layer 2: Conv2d(4, s4) as ONE K=16*C matmul ; IN1 = D(H) - Y ----
    # block layout: t1[(4i+ky), (4j+kx), c] == blk_scr[i, ky, j, kx, c]
    blk_scr[...] = t1.reshape(So, 4, So, 4, C)
    for k in range(16):
        ky, kx = k // 4, k % 4
        col16_scr[:, k * C:(k + 1) * C] = (
            blk_scr[:, pl.ds(ky, 1), :, pl.ds(kx, 1), :].reshape(So * So, C))
    in1 = jnp.dot(col16_scr[...], w2_ref[...],
                  preferred_element_type=jnp.float32)
    in1 = in1 + b2_ref[...] - y_ref[...]

    # ---- DT, layer 1: ConvT2d(4, s4) as ONE N=16*C matmul + PReLU ----
    up = jnp.dot(in1, wt1_ref[...], preferred_element_type=jnp.float32)
    up = up + bt1_ref[...]
    up = jnp.where(up >= 0.0, up, a_dt * up)
    col16_scr[...] = up                      # space-to-depth layout (So*So,16C)
    for k in range(16):                      # depth-to-space scatter (reuse blk_scr)
        ky, kx = k // 4, k % 4
        blk_scr[:, pl.ds(ky, 1), :, pl.ds(kx, 1), :] = (
            col16_scr[:, k * C:(k + 1) * C].reshape(So, 1, So, 1, C))

    # ---- DT, layer 2: ConvT2d(3, s1, p1) as flipped 3x3 conv + fused tail ----
    pad_scr[1:S + 1, 1:S + 1, :] = blk_scr[...].reshape(S, S, C)
    dt = conv3x3(wt2_ref, bt2_ref)
    h_flat = h_ref[...].reshape(S * S, C)
    x_flat = x_ref[...].reshape(S * S, C)
    out = h_flat - (dt + alpha * (h_flat - x_flat)) * beta
    out_ref[...] = out.reshape(S, S, C)


# --------------------------------- wrapper ----------------------------------

def _prep_params(p):
    C = CPAD
    pc = C - HS_CHANNELS

    def pad_w(w):  # zero-pad both channel dims of a (c0, c1, kh, kw) weight
        return jnp.pad(w, ((0, pc), (0, pc), (0, 0), (0, 0)))

    def pad_b(b, tile=1):
        b = jnp.pad(b, ((0, pc),))
        if tile > 1:
            b = jnp.tile(b, (tile,))
        return b.reshape(1, -1)

    # Conv2d weight (Cout, Cin, kh, kw) -> (kh, kw, Cin, Cout) -> (kh*kw*C, C)
    w1 = jnp.transpose(pad_w(p['w_d1']), (2, 3, 1, 0)).reshape(9 * C, C)
    w2 = jnp.transpose(pad_w(p['w_d2']), (2, 3, 1, 0)).reshape(16 * C, C)
    # ConvTranspose2d(4, s4) weight (Cin, Cout, 4, 4) -> (Cin, kh, kw, Cout)
    #   -> (C, 16*C): column index = (ky*4+kx)*C + co
    wt1 = jnp.transpose(pad_w(p['w_dt1']), (0, 2, 3, 1)).reshape(C, 16 * C)
    # ConvTranspose2d(3, s1, p1) == regular 3x3 conv with flipped weights
    wt2 = jnp.transpose(jnp.flip(pad_w(p['w_dt2']), axis=(2, 3)),
                        (2, 3, 0, 1)).reshape(9 * C, C)
    b1 = pad_b(p['b_d1'])
    b2 = pad_b(p['b_d2'])
    bt1 = pad_b(p['b_dt1'], tile=16)        # (1, 16*C) tiled bias
    bt2 = pad_b(p['b_dt2'])
    scal = jnp.stack([p['a_d'], p['a_dt'],
                      p['alpha'], p['beta']]).astype(jnp.float32)
    return w1, b1, w2, b2, wt1, bt1, wt2, bt2, scal


def spat_data_integrity(H_nchw, X_nchw, Y_nchw, p):
    B, Cin, S, _ = H_nchw.shape
    So = S // 4
    C = CPAD
    pc = C - Cin

    def nhwc_pad(a):  # NCHW -> NHWC, zero-pad channels 31 -> 32
        a = jnp.transpose(a, (0, 2, 3, 1))
        return jnp.pad(a, ((0, 0), (0, 0), (0, 0), (0, pc)))

    Hn = nhwc_pad(H_nchw)
    Xn = nhwc_pad(X_nchw)
    Yn = nhwc_pad(Y_nchw).reshape(B, So * So, C)   # pre-flattened for the kernel
    w1, b1, w2, b2, wt1, bt1, wt2, bt2, scal = _prep_params(p)

    img_spec = pl.BlockSpec((None, S, S, C), lambda b: (b, 0, 0, 0))
    y_spec = pl.BlockSpec((None, So * So, C), lambda b: (b, 0, 0))
    smem_spec = pl.BlockSpec(memory_space=pltpu.MemorySpace.SMEM)

    out = pl.pallas_call(
        _spat_kernel,
        out_shape=jax.ShapeDtypeStruct((B, S, S, C), jnp.float32),
        grid=(B,),
        in_specs=[img_spec, img_spec, y_spec,
                  pl.BlockSpec((9 * C, C), lambda b: (0, 0)),
                  pl.BlockSpec((1, C), lambda b: (0, 0)),
                  pl.BlockSpec((16 * C, C), lambda b: (0, 0)),
                  pl.BlockSpec((1, C), lambda b: (0, 0)),
                  pl.BlockSpec((C, 16 * C), lambda b: (0, 0)),
                  pl.BlockSpec((1, 16 * C), lambda b: (0, 0)),
                  pl.BlockSpec((9 * C, C), lambda b: (0, 0)),
                  pl.BlockSpec((1, C), lambda b: (0, 0)),
                  smem_spec],
        out_specs=pl.BlockSpec((None, S, S, C), lambda b: (b, 0, 0, 0)),
        scratch_shapes=[
            pltpu.VMEM((S + 2, S + 2, C), jnp.float32),   # halo image
            pltpu.VMEM((S * S, 9 * C), jnp.float32),      # 3x3 im2col, K=288
            pltpu.VMEM((So, 4, So, 4, C), jnp.float32),   # 4x4 block layout
            pltpu.VMEM((So * So, 16 * C), jnp.float32),   # 4x4 im2col / s2d
        ],
        compiler_params=pltpu.CompilerParams(
            dimension_semantics=("parallel",),
            vmem_limit_bytes=32 * 1024 * 1024),
    )(Hn, Xn, Yn, w1, b1, w2, b2, wt1, bt1, wt2, bt2, scal)

    out = out[..., :Cin]                      # drop padded channels
    return jnp.transpose(out, (0, 3, 1, 2))   # back to NCHW


# --------------------------- params & pure-JAX ref ---------------------------

def init_params(key):
    C = HS_CHANNELS
    ks = jax.random.split(key, 8)

    def w(k, shape, scale=0.05):
        return scale * jax.random.normal(k, shape, jnp.float32)

    return dict(
        w_d1=w(ks[0], (C, C, 3, 3)),   # Conv2d weight  (Cout, Cin, 3, 3)
        b_d1=w(ks[1], (C,)),
        w_d2=w(ks[2], (C, C, 4, 4)),   # Conv2d weight  (Cout, Cin, 4, 4)
        b_d2=w(ks[3], (C,)),
        w_dt1=w(ks[4], (C, C, 4, 4)),  # ConvT weight   (Cin, Cout, 4, 4)
        b_dt1=w(ks[5], (C,)),
        w_dt2=w(ks[6], (C, C, 3, 3)),  # ConvT weight   (Cin, Cout, 3, 3)
        b_dt2=w(ks[7], (C,)),
        a_d=jnp.asarray(0.25, jnp.float32),   # PReLU (default init)
        a_dt=jnp.asarray(0.25, jnp.float32),
        alpha=jnp.asarray(1.0, jnp.float32),
        beta=jnp.asarray(1.0, jnp.float32),
    )


def reference(Hn, Xn, Yn, p):
    """Pure-JAX (lax.conv) NCHW reference matching the PyTorch module."""
    dn = ('NCHW', 'OIHW', 'NCHW')
    hp = lax.Precision.HIGHEST
    # D
    t = lax.conv_general_dilated(Hn, p['w_d1'], (1, 1), ((1, 1), (1, 1)),
                                 dimension_numbers=dn, precision=hp)
    t = t + p['b_d1'][None, :, None, None]
    t = jnp.where(t >= 0, t, p['a_d'] * t)
    t = lax.conv_general_dilated(t, p['w_d2'], (4, 4), ((0, 0), (0, 0)),
                                 dimension_numbers=dn, precision=hp)
    t = t + p['b_d2'][None, :, None, None]
    in1 = t - Yn
    # DT (transposed convs as dilated / padded regular convs)
    w1 = jnp.transpose(jnp.flip(p['w_dt1'], axis=(2, 3)), (1, 0, 2, 3))
    u = lax.conv_general_dilated(in1, w1, (1, 1), ((3, 3), (3, 3)),
                                 lhs_dilation=(4, 4), dimension_numbers=dn,
                                 precision=hp)
    u = u + p['b_dt1'][None, :, None, None]
    u = jnp.where(u >= 0, u, p['a_dt'] * u)
    w2 = jnp.transpose(jnp.flip(p['w_dt2'], axis=(2, 3)), (1, 0, 2, 3))
    u = lax.conv_general_dilated(u, w2, (1, 1), ((1, 1), (1, 1)),
                                 dimension_numbers=dn, precision=hp)
    u = u + p['b_dt2'][None, :, None, None]
    inn = (u + p['alpha'] * (Hn - Xn)) * p['beta']
    return Hn - inn


# ----------------------------------- main ------------------------------------

if __name__ == "__main__":
    key = jax.random.PRNGKey(0)
    k_h, k_x, k_y, k_p = jax.random.split(key, 4)
    B, C, S = 2, HS_CHANNELS, 16
    H = jax.random.normal(k_h, (B, C, S, S), jnp.float32)
    X = jax.random.normal(k_x, (B, C, S, S), jnp.float32)
    Y = jax.random.normal(k_y, (B, C, S // 4, S // 4), jnp.float32)
    params = init_params(k_p)

    out = jax.jit(spat_data_integrity)(H, X, Y, params)
    out = jax.block_until_ready(out)

    ref = jax.block_until_ready(reference(H, X, Y, params))
    np.testing.assert_allclose(np.asarray(out), np.asarray(ref),
                               rtol=5e-4, atol=5e-4)
    print("KERNEL_OK")
</pallas_src>

<mosaic_0001>
module attributes {stable_mosaic.version = 11 : i64} {
  func.func @_spat_kernel(%arg0: i32, %arg1: memref<1x16x16x32xf32, #tpu.memory_space<vmem>>, %arg2: memref<1x16x16x32xf32, #tpu.memory_space<vmem>>, %arg3: memref<1x16x32xf32, #tpu.memory_space<vmem>>, %arg4: memref<288x32xf32, #tpu.memory_space<vmem>>, %arg5: memref<1x32xf32, #tpu.memory_space<vmem>>, %arg6: memref<512x32xf32, #tpu.memory_space<vmem>>, %arg7: memref<1x32xf32, #tpu.memory_space<vmem>>, %arg8: memref<32x512xf32, #tpu.memory_space<vmem>>, %arg9: memref<1x512xf32, #tpu.memory_space<vmem>>, %arg10: memref<288x32xf32, #tpu.memory_space<vmem>>, %arg11: memref<1x32xf32, #tpu.memory_space<vmem>>, %arg12: memref<4xf32, #tpu.memory_space<smem>>, %arg13: memref<1x16x16x32xf32, #tpu.memory_space<vmem>>, %arg14: memref<18x18x32xf32, #tpu.memory_space<vmem>>, %arg15: memref<256x288xf32, #tpu.memory_space<vmem>>, %arg16: memref<4x4x4x4x32xf32, #tpu.memory_space<vmem>>, %arg17: memref<16x512xf32, #tpu.memory_space<vmem>>) attributes {dimension_semantics = [#tpu.dimension_semantics<parallel>], iteration_bounds = array<i64: 2>, scalar_prefetch = 0 : i64, scratch_operands = 4 : i64, tpu.core_type = #tpu.core_type<tc>, window_params = [{transform_indices = @transform_0, window_bounds = array<i64: 1, 16, 16, 32>}, {transform_indices = @transform_1, window_bounds = array<i64: 1, 16, 16, 32>}, {transform_indices = @transform_2, window_bounds = array<i64: 1, 16, 32>}, {pipeline_mode = #tpu.pipeline_mode<synchronous>, transform_indices = @transform_3, window_bounds = array<i64: 288, 32>}, {pipeline_mode = #tpu.pipeline_mode<synchronous>, transform_indices = @transform_4, window_bounds = array<i64: 1, 32>}, {pipeline_mode = #tpu.pipeline_mode<synchronous>, transform_indices = @transform_5, window_bounds = array<i64: 512, 32>}, {pipeline_mode = #tpu.pipeline_mode<synchronous>, transform_indices = @transform_6, window_bounds = array<i64: 1, 32>}, {pipeline_mode = #tpu.pipeline_mode<synchronous>, transform_indices = @transform_7, window_bounds = array<i64: 32, 512>}, {pipeline_mode = #tpu.pipeline_mode<synchronous>, transform_indices = @transform_8, window_bounds = array<i64: 1, 512>}, {pipeline_mode = #tpu.pipeline_mode<synchronous>, transform_indices = @transform_9, window_bounds = array<i64: 288, 32>}, {pipeline_mode = #tpu.pipeline_mode<synchronous>, transform_indices = @transform_10, window_bounds = array<i64: 1, 32>}, {transform_indices = @transform_11, window_bounds = array<i64: 4>}, {transform_indices = @transform_12, window_bounds = array<i64: 1, 16, 16, 32>}]} {
    %c0 = arith.constant 0 : index
    %0 = memref.load %arg12[%c0] : memref<4xf32, #tpu.memory_space<smem>>
    %c1 = arith.constant 1 : index
    %1 = memref.load %arg12[%c1] : memref<4xf32, #tpu.memory_space<smem>>
    %c2 = arith.constant 2 : index
    %2 = memref.load %arg12[%c2] : memref<4xf32, #tpu.memory_space<smem>>
    %c3 = arith.constant 3 : index
    %3 = memref.load %arg12[%c3] : memref<4xf32, #tpu.memory_space<smem>>
    %cst = arith.constant 0.000000e+00 : f32
    %4 = vector.broadcast %cst : f32 to vector<1x18x32xf32>
    %cst_0 = arith.constant 0.000000e+00 : f32
    %5 = vector.broadcast %cst_0 : f32 to vector<18x1x32xf32>
    %c0_1 = arith.constant 0 : index
    %c0_2 = arith.constant 0 : index
    %c0_3 = arith.constant 0 : index
    %6 = vector.load %arg14[%c0_1, %c0_2, %c0_3] : memref<18x18x32xf32, #tpu.memory_space<vmem>>, vector<1x18x32xf32>
    tpu.vector_store %arg14[%c0_1, %c0_2, %c0_3], %4 {strides = array<i32>} : memref<18x18x32xf32, #tpu.memory_space<vmem>>, vector<1x18x32xf32>,
    %c17 = arith.constant 17 : index
    %c0_4 = arith.constant 0 : index
    %c0_5 = arith.constant 0 : index
    %7 = vector.load %arg14[%c17, %c0_4, %c0_5] : memref<18x18x32xf32, #tpu.memory_space<vmem>>, vector<1x18x32xf32>
    tpu.vector_store %arg14[%c17, %c0_4, %c0_5], %4 {strides = array<i32>} : memref<18x18x32xf32, #tpu.memory_space<vmem>>, vector<1x18x32xf32>,
    %c0_6 = arith.constant 0 : index
    %c0_7 = arith.constant 0 : index
    %c0_8 = arith.constant 0 : index
    %8 = vector.load %arg14[%c0_6, %c0_7, %c0_8] : memref<18x18x32xf32, #tpu.memory_space<vmem>>, vector<18x1x32xf32>
    tpu.vector_store %arg14[%c0_6, %c0_7, %c0_8], %5 {strides = array<i32>} : memref<18x18x32xf32, #tpu.memory_space<vmem>>, vector<18x1x32xf32>,
    %c0_9 = arith.constant 0 : index
    %c17_10 = arith.constant 17 : index
    %c0_11 = arith.constant 0 : index
    %9 = vector.load %arg14[%c0_9, %c17_10, %c0_11] : memref<18x18x32xf32, #tpu.memory_space<vmem>>, vector<18x1x32xf32>
    tpu.vector_store %arg14[%c0_9, %c17_10, %c0_11], %5 {strides = array<i32>} : memref<18x18x32xf32, #tpu.memory_space<vmem>>, vector<18x1x32xf32>,
    %c0_12 = arith.constant 0 : index
    %c0_13 = arith.constant 0 : index
    %c0_14 = arith.constant 0 : index
    %c0_15 = arith.constant 0 : index
    %10 = vector.load %arg1[%c0_12, %c0_13, %c0_14, %c0_15] : memref<1x16x16x32xf32, #tpu.memory_space<vmem>>, vector<1x16x16x32xf32>
    %11 = vector.shape_cast %10 : vector<1x16x16x32xf32> to vector<16x16x32xf32>
    %c1_16 = arith.constant 1 : index
    %c1_17 = arith.constant 1 : index
    %c0_18 = arith.constant 0 : index
    %12 = vector.load %arg14[%c1_16, %c1_17, %c0_18] : memref<18x18x32xf32, #tpu.memory_space<vmem>>, vector<16x16x32xf32>
    tpu.vector_store %arg14[%c1_16, %c1_17, %c0_18], %11 {strides = array<i32>} : memref<18x18x32xf32, #tpu.memory_space<vmem>>, vector<16x16x32xf32>,
    %c0_19 = arith.constant 0 : index
    %c0_20 = arith.constant 0 : index
    %c0_21 = arith.constant 0 : index
    %13 = vector.load %arg14[%c0_19, %c0_20, %c0_21] : memref<18x18x32xf32, #tpu.memory_space<vmem>>, vector<16x16x32xf32>
    %14 = vector.shape_cast %13 : vector<16x16x32xf32> to vector<256x32xf32>
    %c0_22 = arith.constant 0 : index
    %c0_23 = arith.constant 0 : index
    %15 = vector.load %arg15[%c0_22, %c0_23] : memref<256x288xf32, #tpu.memory_space<vmem>>, vector<256x32xf32>
    tpu.vector_store %arg15[%c0_22, %c0_23], %14 {strides = array<i32>} : memref<256x288xf32, #tpu.memory_space<vmem>>, vector<256x32xf32>,
    %c0_24 = arith.constant 0 : index
    %c1_25 = arith.constant 1 : index
    %c0_26 = arith.constant 0 : index
    %16 = vector.load %arg14[%c0_24, %c1_25, %c0_26] : memref<18x18x32xf32, #tpu.memory_space<vmem>>, vector<16x16x32xf32>
    %17 = vector.shape_cast %16 : vector<16x16x32xf32> to vector<256x32xf32>
    %c0_27 = arith.constant 0 : index
    %c32 = arith.constant 32 : index
    %18 = vector.load %arg15[%c0_27, %c32] : memref<256x288xf32, #tpu.memory_space<vmem>>, vector<256x32xf32>
    tpu.vector_store %arg15[%c0_27, %c32], %17 {strides = array<i32>} : memref<256x288xf32, #tpu.memory_space<vmem>>, vector<256x32xf32>,
    %c0_28 = arith.constant 0 : index
    %c2_29 = arith.constant 2 : index
    %c0_30 = arith.constant 0 : index
    %19 = vector.load %arg14[%c0_28, %c2_29, %c0_30] : memref<18x18x32xf32, #tpu.memory_space<vmem>>, vector<16x16x32xf32>
    %20 = vector.shape_cast %19 : vector<16x16x32xf32> to vector<256x32xf32>
    %c0_31 = arith.constant 0 : index
    %c64 = arith.constant 64 : index
    %21 = vector.load %arg15[%c0_31, %c64] : memref<256x288xf32, #tpu.memory_space<vmem>>, vector<256x32xf32>
    tpu.vector_store %arg15[%c0_31, %c64], %20 {strides = array<i32>} : memref<256x288xf32, #tpu.memory_space<vmem>>, vector<256x32xf32>,
    %c1_32 = arith.constant 1 : index
    %c0_33 = arith.constant 0 : index
    %c0_34 = arith.constant 0 : index
    %22 = vector.load %arg14[%c1_32, %c0_33, %c0_34] : memref<18x18x32xf32, #tpu.memory_space<vmem>>, vector<16x16x32xf32>
    %23 = vector.shape_cast %22 : vector<16x16x32xf32> to vector<256x32xf32>
    %c0_35 = arith.constant 0 : index
    %c96 = arith.constant 96 : index
    %24 = vector.load %arg15[%c0_35, %c96] : memref<256x288xf32, #tpu.memory_space<vmem>>, vector<256x32xf32>
    tpu.vector_store %arg15[%c0_35, %c96], %23 {strides = array<i32>} : memref<256x288xf32, #tpu.memory_space<vmem>>, vector<256x32xf32>,
    %c1_36 = arith.constant 1 : index
    %c1_37 = arith.constant 1 : index
    %c0_38 = arith.constant 0 : index
    %25 = vector.load %arg14[%c1_36, %c1_37, %c0_38] : memref<18x18x32xf32, #tpu.memory_space<vmem>>, vector<16x16x32xf32>
    %26 = vector.shape_cast %25 : vector<16x16x32xf32> to vector<256x32xf32>
    %c0_39 = arith.constant 0 : index
    %c128 = arith.constant 128 : index
    %27 = vector.load %arg15[%c0_39, %c128] : memref<256x288xf32, #tpu.memory_space<vmem>>, vector<256x32xf32>
    tpu.vector_store %arg15[%c0_39, %c128], %26 {strides = array<i32>} : memref<256x288xf32, #tpu.memory_space<vmem>>, vector<256x32xf32>,
    %c1_40 = arith.constant 1 : index
    %c2_41 = arith.constant 2 : index
    %c0_42 = arith.constant 0 : index
    %28 = vector.load %arg14[%c1_40, %c2_41, %c0_42] : memref<18x18x32xf32, #tpu.memory_space<vmem>>, vector<16x16x32xf32>
    %29 = vector.shape_cast %28 : vector<16x16x32xf32> to vector<256x32xf32>
    %c0_43 = arith.constant 0 : index
    %c160 = arith.constant 160 : index
    %30 = vector.load %arg15[%c0_43, %c160] : memref<256x288xf32, #tpu.memory_space<vmem>>, vector<256x32xf32>
    tpu.vector_store %arg15[%c0_43, %c160], %29 {strides = array<i32>} : memref<256x288xf32, #tpu.memory_space<vmem>>, vector<256x32xf32>,
    %c2_44 = arith.constant 2 : index
    %c0_45 = arith.constant 0 : index
    %c0_46 = arith.constant 0 : index
    %31 = vector.load %arg14[%c2_44, %c0_45, %c0_46] : memref<18x18x32xf32, #tpu.memory_space<vmem>>, vector<16x16x32xf32>
    %32 = vector.shape_cast %31 : vector<16x16x32xf32> to vector<256x32xf32>
    %c0_47 = arith.constant 0 : index
    %c192 = arith.constant 192 : index
    %33 = vector.load %arg15[%c0_47, %c192] : memref<256x288xf32, #tpu.memory_space<vmem>>, vector<256x32xf32>
    tpu.vector_store %arg15[%c0_47, %c192], %32 {strides = array<i32>} : memref<256x288xf32, #tpu.memory_space<vmem>>, vector<256x32xf32>,
    %c2_48 = arith.constant 2 : index
    %c1_49 = arith.constant 1 : index
    %c0_50 = arith.constant 0 : index
    %34 = vector.load %arg14[%c2_48, %c1_49, %c0_50] : memref<18x18x32xf32, #tpu.memory_space<vmem>>, vector<16x16x32xf32>
    %35 = vector.shape_cast %34 : vector<16x16x32xf32> to vector<256x32xf32>
    %c0_51 = arith.constant 0 : index
    %c224 = arith.constant 224 : index
    %36 = vector.load %arg15[%c0_51, %c224] : memref<256x288xf32, #tpu.memory_space<vmem>>, vector<256x32xf32>
    tpu.vector_store %arg15[%c0_51, %c224], %35 {strides = array<i32>} : memref<256x288xf32, #tpu.memory_space<vmem>>, vector<256x32xf32>,
    %c2_52 = arith.constant 2 : index
    %c2_53 = arith.constant 2 : index
    %c0_54 = arith.constant 0 : index
    %37 = vector.load %arg14[%c2_52, %c2_53, %c0_54] : memref<18x18x32xf32, #tpu.memory_space<vmem>>, vector<16x16x32xf32>
    %38 = vector.shape_cast %37 : vector<16x16x32xf32> to vector<256x32xf32>
    %c0_55 = arith.constant 0 : index
    %c256 = arith.constant 256 : index
    %39 = vector.load %arg15[%c0_55, %c256] : memref<256x288xf32, #tpu.memory_space<vmem>>, vector<256x32xf32>
    tpu.vector_store %arg15[%c0_55, %c256], %38 {strides = array<i32>} : memref<256x288xf32, #tpu.memory_space<vmem>>, vector<256x32xf32>,
    %c0_56 = arith.constant 0 : index
    %c0_57 = arith.constant 0 : index
    %40 = vector.load %arg15[%c0_56, %c0_57] : memref<256x288xf32, #tpu.memory_space<vmem>>, vector<256x288xf32>
    %c0_58 = arith.constant 0 : index
    %c0_59 = arith.constant 0 : index
    %41 = vector.load %arg4[%c0_58, %c0_59] : memref<288x32xf32, #tpu.memory_space<vmem>>, vector<288x32xf32>
    %cst_60 = arith.constant dense<0.000000e+00> : vector<256x32xf32>
    %42 = tpu.matmul %40, %41, %cst_60 {dimension_numbers = #tpu.dot_dimension_numbers<[1], [0], [0], [1], [0, 0, 1, 1], [], []>} : vector<256x288xf32>, vector<288x32xf32>, vector<256x32xf32> -> vector<256x32xf32>
    %c0_61 = arith.constant 0 : index
    %c0_62 = arith.constant 0 : index
    %43 = vector.load %arg5[%c0_61, %c0_62] : memref<1x32xf32, #tpu.memory_space<vmem>>, vector<1x32xf32>
    %44 = vector.broadcast %43 : vector<1x32xf32> to vector<256x32xf32>
    %45 = arith.addf %42, %44 : vector<256x32xf32>
    %cst_63 = arith.constant 0.000000e+00 : f32
    %46 = vector.broadcast %cst_63 : f32 to vector<256x32xf32>
    %47 = arith.cmpf oge, %45, %46 : vector<256x32xf32>
    %48 = vector.broadcast %0 : f32 to vector<256x32xf32>
    %49 = arith.mulf %48, %45 : vector<256x32xf32>
    %50 = arith.select %47, %45, %49 : vector<256x32xi1>, vector<256x32xf32>
    %51 = vector.shape_cast %50 : vector<256x32xf32> to vector<4x4x4x4x32xf32>
    %c0_64 = arith.constant 0 : index
    %c0_65 = arith.constant 0 : index
    %c0_66 = arith.constant 0 : index
    %c0_67 = arith.constant 0 : index
    %c0_68 = arith.constant 0 : index
    %52 = vector.load %arg16[%c0_64, %c0_65, %c0_66, %c0_67, %c0_68] : memref<4x4x4x4x32xf32, #tpu.memory_space<vmem>>, vector<4x4x4x4x32xf32>
    tpu.vector_store %arg16[%c0_64, %c0_65, %c0_66, %c0_67, %c0_68], %51 {strides = array<i32>} : memref<4x4x4x4x32xf32, #tpu.memory_space<vmem>>, vector<4x4x4x4x32xf32>,
    %c0_69 = arith.constant 0 : index
    %c0_70 = arith.constant 0 : index
    %c0_71 = arith.constant 0 : index
    %c0_72 = arith.constant 0 : index
    %c0_73 = arith.constant 0 : index
    %53 = vector.load %arg16[%c0_69, %c0_70, %c0_71, %c0_72, %c0_73] : memref<4x4x4x4x32xf32, #tpu.memory_space<vmem>>, vector<4x1x4x1x32xf32>
    %54 = vector.shape_cast %53 : vector<4x1x4x1x32xf32> to vector<16x32xf32>
    %c0_74 = arith.constant 0 : index
    %c0_75 = arith.constant 0 : index
    %55 = vector.load %arg17[%c0_74, %c0_75] : memref<16x512xf32, #tpu.memory_space<vmem>>, vector<16x32xf32>
    tpu.vector_store %arg17[%c0_74, %c0_75], %54 {strides = array<i32>} : memref<16x512xf32, #tpu.memory_space<vmem>>, vector<16x32xf32>,
    %c0_76 = arith.constant 0 : index
    %c0_77 = arith.constant 0 : index
    %c0_78 = arith.constant 0 : index
    %c1_79 = arith.constant 1 : index
    %c0_80 = arith.constant 0 : index
    %56 = vector.load %arg16[%c0_76, %c0_77, %c0_78, %c1_79, %c0_80] : memref<4x4x4x4x32xf32, #tpu.memory_space<vmem>>, vector<4x1x4x1x32xf32>
    %57 = vector.shape_cast %56 : vector<4x1x4x1x32xf32> to vector<16x32xf32>
    %c0_81 = arith.constant 0 : index
    %c32_82 = arith.constant 32 : index
    %58 = vector.load %arg17[%c0_81, %c32_82] : memref<16x512xf32, #tpu.memory_space<vmem>>, vector<16x32xf32>
    tpu.vector_store %arg17[%c0_81, %c32_82], %57 {strides = array<i32>} : memref<16x512xf32, #tpu.memory_space<vmem>>, vector<16x32xf32>,
    %c0_83 = arith.constant 0 : index
    %c0_84 = arith.constant 0 : index
    %c0_85 = arith.constant 0 : index
    %c2_86 = arith.constant 2 : index
    %c0_87 = arith.constant 0 : index
    %59 = vector.load %arg16[%c0_83, %c0_84, %c0_85, %c2_86, %c0_87] : memref<4x4x4x4x32xf32, #tpu.memory_space<vmem>>, vector<4x1x4x1x32xf32>
    %60 = vector.shape_cast %59 : vector<4x1x4x1x32xf32> to vector<16x32xf32>
    %c0_88 = arith.constant 0 : index
    %c64_89 = arith.constant 64 : index
    %61 = vector.load %arg17[%c0_88, %c64_89] : memref<16x512xf32, #tpu.memory_space<vmem>>, vector<16x32xf32>
    tpu.vector_store %arg17[%c0_88, %c64_89], %60 {strides = array<i32>} : memref<16x512xf32, #tpu.memory_space<vmem>>, vector<16x32xf32>,
    %c0_90 = arith.constant 0 : index
    %c0_91 = arith.constant 0 : index
    %c0_92 = arith.constant 0 : index
    %c3_93 = arith.constant 3 : index
    %c0_94 = arith.constant 0 : index
    %62 = vector.load %arg16[%c0_90, %c0_91, %c0_92, %c3_93, %c0_94] : memref<4x4x4x4x32xf32, #tpu.memory_space<vmem>>, vector<4x1x4x1x32xf32>
    %63 = vector.shape_cast %62 : vector<4x1x4x1x32xf32> to vector<16x32xf32>
    %c0_95 = arith.constant 0 : index
    %c96_96 = arith.constant 96 : index
    %64 = vector.load %arg17[%c0_95, %c96_96] : memref<16x512xf32, #tpu.memory_space<vmem>>, vector<16x32xf32>
    tpu.vector_store %arg17[%c0_95, %c96_96], %63 {strides = array<i32>} : memref<16x512xf32, #tpu.memory_space<vmem>>, vector<16x32xf32>,
    %c0_97 = arith.constant 0 : index
    %c1_98 = arith.constant 1 : index
    %c0_99 = arith.constant 0 : index
    %c0_100 = arith.constant 0 : index
    %c0_101 = arith.constant 0 : index
    %65 = vector.load %arg16[%c0_97, %c1_98, %c0_99, %c0_100, %c0_101] : memref<4x4x4x4x32xf32, #tpu.memory_space<vmem>>, vector<4x1x4x1x32xf32>
    %66 = vector.shape_cast %65 : vector<4x1x4x1x32xf32> to vector<16x32xf32>
    %c0_102 = arith.constant 0 : index
    %c128_103 = arith.constant 128 : index
    %67 = vector.load %arg17[%c0_102, %c128_103] : memref<16x512xf32, #tpu.memory_space<vmem>>, vector<16x32xf32>
    tpu.vector_store %arg17[%c0_102, %c128_103], %66 {strides = array<i32>} : memref<16x512xf32, #tpu.memory_space<vmem>>, vector<16x32xf32>,
    %c0_104 = arith.constant 0 : index
    %c1_105 = arith.constant 1 : index
    %c0_106 = arith.constant 0 : index
    %c1_107 = arith.constant 1 : index
    %c0_108 = arith.constant 0 : index
    %68 = vector.load %arg16[%c0_104, %c1_105, %c0_106, %c1_107, %c0_108] : memref<4x4x4x4x32xf32, #tpu.memory_space<vmem>>, vector<4x1x4x1x32xf32>
    %69 = vector.shape_cast %68 : vector<4x1x4x1x32xf32> to vector<16x32xf32>
    %c0_109 = arith.constant 0 : index
    %c160_110 = arith.constant 160 : index
    %70 = vector.load %arg17[%c0_109, %c160_110] : memref<16x512xf32, #tpu.memory_space<vmem>>, vector<16x32xf32>
    tpu.vector_store %arg17[%c0_109, %c160_110], %69 {strides = array<i32>} : memref<16x512xf32, #tpu.memory_space<vmem>>, vector<16x32xf32>,
    %c0_111 = arith.constant 0 : index
    %c1_112 = arith.constant 1 : index
    %c0_113 = arith.constant 0 : index
    %c2_114 = arith.constant 2 : index
    %c0_115 = arith.constant 0 : index
    %71 = vector.load %arg16[%c0_111, %c1_112, %c0_113, %c2_114, %c0_115] : memref<4x4x4x4x32xf32, #tpu.memory_space<vmem>>, vector<4x1x4x1x32xf32>
    %72 = vector.shape_cast %71 : vector<4x1x4x1x32xf32> to vector<16x32xf32>
    %c0_116 = arith.constant 0 : index
    %c192_117 = arith.constant 192 : index
    %73 = vector.load %arg17[%c0_116, %c192_117] : memref<16x512xf32, #tpu.memory_space<vmem>>, vector<16x32xf32>
    tpu.vector_store %arg17[%c0_116, %c192_117], %72 {strides = array<i32>} : memref<16x512xf32, #tpu.memory_space<vmem>>, vector<16x32xf32>,
    %c0_118 = arith.constant 0 : index
    %c1_119 = arith.constant 1 : index
    %c0_120 = arith.constant 0 : index
    %c3_121 = arith.constant 3 : index
    %c0_122 = arith.constant 0 : index
    %74 = vector.load %arg16[%c0_118, %c1_119, %c0_120, %c3_121, %c0_122] : memref<4x4x4x4x32xf32, #tpu.memory_space<vmem>>, vector<4x1x4x1x32xf32>
    %75 = vector.shape_cast %74 : vector<4x1x4x1x32xf32> to vector<16x32xf32>
    %c0_123 = arith.constant 0 : index
    %c224_124 = arith.constant 224 : index
    %76 = vector.load %arg17[%c0_123, %c224_124] : memref<16x512xf32, #tpu.memory_space<vmem>>, vector<16x32xf32>
    tpu.vector_store %arg17[%c0_123, %c224_124], %75 {strides = array<i32>} : memref<16x512xf32, #tpu.memory_space<vmem>>, vector<16x32xf32>,
    %c0_125 = arith.constant 0 : index
    %c2_126 = arith.constant 2 : index
    %c0_127 = arith.constant 0 : index
    %c0_128 = arith.constant 0 : index
    %c0_129 = arith.constant 0 : index
    %77 = vector.load %arg16[%c0_125, %c2_126, %c0_127, %c0_128, %c0_129] : memref<4x4x4x4x32xf32, #tpu.memory_space<vmem>>, vector<4x1x4x1x32xf32>
    %78 = vector.shape_cast %77 : vector<4x1x4x1x32xf32> to vector<16x32xf32>
    %c0_130 = arith.constant 0 : index
    %c256_131 = arith.constant 256 : index
    %79 = vector.load %arg17[%c0_130, %c256_131] : memref<16x512xf32, #tpu.memory_space<vmem>>, vector<16x32xf32>
    tpu.vector_store %arg17[%c0_130, %c256_131], %78 {strides = array<i32>} : memref<16x512xf32, #tpu.memory_space<vmem>>, vector<16x32xf32>,
    %c0_132 = arith.constant 0 : index
    %c2_133 = arith.constant 2 : index
    %c0_134 = arith.constant 0 : index
    %c1_135 = arith.constant 1 : index
    %c0_136 = arith.constant 0 : index
    %80 = vector.load %arg16[%c0_132, %c2_133, %c0_134, %c1_135, %c0_136] : memref<4x4x4x4x32xf32, #tpu.memory_space<vmem>>, vector<4x1x4x1x32xf32>
    %81 = vector.shape_cast %80 : vector<4x1x4x1x32xf32> to vector<16x32xf32>
    %c0_137 = arith.constant 0 : index
    %c288 = arith.constant 288 : index
    %82 = vector.load %arg17[%c0_137, %c288] : memref<16x512xf32, #tpu.memory_space<vmem>>, vector<16x32xf32>
    tpu.vector_store %arg17[%c0_137, %c288], %81 {strides = array<i32>} : memref<16x512xf32, #tpu.memory_space<vmem>>, vector<16x32xf32>,
    %c0_138 = arith.constant 0 : index
    %c2_139 = arith.constant 2 : index
    %c0_140 = arith.constant 0 : index
    %c2_141 = arith.constant 2 : index
    %c0_142 = arith.constant 0 : index
    %83 = vector.load %arg16[%c0_138, %c2_139, %c0_140, %c2_141, %c0_142] : memref<4x4x4x4x32xf32, #tpu.memory_space<vmem>>, vector<4x1x4x1x32xf32>
    %84 = vector.shape_cast %83 : vector<4x1x4x1x32xf32> to vector<16x32xf32>
    %c0_143 = arith.constant 0 : index
    %c320 = arith.constant 320 : index
    %85 = vector.load %arg17[%c0_143, %c320] : memref<16x512xf32, #tpu.memory_space<vmem>>, vector<16x32xf32>
    tpu.vector_store %arg17[%c0_143, %c320], %84 {strides = array<i32>} : memref<16x512xf32, #tpu.memory_space<vmem>>, vector<16x32xf32>,
    %c0_144 = arith.constant 0 : index
    %c2_145 = arith.constant 2 : index
    %c0_146 = arith.constant 0 : index
    %c3_147 = arith.constant 3 : index
    %c0_148 = arith.constant 0 : index
    %86 = vector.load %arg16[%c0_144, %c2_145, %c0_146, %c3_147, %c0_148] : memref<4x4x4x4x32xf32, #tpu.memory_space<vmem>>, vector<4x1x4x1x32xf32>
    %87 = vector.shape_cast %86 : vector<4x1x4x1x32xf32> to vector<16x32xf32>
    %c0_149 = arith.constant 0 : index
    %c352 = arith.constant 352 : index
    %88 = vector.load %arg17[%c0_149, %c352] : memref<16x512xf32, #tpu.memory_space<vmem>>, vector<16x32xf32>
    tpu.vector_store %arg17[%c0_149, %c352], %87 {strides = array<i32>} : memref<16x512xf32, #tpu.memory_space<vmem>>, vector<16x32xf32>,
    %c0_150 = arith.constant 0 : index
    %c3_151 = arith.constant 3 : index
    %c0_152 = arith.constant 0 : index
    %c0_153 = arith.constant 0 : index
    %c0_154 = arith.constant 0 : index
    %89 = vector.load %arg16[%c0_150, %c3_151, %c0_152, %c0_153, %c0_154] : memref<4x4x4x4x32xf32, #tpu.memory_space<vmem>>, vector<4x1x4x1x32xf32>
    %90 = vector.shape_cast %89 : vector<4x1x4x1x32xf32> to vector<16x32xf32>
    %c0_155 = arith.constant 0 : index
    %c384 = arith.constant 384 : index
    %91 = vector.load %arg17[%c0_155, %c384] : memref<16x512xf32, #tpu.memory_space<vmem>>, vector<16x32xf32>
    tpu.vector_store %arg17[%c0_155, %c384], %90 {strides = array<i32>} : memref<16x512xf32, #tpu.memory_space<vmem>>, vector<16x32xf32>,
    %c0_156 = arith.constant 0 : index
    %c3_157 = arith.constant 3 : index
    %c0_158 = arith.constant 0 : index
    %c1_159 = arith.constant 1 : index
    %c0_160 = arith.constant 0 : index
    %92 = vector.load %arg16[%c0_156, %c3_157, %c0_158, %c1_159, %c0_160] : memref<4x4x4x4x32xf32, #tpu.memory_space<vmem>>, vector<4x1x4x1x32xf32>
    %93 = vector.shape_cast %92 : vector<4x1x4x1x32xf32> to vector<16x32xf32>
    %c0_161 = arith.constant 0 : index
    %c416 = arith.constant 416 : index
    %94 = vector.load %arg17[%c0_161, %c416] : memref<16x512xf32, #tpu.memory_space<vmem>>, vector<16x32xf32>
    tpu.vector_store %arg17[%c0_161, %c416], %93 {strides = array<i32>} : memref<16x512xf32, #tpu.memory_space<vmem>>, vector<16x32xf32>,
    %c0_162 = arith.constant 0 : index
    %c3_163 = arith.constant 3 : index
    %c0_164 = arith.constant 0 : index
    %c2_165 = arith.constant 2 : index
    %c0_166 = arith.constant 0 : index
    %95 = vector.load %arg16[%c0_162, %c3_163, %c0_164, %c2_165, %c0_166] : memref<4x4x4x4x32xf32, #tpu.memory_space<vmem>>, vector<4x1x4x1x32xf32>
    %96 = vector.shape_cast %95 : vector<4x1x4x1x32xf32> to vector<16x32xf32>
    %c0_167 = arith.constant 0 : index
    %c448 = arith.constant 448 : index
    %97 = vector.load %arg17[%c0_167, %c448] : memref<16x512xf32, #tpu.memory_space<vmem>>, vector<16x32xf32>
    tpu.vector_store %arg17[%c0_167, %c448], %96 {strides = array<i32>} : memref<16x512xf32, #tpu.memory_space<vmem>>, vector<16x32xf32>,
    %c0_168 = arith.constant 0 : index
    %c3_169 = arith.constant 3 : index
    %c0_170 = arith.constant 0 : index
    %c3_171 = arith.constant 3 : index
    %c0_172 = arith.constant 0 : index
    %98 = vector.load %arg16[%c0_168, %c3_169, %c0_170, %c3_171, %c0_172] : memref<4x4x4x4x32xf32, #tpu.memory_space<vmem>>, vector<4x1x4x1x32xf32>
    %99 = vector.shape_cast %98 : vector<4x1x4x1x32xf32> to vector<16x32xf32>
    %c0_173 = arith.constant 0 : index
    %c480 = arith.constant 480 : index
    %100 = vector.load %arg17[%c0_173, %c480] : memref<16x512xf32, #tpu.memory_space<vmem>>, vector<16x32xf32>
    tpu.vector_store %arg17[%c0_173, %c480], %99 {strides = array<i32>} : memref<16x512xf32, #tpu.memory_space<vmem>>, vector<16x32xf32>,
    %c0_174 = arith.constant 0 : index
    %c0_175 = arith.constant 0 : index
    %101 = vector.load %arg17[%c0_174, %c0_175] : memref<16x512xf32, #tpu.memory_space<vmem>>, vector<16x512xf32>
    %c0_176 = arith.constant 0 : index
    %c0_177 = arith.constant 0 : index
    %102 = vector.load %arg6[%c0_176, %c0_177] : memref<512x32xf32, #tpu.memory_space<vmem>>, vector<512x32xf32>
    %cst_178 = arith.constant dense<0.000000e+00> : vector<16x32xf32>
    %103 = tpu.matmul %101, %102, %cst_178 {dimension_numbers = #tpu.dot_dimension_numbers<[1], [0], [0], [1], [0, 0, 1, 1], [], []>} : vector<16x512xf32>, vector<512x32xf32>, vector<16x32xf32> -> vector<16x32xf32>
    %c0_179 = arith.constant 0 : index
    %c0_180 = arith.constant 0 : index
    %104 = vector.load %arg7[%c0_179, %c0_180] : memref<1x32xf32, #tpu.memory_space<vmem>>, vector<1x32xf32>
    %105 = vector.broadcast %104 : vector<1x32xf32> to vector<16x32xf32>
    %106 = arith.addf %103, %105 : vector<16x32xf32>
    %c0_181 = arith.constant 0 : index
    %c0_182 = arith.constant 0 : index
    %c0_183 = arith.constant 0 : index
    %107 = vector.load %arg3[%c0_181, %c0_182, %c0_183] : memref<1x16x32xf32, #tpu.memory_space<vmem>>, vector<1x16x32xf32>
    %108 = vector.shape_cast %107 : vector<1x16x32xf32> to vector<16x32xf32>
    %109 = arith.subf %106, %108 : vector<16x32xf32>
    %c0_184 = arith.constant 0 : index
    %c0_185 = arith.constant 0 : index
    %110 = vector.load %arg8[%c0_184, %c0_185] : memref<32x512xf32, #tpu.memory_space<vmem>>, vector<32x512xf32>
    %cst_186 = arith.constant dense<0.000000e+00> : vector<16x512xf32>
    %111 = tpu.matmul %109, %110, %cst_186 {dimension_numbers = #tpu.dot_dimension_numbers<[1], [0], [0], [1], [0, 0, 1, 1], [], []>} : vector<16x32xf32>, vector<32x512xf32>, vector<16x512xf32> -> vector<16x512xf32>
    %c0_187 = arith.constant 0 : index
    %c0_188 = arith.constant 0 : index
    %112 = vector.load %arg9[%c0_187, %c0_188] : memref<1x512xf32, #tpu.memory_space<vmem>>, vector<1x512xf32>
    %113 = vector.broadcast %112 : vector<1x512xf32> to vector<16x512xf32>
    %114 = arith.addf %111, %113 : vector<16x512xf32>
    %cst_189 = arith.constant 0.000000e+00 : f32
    %115 = vector.broadcast %cst_189 : f32 to vector<16x512xf32>
    %116 = arith.cmpf oge, %114, %115 : vector<16x512xf32>
    %117 = vector.broadcast %1 : f32 to vector<16x512xf32>
    %118 = arith.mulf %117, %114 : vector<16x512xf32>
    %119 = arith.select %116, %114, %118 : vector<16x512xi1>, vector<16x512xf32>
    %c0_190 = arith.constant 0 : index
    %c0_191 = arith.constant 0 : index
    %120 = vector.load %arg17[%c0_190, %c0_191] : memref<16x512xf32, #tpu.memory_space<vmem>>, vector<16x512xf32>
    tpu.vector_store %arg17[%c0_190, %c0_191], %119 {strides = array<i32>} : memref<16x512xf32, #tpu.memory_space<vmem>>, vector<16x512xf32>,
    %c0_192 = arith.constant 0 : index
    %c0_193 = arith.constant 0 : index
    %121 = vector.load %arg17[%c0_192, %c0_193] : memref<16x512xf32, #tpu.memory_space<vmem>>, vector<16x32xf32>
    %122 = vector.shape_cast %121 : vector<16x32xf32> to vector<4x1x4x1x32xf32>
    %c0_194 = arith.constant 0 : index
    %c0_195 = arith.constant 0 : index
    %c0_196 = arith.constant 0 : index
    %c0_197 = arith.constant 0 : index
    %c0_198 = arith.constant 0 : index
    %123 = vector.load %arg16[%c0_194, %c0_195, %c0_196, %c0_197, %c0_198] : memref<4x4x4x4x32xf32, #tpu.memory_space<vmem>>, vector<4x1x4x1x32xf32>
    tpu.vector_store %arg16[%c0_194, %c0_195, %c0_196, %c0_197, %c0_198], %122 {strides = array<i32>} : memref<4x4x4x4x32xf32, #tpu.memory_space<vmem>>, vector<4x1x4x1x32xf32>,
    %c0_199 = arith.constant 0 : index
    %c32_200 = arith.constant 32 : index
    %124 = vector.load %arg17[%c0_199, %c32_200] : memref<16x512xf32, #tpu.memory_space<vmem>>, vector<16x32xf32>
    %125 = vector.shape_cast %124 : vector<16x32xf32> to vector<4x1x4x1x32xf32>
    %c0_201 = arith.constant 0 : index
    %c0_202 = arith.constant 0 : index
    %c0_203 = arith.constant 0 : index
    %c1_204 = arith.constant 1 : index
    %c0_205 = arith.constant 0 : index
    %126 = vector.load %arg16[%c0_201, %c0_202, %c0_203, %c1_204, %c0_205] : memref<4x4x4x4x32xf32, #tpu.memory_space<vmem>>, vector<4x1x4x1x32xf32>
    tpu.vector_store %arg16[%c0_201, %c0_202, %c0_203, %c1_204, %c0_205], %125 {strides = array<i32>} : memref<4x4x4x4x32xf32, #tpu.memory_space<vmem>>, vector<4x1x4x1x32xf32>,
    %c0_206 = arith.constant 0 : index
    %c64_207 = arith.constant 64 : index
    %127 = vector.load %arg17[%c0_206, %c64_207] : memref<16x512xf32, #tpu.memory_space<vmem>>, vector<16x32xf32>
    %128 = vector.shape_cast %127 : vector<16x32xf32> to vector<4x1x4x1x32xf32>
    %c0_208 = arith.constant 0 : index
    %c0_209 = arith.constant 0 : index
    %c0_210 = arith.constant 0 : index
    %c2_211 = arith.constant 2 : index
    %c0_212 = arith.constant 0 : index
    %129 = vector.load %arg16[%c0_208, %c0_209, %c0_210, %c2_211, %c0_212] : memref<4x4x4x4x32xf32, #tpu.memory_space<vmem>>, vector<4x1x4x1x32xf32>
    tpu.vector_store %arg16[%c0_208, %c0_209, %c0_210, %c2_211, %c0_212], %128 {strides = array<i32>} : memref<4x4x4x4x32xf32, #tpu.memory_space<vmem>>, vector<4x1x4x1x32xf32>,
    %c0_213 = arith.constant 0 : index
    %c96_214 = arith.constant 96 : index
    %130 = vector.load %arg17[%c0_213, %c96_214] : memref<16x512xf32, #tpu.memory_space<vmem>>, vector<16x32xf32>
    %131 = vector.shape_cast %130 : vector<16x32xf32> to vector<4x1x4x1x32xf32>
    %c0_215 = arith.constant 0 : index
    %c0_216 = arith.constant 0 : index
    %c0_217 = arith.constant 0 : index
    %c3_218 = arith.constant 3 : index
    %c0_219 = arith.constant 0 : index
    %132 = vector.load %arg16[%c0_215, %c0_216, %c0_217, %c3_218, %c0_219] : memref<4x4x4x4x32xf32, #tpu.memory_space<vmem>>, vector<4x1x4x1x32xf32>
    tpu.vector_store %arg16[%c0_215, %c0_216, %c0_217, %c3_218, %c0_219], %131 {strides = array<i32>} : memref<4x4x4x4x32xf32, #tpu.memory_space<vmem>>, vector<4x1x4x1x32xf32>,
    %c0_220 = arith.constant 0 : index
    %c128_221 = arith.constant 128 : index
    %133 = vector.load %arg17[%c0_220, %c128_221] : memref<16x512xf32, #tpu.memory_space<vmem>>, vector<16x32xf32>
    %134 = vector.shape_cast %133 : vector<16x32xf32> to vector<4x1x4x1x32xf32>
    %c0_222 = arith.constant 0 : index
    %c1_223 = arith.constant 1 : index
    %c0_224 = arith.constant 0 : index
    %c0_225 = arith.constant 0 : index
    %c0_226 = arith.constant 0 : index
    %135 = vector.load %arg16[%c0_222, %c1_223, %c0_224, %c0_225, %c0_226] : memref<4x4x4x4x32xf32, #tpu.memory_space<vmem>>, vector<4x1x4x1x32xf32>
    tpu.vector_store %arg16[%c0_222, %c1_223, %c0_224, %c0_225, %c0_226], %134 {strides = array<i32>} : memref<4x4x4x4x32xf32, #tpu.memory_space<vmem>>, vector<4x1x4x1x32xf32>,
    %c0_227 = arith.constant 0 : index
    %c160_228 = arith.constant 160 : index
    %136 = vector.load %arg17[%c0_227, %c160_228] : memref<16x512xf32, #tpu.memory_space<vmem>>, vector<16x32xf32>
    %137 = vector.shape_cast %136 : vector<16x32xf32> to vector<4x1x4x1x32xf32>
    %c0_229 = arith.constant 0 : index
    %c1_230 = arith.constant 1 : index
    %c0_231 = arith.constant 0 : index
    %c1_232 = arith.constant 1 : index
    %c0_233 = arith.constant 0 : index
    %138 = vector.load %arg16[%c0_229, %c1_230, %c0_231, %c1_232, %c0_233] : memref<4x4x4x4x32xf32, #tpu.memory_space<vmem>>, vector<4x1x4x1x32xf32>
    tpu.vector_store %arg16[%c0_229, %c1_230, %c0_231, %c1_232, %c0_233], %137 {strides = array<i32>} : memref<4x4x4x4x32xf32, #tpu.memory_space<vmem>>, vector<4x1x4x1x32xf32>,
    %c0_234 = arith.constant 0 : index
    %c192_235 = arith.constant 192 : index
    %139 = vector.load %arg17[%c0_234, %c192_235] : memref<16x512xf32, #tpu.memory_space<vmem>>, vector<16x32xf32>
    %140 = vector.shape_cast %139 : vector<16x32xf32> to vector<4x1x4x1x32xf32>
    %c0_236 = arith.constant 0 : index
    %c1_237 = arith.constant 1 : index
    %c0_238 = arith.constant 0 : index
    %c2_239 = arith.constant 2 : index
    %c0_240 = arith.constant 0 : index
    %141 = vector.load %arg16[%c0_236, %c1_237, %c0_238, %c2_239, %c0_240] : memref<4x4x4x4x32xf32, #tpu.memory_space<vmem>>, vector<4x1x4x1x32xf32>
    tpu.vector_store %arg16[%c0_236, %c1_237, %c0_238, %c2_239, %c0_240], %140 {strides = array<i32>} : memref<4x4x4x4x32xf32, #tpu.memory_space<vmem>>, vector<4x1x4x1x32xf32>,
    %c0_241 = arith.constant 0 : index
    %c224_242 = arith.constant 224 : index
    %142 = vector.load %arg17[%c0_241, %c224_242] : memref<16x512xf32, #tpu.memory_space<vmem>>, vector<16x32xf32>
    %143 = vector.shape_cast %142 : vector<16x32xf32> to vector<4x1x4x1x32xf32>
    %c0_243 = arith.constant 0 : index
    %c1_244 = arith.constant 1 : index
    %c0_245 = arith.constant 0 : index
    %c3_246 = arith.constant 3 : index
    %c0_247 = arith.constant 0 : index
    %144 = vector.load %arg16[%c0_243, %c1_244, %c0_245, %c3_246, %c0_247] : memref<4x4x4x4x32xf32, #tpu.memory_space<vmem>>, vector<4x1x4x1x32xf32>
    tpu.vector_store %arg16[%c0_243, %c1_244, %c0_245, %c3_246, %c0_247], %143 {strides = array<i32>} : memref<4x4x4x4x32xf32, #tpu.memory_space<vmem>>, vector<4x1x4x1x32xf32>,
    %c0_248 = arith.constant 0 : index
    %c256_249 = arith.constant 256 : index
    %145 = vector.load %arg17[%c0_248, %c256_249] : memref<16x512xf32, #tpu.memory_space<vmem>>, vector<16x32xf32>
    %146 = vector.shape_cast %145 : vector<16x32xf32> to vector<4x1x4x1x32xf32>
    %c0_250 = arith.constant 0 : index
    %c2_251 = arith.constant 2 : index
    %c0_252 = arith.constant 0 : index
    %c0_253 = arith.constant 0 : index
    %c0_254 = arith.constant 0 : index
    %147 = vector.load %arg16[%c0_250, %c2_251, %c0_252, %c0_253, %c0_254] : memref<4x4x4x4x32xf32, #tpu.memory_space<vmem>>, vector<4x1x4x1x32xf32>
    tpu.vector_store %arg16[%c0_250, %c2_251, %c0_252, %c0_253, %c0_254], %146 {strides = array<i32>} : memref<4x4x4x4x32xf32, #tpu.memory_space<vmem>>, vector<4x1x4x1x32xf32>,
    %c0_255 = arith.constant 0 : index
    %c288_256 = arith.constant 288 : index
    %148 = vector.load %arg17[%c0_255, %c288_256] : memref<16x512xf32, #tpu.memory_space<vmem>>, vector<16x32xf32>
    %149 = vector.shape_cast %148 : vector<16x32xf32> to vector<4x1x4x1x32xf32>
    %c0_257 = arith.constant 0 : index
    %c2_258 = arith.constant 2 : index
    %c0_259 = arith.constant 0 : index
    %c1_260 = arith.constant 1 : index
    %c0_261 = arith.constant 0 : index
    %150 = vector.load %arg16[%c0_257, %c2_258, %c0_259, %c1_260, %c0_261] : memref<4x4x4x4x32xf32, #tpu.memory_space<vmem>>, vector<4x1x4x1x32xf32>
    tpu.vector_store %arg16[%c0_257, %c2_258, %c0_259, %c1_260, %c0_261], %149 {strides = array<i32>} : memref<4x4x4x4x32xf32, #tpu.memory_space<vmem>>, vector<4x1x4x1x32xf32>,
    %c0_262 = arith.constant 0 : index
    %c320_263 = arith.constant 320 : index
    %151 = vector.load %arg17[%c0_262, %c320_263] : memref<16x512xf32, #tpu.memory_space<vmem>>, vector<16x32xf32>
    %152 = vector.shape_cast %151 : vector<16x32xf32> to vector<4x1x4x1x32xf32>
    %c0_264 = arith.constant 0 : index
    %c2_265 = arith.constant 2 : index
    %c0_266 = arith.constant 0 : index
    %c2_267 = arith.constant 2 : index
    %c0_268 = arith.constant 0 : index
    %153 = vector.load %arg16[%c0_264, %c2_265, %c0_266, %c2_267, %c0_268] : memref<4x4x4x4x32xf32, #tpu.memory_space<vmem>>, vector<4x1x4x1x32xf32>
    tpu.vector_store %arg16[%c0_264, %c2_265, %c0_266, %c2_267, %c0_268], %152 {strides = array<i32>} : memref<4x4x4x4x32xf32, #tpu.memory_space<vmem>>, vector<4x1x4x1x32xf32>,
    %c0_269 = arith.constant 0 : index
    %c352_270 = arith.constant 352 : index
    %154 = vector.load %arg17[%c0_269, %c352_270] : memref<16x512xf32, #tpu.memory_space<vmem>>, vector<16x32xf32>
    %155 = vector.shape_cast %154 : vector<16x32xf32> to vector<4x1x4x1x32xf32>
    %c0_271 = arith.constant 0 : index
    %c2_272 = arith.constant 2 : index
    %c0_273 = arith.constant 0 : index
    %c3_274 = arith.constant 3 : index
    %c0_275 = arith.constant 0 : index
    %156 = vector.load %arg16[%c0_271, %c2_272, %c0_273, %c3_274, %c0_275] : memref<4x4x4x4x32xf32, #tpu.memory_space<vmem>>, vector<4x1x4x1x32xf32>
    tpu.vector_store %arg16[%c0_271, %c2_272, %c0_273, %c3_274, %c0_275], %155 {strides = array<i32>} : memref<4x4x4x4x32xf32, #tpu.memory_space<vmem>>, vector<4x1x4x1x32xf32>,
    %c0_276 = arith.constant 0 : index
    %c384_277 = arith.constant 384 : index
    %157 = vector.load %arg17[%c0_276, %c384_277] : memref<16x512xf32, #tpu.memory_space<vmem>>, vector<16x32xf32>
    %158 = vector.shape_cast %157 : vector<16x32xf32> to vector<4x1x4x1x32xf32>
    %c0_278 = arith.constant 0 : index
    %c3_279 = arith.constant 3 : index
    %c0_280 = arith.constant 0 : index
    %c0_281 = arith.constant 0 : index
    %c0_282 = arith.constant 0 : index
    %159 = vector.load %arg16[%c0_278, %c3_279, %c0_280, %c0_281, %c0_282] : memref<4x4x4x4x32xf32, #tpu.memory_space<vmem>>, vector<4x1x4x1x32xf32>
    tpu.vector_store %arg16[%c0_278, %c3_279, %c0_280, %c0_281, %c0_282], %158 {strides = array<i32>} : memref<4x4x4x4x32xf32, #tpu.memory_space<vmem>>, vector<4x1x4x1x32xf32>,
    %c0_283 = arith.constant 0 : index
    %c416_284 = arith.constant 416 : index
    %160 = vector.load %arg17[%c0_283, %c416_284] : memref<16x512xf32, #tpu.memory_space<vmem>>, vector<16x32xf32>
    %161 = vector.shape_cast %160 : vector<16x32xf32> to vector<4x1x4x1x32xf32>
    %c0_285 = arith.constant 0 : index
    %c3_286 = arith.constant 3 : index
    %c0_287 = arith.constant 0 : index
    %c1_288 = arith.constant 1 : index
    %c0_289 = arith.constant 0 : index
    %162 = vector.load %arg16[%c0_285, %c3_286, %c0_287, %c1_288, %c0_289] : memref<4x4x4x4x32xf32, #tpu.memory_space<vmem>>, vector<4x1x4x1x32xf32>
    tpu.vector_store %arg16[%c0_285, %c3_286, %c0_287, %c1_288, %c0_289], %161 {strides = array<i32>} : memref<4x4x4x4x32xf32, #tpu.memory_space<vmem>>, vector<4x1x4x1x32xf32>,
    %c0_290 = arith.constant 0 : index
    %c448_291 = arith.constant 448 : index
    %163 = vector.load %arg17[%c0_290, %c448_291] : memref<16x512xf32, #tpu.memory_space<vmem>>, vector<16x32xf32>
    %164 = vector.shape_cast %163 : vector<16x32xf32> to vector<4x1x4x1x32xf32>
    %c0_292 = arith.constant 0 : index
    %c3_293 = arith.constant 3 : index
    %c0_294 = arith.constant 0 : index
    %c2_295 = arith.constant 2 : index
    %c0_296 = arith.constant 0 : index
    %165 = vector.load %arg16[%c0_292, %c3_293, %c0_294, %c2_295, %c0_296] : memref<4x4x4x4x32xf32, #tpu.memory_space<vmem>>, vector<4x1x4x1x32xf32>
    tpu.vector_store %arg16[%c0_292, %c3_293, %c0_294, %c2_295, %c0_296], %164 {strides = array<i32>} : memref<4x4x4x4x32xf32, #tpu.memory_space<vmem>>, vector<4x1x4x1x32xf32>,
    %c0_297 = arith.constant 0 : index
    %c480_298 = arith.constant 480 : index
    %166 = vector.load %arg17[%c0_297, %c480_298] : memref<16x512xf32, #tpu.memory_space<vmem>>, vector<16x32xf32>
    %167 = vector.shape_cast %166 : vector<16x32xf32> to vector<4x1x4x1x32xf32>
    %c0_299 = arith.constant 0 : index
    %c3_300 = arith.constant 3 : index
    %c0_301 = arith.constant 0 : index
    %c3_302 = arith.constant 3 : index
    %c0_303 = arith.constant 0 : index
    %168 = vector.load %arg16[%c0_299, %c3_300, %c0_301, %c3_302, %c0_303] : memref<4x4x4x4x32xf32, #tpu.memory_space<vmem>>, vector<4x1x4x1x32xf32>
    tpu.vector_store %arg16[%c0_299, %c3_300, %c0_301, %c3_302, %c0_303], %167 {strides = array<i32>} : memref<4x4x4x4x32xf32, #tpu.memory_space<vmem>>, vector<4x1x4x1x32xf32>,
    %c0_304 = arith.constant 0 : index
    %c0_305 = arith.constant 0 : index
    %c0_306 = arith.constant 0 : index
    %c0_307 = arith.constant 0 : index
    %c0_308 = arith.constant 0 : index
    %169 = vector.load %arg16[%c0_304, %c0_305, %c0_306, %c0_307, %c0_308] : memref<4x4x4x4x32xf32, #tpu.memory_space<vmem>>, vector<4x4x4x4x32xf32>
    %170 = vector.shape_cast %169 : vector<4x4x4x4x32xf32> to vector<16x16x32xf32>
    %c1_309 = arith.constant 1 : index
    %c1_310 = arith.constant 1 : index
    %c0_311 = arith.constant 0 : index
    %171 = vector.load %arg14[%c1_309, %c1_310, %c0_311] : memref<18x18x32xf32, #tpu.memory_space<vmem>>, vector<16x16x32xf32>
    tpu.vector_store %arg14[%c1_309, %c1_310, %c0_311], %170 {strides = array<i32>} : memref<18x18x32xf32, #tpu.memory_space<vmem>>, vector<16x16x32xf32>,
    %c0_312 = arith.constant 0 : index
    %c0_313 = arith.constant 0 : index
    %c0_314 = arith.constant 0 : index
    %172 = vector.load %arg14[%c0_312, %c0_313, %c0_314] : memref<18x18x32xf32, #tpu.memory_space<vmem>>, vector<16x16x32xf32>
    %173 = vector.shape_cast %172 : vector<16x16x32xf32> to vector<256x32xf32>
    %c0_315 = arith.constant 0 : index
    %c0_316 = arith.constant 0 : index
    %174 = vector.load %arg15[%c0_315, %c0_316] : memref<256x288xf32, #tpu.memory_space<vmem>>, vector<256x32xf32>
    tpu.vector_store %arg15[%c0_315, %c0_316], %173 {strides = array<i32>} : memref<256x288xf32, #tpu.memory_space<vmem>>, vector<256x32xf32>,
    %c0_317 = arith.constant 0 : index
    %c1_318 = arith.constant 1 : index
    %c0_319 = arith.constant 0 : index
    %175 = vector.load %arg14[%c0_317, %c1_318, %c0_319] : memref<18x18x32xf32, #tpu.memory_space<vmem>>, vector<16x16x32xf32>
    %176 = vector.shape_cast %175 : vector<16x16x32xf32> to vector<256x32xf32>
    %c0_320 = arith.constant 0 : index
    %c32_321 = arith.constant 32 : index
    %177 = vector.load %arg15[%c0_320, %c32_321] : memref<256x288xf32, #tpu.memory_space<vmem>>, vector<256x32xf32>
    tpu.vector_store %arg15[%c0_320, %c32_321], %176 {strides = array<i32>} : memref<256x288xf32, #tpu.memory_space<vmem>>, vector<256x32xf32>,
    %c0_322 = arith.constant 0 : index
    %c2_323 = arith.constant 2 : index
    %c0_324 = arith.constant 0 : index
    %178 = vector.load %arg14[%c0_322, %c2_323, %c0_324] : memref<18x18x32xf32, #tpu.memory_space<vmem>>, vector<16x16x32xf32>
    %179 = vector.shape_cast %178 : vector<16x16x32xf32> to vector<256x32xf32>
    %c0_325 = arith.constant 0 : index
    %c64_326 = arith.constant 64 : index
    %180 = vector.load %arg15[%c0_325, %c64_326] : memref<256x288xf32, #tpu.memory_space<vmem>>, vector<256x32xf32>
    tpu.vector_store %arg15[%c0_325, %c64_326], %179 {strides = array<i32>} : memref<256x288xf32, #tpu.memory_space<vmem>>, vector<256x32xf32>,
    %c1_327 = arith.constant 1 : index
    %c0_328 = arith.constant 0 : index
    %c0_329 = arith.constant 0 : index
    %181 = vector.load %arg14[%c1_327, %c0_328, %c0_329] : memref<18x18x32xf32, #tpu.memory_space<vmem>>, vector<16x16x32xf32>
    %182 = vector.shape_cast %181 : vector<16x16x32xf32> to vector<256x32xf32>
    %c0_330 = arith.constant 0 : index
    %c96_331 = arith.constant 96 : index
    %183 = vector.load %arg15[%c0_330, %c96_331] : memref<256x288xf32, #tpu.memory_space<vmem>>, vector<256x32xf32>
    tpu.vector_store %arg15[%c0_330, %c96_331], %182 {strides = array<i32>} : memref<256x288xf32, #tpu.memory_space<vmem>>, vector<256x32xf32>,
    %c1_332 = arith.constant 1 : index
    %c1_333 = arith.constant 1 : index
    %c0_334 = arith.constant 0 : index
    %184 = vector.load %arg14[%c1_332, %c1_333, %c0_334] : memref<18x18x32xf32, #tpu.memory_space<vmem>>, vector<16x16x32xf32>
    %185 = vector.shape_cast %184 : vector<16x16x32xf32> to vector<256x32xf32>
    %c0_335 = arith.constant 0 : index
    %c128_336 = arith.constant 128 : index
    %186 = vector.load %arg15[%c0_335, %c128_336] : memref<256x288xf32, #tpu.memory_space<vmem>>, vector<256x32xf32>
    tpu.vector_store %arg15[%c0_335, %c128_336], %185 {strides = array<i32>} : memref<256x288xf32, #tpu.memory_space<vmem>>, vector<256x32xf32>,
    %c1_337 = arith.constant 1 : index
    %c2_338 = arith.constant 2 : index
    %c0_339 = arith.constant 0 : index
    %187 = vector.load %arg14[%c1_337, %c2_338, %c0_339] : memref<18x18x32xf32, #tpu.memory_space<vmem>>, vector<16x16x32xf32>
    %188 = vector.shape_cast %187 : vector<16x16x32xf32> to vector<256x32xf32>
    %c0_340 = arith.constant 0 : index
    %c160_341 = arith.constant 160 : index
    %189 = vector.load %arg15[%c0_340, %c160_341] : memref<256x288xf32, #tpu.memory_space<vmem>>, vector<256x32xf32>
    tpu.vector_store %arg15[%c0_340, %c160_341], %188 {strides = array<i32>} : memref<256x288xf32, #tpu.memory_space<vmem>>, vector<256x32xf32>,
    %c2_342 = arith.constant 2 : index
    %c0_343 = arith.constant 0 : index
    %c0_344 = arith.constant 0 : index
    %190 = vector.load %arg14[%c2_342, %c0_343, %c0_344] : memref<18x18x32xf32, #tpu.memory_space<vmem>>, vector<16x16x32xf32>
    %191 = vector.shape_cast %190 : vector<16x16x32xf32> to vector<256x32xf32>
    %c0_345 = arith.constant 0 : index
    %c192_346 = arith.constant 192 : index
    %192 = vector.load %arg15[%c0_345, %c192_346] : memref<256x288xf32, #tpu.memory_space<vmem>>, vector<256x32xf32>
    tpu.vector_store %arg15[%c0_345, %c192_346], %191 {strides = array<i32>} : memref<256x288xf32, #tpu.memory_space<vmem>>, vector<256x32xf32>,
    %c2_347 = arith.constant 2 : index
    %c1_348 = arith.constant 1 : index
    %c0_349 = arith.constant 0 : index
    %193 = vector.load %arg14[%c2_347, %c1_348, %c0_349] : memref<18x18x32xf32, #tpu.memory_space<vmem>>, vector<16x16x32xf32>
    %194 = vector.shape_cast %193 : vector<16x16x32xf32> to vector<256x32xf32>
    %c0_350 = arith.constant 0 : index
    %c224_351 = arith.constant 224 : index
    %195 = vector.load %arg15[%c0_350, %c224_351] : memref<256x288xf32, #tpu.memory_space<vmem>>, vector<256x32xf32>
    tpu.vector_store %arg15[%c0_350, %c224_351], %194 {strides = array<i32>} : memref<256x288xf32, #tpu.memory_space<vmem>>, vector<256x32xf32>,
    %c2_352 = arith.constant 2 : index
    %c2_353 = arith.constant 2 : index
    %c0_354 = arith.constant 0 : index
    %196 = vector.load %arg14[%c2_352, %c2_353, %c0_354] : memref<18x18x32xf32, #tpu.memory_space<vmem>>, vector<16x16x32xf32>
    %197 = vector.shape_cast %196 : vector<16x16x32xf32> to vector<256x32xf32>
    %c0_355 = arith.constant 0 : index
    %c256_356 = arith.constant 256 : index
    %198 = vector.load %arg15[%c0_355, %c256_356] : memref<256x288xf32, #tpu.memory_space<vmem>>, vector<256x32xf32>
    tpu.vector_store %arg15[%c0_355, %c256_356], %197 {strides = array<i32>} : memref<256x288xf32, #tpu.memory_space<vmem>>, vector<256x32xf32>,
    %c0_357 = arith.constant 0 : index
    %c0_358 = arith.constant 0 : index
    %199 = vector.load %arg15[%c0_357, %c0_358] : memref<256x288xf32, #tpu.memory_space<vmem>>, vector<256x288xf32>
    %c0_359 = arith.constant 0 : index
    %c0_360 = arith.constant 0 : index
    %200 = vector.load %arg10[%c0_359, %c0_360] : memref<288x32xf32, #tpu.memory_space<vmem>>, vector<288x32xf32>
    %cst_361 = arith.constant dense<0.000000e+00> : vector<256x32xf32>
    %201 = tpu.matmul %199, %200, %cst_361 {dimension_numbers = #tpu.dot_dimension_numbers<[1], [0], [0], [1], [0, 0, 1, 1], [], []>} : vector<256x288xf32>, vector<288x32xf32>, vector<256x32xf32> -> vector<256x32xf32>
    %c0_362 = arith.constant 0 : index
    %c0_363 = arith.constant 0 : index
    %202 = vector.load %arg11[%c0_362, %c0_363] : memref<1x32xf32, #tpu.memory_space<vmem>>, vector<1x32xf32>
    %203 = vector.broadcast %202 : vector<1x32xf32> to vector<256x32xf32>
    %204 = arith.addf %201, %203 : vector<256x32xf32>
    %c0_364 = arith.constant 0 : index
    %c0_365 = arith.constant 0 : index
    %c0_366 = arith.constant 0 : index
    %c0_367 = arith.constant 0 : index
    %205 = vector.load %arg1[%c0_364, %c0_365, %c0_366, %c0_367] : memref<1x16x16x32xf32, #tpu.memory_space<vmem>>, vector<1x16x16x32xf32>
    %206 = vector.shape_cast %205 : vector<1x16x16x32xf32> to vector<16x16x32xf32>
    %207 = vector.shape_cast %206 : vector<16x16x32xf32> to vector<256x32xf32>
    %c0_368 = arith.constant 0 : index
    %c0_369 = arith.constant 0 : index
    %c0_370 = arith.constant 0 : index
    %c0_371 = arith.constant 0 : index
    %208 = vector.load %arg2[%c0_368, %c0_369, %c0_370, %c0_371] : memref<1x16x16x32xf32, #tpu.memory_space<vmem>>, vector<1x16x16x32xf32>
    %209 = vector.shape_cast %208 : vector<1x16x16x32xf32> to vector<16x16x32xf32>
    %210 = vector.shape_cast %209 : vector<16x16x32xf32> to vector<256x32xf32>
    %211 = arith.subf %207, %210 : vector<256x32xf32>
    %212 = vector.broadcast %2 : f32 to vector<256x32xf32>
    %213 = arith.mulf %212, %211 : vector<256x32xf32>
    %214 = arith.addf %204, %213 : vector<256x32xf32>
    %215 = vector.broadcast %3 : f32 to vector<256x32xf32>
    %216 = arith.mulf %214, %215 : vector<256x32xf32>
    %217 = arith.subf %207, %216 : vector<256x32xf32>
    %218 = vector.shape_cast %217 : vector<256x32xf32> to vector<16x16x32xf32>
    %c0_372 = arith.constant 0 : index
    %c0_373 = arith.constant 0 : index
    %c0_374 = arith.constant 0 : index
    %c0_375 = arith.constant 0 : index
    %219 = vector.load %arg13[%c0_372, %c0_373, %c0_374, %c0_375] : memref<1x16x16x32xf32, #tpu.memory_space<vmem>>, vector<1x16x16x32xf32>
    %220 = vector.shape_cast %219 : vector<1x16x16x32xf32> to vector<16x16x32xf32>
    %221 = vector.shape_cast %218 : vector<16x16x32xf32> to vector<1x16x16x32xf32>
    tpu.vector_store %arg13[%c0_372, %c0_373, %c0_374, %c0_375], %221 {strides = array<i32>} : memref<1x16x16x32xf32, #tpu.memory_space<vmem>>, vector<1x16x16x32xf32>,
    return
  }
  func.func @transform_0(%arg0: i32) -> (i32, i32, i32, i32) {
    %c0_i32 = arith.constant 0 : i32
    %c0_i32_0 = arith.constant 0 : i32
    %c0_i32_1 = arith.constant 0 : i32
    %c0_i32_2 = arith.constant 0 : i32
    return %arg0, %c0_i32, %c0_i32_0, %c0_i32_1 : i32, i32, i32, i32
  }
  func.func @transform_1(%arg0: i32) -> (i32, i32, i32, i32) {
    %c0_i32 = arith.constant 0 : i32
    %c0_i32_0 = arith.constant 0 : i32
    %c0_i32_1 = arith.constant 0 : i32
    %c0_i32_2 = arith.constant 0 : i32
    return %arg0, %c0_i32, %c0_i32_0, %c0_i32_1 : i32, i32, i32, i32
  }
  func.func @transform_2(%arg0: i32) -> (i32, i32, i32) {
    %c0_i32 = arith.constant 0 : i32
    %c0_i32_0 = arith.constant 0 : i32
    %c0_i32_1 = arith.constant 0 : i32
    return %arg0, %c0_i32, %c0_i32_0 : i32, i32, i32
  }
  func.func @transform_3(%arg0: i32) -> (i32, i32) {
    %c0_i32 = arith.constant 0 : i32
    %c0_i32_0 = arith.constant 0 : i32
    %c0_i32_1 = arith.constant 0 : i32
    return %c0_i32, %c0_i32_0 : i32, i32
  }
  func.func @transform_4(%arg0: i32) -> (i32, i32) {
    %c0_i32 = arith.constant 0 : i32
    %c0_i32_0 = arith.constant 0 : i32
    %c0_i32_1 = arith.constant 0 : i32
    return %c0_i32, %c0_i32_0 : i32, i32
  }
  func.func @transform_5(%arg0: i32) -> (i32, i32) {
    %c0_i32 = arith.constant 0 : i32
    %c0_i32_0 = arith.constant 0 : i32
    %c0_i32_1 = arith.constant 0 : i32
    return %c0_i32, %c0_i32_0 : i32, i32
  }
  func.func @transform_6(%arg0: i32) -> (i32, i32) {
    %c0_i32 = arith.constant 0 : i32
    %c0_i32_0 = arith.constant 0 : i32
    %c0_i32_1 = arith.constant 0 : i32
    return %c0_i32, %c0_i32_0 : i32, i32
  }
  func.func @transform_7(%arg0: i32) -> (i32, i32) {
    %c0_i32 = arith.constant 0 : i32
    %c0_i32_0 = arith.constant 0 : i32
    %c0_i32_1 = arith.constant 0 : i32
    return %c0_i32, %c0_i32_0 : i32, i32
  }
  func.func @transform_8(%arg0: i32) -> (i32, i32) {
    %c0_i32 = arith.constant 0 : i32
    %c0_i32_0 = arith.constant 0 : i32
    %c0_i32_1 = arith.constant 0 : i32
    return %c0_i32, %c0_i32_0 : i32, i32
  }
  func.func @transform_9(%arg0: i32) -> (i32, i32) {
    %c0_i32 = arith.constant 0 : i32
    %c0_i32_0 = arith.constant 0 : i32
    %c0_i32_1 = arith.constant 0 : i32
    return %c0_i32, %c0_i32_0 : i32, i32
  }
  func.func @transform_10(%arg0: i32) -> (i32, i32) {
    %c0_i32 = arith.constant 0 : i32
    %c0_i32_0 = arith.constant 0 : i32
    %c0_i32_1 = arith.constant 0 : i32
    return %c0_i32, %c0_i32_0 : i32, i32
  }
  func.func @transform_11(%arg0: i32) -> i32 {
    %c0_i32 = arith.constant 0 : i32
    %c0_i32_0 = arith.constant 0 : i32
    return %c0_i32 : i32
  }
  func.func @transform_12(%arg0: i32) -> (i32, i32, i32, i32) {
    %c0_i32 = arith.constant 0 : i32
    %c0_i32_0 = arith.constant 0 : i32
    %c0_i32_1 = arith.constant 0 : i32
    %c0_i32_2 = arith.constant 0 : i32
    return %arg0, %c0_i32, %c0_i32_0, %c0_i32_1 : i32, i32, i32, i32
  }
}

</mosaic_0001>

<bundles_post_ra>
// kernel: tile.8
= control target key start
LH: loop header
LB: loop body
LE: loop exit
PB: predicated region body
PF: predicated region fallthrough
CT: control target
= control target key end

     0   :  { %s28_s0 = inlined_call_operand.vmem [shape: f32[32], index: 0, kind: input, shape index: {}]   ;;  %s29_s1 = inlined_call_operand.vmem [shape: f32[16,32], index: 1, kind: output, shape index: {}]  }
   0x1   :  { %v4_v0 = vld [vmem:[%s28_s0] ss:$0 sm:$0xff] }
   0x2   :  { %5 = vst [vmem:[%s29_s1] sm:$0xff] %v4_v0  ;;  %8 = vst [vmem:[%s29_s1 + $0x8] sm:$0xff] %v4_v0 }

// kernel: tile.9
= control target key start
LH: loop header
LB: loop body
LE: loop exit
PB: predicated region body
PF: predicated region fallthrough
CT: control target
= control target key end

     0   :  { %s57_s8 = smov 96   ;;  %vm3_vm0 = vcmask 261120   ;;  %s59_s15 = smov 64   ;;  %vm9_vm1 = vcmask 1048320   ;;  %vm15_vm2 = vcmask 785920   ;;  %vm21_vm3 = vcmask 523520   ;;  %s94_s0 = inlined_call_operand.vmem [shape: f32[16,32], index: 0, kind: input, shape index: {}]   ;;  %s95_s1 = inlined_call_operand.vmem [shape: f32[1,512], index: 1, kind: output, shape index: {}]  }
   0x1   :  { %v48_v0 = vld [vmem:[%s94_s0 + $0x3] ss:$4 sm:$0xf]   ;;  %v49_v1 = vld [vmem:[%s94_s0 + $0x2] ss:$4 sm:$0xf]  }
   0x2   :  { %7 = vrot.lane.b32.xlu0 %v48_v0, %s57_s8  ;;  %v50_v2 = vld [vmem:[%s94_s0 + $0x1] ss:$4 sm:$0xf]   ;;  %v2_v3 = vld [vmem:[%s94_s0] ss:$4 sm:$0xf]  }
   0x3   :  { %s58_s0 = smov 32   ;;  %4 = vst.msk [vmem:[#allocation0] ss:$8 sm:$0xf] %vm3_vm0, %v2_v3  }
   0x4   :  { %19 = vrot.lane.b32.xlu1 %v50_v2, %s58_s0 }
   0x6   :  { %13 = vrot.lane.b32.xlu0 %v49_v1, %s59_s15 }
  0x74   :  { %v8_v4 = vpop.permute.xlu0 %7  }
  0x75   :  { %10 = vst.msk [vmem:[#allocation0] ss:$8 sm:$0xf] %vm9_vm1, %v8_v4  }
  0x76   :  { %v20_v5 = vpop.permute.xlu1 %19  }
  0x78   :  { %v14_v6 = vpop.permute.xlu0 %13  }
  0x79   :  { %16 = vst.msk [vmem:[#allocation0] ss:$8 sm:$0xf] %vm15_vm2, %v14_v6  }
  0x7a   :  { %22 = vst.msk [vmem:[#allocation0] ss:$8 sm:$0xf] %vm21_vm3, %v20_v5  }
  0x81   :  { %v26_v7 = vld [vmem:[#allocation0] sm:$0x1]  ;;  %v30_v8 = vld [vmem:[#allocation0 + $0x8] sm:$0x1]  ;;  %v35_v9 = vld [vmem:[#allocation0 + $0x10] sm:$0x1] }
  0x82   :  { %28 = vst [vmem:[%s95_s1] sm:$0x1] %v26_v7  ;;  %51 = vst [vmem:[%s95_s1 + $0x1] sm:$0x1] %v30_v8  ;;  %v41_v10 = vld [vmem:[#allocation0 + $0x18] sm:$0x1] }
  0x83   :  { %52 = vst [vmem:[%s95_s1 + $0x2] sm:$0x1] %v35_v9  ;;  %53 = vst [vmem:[%s95_s1 + $0x3] sm:$0x1] %v41_v10 }

// kernel: spat_data_integrity.1
= control target key start
LH: loop header
LB: loop body
LE: loop exit
PB: predicated region body
PF: predicated region fallthrough
CT: control target
= control target key end

     0   :  { %17 = vsyncpa [#allocation7], 0  ;;  %s10992_s21 = smov 0   ;;  %s15555_s0 = inlined_call_operand.vmem [shape: f32[2,16,16,32], index: 0, kind: input, shape index: {}]   ;;  %s15556_s1 = inlined_call_operand.vmem [shape: f32[2,16,16,32], index: 1, kind: input, shape index: {}]   ;;  %s15557_s2 = inlined_call_operand.vmem [shape: f32[2,16,32], index: 2, kind: input, shape index: {}]   ;;  %s15558_s3 = inlined_call_operand.vmem [shape: f32[288,32], index: 3, kind: input, shape index: {}]   ;;  %s15559_s4 = inlined_call_operand.vmem [shape: f32[1,32], index: 4, kind: input, shape index: {}]   ;;  %s15560_s5 = inlined_call_operand.vmem [shape: f32[512,32], index: 5, kind: input, shape index: {}]   ;;  %s15561_s6 = inlined_call_operand.vmem [shape: f32[1,32], index: 6, kind: input, shape index: {}]   ;;  %s15562_s7 = inlined_call_operand.vmem [shape: f32[32,512], index: 7, kind: input, shape index: {}]   ;;  %s15563_s8 = inlined_call_operand.vmem [shape: f32[1,512], index: 8, kind: input, shape index: {}]   ;;  %s15564_s9 = inlined_call_operand.vmem [shape: f32[288,32], index: 9, kind: input, shape index: {}]   ;;  %s15565_s10 = inlined_call_operand.vmem [shape: f32[1,32], index: 10, kind: input, shape index: {}]   ;;  %s15566_s11 = inlined_call_operand.vmem [shape: f32[4], index: 11, kind: input, shape index: {}]   ;;  %s15567_s12 = inlined_call_operand.vmem [shape: f32[2,16,16,32], index: 12, kind: output, shape index: {}]  }
   0x1 LB: > { %s10998_s22 = sadd.s32 4294967295, %s10918_s21   ;;  %p10320_p0 = scmp.ge.s32.totalorder %s10918_s21, 1  ;;  %s10918_s21 = sphi %s10992_s21, %s23_s21  }
   0x2   : > { %p321_p1 = scmp.lt.s32.totalorder %s10918_s21, 3  ;;  %s358_s25 = sshll.u32 %s15566_s11, 4  ;;  %s359_s25 = int_to_ptr.vmem [resolvable:$true] %s358_s25 }
   0x3   : > { %p10873_p3 = scmp.eq.s32.totalorder %s10998_s22, 0  ;;  %s10893_s27 = scalar_lea.vmem %s359_s25, 16 }
   0x4   : > { %p11005_p2 = pnand %p10320_p0, %p321_p1  ;;  %p10894_p6 = scmp.ne.s32.totalorder %s359_s25, %s10893_s27 }
   0x5   : > { %p10901_p10 = scmp.lt.s32.totalorder %s359_s25, %s359_s25  ;;  %p10902_p11 = scmp.lt.s32.totalorder %s10893_s27, %s10893_s27 }
   0x6   : > { %p10869_p4 = pneg %p11005_p2 }
   0x7   : > { %p10903_p12 = por %p10902_p11, %p10901_p10 }
   0x8   : > { %p10870_p5 = pnand %p10873_p3, %p10869_p4 }
   0xa   : > { %p10895_p7 = pneg %p10870_p5 }
   0xc   : > { %p10896_p8 = pnand %p10895_p7, %p10894_p6 }
   0xe   : > { %p10897_p9 = pneg %p10896_p8 }
  0x10   : > { %p10904_p13 = pnand %p10903_p12, %p10897_p9 }
  0x12   : > { %10907 = shalt.err (!%p10904_p13)
}
  0x13   : > { %s10920_s28 = smov [#allocation6]   ;;  %395 = sbr.rel (%p11005_p2) target bundleno = 2284 (0x8ec), region = 68 }
  0x14   : > { %10872 = dma.vmem_to_smem (!%p10870_p5), %s359_s25, 16, %s10920_s28, [#allocation7]  }
  0x1a   : > { %10913 = dma.done.wait (%p10873_p3), [#allocation7], 16  }
  0x1b   : > { %10915 = vsyncadd (%p10873_p3), [#allocation7], 4294967280 }
  0x1c   : > { %401 = sfence }
  0x1d   : > { %vm472_vm0 = vcmask 261120   ;;  %vm475_vm1 = vcmask 254976   ;;  %vm481_vm2 = vcmask 253952   ;;  %v10921_v0 = vmov 0.0   ;;  %p448_p0 = scmp.lt.s32.totalorder %s10998_s22, 1  ;;  %v2027_v1 = vld [vmem:[%s15558_s3] sm:$0xff] }
  0x1e   : > { %473 = vst.msk [vmem:[#allocation2] sm:$0xff] %vm472_vm0, %v10921_v0  ;;  %474 = vst.msk [vmem:[#allocation2 + $0x8] sm:$0xff] %vm472_vm0, %v10921_v0  ;;  %v2028_v2 = vld [vmem:[%s15558_s3 + $0x8] sm:$0xff]  ;;  %v2029_v3 = vld [vmem:[%s15558_s3 + $0x10] sm:$0xff]  ;;  %v10922_v4 = vmov 0.0|0.0   ;;  %s10923_s15 = smov 64  }
  0x1f   : > { %478 = vst.msk [vmem:[#allocation2 + $0x198] sm:$0xff] %vm472_vm0, %v10921_v0  ;;  %479 = vst.msk [vmem:[#allocation2 + $0x1a0] sm:$0xff] %vm472_vm0, %v10921_v0  ;;  %10673 = vmatprep.subr.bf16.mxu0 %v10922_v4  ;;  %v10674_v5 = vpack.c.bf16 %v2028_v2, %v2027_v1  ;;  %v2030_v6 = vld [vmem:[%s15558_s3 + $0x18] sm:$0xff]  ;;  %s15582_s22 = smov (!%p448_p0, %s10998_s22), 1  ;;  %v2031_v8 = vld [vmem:[%s15558_s3 + $0x20] sm:$0xff]  ;;  %s10924_s16 = smov 32  }
  0x20   : > { %476 = vst.msk [vmem:[#allocation2 + $0x10] sm:$0x3] %vm475_vm1, %v10921_v0  ;;  %480 = vst.msk [vmem:[#allocation2 + $0x1a8] sm:$0x3] %vm475_vm1, %v10921_v0  ;;  %v10677_v7 = vpack.c.bf16 %v2030_v6, %v2029_v3  ;;  %s11122_s19 = sshll.u32 %s15582_s22, 8  ;;  %v2032_v9 = vld [vmem:[%s15558_s3 + $0x28] sm:$0xff] }
  0x21   : > { %484 = vst.msk [vmem:[#allocation2 + $0x30] sm:$0x1] %vm481_vm2, %v10921_v0  ;;  %483 = vst.msk [vmem:[#allocation2 + $0x18] sm:$0x1] %vm481_vm2, %v10921_v0  ;;  %10675 = vmatpush1.bf16.msra.mxu0 %v10674_v5  ;;  %s11135_s28 = scalar_lea.vmem %s15555_s0, %s11122_s19  ;;  %v2033_v13 = vld [vmem:[%s15558_s3 + $0x30] sm:$0xff]  ;;  %v10680_v16 = vpack.c.bf16 %v2032_v9, %v2031_v8  ;;  %v2034_v17 = vld [vmem:[%s15558_s3 + $0x38] sm:$0xff] }
  0x22   : > { %485 = vst.msk [vmem:[#allocation2 + $0x48] sm:$0x1] %vm481_vm2, %v10921_v0  ;;  %486 = vst.msk [vmem:[#allocation2 + $0x60] sm:$0x1] %vm481_vm2, %v10921_v0  ;;  %10676 = vmatprep.subr.bf16.mxu0 %v10922_v4  ;;  %v518_v10 = vld [vmem:[%s11135_s28] sm:$0xff]  ;;  %v519_v11 = vld [vmem:[%s11135_s28 + $0x8] sm:$0xff]  ;;  %v10683_v27 = vpack.c.bf16 %v2034_v17, %v2033_v13 }
  0x23   : > { %487 = vst.msk [vmem:[#allocation2 + $0x78] sm:$0x1] %vm481_vm2, %v10921_v0  ;;  %488 = vst.msk [vmem:[#allocation2 + $0x90] sm:$0x1] %vm481_vm2, %v10921_v0  ;;  %v520_v12 = vld [vmem:[%s11135_s28 + $0x10] sm:$0xff]  ;;  %v521_v19 = vld [vmem:[%s11135_s28 + $0x18] sm:$0xff] }
  0x24   : > { %489 = vst.msk [vmem:[#allocation2 + $0xa8] sm:$0x1] %vm481_vm2, %v10921_v0  ;;  %490 = vst.msk [vmem:[#allocation2 + $0xc0] sm:$0x1] %vm481_vm2, %v10921_v0  ;;  %v522_v20 = vld [vmem:[%s11135_s28 + $0x20] sm:$0xff]  ;;  %v523_v21 = vld [vmem:[%s11135_s28 + $0x28] sm:$0xff] }
  0x25   : > { %491 = vst.msk [vmem:[#allocation2 + $0xd8] sm:$0x1] %vm481_vm2, %v10921_v0  ;;  %492 = vst.msk [vmem:[#allocation2 + $0xf0] sm:$0x1] %vm481_vm2, %v10921_v0  ;;  %v840_v14 = vld [vmem:[#allocation2 + $0x2] sm:$0xff]  ;;  %10678 = vmatpush1.bf16.msra.mxu0 %v10677_v7  ;;  %v524_v22 = vld [vmem:[%s11135_s28 + $0x30] sm:$0xff] }
  0x26   : > { %493 = vst.msk [vmem:[#allocation2 + $0x108] sm:$0x1] %vm481_vm2, %v10921_v0  ;;  %494 = vst.msk [vmem:[#allocation2 + $0x120] sm:$0x1] %vm481_vm2, %v10921_v0  ;;  %v647_v15 = vld [vmem:[#allocation2 + $0x1] sm:$0xff]  ;;  %904 = vrot.lane.b32.xlu1 %v840_v14, %s10923_s15  ;;  %v525_v23 = vld [vmem:[%s11135_s28 + $0x38] sm:$0xff]  ;;  %10679 = vmatprep.subr.bf16.mxu0 %v10922_v4 }
  0x27   : > { %495 = vst.msk [vmem:[#allocation2 + $0x138] sm:$0x1] %vm481_vm2, %v10921_v0  ;;  %496 = vst.msk [vmem:[#allocation2 + $0x150] sm:$0x1] %vm481_vm2, %v10921_v0  ;;  %711 = vrot.lane.b32.xlu0 %v647_v15, %s10924_s16  ;;  %v648_v18 = vld [vmem:[#allocation2 + $0x9] sm:$0xff]  ;;  %v526_v24 = vld [vmem:[%s11135_s28 + $0x40] sm:$0xff] }
  0x28   : > { %497 = vst.msk [vmem:[#allocation2 + $0x168] sm:$0x1] %vm481_vm2, %v10921_v0  ;;  %498 = vst.msk [vmem:[#allocation2 + $0x180] sm:$0x1] %vm481_vm2, %v10921_v0  ;;  %v527_v25 = vld [vmem:[%s11135_s28 + $0x48] sm:$0xff]  ;;  %v528_v26 = vld [vmem:[%s11135_s28 + $0x50] sm:$0xff] }
  0x29   : > { %501 = vst.msk [vmem:[#allocation2 + $0x29] sm:$0x1] %vm481_vm2, %v10921_v0  ;;  %502 = vst.msk [vmem:[#allocation2 + $0x41] sm:$0x1] %vm481_vm2, %v10921_v0  ;;  %10681 = vmatpush1.bf16.msra.mxu0 %v10680_v16  ;;  %v2035_v28 = vld [vmem:[%s15558_s3 + $0x40] sm:$0xff]  ;;  %v2036_v29 = vld [vmem:[%s15558_s3 + $0x48] sm:$0xff] }
  0x2a   : > { %503 = vst.msk [vmem:[#allocation2 + $0x59] sm:$0x1] %vm481_vm2, %v10921_v0  ;;  %504 = vst.msk [vmem:[#allocation2 + $0x71] sm:$0x1] %vm481_vm2, %v10921_v0  ;;  %713 = vrot.lane.b32.xlu1 %v648_v18, %s10924_s16  ;;  %10682 = vmatprep.subr.bf16.mxu0 %v10922_v4  ;;  %v529_v30 = vld [vmem:[%s11135_s28 + $0x58] sm:$0xff]  ;;  %v584_v32 = vld [vmem:[#allocation2 + $0x8] sm:$0xff]  ;;  %v10686_v39 = vpack.c.bf16 %v2036_v29, %v2035_v28 }
  0x2b   : > { %505 = vst.msk [vmem:[#allocation2 + $0x89] sm:$0x1] %vm481_vm2, %v10921_v0  ;;  %506 = vst.msk [vmem:[#allocation2 + $0xa1] sm:$0x1] %vm481_vm2, %v10921_v0  ;;  %v11187_v36 = vld [vmem:[%s15558_s3 + $0x50] sm:$0xff]  ;;  %v2038_v40 = vld [vmem:[%s15558_s3 + $0x58] sm:$0xff] }
  0x2c   : > { %507 = vst.msk [vmem:[#allocation2 + $0xb9] sm:$0x1] %vm481_vm2, %v10921_v0  ;;  %508 = vst.msk [vmem:[#allocation2 + $0xd1] sm:$0x1] %vm481_vm2, %v10921_v0  ;;  %v2039_v51 = vld [vmem:[%s15558_s3 + $0x60] sm:$0xff]  ;;  %v2040_v52 = vld [vmem:[%s15558_s3 + $0x68] sm:$0xff]  ;;  %v10689_v57 = vpack.c.bf16 %v2038_v40, %v11187_v36 }
  0x2d   : > { %509 = vst.msk [vmem:[#allocation2 + $0xe9] sm:$0x1] %vm481_vm2, %v10921_v0  ;;  %510 = vst.msk [vmem:[#allocation2 + $0x101] sm:$0x1] %vm481_vm2, %v10921_v0  ;;  %10684 = vmatpush1.bf16.msra.mxu0 %v10683_v27  ;;  %s10925_s17 = smov 96   ;;  %v10692_v5 = vpack.c.bf16 %v2040_v52, %v2039_v51  ;;  %v2041_v7 = vld [vmem:[%s15558_s3 + $0x70] sm:$0xff] }
  0x2e   : > { %511 = vst.msk [vmem:[#allocation2 + $0x119] sm:$0x1] %vm481_vm2, %v10921_v0  ;;  %512 = vst.msk [vmem:[#allocation2 + $0x131] sm:$0x1] %vm481_vm2, %v10921_v0  ;;  %10685 = vmatprep.subr.bf16.mxu0 %v10922_v4  ;;  %v2042_v8 = vld [vmem:[%s15558_s3 + $0x78] sm:$0xff]  ;;  %v2043_v14 = vld [vmem:[%s15558_s3 + $0x80] sm:$0xff] }
  0x2f   : > { %513 = vst.msk [vmem:[#allocation2 + $0x149] sm:$0x1] %vm481_vm2, %v10921_v0  ;;  %514 = vst.msk [vmem:[#allocation2 + $0x161] sm:$0x1] %vm481_vm2, %v10921_v0  ;;  %v10695_v13 = vpack.c.bf16 %v2042_v8, %v2041_v7  ;;  %v530_v15 = vld [vmem:[%s11135_s28 + $0x60] sm:$0xff]  ;;  %v2044_v16 = vld [vmem:[%s15558_s3 + $0x88] sm:$0xff] }
  0x30   : > { %515 = vst.msk [vmem:[#allocation2 + $0x179] sm:$0x1] %vm481_vm2, %v10921_v0  ;;  %516 = vst.msk [vmem:[#allocation2 + $0x191] sm:$0x1] %vm481_vm2, %v10921_v0  ;;  %v2059_v17 = vld [vmem:[%s15558_s3 + $0x100] sm:$0xff]  ;;  %v2060_v18 = vld [vmem:[%s15558_s3 + $0x108] sm:$0xff] }
  0x31   : > { %482 = vst.msk [vmem:[#allocation2] sm:$0x1] %vm481_vm2, %v10921_v0  ;;  %499 = vst.msk [vmem:[#allocation2 + $0x198] sm:$0x1] %vm481_vm2, %v10921_v0  ;;  %10687 = vmatpush1.bf16.msra.mxu0 %v10686_v39  ;;  %v2045_v27 = vld [vmem:[%s15558_s3 + $0x90] sm:$0xff]  ;;  %v2046_v28 = vld [vmem:[%s15558_s3 + $0x98] sm:$0xff] }
  0x32   : > { %500 = vst.msk [vmem:[#allocation2 + $0x11] sm:$0x1] %vm481_vm2, %v10921_v0  ;;  %517 = vst.msk [vmem:[#allocation2 + $0x1a9] sm:$0x1] %vm481_vm2, %v10921_v0  ;;  %10688 = vmatprep.subr.bf16.mxu0 %v10922_v4  ;;  %v2047_v36 = vld [vmem:[%s15558_s3 + $0xa0] sm:$0xff]  ;;  %vm807_vm3 = vcmask 523520  }
  0x33   : > { %551 = vst.msk [vmem:[#allocation2 + $0x19] sm:$0xff] %vm472_vm0, %v518_v10  ;;  %552 = vst.msk [vmem:[#allocation2 + $0x21] sm:$0xff] %vm472_vm0, %v519_v11  ;;  %vm1000_vm4 = vcmask 785920   ;;  %vm1193_vm5 = vcmask 1048320   ;;  %s468_s18 = sld [smem:[#allocation6]]  ;;  %vm2809_vm7 = vcmask 257024  }
  0x34   : > { %553 = vst.msk [vmem:[#allocation2 + $0x31] sm:$0xff] %vm472_vm0, %v520_v12  ;;  %554 = vst.msk [vmem:[#allocation2 + $0x39] sm:$0xff] %vm472_vm0, %v521_v19  ;;  %v10721_v19 = vpack.c.bf16 %v2060_v18, %v2059_v17  ;;  %v534_v17 = vld [vmem:[%s11135_s28 + $0x80] sm:$0xff]  ;;  %v2053_v18 = vld [vmem:[%s15558_s3 + $0xd0] sm:$0xff]  ;;  %vm2907_vm1 = vcmask 1041409   ;;  %s10411_s23 = sshll.u32 %s15582_s22, 4 }
  0x35   : > { %555 = vst.msk [vmem:[#allocation2 + $0x49] sm:$0xff] %vm472_vm0, %v522_v20  ;;  %556 = vst.msk [vmem:[#allocation2 + $0x51] sm:$0xff] %vm472_vm0, %v523_v21  ;;  %10690 = vmatpush1.bf16.msra.mxu0 %v10689_v57  ;;  %v2061_v20 = vld [vmem:[%s15558_s3 + $0x110] sm:$0xff]  ;;  %v2062_v21 = vld [vmem:[%s15558_s3 + $0x118] sm:$0xff]  ;;  %s462_s29 = scalar_lea.vmem %s15557_s2, %s10411_s23  ;;  %s10333_s22 = sld [smem:[#allocation6 + $0x1]] }
  0x36   : > { %557 = vst.msk [vmem:[#allocation2 + $0x61] sm:$0xff] %vm472_vm0, %v524_v22  ;;  %558 = vst.msk [vmem:[#allocation2 + $0x69] sm:$0xff] %vm472_vm0, %v525_v23  ;;  %10691 = vmatprep.subr.bf16.mxu0 %v10922_v4  ;;  %10722 = vmatprep.subr.bf16.mxu1 %v10721_v19  ;;  %v10725_v29 = vpack.c.bf16 %v2062_v21, %v2061_v20  ;;  %s10334_s14 = sld [smem:[#allocation6 + $0x2]]  ;;  %s15158_s23 = scalar_lea.vmem %s15556_s1, %s11122_s19 }
  0x37   : > { %559 = vst.msk [vmem:[#allocation2 + $0x79] sm:$0xff] %vm472_vm0, %v526_v24  ;;  %560 = vst.msk [vmem:[#allocation2 + $0x81] sm:$0xff] %vm472_vm0, %v527_v25  ;;  %v10698_v24 = vpack.c.bf16 %v2044_v16, %v2043_v14  ;;  %v531_v25 = vld [vmem:[%s11135_s28 + $0x68] sm:$0xff]  ;;  %10724 = vmatpush3.bf16.msra.mxu1 %v10721_v19  ;;  %v2051_v14 = vld [vmem:[%s15558_s3 + $0xc0] sm:$0xff]  ;;  %s10335_s24 = sld [smem:[#allocation6 + $0x3]] }
  0x38   : > { %561 = vst.msk [vmem:[#allocation2 + $0x91] sm:$0xff] %vm472_vm0, %v528_v26  ;;  %562 = vst.msk [vmem:[#allocation2 + $0x99] sm:$0xff] %vm472_vm0, %v529_v30  ;;  %v583_v31 = vld [vmem:[#allocation2] sm:$0xff]  ;;  %v532_v26 = vld [vmem:[%s11135_s28 + $0x70] sm:$0xff]  ;;  %10726 = vmatprep.subr.bf16.mxu1 %v10725_v29 }
  0x39   : > { %615 = vst.msk [vmem:[#allocation3] sm:$0xff] %vm472_vm0, %v583_v31  ;;  %616 = vst.msk [vmem:[#allocation3 + $0x18] sm:$0xff] %vm472_vm0, %v584_v32  ;;  %v841_v53 = vld [vmem:[#allocation2 + $0xa] sm:$0xff]  ;;  %10693 = vmatpush1.bf16.msra.mxu0 %v10692_v5  ;;  %v533_v30 = vld [vmem:[%s11135_s28 + $0x78] sm:$0xff]  ;;  %v10701_v31 = vpack.c.bf16 %v2046_v28, %v2045_v27 }
  0x3a   : > { %v11178_v33 = vld [vmem:[#allocation2 + $0x1a] sm:$0xff]  ;;  %v11226_v47 = vld [vmem:[#allocation2 + $0x22] sm:$0xff]  ;;  %10694 = vmatprep.subr.bf16.mxu0 %v10922_v4  ;;  %563 = vst.msk [vmem:[#allocation2 + $0xa9] sm:$0xff] %vm472_vm0, %v530_v15  ;;  %564 = vst.msk [vmem:[#allocation2 + $0xb1] sm:$0xff] %vm472_vm0, %v531_v25 }
  0x3b   : > { %v11180_v34 = vld [vmem:[#allocation2 + $0x30] sm:$0xff]  ;;  %1354 = vrot.lane.b32.xlu0 %v11178_v33, %s10924_s16  ;;  %v1033_v37 = vld [vmem:[#allocation2 + $0x18] sm:$0xff]  ;;  %v11193_v38 = vld [vmem:[#allocation2 + $0x20] sm:$0xff]  ;;  %565 = vst.msk [vmem:[#allocation2 + $0xc1] sm:$0xff] %vm472_vm0, %v532_v26  ;;  %10728 = vmatpush3.bf16.msra.mxu1 %v10725_v29 }
  0x3c   : > { %v11182_v35 = vld [vmem:[#allocation2 + $0x31] sm:$0xff]  ;;  %619 = vst.msk [vmem:[#allocation3 + $0x60] sm:$0xff] %vm472_vm0, %v11180_v34  ;;  %1547 = vrot.lane.b32.xlu1 %v11180_v34, %s10923_s15  ;;  %v11206_v42 = vld [vmem:[#allocation2 + $0x39] sm:$0xff]  ;;  %617 = vst.msk [vmem:[#allocation3 + $0x30] sm:$0xff] %vm472_vm0, %v1033_v37 }
  0x3d   : > { %1260 = vst.msk [vmem:[#allocation3 + $0x38] sm:$0xff] %vm472_vm0, %v11182_v35  ;;  %v11204_v41 = vld [vmem:[#allocation2 + $0x38] sm:$0xff]  ;;  %618 = vst.msk [vmem:[#allocation3 + $0x48] sm:$0xff] %vm472_vm0, %v11193_v38  ;;  %v11216_v45 = vld [vmem:[#allocation2 + $0x48] sm:$0xff]  ;;  %10696 = vmatpush1.bf16.msra.mxu0 %v10695_v13 }
  0x3e   : > { %v11208_v43 = vld [vmem:[#allocation2 + $0x32] sm:$0xff]  ;;  %v11218_v46 = vld [vmem:[#allocation2 + $0x49] sm:$0xff]  ;;  %1261 = vst.msk [vmem:[#allocation3 + $0x50] sm:$0xff] %vm472_vm0, %v11206_v42  ;;  %620 = vst.msk [vmem:[#allocation3 + $0x78] sm:$0xff] %vm472_vm0, %v11204_v41  ;;  %10697 = vmatprep.subr.bf16.mxu0 %v10922_v4 }
  0x3f   : > { %v11214_v44 = vld [vmem:[#allocation2 + $0x19] sm:$0xff]  ;;  %1899 = vst.msk [vmem:[#allocation3 + $0x10] sm:$0xff] %vm472_vm0, %v11208_v43  ;;  %v11230_v49 = vld [vmem:[#allocation2 + $0x21] sm:$0xff]  ;;  %v11232_v50 = vld [vmem:[#allocation2 + $0x50] sm:$0xff]  ;;  %1739 = vrot.lane.b32.xlu0 %v11182_v35, %s10925_s17 }
  0x40   : > { %v11228_v48 = vld [vmem:[#allocation2 + $0x3a] sm:$0xff]  ;;  %1258 = vst.msk [vmem:[#allocation3 + $0x8] sm:$0xff] %vm472_vm0, %v11214_v44  ;;  %1262 = vst.msk [vmem:[#allocation3 + $0x68] sm:$0xff] %vm472_vm0, %v11218_v46  ;;  %v11248_v54 = vld [vmem:[#allocation2 + $0x51] sm:$0xff]  ;;  %1097 = vrot.lane.b32.xlu1 %v1033_v37, %s10925_s17 }
  0x41   : > { %621 = vst.msk [vmem:[#allocation3 + $0x90] sm:$0xff] %vm472_vm0, %v11216_v45  ;;  %v11250_v55 = vld [vmem:[#allocation2 + $0x4a] sm:$0xff]  ;;  %v11252_v56 = vld [vmem:[#allocation2 + $0x60] sm:$0xff]  ;;  %1259 = vst.msk [vmem:[#allocation3 + $0x20] sm:$0xff] %vm472_vm0, %v11230_v49  ;;  %10699 = vmatpush1.bf16.msra.mxu0 %v10698_v24 }
  0x42   : > { %1900 = vst.msk [vmem:[#allocation3 + $0x28] sm:$0xff] %vm472_vm0, %v11228_v48  ;;  %622 = vst.msk [vmem:[#allocation3 + $0xa8] sm:$0xff] %vm472_vm0, %v11232_v50  ;;  %v11262_v58 = vld [vmem:[#allocation2 + $0x61] sm:$0xff]  ;;  %v11264_v59 = vld [vmem:[#allocation2 + $0x52] sm:$0xff]  ;;  %10700 = vmatprep.subr.bf16.mxu0 %v10922_v4 }
  0x43   : > { %v11266_v60 = vld [vmem:[#allocation2 + $0x68] sm:$0xff]  ;;  %1901 = vst.msk [vmem:[#allocation3 + $0x40] sm:$0xff] %vm472_vm0, %v11250_v55  ;;  %1263 = vst.msk [vmem:[#allocation3 + $0x80] sm:$0xff] %vm472_vm0, %v11248_v54  ;;  %v11279_v63 = vld [vmem:[#allocation2 + $0x78] sm:$0xff]  ;;  %1356 = vrot.lane.b32.xlu0 %v11226_v47, %s10924_s16 }
  0x44   : > { %623 = vst.msk [vmem:[#allocation3 + $0xc0] sm:$0xff] %vm472_vm0, %v11252_v56  ;;  %v11275_v61 = vld [vmem:[#allocation2 + $0x69] sm:$0xff]  ;;  %1902 = vst.msk [vmem:[#allocation3 + $0x58] sm:$0xff] %vm472_vm0, %v11264_v59  ;;  %v11287_v1 = vld [vmem:[#allocation2 + $0x79] sm:$0xff]  ;;  %906 = vrot.lane.b32.xlu1 %v841_v53, %s10923_s15 }
  0x45   : > { %v11277_v62 = vld [vmem:[#allocation2 + $0x62] sm:$0xff]  ;;  %1264 = vst.msk [vmem:[#allocation3 + $0x98] sm:$0xff] %vm472_vm0, %v11262_v58  ;;  %624 = vst.msk [vmem:[#allocation3 + $0xd8] sm:$0xff] %vm472_vm0, %v11266_v60  ;;  %v11289_v2 = vld [vmem:[#allocation2 + $0x6a] sm:$0xff]  ;;  %10702 = vmatpush1.bf16.msra.mxu0 %v10701_v31 }
  0x46   : > { %1903 = vst.msk [vmem:[#allocation3 + $0x70] sm:$0xff] %vm472_vm0, %v11277_v62  ;;  %1265 = vst.msk [vmem:[#allocation3 + $0xb0] sm:$0xff] %vm472_vm0, %v11275_v61  ;;  %v11299_v3 = vld [vmem:[#allocation2 + $0x81] sm:$0xff]  ;;  %v11315_v9 = vld [vmem:[#allocation2 + $0x91] sm:$0xff]  ;;  %10703 = vmatprep.subr.bf16.mxu0 %v10922_v4 }
  0x47   : > { %625 = vst.msk [vmem:[#allocation3 + $0xf0] sm:$0xff] %vm472_vm0, %v11279_v63  ;;  %v11301_v6 = vld [vmem:[#allocation2 + $0x7a] sm:$0xff]  ;;  %1904 = vst.msk [vmem:[#allocation3 + $0x88] sm:$0xff] %vm472_vm0, %v11289_v2  ;;  %v11317_v10 = vld [vmem:[#allocation2 + $0x82] sm:$0xff]  ;;  %1549 = vrot.lane.b32.xlu0 %v11204_v41, %s10923_s15 }
  0x48   : > { %1266 = vst.msk [vmem:[#allocation3 + $0xc8] sm:$0xff] %vm472_vm0, %v11287_v1  ;;  %1905 = vst.msk [vmem:[#allocation3 + $0xa0] sm:$0xff] %vm472_vm0, %v11301_v6  ;;  %v11323_v11 = vld [vmem:[#allocation2 + $0x99] sm:$0xff]  ;;  %1099 = vrot.lane.b32.xlu1 %v11193_v38, %s10925_s17  ;;  %v11383_v32 = vld [vmem:[#allocation2 + $0xa9] sm:$0xff] }
  0x49   : > { %1267 = vst.msk [vmem:[#allocation3 + $0xe0] sm:$0xff] %vm472_vm0, %v11299_v3  ;;  %1906 = vst.msk [vmem:[#allocation3 + $0xb8] sm:$0xff] %vm472_vm0, %v11317_v10  ;;  %v11329_v12 = vld [vmem:[#allocation2 + $0x92] sm:$0xff]  ;;  %v11360_v22 = vld [vmem:[#allocation2 + $0x9a] sm:$0xff] }
  0x4a   : > { %1268 = vst.msk [vmem:[#allocation3 + $0xf8] sm:$0xff] %vm472_vm0, %v11315_v9  ;;  %1269 = vst.msk [vmem:[#allocation3 + $0x110] sm:$0xff] %vm472_vm0, %v11323_v11  ;;  %v1933_v23 = vld [vmem:[#allocation3 + $0x10] sm:$0xff]  ;;  %v2048_v37 = vld [vmem:[%s15558_s3 + $0xa8] sm:$0xff] }
  0x4b   : > { %1907 = vst.msk [vmem:[#allocation3 + $0xd0] sm:$0xff] %vm472_vm0, %v11329_v12  ;;  %1741 = vrot.lane.b32.xlu0 %v11206_v42, %s10925_s17  ;;  %1908 = vst.msk [vmem:[#allocation3 + $0xe8] sm:$0xff] %vm472_vm0, %v11360_v22  ;;  %10569 = vmatprep.mubr.msk.f32.mxu1 %vm472_vm0, %v1933_v23  ;;  %v2049_v38 = vld [vmem:[%s15558_s3 + $0xb0] sm:$0xff]  ;;  %v1936_v39 = vld [vmem:[#allocation3 + $0x28] sm:$0xff] }
  0x4c   : > { %715 = vrot.lane.b32.xlu1 %v11214_v44, %s10924_s16  ;;  %566 = vst.msk [vmem:[#allocation2 + $0xc9] sm:$0xff] %vm472_vm0, %v533_v30  ;;  %1270 = vst.msk [vmem:[#allocation3 + $0x128] sm:$0xff] %vm472_vm0, %v11383_v32  ;;  %v1939_v40 = vld [vmem:[#allocation3 + $0x40] sm:$0xff]  ;;  %v10704_v44 = vpack.c.bf16 %v2048_v37, %v2047_v36  ;;  %v11414_v57 = vld [vmem:[#allocation2 + $0xc0] sm:$0xff]  ;;  %10570 = vmatmul.mubr.msk.f32.vlgmr.msra.gmra.mrb[0].mxu1 %vm472_vm0, %v1936_v39 }
  0x4d   : > { %v11405_v51 = vld [vmem:[#allocation2 + $0xb0] sm:$0xff]  ;;  %v11416_v5 = vld [vmem:[#allocation2 + $0xc1] sm:$0xff]  ;;  %631 = vst.msk [vmem:[#allocation3 + $0x180] sm:$0xff] %vm472_vm0, %v11414_v57  ;;  %10572 = vmatprep.mubr.msk.f32.mxu1 %vm472_vm0, %v1939_v40  ;;  %567 = vst.msk [vmem:[#allocation2 + $0xd9] sm:$0xff] %vm472_vm0, %v534_v17 }
  0x4e   : > { %v11407_v52 = vld [vmem:[#allocation2 + $0xb1] sm:$0xff]  ;;  %630 = vst.msk [vmem:[#allocation3 + $0x168] sm:$0xff] %vm472_vm0, %v11405_v51  ;;  %1272 = vst.msk [vmem:[#allocation3 + $0x158] sm:$0xff] %vm472_vm0, %v11416_v5  ;;  %10705 = vmatpush1.bf16.msra.mxu0 %v10704_v44  ;;  %v2052_v15 = vld [vmem:[%s15558_s3 + $0xc8] sm:$0xff] }
  0x4f   : > { %1358 = vrot.lane.b32.xlu0 %v11208_v43, %s10924_s16  ;;  %v11409_v53 = vld [vmem:[#allocation2 + $0xaa] sm:$0xff]  ;;  %v11418_v7 = vld [vmem:[#allocation2 + $0xb2] sm:$0xff]  ;;  %1271 = vst.msk [vmem:[#allocation3 + $0x140] sm:$0xff] %vm472_vm0, %v11407_v52  ;;  %10706 = vmatprep.subr.bf16.mxu0 %v10922_v4  ;;  %v594_v17 = vld [vmem:[#allocation2 + $0x80] sm:$0xff] }
  0x50   : > { %908 = vrot.lane.b32.xlu1 %v11178_v33, %s10923_s15  ;;  %v2050_v33 = vld [vmem:[%s15558_s3 + $0xb8] sm:$0xff]  ;;  %1909 = vst.msk [vmem:[#allocation3 + $0x100] sm:$0xff] %vm472_vm0, %v11409_v53  ;;  %1910 = vst.msk [vmem:[#allocation3 + $0x118] sm:$0xff] %vm472_vm0, %v11418_v7  ;;  %v2056_v23 = vld [vmem:[%s15558_s3 + $0xe8] sm:$0xff] }
  0x51   : > { %v10707_v13 = vpack.c.bf16 %v2050_v33, %v2049_v38  ;;  %v2054_v19 = vld [vmem:[%s15558_s3 + $0xd8] sm:$0xff]  ;;  %v535_v28 = vld [vmem:[%s11135_s28 + $0x88] sm:$0xff]  ;;  %v536_v37 = vld [vmem:[%s11135_s28 + $0x90] sm:$0xff]  ;;  %626 = vst.msk [vmem:[#allocation3 + $0x108] sm:$0xff] %vm472_vm0, %v594_v17 }
  0x52   : > { %v10713_v21 = vpack.c.bf16 %v2054_v19, %v2053_v18  ;;  %v2058_v26 = vld [vmem:[%s15558_s3 + $0xf8] sm:$0xff]  ;;  %568 = vst.msk [vmem:[#allocation2 + $0xe1] sm:$0xff] %vm472_vm0, %v535_v28  ;;  %569 = vst.msk [vmem:[#allocation2 + $0xf1] sm:$0xff] %vm472_vm0, %v536_v37  ;;  %v538_v33 = vld [vmem:[%s11135_s28 + $0xa0] sm:$0xff] }
  0x53   : > { %1551 = vrot.lane.b32.xlu0 %v11216_v45, %s10923_s15  ;;  %v11434_v8 = vld [vmem:[#allocation2 + $0xc8] sm:$0xff]  ;;  %10708 = vmatpush1.bf16.msra.mxu0 %v10707_v13  ;;  %v1948_v31 = vld [vmem:[#allocation3 + $0x88] sm:$0xff]  ;;  %571 = vst.msk [vmem:[#allocation2 + $0x109] sm:$0xff] %vm472_vm0, %v538_v33 }
  0x54   : > { %1101 = vrot.lane.b32.xlu1 %v11180_v34, %s10925_s17  ;;  %v1942_v34 = vld [vmem:[#allocation3 + $0x58] sm:$0xff]  ;;  %632 = vst.msk [vmem:[#allocation3 + $0x198] sm:$0xff] %vm472_vm0, %v11434_v8  ;;  %10709 = vmatprep.subr.bf16.mxu0 %v10922_v4  ;;  %v11482_v24 = vld [vmem:[#allocation2 + $0xd8] sm:$0xff] }
  0x55   : > { %10573 = vmatmul.mubr.msk.f32.gmra.mrb[2].mxu1 %vm472_vm0, %v1942_v34  ;;  %v11450_v16 = vld [vmem:[#allocation2 + $0xc9] sm:$0xff]  ;;  %633 = vst.msk [vmem:[#allocation3 + $0x1b0] sm:$0xff] %vm472_vm0, %v11482_v24  ;;  %v11497_v27 = vld [vmem:[#allocation2 + $0xd9] sm:$0xff] }
  0x56   : > { %1273 = vst.msk [vmem:[#allocation3 + $0x170] sm:$0xff] %vm472_vm0, %v11450_v16  ;;  %v11467_v20 = vld [vmem:[#allocation2 + $0xc2] sm:$0xff]  ;;  %1274 = vst.msk [vmem:[#allocation3 + $0x188] sm:$0xff] %vm472_vm0, %v11497_v27  ;;  %v11508_v30 = vld [vmem:[#allocation2 + $0xca] sm:$0xff] }
  0x57   : > { %1743 = vrot.lane.b32.xlu0 %v11218_v46, %s10925_s17  ;;  %1911 = vst.msk [vmem:[#allocation3 + $0x130] sm:$0xff] %vm472_vm0, %v11467_v20  ;;  %1912 = vst.msk [vmem:[#allocation3 + $0x148] sm:$0xff] %vm472_vm0, %v11508_v30  ;;  %v539_v40 = vld [vmem:[%s11135_s28 + $0xa8] sm:$0xff]  ;;  %v540_v34 = vld [vmem:[%s11135_s28 + $0xb0] sm:$0xff] }
  0x58   : > { %717 = vrot.lane.b32.xlu1 %v11230_v49, %s10924_s16  ;;  %v10710_v49 = vpack.c.bf16 %v2052_v15, %v2051_v14  ;;  %572 = vst.msk [vmem:[#allocation2 + $0x111] sm:$0xff] %vm472_vm0, %v539_v40  ;;  %573 = vst.msk [vmem:[#allocation2 + $0x121] sm:$0xff] %vm472_vm0, %v540_v34  ;;  %v541_v19 = vld [vmem:[%s11135_s28 + $0xb8] sm:$0xff] }
  0x59   : > { %v11526_v36 = vld [vmem:[#allocation2 + $0xe1] sm:$0xff]  ;;  %574 = vst.msk [vmem:[#allocation2 + $0x129] sm:$0xff] %vm472_vm0, %v541_v19 }
  0x5a   : > { %10711 = vmatpush1.bf16.msra.mxu0 %v10710_v49  ;;  %1275 = vst.msk [vmem:[#allocation3 + $0x1a0] sm:$0xff] %vm472_vm0, %v11526_v36  ;;  %v11558_v38 = vld [vmem:[#allocation2 + $0xe2] sm:$0xff] }
  0x5b   : > { %1360 = vrot.lane.b32.xlu0 %v11228_v48, %s10924_s16  ;;  %10712 = vmatprep.subr.bf16.mxu0 %v10922_v4  ;;  %1914 = vst.msk [vmem:[#allocation3 + $0x178] sm:$0xff] %vm472_vm0, %v11558_v38 }
  0x5c   : > { %910 = vrot.lane.b32.xlu1 %v11226_v47, %s10923_s15  ;;  %v2055_v47 = vld [vmem:[%s15558_s3 + $0xe0] sm:$0xff] }
  0x5d   : > { %v10716_v25 = vpack.c.bf16 %v2056_v23, %v2055_v47  ;;  %v1963_v23 = vld [vmem:[#allocation3 + $0x100] sm:$0xff] }
  0x5e   : > { %10714 = vmatpush1.bf16.msra.mxu0 %v10713_v21  ;;  %v1972_v17 = vld [vmem:[#allocation3 + $0x148] sm:$0xff] }
  0x5f   : > { %1553 = vrot.lane.b32.xlu0 %v11232_v50, %s10923_s15  ;;  %10715 = vmatprep.subr.bf16.mxu0 %v10922_v4  ;;  %v11628_v14 = vld [vmem:[#allocation2 + $0x10a] sm:$0xff]  ;;  %v11644_v18 = vld [vmem:[#allocation2 + $0x121] sm:$0xff] }
  0x60   : > { %1103 = vrot.lane.b32.xlu1 %v11204_v41, %s10925_s17  ;;  %v2057_v41 = vld [vmem:[%s15558_s3 + $0xf0] sm:$0xff]  ;;  %1917 = vst.msk [vmem:[#allocation3 + $0x1c0] sm:$0xff] %vm472_vm0, %v11628_v14  ;;  %1280 = vst.msk [vmem:[#allocation3 + $0x218] sm:$0xff] %vm472_vm0, %v11644_v18  ;;  %v11688_v33 = vld [vmem:[#allocation2 + $0x122] sm:$0xff] }
  0x61   : > { %v10719_v29 = vpack.c.bf16 %v2058_v26, %v2057_v41  ;;  %v1966_v41 = vld [vmem:[#allocation3 + $0x118] sm:$0xff]  ;;  %1919 = vst.msk [vmem:[#allocation3 + $0x1f0] sm:$0xff] %vm472_vm0, %v11688_v33 }
  0x62   : > { %10717 = vmatpush1.bf16.msra.mxu0 %v10716_v25  ;;  %v11658_v25 = vld [vmem:[#allocation2 + $0x112] sm:$0xff] }
  0x63   : > { %1745 = vrot.lane.b32.xlu0 %v11248_v54, %s10925_s17  ;;  %10718 = vmatprep.subr.bf16.mxu0 %v10922_v4  ;;  %1918 = vst.msk [vmem:[#allocation3 + $0x1d8] sm:$0xff] %vm472_vm0, %v11658_v25 }
  0x64   : > { %719 = vrot.lane.b32.xlu1 %v11182_v35, %s10924_s16  ;;  %v1945_v35 = vld [vmem:[#allocation3 + $0x70] sm:$0xff] }
  0x65   : > { %10575 = vmatprep.mubr.msk.f32.mxu1 %vm472_vm0, %v1945_v35  ;;  %v595_v35 = vld [vmem:[#allocation2 + $0x90] sm:$0xff] }
  0x66   : > { %10720 = vmatpush1.bf16.msra.mxu0 %v10719_v29  ;;  %10576 = vmatmul.mubr.msk.f32.gmra.mrb[4].mxu1 %vm472_vm0, %v1948_v31  ;;  %627 = vst.msk [vmem:[#allocation3 + $0x120] sm:$0xff] %vm472_vm0, %v595_v35 }
  0x67   : > { %1362 = vrot.lane.b32.xlu0 %v11250_v55, %s10924_s16 }
  0x68   : > { %912 = vrot.lane.b32.xlu1 %v11208_v43, %s10923_s15  ;;  %v11518_v43 = vld [vmem:[#allocation2 + $0xe0] sm:$0xff] }
  0x69   : > { %634 = vst.msk [vmem:[#allocation3 + $0x1c8] sm:$0xff] %vm472_vm0, %v11518_v43 }
  0x6b   : > { %1555 = vrot.lane.b32.xlu0 %v11252_v56, %s10923_s15 }
  0x6c   : > { %1105 = vrot.lane.b32.xlu1 %v11216_v45, %s10925_s17  ;;  %v11536_v45 = vld [vmem:[#allocation2 + $0xda] sm:$0xff] }
  0x6d   : > { %1913 = vst.msk [vmem:[#allocation3 + $0x160] sm:$0xff] %vm472_vm0, %v11536_v45 }
  0x6f   : > { %1747 = vrot.lane.b32.xlu0 %v11262_v58, %s10925_s17 }
  0x70   : > { %721 = vrot.lane.b32.xlu1 %v11206_v42, %s10924_s16  ;;  %v11548_v42 = vld [vmem:[#allocation2 + $0xf1] sm:$0xff] }
  0x71   : > { %1276 = vst.msk [vmem:[#allocation3 + $0x1b8] sm:$0xff] %vm472_vm0, %v11548_v42 }
  0x73   : > { %1364 = vrot.lane.b32.xlu0 %v11264_v59, %s10924_s16 }
  0x74   : > { %914 = vrot.lane.b32.xlu1 %v11228_v48, %s10923_s15  ;;  %v537_v48 = vld [vmem:[%s11135_s28 + $0x98] sm:$0xff] }
  0x75   : > { %570 = vst.msk [vmem:[#allocation2 + $0xf9] sm:$0xff] %vm472_vm0, %v537_v48  ;;  %v11676_v48 = vld [vmem:[#allocation2 + $0x129] sm:$0xff] }
  0x76   : > { %1281 = vst.msk [vmem:[#allocation3 + $0x230] sm:$0xff] %vm472_vm0, %v11676_v48 }
  0x77   : > { %1557 = vrot.lane.b32.xlu0 %v11266_v60, %s10923_s15 }
  0x78   : > { %1107 = vrot.lane.b32.xlu1 %v11232_v50, %s10925_s17  ;;  %v1951_v50 = vld [vmem:[#allocation3 + $0xa0] sm:$0xff] }
  0x79   : > { %10578 = vmatprep.mubr.msk.f32.mxu1 %vm472_vm0, %v1951_v50  ;;  %v542_v50 = vld [vmem:[%s11135_s28 + $0xc0] sm:$0xff] }
  0x7a   : > { %575 = vst.msk [vmem:[#allocation2 + $0x139] sm:$0xff] %vm472_vm0, %v542_v50 }
  0x7b   : > { %1749 = vrot.lane.b32.xlu0 %v11275_v61, %s10925_s17 }
  0x7c   : > { %723 = vrot.lane.b32.xlu1 %v11218_v46, %s10924_s16  ;;  %v1954_v46 = vld [vmem:[#allocation3 + $0xb8] sm:$0xff]  ;;  %v11582_v39 = vld [vmem:[#allocation2 + $0xf2] sm:$0xff]  ;;  %v11603_v44 = vld [vmem:[#allocation2 + $0xfa] sm:$0xff] }
  0x7d   : > { %10579 = vmatmul.mubr.msk.f32.gmra.mrb[6].mxu1 %vm472_vm0, %v1954_v46  ;;  %1915 = vst.msk [vmem:[#allocation3 + $0x190] sm:$0xff] %vm472_vm0, %v11582_v39  ;;  %1916 = vst.msk [vmem:[#allocation3 + $0x1a8] sm:$0xff] %vm472_vm0, %v11603_v44 }
  0x7f   : > { %1366 = vrot.lane.b32.xlu0 %v11277_v62, %s10924_s16 }
  0x80   : > { %916 = vrot.lane.b32.xlu1 %v11250_v55, %s10923_s15  ;;  %v11572_v55 = vld [vmem:[#allocation2 + $0xf9] sm:$0xff] }
  0x81   : > { %1277 = vst.msk [vmem:[#allocation3 + $0x1d0] sm:$0xff] %vm472_vm0, %v11572_v55 }
  0x83   : > { %1559 = vrot.lane.b32.xlu0 %v11279_v63, %s10923_s15 }
  0x84   : > { %1109 = vrot.lane.b32.xlu1 %v11252_v56, %s10925_s17  ;;  %v1490_v56 = vld [vmem:[#allocation2 + $0x80] sm:$0xff] }
  0x87   : > { %1751 = vrot.lane.b32.xlu0 %v11287_v1, %s10925_s17 }
  0x88   : > { %725 = vrot.lane.b32.xlu1 %v11248_v54, %s10924_s16  ;;  %v11593_v54 = vld [vmem:[#allocation2 + $0x109] sm:$0xff] }
  0x89   : > { %1278 = vst.msk [vmem:[#allocation3 + $0x1e8] sm:$0xff] %vm472_vm0, %v11593_v54 }
  0x8b   : > { %1368 = vrot.lane.b32.xlu0 %v11289_v2, %s10924_s16 }
  0x8c   : > { %918 = vrot.lane.b32.xlu1 %v11264_v59, %s10923_s15  ;;  %v1491_v59 = vld [vmem:[#allocation2 + $0x90] sm:$0xff] }
  0x8f   : > { %1561 = vrot.lane.b32.xlu0 %v1490_v56, %s10923_s15 }
  0x90   : > { %1111 = vrot.lane.b32.xlu1 %v11266_v60, %s10925_s17  ;;  %v1957_v60 = vld [vmem:[#allocation3 + $0xd0] sm:$0xff] }
  0x91   : > { %10581 = vmatprep.mubr.msk.f32.mxu1 %vm472_vm0, %v1957_v60 }
  0x93   : > { %1753 = vrot.lane.b32.xlu0 %v11299_v3, %s10925_s17 }
  0x94   : > { %727 = vrot.lane.b32.xlu1 %v11262_v58, %s10924_s16  ;;  %v1960_v58 = vld [vmem:[#allocation3 + $0xe8] sm:$0xff] }
  0x95   : > { %10582 = vmatmul.mubr.msk.f32.gmra.mrb[8].mxu1 %vm472_vm0, %v1960_v58  ;;  %v596_v58 = vld [vmem:[#allocation2 + $0x98] sm:$0xff] }
  0x96   : > { %10584 = vmatprep.mubr.msk.f32.mxu1 %vm472_vm0, %v1963_v23  ;;  %628 = vst.msk [vmem:[#allocation3 + $0x138] sm:$0xff] %vm472_vm0, %v596_v58  ;;  %v597_v23 = vld [vmem:[#allocation2 + $0xa8] sm:$0xff] }
  0x97   : > { %1370 = vrot.lane.b32.xlu0 %v11301_v6, %s10924_s16  ;;  %629 = vst.msk [vmem:[#allocation3 + $0x150] sm:$0xff] %vm472_vm0, %v597_v23 }
  0x98   : > { %920 = vrot.lane.b32.xlu1 %v11277_v62, %s10923_s15  ;;  %v11616_v62 = vld [vmem:[#allocation2 + $0x111] sm:$0xff]  ;;  %v905_v13 = vpop.permute.xlu1 %904 }
  0x99   : > { %1279 = vst.msk [vmem:[#allocation3 + $0x200] sm:$0xff] %vm472_vm0, %v11616_v62  ;;  %10585 = vmatmul.mubr.msk.f32.gmra.mrb[10].mxu1 %vm472_vm0, %v1966_v41 }
  0x9b   : > { %1563 = vrot.lane.b32.xlu0 %v1491_v59, %s10923_s15 }
  0x9c   : > { %1113 = vrot.lane.b32.xlu1 %v11279_v63, %s10925_s17  ;;  %v11624_v63 = vld [vmem:[#allocation2 + $0x98] sm:$0xff] }
  0x9f   : > { %1755 = vrot.lane.b32.xlu0 %v11315_v9, %s10925_s17 }
  0xa0   : > { %729 = vrot.lane.b32.xlu1 %v11275_v61, %s10924_s16  ;;  %v712_v61 = vpop.permute.xlu0 %711 }
  0xa1   : > { %808 = vst.msk [vmem:[#allocation3] sm:$0xff] %vm807_vm3, %v712_v61 }
  0xa2   : > { %1001 = vst.msk [vmem:[#allocation3] sm:$0xff] %vm1000_vm4, %v905_v13  ;;  %v543_v13 = vld [vmem:[%s11135_s28 + $0xc8] sm:$0xff] }
  0xa3   : > { %1372 = vrot.lane.b32.xlu0 %v11317_v10, %s10924_s16  ;;  %576 = vst.msk [vmem:[#allocation2 + $0x141] sm:$0xff] %vm472_vm0, %v543_v13 }
  0xa4   : > { %922 = vrot.lane.b32.xlu1 %v11289_v2, %s10923_s15  ;;  %v714_v2 = vpop.permute.xlu1 %713 }
  0xa5   : > { %809 = vst.msk [vmem:[#allocation3 + $0x18] sm:$0xff] %vm807_vm3, %v714_v2  ;;  %v1969_v2 = vld [vmem:[#allocation3 + $0x130] sm:$0xff] }
  0xa6   : > { %10587 = vmatprep.mubr.msk.f32.mxu1 %vm472_vm0, %v1969_v2 }
  0xa7   : > { %1565 = vrot.lane.b32.xlu0 %v11624_v63, %s10923_s15  ;;  %10588 = vmatmul.mubr.msk.f32.gmra.mrb[12].mxu1 %vm472_vm0, %v1972_v17 }
  0xa8   : > { %1115 = vrot.lane.b32.xlu1 %v1490_v56, %s10925_s17 }
  0xaa   : > { %v11736_v41 = vld [vmem:[#allocation2 + $0x141] sm:$0xff] }
  0xab   : > { %1757 = vrot.lane.b32.xlu0 %v11323_v11, %s10925_s17  ;;  %1283 = vst.msk [vmem:[#allocation3 + $0x260] sm:$0xff] %vm472_vm0, %v11736_v41 }
  0xac   : > { %731 = vrot.lane.b32.xlu1 %v11287_v1, %s10924_s16  ;;  %v11653_v1 = vld [vmem:[#allocation2 + $0xa8] sm:$0xff] }
  0xad   : > { %v1355_v15 = vpop.permute.xlu0 %1354 }
  0xae   : > { %1450 = vst.msk [vmem:[#allocation3 + $0x8] sm:$0xff] %vm807_vm3, %v1355_v15  ;;  %v1548_v49 = vpop.permute.xlu1 %1547  ;;  %v11717_v15 = vld [vmem:[#allocation2 + $0x12a] sm:$0xff] }
  0xaf   : > { %1643 = vst.msk [vmem:[#allocation3 + $0x8] sm:$0xff] %vm1000_vm4, %v1548_v49  ;;  %1374 = vrot.lane.b32.xlu0 %v11329_v12, %s10924_s16 }
  0xb0   : > { %924 = vrot.lane.b32.xlu1 %v11301_v6, %s10923_s15  ;;  %1920 = vst.msk [vmem:[#allocation3 + $0x208] sm:$0xff] %vm472_vm0, %v11717_v15 }
  0xb1   : > { %v1740_v21 = vpop.permute.xlu0 %1739 }
  0xb2   : > { %1835 = vst.msk [vmem:[#allocation3 + $0x8] sm:$0xff] %vm1193_vm5, %v1740_v21  ;;  %v1098_v47 = vpop.permute.xlu1 %1097 }
  0xb3   : > { %1567 = vrot.lane.b32.xlu0 %v11653_v1, %s10923_s15  ;;  %1194 = vst.msk [vmem:[#allocation3] sm:$0xff] %vm1193_vm5, %v1098_v47 }
  0xb4   : > { %1117 = vrot.lane.b32.xlu1 %v1491_v59, %s10925_s17 }
  0xb5   : > { %v1357_v6 = vpop.permute.xlu0 %1356 }
  0xb6   : > { %1451 = vst.msk [vmem:[#allocation3 + $0x20] sm:$0xff] %vm807_vm3, %v1357_v6  ;;  %v907_v26 = vpop.permute.xlu1 %906  ;;  %v544_v6 = vld [vmem:[%s11135_s28 + $0xd0] sm:$0xff] }
  0xb7   : > { %1759 = vrot.lane.b32.xlu0 %v11383_v32, %s10925_s17  ;;  %1002 = vst.msk [vmem:[#allocation3 + $0x18] sm:$0xff] %vm1000_vm4, %v907_v26 }
  0xb8   : > { %733 = vrot.lane.b32.xlu1 %v11299_v3, %s10924_s16  ;;  %577 = vst.msk [vmem:[#allocation2 + $0x151] sm:$0xff] %vm472_vm0, %v544_v6  ;;  %v1981_v6 = vld [vmem:[#allocation3 + $0x190] sm:$0xff] }
  0xb9   : > { %v1550_v28 = vpop.permute.xlu0 %1549  ;;  %v1932_v29 = vld [vmem:[#allocation3 + $0x8] sm:$0xff] }
  0xba   : > { %1644 = vst.msk [vmem:[#allocation3 + $0x20] sm:$0xff] %vm1000_vm4, %v1550_v28  ;;  %2230 = vmatprep.mubr.f32.mxu0 %v1932_v29  ;;  %v1931_v31 = vld [vmem:[#allocation3] sm:$0xff]  ;;  %v1100_v37 = vpop.permute.xlu1 %1099  ;;  %v11748_v28 = vld [vmem:[#allocation2 + $0x13a] sm:$0xff] }
  0xbb   : > { %1376 = vrot.lane.b32.xlu0 %v11360_v22, %s10924_s16  ;;  %2231 = vmatmul.mubr.f32.vlgmr.msra.gmra.mrb[0].mxu0 %v1931_v31  ;;  %1195 = vst.msk [vmem:[#allocation3 + $0x18] sm:$0xff] %vm1193_vm5, %v1100_v37 }
  0xbc   : > { %926 = vrot.lane.b32.xlu1 %v11317_v10, %s10923_s15  ;;  %1921 = vst.msk [vmem:[#allocation3 + $0x220] sm:$0xff] %vm472_vm0, %v11748_v28 }
  0xbd   : > { %v1742_v3 = vpop.permute.xlu0 %1741 }
  0xbe   : > { %1836 = vst.msk [vmem:[#allocation3 + $0x20] sm:$0xff] %vm1193_vm5, %v1742_v3  ;;  %v716_v46 = vpop.permute.xlu1 %715  ;;  %v545_v3 = vld [vmem:[%s11135_s28 + $0xd8] sm:$0xff] }
  0xbf   : > { %1569 = vrot.lane.b32.xlu0 %v11405_v51, %s10923_s15  ;;  %810 = vst.msk [vmem:[#allocation3 + $0x30] sm:$0xff] %vm807_vm3, %v716_v46 }
  0xc0   : > { %1119 = vrot.lane.b32.xlu1 %v11624_v63, %s10925_s17  ;;  %v11705_v63 = vld [vmem:[#allocation2 + $0x139] sm:$0xff]  ;;  %578 = vst.msk [vmem:[#allocation2 + $0x159] sm:$0xff] %vm472_vm0, %v545_v3 }
  0xc1   : > { %v1359_v56 = vpop.permute.xlu0 %1358  ;;  %1282 = vst.msk [vmem:[#allocation3 + $0x248] sm:$0xff] %vm472_vm0, %v11705_v63 }
  0xc2   : > { %1452 = vst.msk [vmem:[#allocation3 + $0x38] sm:$0xff] %vm807_vm3, %v1359_v56  ;;  %v909_v10 = vpop.permute.xlu1 %908  ;;  %v1934_v40 = vld [vmem:[#allocation3 + $0x18] sm:$0xff]  ;;  %v1975_v56 = vld [vmem:[#allocation3 + $0x160] sm:$0xff] }
  0xc3   : > { %1761 = vrot.lane.b32.xlu0 %v11407_v52, %s10925_s17  ;;  %1003 = vst.msk [vmem:[#allocation3 + $0x30] sm:$0xff] %vm1000_vm4, %v909_v10  ;;  %v11776_v10 = vld [vmem:[#allocation2 + $0x142] sm:$0xff]  ;;  %10590 = vmatprep.mubr.msk.f32.mxu1 %vm472_vm0, %v1975_v56 }
  0xc4   : > { %735 = vrot.lane.b32.xlu1 %v11315_v9, %s10924_s16  ;;  %1922 = vst.msk [vmem:[#allocation3 + $0x238] sm:$0xff] %vm472_vm0, %v11776_v10 }
  0xc5   : > { %v1552_v59 = vpop.permute.xlu0 %1551  ;;  %v1935_v60 = vld [vmem:[#allocation3 + $0x20] sm:$0xff] }
  0xc6   : > { %1645 = vst.msk [vmem:[#allocation3 + $0x38] sm:$0xff] %vm1000_vm4, %v1552_v59  ;;  %2235 = vmatprep.mubr.f32.mxu0 %v1935_v60  ;;  %v1102_v34 = vpop.permute.xlu1 %1101 }
  0xc7   : > { %1378 = vrot.lane.b32.xlu0 %v11409_v53, %s10924_s16  ;;  %2236 = vmatmul.mubr.f32.gmra.mrb[2].mxu0 %v1934_v40  ;;  %1196 = vst.msk [vmem:[#allocation3 + $0x30] sm:$0xff] %vm1193_vm5, %v1102_v34  ;;  %v1978_v40 = vld [vmem:[#allocation3 + $0x178] sm:$0xff]  ;;  %v11794_v13 = vld [vmem:[#allocation2 + $0x159] sm:$0xff] }
  0xc8   : > { %928 = vrot.lane.b32.xlu1 %v11329_v12, %s10923_s15  ;;  %10591 = vmatmul.mubr.msk.f32.gmra.mrb[14].mxu1 %vm472_vm0, %v1978_v40  ;;  %1285 = vst.msk [vmem:[#allocation3 + $0x290] sm:$0xff] %vm472_vm0, %v11794_v13  ;;  %v11806_v2 = vld [vmem:[#allocation2 + $0x152] sm:$0xff] }
  0xc9   : > { %v1744_v9 = vpop.permute.xlu0 %1743  ;;  %1923 = vst.msk [vmem:[#allocation3 + $0x250] sm:$0xff] %vm472_vm0, %v11806_v2  ;;  %10593 = vmatprep.mubr.msk.f32.mxu1 %vm472_vm0, %v1981_v6 }
  0xca   : > { %1837 = vst.msk [vmem:[#allocation3 + $0x38] sm:$0xff] %vm1193_vm5, %v1744_v9  ;;  %v718_v61 = vpop.permute.xlu1 %717  ;;  %v546_v9 = vld [vmem:[%s11135_s28 + $0xe0] sm:$0xff] }
  0xcb   : > { %1571 = vrot.lane.b32.xlu0 %v11414_v57, %s10923_s15  ;;  %811 = vst.msk [vmem:[#allocation3 + $0x48] sm:$0xff] %vm807_vm3, %v718_v61 }
  0xcc   : > { %1121 = vrot.lane.b32.xlu1 %v11653_v1, %s10925_s17  ;;  %579 = vst.msk [vmem:[#allocation2 + $0x169] sm:$0xff] %vm472_vm0, %v546_v9  ;;  %v1987_v9 = vld [vmem:[#allocation3 + $0x1c0] sm:$0xff] }
  0xcd   : > { %v1361_v12 = vpop.permute.xlu0 %1360 }
  0xce   : > { %1453 = vst.msk [vmem:[#allocation3 + $0x50] sm:$0xff] %vm807_vm3, %v1361_v12  ;;  %v911_v49 = vpop.permute.xlu1 %910  ;;  %v1937_v19 = vld [vmem:[#allocation3 + $0x30] sm:$0xff] }
  0xcf   : > { %1763 = vrot.lane.b32.xlu0 %v11416_v5, %s10925_s17  ;;  %1004 = vst.msk [vmem:[#allocation3 + $0x48] sm:$0xff] %vm1000_vm4, %v911_v49 }
  0xd0   : > { %737 = vrot.lane.b32.xlu1 %v11323_v11, %s10924_s16 }
  0xd1   : > { %v1554_v21 = vpop.permute.xlu0 %1553  ;;  %v1938_v47 = vld [vmem:[#allocation3 + $0x38] sm:$0xff] }
  0xd2   : > { %1646 = vst.msk [vmem:[#allocation3 + $0x50] sm:$0xff] %vm1000_vm4, %v1554_v21  ;;  %2240 = vmatprep.mubr.f32.mxu0 %v1938_v47  ;;  %v1104_v1 = vpop.permute.xlu1 %1103  ;;  %v547_v47 = vld [vmem:[%s11135_s28 + $0xe8] sm:$0xff] }
  0xd3   : > { %1380 = vrot.lane.b32.xlu0 %v11418_v7, %s10924_s16  ;;  %2241 = vmatmul.mubr.f32.gmra.mrb[4].mxu0 %v1937_v19  ;;  %1197 = vst.msk [vmem:[#allocation3 + $0x48] sm:$0xff] %vm1193_vm5, %v1104_v1 }
  0xd4   : > { %930 = vrot.lane.b32.xlu1 %v11360_v22, %s10923_s15  ;;  %580 = vst.msk [vmem:[#allocation2 + $0x171] sm:$0xff] %vm472_vm0, %v547_v47 }
  0xd5   : > { %v1746_v11 = vpop.permute.xlu0 %1745 }
  0xd6   : > { %1838 = vst.msk [vmem:[#allocation3 + $0x50] sm:$0xff] %vm1193_vm5, %v1746_v11  ;;  %v720_v26 = vpop.permute.xlu1 %719  ;;  %v11836_v11 = vld [vmem:[#allocation2 + $0x15a] sm:$0xff] }
  0xd7   : > { %1573 = vrot.lane.b32.xlu0 %v11434_v8, %s10923_s15  ;;  %812 = vst.msk [vmem:[#allocation3 + $0x60] sm:$0xff] %vm807_vm3, %v720_v26  ;;  %v1984_v26 = vld [vmem:[#allocation3 + $0x1a8] sm:$0xff] }
  0xd8   : > { %1123 = vrot.lane.b32.xlu1 %v11405_v51, %s10925_s17  ;;  %v11764_v51 = vld [vmem:[#allocation2 + $0x151] sm:$0xff]  ;;  %1924 = vst.msk [vmem:[#allocation3 + $0x268] sm:$0xff] %vm472_vm0, %v11836_v11  ;;  %10594 = vmatmul.mubr.msk.f32.gmra.mrb[16].mxu1 %vm472_vm0, %v1984_v26 }
  0xd9   : > { %v1363_v29 = vpop.permute.xlu0 %1362  ;;  %1284 = vst.msk [vmem:[#allocation3 + $0x278] sm:$0xff] %vm472_vm0, %v11764_v51  ;;  %10596 = vmatprep.mubr.msk.f32.mxu1 %vm472_vm0, %v1987_v9 }
  0xda   : > { %1454 = vst.msk [vmem:[#allocation3 + $0x68] sm:$0xff] %vm807_vm3, %v1363_v29  ;;  %v913_v22 = vpop.permute.xlu1 %912  ;;  %v1940_v35 = vld [vmem:[#allocation3 + $0x48] sm:$0xff] }
  0xdb   : > { %1765 = vrot.lane.b32.xlu0 %v11450_v16, %s10925_s17  ;;  %1005 = vst.msk [vmem:[#allocation3 + $0x60] sm:$0xff] %vm1000_vm4, %v913_v22 }
  0xdc   : > { %739 = vrot.lane.b32.xlu1 %v11383_v32, %s10924_s16 }
  0xdd   : > { %v1556_v31 = vpop.permute.xlu0 %1555  ;;  %v1941_v37 = vld [vmem:[#allocation3 + $0x50] sm:$0xff] }
  0xde   : > { %1647 = vst.msk [vmem:[#allocation3 + $0x68] sm:$0xff] %vm1000_vm4, %v1556_v31  ;;  %2245 = vmatprep.mubr.f32.mxu0 %v1941_v37  ;;  %v1106_v50 = vpop.permute.xlu1 %1105  ;;  %v11854_v37 = vld [vmem:[#allocation2 + $0x171] sm:$0xff] }
  0xdf   : > { %1382 = vrot.lane.b32.xlu0 %v11467_v20, %s10924_s16  ;;  %2246 = vmatmul.mubr.f32.gmra.mrb[6].mxu0 %v1940_v35  ;;  %1198 = vst.msk [vmem:[#allocation3 + $0x60] sm:$0xff] %vm1193_vm5, %v1106_v50  ;;  %v548_v50 = vld [vmem:[%s11135_s28 + $0xf0] sm:$0xff] }
  0xe0   : > { %932 = vrot.lane.b32.xlu1 %v11409_v53, %s10923_s15  ;;  %581 = vst.msk [vmem:[#allocation2 + $0x181] sm:$0xff] %vm472_vm0, %v548_v50  ;;  %1287 = vst.msk [vmem:[#allocation3 + $0x2c0] sm:$0xff] %vm472_vm0, %v11854_v37 }
  0xe1   : > { %v1748_v32 = vpop.permute.xlu0 %1747 }
  0xe2   : > { %1839 = vst.msk [vmem:[#allocation3 + $0x68] sm:$0xff] %vm1193_vm5, %v1748_v32  ;;  %v722_v46 = vpop.permute.xlu1 %721 }
  0xe3   : > { %1575 = vrot.lane.b32.xlu0 %v11482_v24, %s10923_s15  ;;  %813 = vst.msk [vmem:[#allocation3 + $0x78] sm:$0xff] %vm807_vm3, %v722_v46  ;;  %v11868_v46 = vld [vmem:[#allocation2 + $0x16a] sm:$0xff] }
  0xe4   : > { %1125 = vrot.lane.b32.xlu1 %v11414_v57, %s10925_s17  ;;  %1925 = vst.msk [vmem:[#allocation3 + $0x280] sm:$0xff] %vm472_vm0, %v11868_v46 }
  0xe5   : > { %v1365_v53 = vpop.permute.xlu0 %1364 }
  0xe6   : > { %1455 = vst.msk [vmem:[#allocation3 + $0x80] sm:$0xff] %vm807_vm3, %v1365_v53  ;;  %v915_v59 = vpop.permute.xlu1 %914  ;;  %v1943_v60 = vld [vmem:[#allocation3 + $0x60] sm:$0xff] }
  0xe7   : > { %1767 = vrot.lane.b32.xlu0 %v11497_v27, %s10925_s17  ;;  %1006 = vst.msk [vmem:[#allocation3 + $0x78] sm:$0xff] %vm1000_vm4, %v915_v59 }
  0xe8   : > { %741 = vrot.lane.b32.xlu1 %v11407_v52, %s10924_s16 }
  0xe9   : > { %v1558_v58 = vpop.permute.xlu0 %1557  ;;  %v1944_v34 = vld [vmem:[#allocation3 + $0x68] sm:$0xff] }
  0xea   : > { %1648 = vst.msk [vmem:[#allocation3 + $0x80] sm:$0xff] %vm1000_vm4, %v1558_v58  ;;  %2250 = vmatprep.mubr.f32.mxu0 %v1944_v34  ;;  %v1108_v57 = vpop.permute.xlu1 %1107  ;;  %v549_v58 = vld [vmem:[%s11135_s28 + $0xf8] sm:$0xff] }
  0xeb   : > { %1384 = vrot.lane.b32.xlu0 %v11508_v30, %s10924_s16  ;;  %2251 = vmatmul.mubr.f32.gmra.mrb[8].mxu0 %v1943_v60  ;;  %1199 = vst.msk [vmem:[#allocation3 + $0x78] sm:$0xff] %vm1193_vm5, %v1108_v57 }
  0xec   : > { %934 = vrot.lane.b32.xlu1 %v11418_v7, %s10923_s15  ;;  %582 = vst.msk [vmem:[#allocation2 + $0x189] sm:$0xff] %vm472_vm0, %v549_v58 }
  0xed   : > { %v1750_v52 = vpop.permute.xlu0 %1749 }
  0xee   : > { %1840 = vst.msk [vmem:[#allocation3 + $0x80] sm:$0xff] %vm1193_vm5, %v1750_v52  ;;  %v724_v61 = vpop.permute.xlu1 %723  ;;  %v11898_v52 = vld [vmem:[#allocation2 + $0x172] sm:$0xff] }
  0xef   : > { %1577 = vrot.lane.b32.xlu0 %v11518_v43, %s10923_s15  ;;  %814 = vst.msk [vmem:[#allocation3 + $0x90] sm:$0xff] %vm807_vm3, %v724_v61  ;;  %v1990_v61 = vld [vmem:[#allocation3 + $0x1d8] sm:$0xff] }
  0xf0   : > { %1127 = vrot.lane.b32.xlu1 %v11434_v8, %s10925_s17  ;;  %v11822_v8 = vld [vmem:[#allocation2 + $0x169] sm:$0xff]  ;;  %1926 = vst.msk [vmem:[#allocation3 + $0x298] sm:$0xff] %vm472_vm0, %v11898_v52  ;;  %10597 = vmatmul.mubr.msk.f32.gmra.mrb[18].mxu1 %vm472_vm0, %v1990_v61 }
  0xf1   : > { %v1367_v17 = vpop.permute.xlu0 %1366  ;;  %1286 = vst.msk [vmem:[#allocation3 + $0x2a8] sm:$0xff] %vm472_vm0, %v11822_v8 }
  0xf2   : > { %1456 = vst.msk [vmem:[#allocation3 + $0x98] sm:$0xff] %vm807_vm3, %v1367_v17  ;;  %v917_v7 = vpop.permute.xlu1 %916  ;;  %v1946_v12 = vld [vmem:[#allocation3 + $0x78] sm:$0xff] }
  0xf3   : > { %1769 = vrot.lane.b32.xlu0 %v11526_v36, %s10925_s17  ;;  %1007 = vst.msk [vmem:[#allocation3 + $0x90] sm:$0xff] %vm1000_vm4, %v917_v7  ;;  %v11917_v47 = vld [vmem:[#allocation2 + $0x189] sm:$0xff] }
  0xf4   : > { %743 = vrot.lane.b32.xlu1 %v11416_v5, %s10924_s16  ;;  %v11831_v5 = vld [vmem:[#allocation2 + $0xf0] sm:$0xff]  ;;  %1289 = vst.msk [vmem:[#allocation3 + $0x2f0] sm:$0xff] %vm472_vm0, %v11917_v47 }
  0xf5   : > { %v1560_v49 = vpop.permute.xlu0 %1559  ;;  %v1947_v19 = vld [vmem:[#allocation3 + $0x80] sm:$0xff] }
  0xf6   : > { %1649 = vst.msk [vmem:[#allocation3 + $0x98] sm:$0xff] %vm1000_vm4, %v1560_v49  ;;  %2255 = vmatprep.mubr.f32.mxu0 %v1947_v19  ;;  %v1110_v21 = vpop.permute.xlu1 %1109  ;;  %v603_v19 = vld [vmem:[#allocation2 + $0xf0] sm:$0xff] }
  0xf7   : > { %1386 = vrot.lane.b32.xlu0 %v11536_v45, %s10924_s16  ;;  %2256 = vmatmul.mubr.f32.gmra.mrb[10].mxu0 %v1946_v12  ;;  %1200 = vst.msk [vmem:[#allocation3 + $0x90] sm:$0xff] %vm1193_vm5, %v1110_v21 }
  0xf8   : > { %936 = vrot.lane.b32.xlu1 %v11467_v20, %s10923_s15  ;;  %635 = vst.msk [vmem:[#allocation3 + $0x1e0] sm:$0xff] %vm472_vm0, %v603_v19  ;;  %v12005_v19 = vld [vmem:[#allocation2 + $0x138] sm:$0xff] }
  0xf9   : > { %v1752_v23 = vpop.permute.xlu0 %1751 }
  0xfa   : > { %1841 = vst.msk [vmem:[#allocation3 + $0x98] sm:$0xff] %vm1193_vm5, %v1752_v23  ;;  %v726_v1 = vpop.permute.xlu1 %725 }
  0xfb   : > { %1579 = vrot.lane.b32.xlu0 %v11831_v5, %s10923_s15  ;;  %815 = vst.msk [vmem:[#allocation3 + $0xa8] sm:$0xff] %vm807_vm3, %v726_v1  ;;  %v11929_v1 = vld [vmem:[#allocation2 + $0x182] sm:$0xff] }
  0xfc   : > { %1129 = vrot.lane.b32.xlu1 %v11482_v24, %s10925_s17  ;;  %1927 = vst.msk [vmem:[#allocation3 + $0x2b0] sm:$0xff] %vm472_vm0, %v11929_v1 }
  0xfd   : > { %v1369_v20 = vpop.permute.xlu0 %1368 }
  0xfe   : > { %1457 = vst.msk [vmem:[#allocation3 + $0xb0] sm:$0xff] %vm807_vm3, %v1369_v20  ;;  %v919_v29 = vpop.permute.xlu1 %918  ;;  %v1949_v22 = vld [vmem:[#allocation3 + $0x90] sm:$0xff] }
  0xff   : > { %1771 = vrot.lane.b32.xlu0 %v11548_v42, %s10925_s17  ;;  %1008 = vst.msk [vmem:[#allocation3 + $0xa8] sm:$0xff] %vm1000_vm4, %v919_v29 }
 0x100   : > { %745 = vrot.lane.b32.xlu1 %v11450_v16, %s10924_s16  ;;  %v11863_v16 = vld [vmem:[#allocation2 + $0xf8] sm:$0xff] }
 0x101   : > { %v1562_v35 = vpop.permute.xlu0 %1561  ;;  %v1950_v31 = vld [vmem:[#allocation3 + $0x98] sm:$0xff] }
 0x102   : > { %1650 = vst.msk [vmem:[#allocation3 + $0xb0] sm:$0xff] %vm1000_vm4, %v1562_v35  ;;  %2260 = vmatprep.mubr.f32.mxu0 %v1950_v31  ;;  %v1112_v24 = vpop.permute.xlu1 %1111  ;;  %v11949_v31 = vld [vmem:[#allocation2 + $0x120] sm:$0xff] }
 0x103   : > { %1388 = vrot.lane.b32.xlu0 %v11558_v38, %s10924_s16  ;;  %2261 = vmatmul.mubr.f32.gmra.mrb[12].mxu0 %v1949_v22  ;;  %1201 = vst.msk [vmem:[#allocation3 + $0xa8] sm:$0xff] %vm1193_vm5, %v1112_v24  ;;  %v604_v22 = vld [vmem:[#allocation2 + $0xf8] sm:$0xff] }
 0x104   : > { %938 = vrot.lane.b32.xlu1 %v11508_v30, %s10923_s15  ;;  %636 = vst.msk [vmem:[#allocation3 + $0x1f8] sm:$0xff] %vm472_vm0, %v604_v22  ;;  %v607_v22 = vld [vmem:[#allocation2 + $0x120] sm:$0xff] }
 0x105   : > { %v1754_v3 = vpop.permute.xlu0 %1753  ;;  %639 = vst.msk [vmem:[#allocation3 + $0x240] sm:$0xff] %vm472_vm0, %v607_v22  ;;  %v2011_v22 = vld [vmem:[#allocation3 + $0x280] sm:$0xff] }
 0x106   : > { %1842 = vst.msk [vmem:[#allocation3 + $0xb0] sm:$0xff] %vm1193_vm5, %v1754_v3  ;;  %v728_v32 = vpop.permute.xlu1 %727  ;;  %v1993_v3 = vld [vmem:[#allocation3 + $0x1f0] sm:$0xff] }
 0x107   : > { %1581 = vrot.lane.b32.xlu0 %v11863_v16, %s10923_s15  ;;  %816 = vst.msk [vmem:[#allocation3 + $0xc0] sm:$0xff] %vm807_vm3, %v728_v32  ;;  %v11958_v32 = vld [vmem:[#allocation2 + $0x18a] sm:$0xff]  ;;  %10599 = vmatprep.mubr.msk.f32.mxu1 %vm472_vm0, %v1993_v3 }
 0x108   : > { %1131 = vrot.lane.b32.xlu1 %v11518_v43, %s10925_s17  ;;  %v11884_v43 = vld [vmem:[#allocation2 + $0x181] sm:$0xff]  ;;  %1928 = vst.msk [vmem:[#allocation3 + $0x2c8] sm:$0xff] %vm472_vm0, %v11958_v32 }
 0x109   : > { %v1371_v56 = vpop.permute.xlu0 %1370  ;;  %1288 = vst.msk [vmem:[#allocation3 + $0x2d8] sm:$0xff] %vm472_vm0, %v11884_v43 }
 0x10a   : > { %1458 = vst.msk [vmem:[#allocation3 + $0xc8] sm:$0xff] %vm807_vm3, %v1371_v56  ;;  %v921_v30 = vpop.permute.xlu1 %920  ;;  %v1952_v40 = vld [vmem:[#allocation3 + $0xa8] sm:$0xff] }
 0x10b   : > { %1773 = vrot.lane.b32.xlu0 %v11572_v55, %s10925_s17  ;;  %1009 = vst.msk [vmem:[#allocation3 + $0xc0] sm:$0xff] %vm1000_vm4, %v921_v30  ;;  %v1996_v56 = vld [vmem:[#allocation3 + $0x208] sm:$0xff] }
 0x10c   : > { %747 = vrot.lane.b32.xlu1 %v11497_v27, %s10924_s16  ;;  %v11893_v27 = vld [vmem:[#allocation2 + $0x108] sm:$0xff]  ;;  %10600 = vmatmul.mubr.msk.f32.gmra.mrb[20].mxu1 %vm472_vm0, %v1996_v56 }
 0x10d   : > { %v1564_v53 = vpop.permute.xlu0 %1563  ;;  %v1953_v59 = vld [vmem:[#allocation3 + $0xb0] sm:$0xff] }
 0x10e   : > { %1651 = vst.msk [vmem:[#allocation3 + $0xc8] sm:$0xff] %vm1000_vm4, %v1564_v53  ;;  %2265 = vmatprep.mubr.f32.mxu0 %v1953_v59  ;;  %v1114_v60 = vpop.permute.xlu1 %1113 }
 0x10f   : > { %1390 = vrot.lane.b32.xlu0 %v11582_v39, %s10924_s16  ;;  %2266 = vmatmul.mubr.f32.gmra.mrb[14].mxu0 %v1952_v40  ;;  %1202 = vst.msk [vmem:[#allocation3 + $0xc0] sm:$0xff] %vm1193_vm5, %v1114_v60 }
 0x110   : > { %940 = vrot.lane.b32.xlu1 %v11536_v45, %s10923_s15 }
 0x111   : > { %v1756_v34 = vpop.permute.xlu0 %1755 }
 0x112   : > { %1843 = vst.msk [vmem:[#allocation3 + $0xc8] sm:$0xff] %vm1193_vm5, %v1756_v34  ;;  %v730_v57 = vpop.permute.xlu1 %729 }
 0x113   : > { %1583 = vrot.lane.b32.xlu0 %v11893_v27, %s10923_s15  ;;  %817 = vst.msk [vmem:[#allocation3 + $0xd8] sm:$0xff] %vm807_vm3, %v730_v57  ;;  %v11984_v57 = vld [vmem:[#allocation2 + $0x128] sm:$0xff] }
 0x114   : > { %1133 = vrot.lane.b32.xlu1 %v11831_v5, %s10925_s17 }
 0x115   : > { %v1373_v45 = vpop.permute.xlu0 %1372 }
 0x116   : > { %1459 = vst.msk [vmem:[#allocation3 + $0xe0] sm:$0xff] %vm807_vm3, %v1373_v45  ;;  %v923_v17 = vpop.permute.xlu1 %922  ;;  %v1955_v7 = vld [vmem:[#allocation3 + $0xc0] sm:$0xff] }
 0x117   : > { %1775 = vrot.lane.b32.xlu0 %v11593_v54, %s10925_s17  ;;  %1010 = vst.msk [vmem:[#allocation3 + $0xd8] sm:$0xff] %vm1000_vm4, %v923_v17 }
 0x118   : > { %749 = vrot.lane.b32.xlu1 %v11526_v36, %s10924_s16  ;;  %v11924_v36 = vld [vmem:[#allocation2 + $0x110] sm:$0xff] }
 0x119   : > { %v1566_v12 = vpop.permute.xlu0 %1565  ;;  %v1956_v49 = vld [vmem:[#allocation3 + $0xc8] sm:$0xff] }
 0x11a   : > { %1652 = vst.msk [vmem:[#allocation3 + $0xe0] sm:$0xff] %vm1000_vm4, %v1566_v12  ;;  %2270 = vmatprep.mubr.f32.mxu0 %v1956_v49  ;;  %v1116_v21 = vpop.permute.xlu1 %1115  ;;  %v606_v12 = vld [vmem:[#allocation2 + $0x110] sm:$0xff] }
 0x11b   : > { %1392 = vrot.lane.b32.xlu0 %v11603_v44, %s10924_s16  ;;  %2271 = vmatmul.mubr.f32.gmra.mrb[16].mxu0 %v1955_v7  ;;  %1203 = vst.msk [vmem:[#allocation3 + $0xd8] sm:$0xff] %vm1193_vm5, %v1116_v21 }
 0x11c   : > { %942 = vrot.lane.b32.xlu1 %v11558_v38, %s10923_s15  ;;  %638 = vst.msk [vmem:[#allocation3 + $0x228] sm:$0xff] %vm472_vm0, %v606_v12  ;;  %v12080_v12 = vld [vmem:[#allocation2 + $0x158] sm:$0xff] }
 0x11d   : > { %v1758_v5 = vpop.permute.xlu0 %1757 }
 0x11e   : > { %1844 = vst.msk [vmem:[#allocation3 + $0xe0] sm:$0xff] %vm1193_vm5, %v1758_v5  ;;  %v732_v23 = vpop.permute.xlu1 %731 }
 0x11f   : > { %1585 = vrot.lane.b32.xlu0 %v11924_v36, %s10923_s15  ;;  %818 = vst.msk [vmem:[#allocation3 + $0xf0] sm:$0xff] %vm807_vm3, %v732_v23  ;;  %v1999_v23 = vld [vmem:[#allocation3 + $0x220] sm:$0xff] }
 0x120   : > { %1135 = vrot.lane.b32.xlu1 %v11863_v16, %s10925_s17  ;;  %10602 = vmatprep.mubr.msk.f32.mxu1 %vm472_vm0, %v1999_v23 }
 0x121   : > { %v1375_v6 = vpop.permute.xlu0 %1374 }
 0x122   : > { %1460 = vst.msk [vmem:[#allocation3 + $0xf8] sm:$0xff] %vm807_vm3, %v1375_v6  ;;  %v925_v38 = vpop.permute.xlu1 %924  ;;  %v1958_v26 = vld [vmem:[#allocation3 + $0xd8] sm:$0xff] }
 0x123   : > { %1777 = vrot.lane.b32.xlu0 %v11616_v62, %s10925_s17  ;;  %1011 = vst.msk [vmem:[#allocation3 + $0xf0] sm:$0xff] %vm1000_vm4, %v925_v38  ;;  %v2002_v6 = vld [vmem:[#allocation3 + $0x238] sm:$0xff] }
 0x124   : > { %751 = vrot.lane.b32.xlu1 %v11548_v42, %s10924_s16  ;;  %v11953_v42 = vpop.f32.mrb[0].mxu1  ;;  %10603 = vmatmul.mubr.msk.f32.gmra.mrb[22].mxu1 %vm472_vm0, %v2002_v6  ;;  %v610_v6 = vld [vmem:[#allocation2 + $0x140] sm:$0xff] }
 0x125   : > { %v1568_v20 = vpop.permute.xlu0 %1567  ;;  %v1959_v29 = vld [vmem:[#allocation3 + $0xe0] sm:$0xff]  ;;  %v11955_v50 = vpop.f32.mrb[1].mxu1  ;;  %642 = vst.msk [vmem:[#allocation3 + $0x288] sm:$0xff] %vm472_vm0, %v610_v6  ;;  %v613_v6 = vld [vmem:[#allocation2 + $0x168] sm:$0xff] }
 0x126   : > { %1653 = vst.msk [vmem:[#allocation3 + $0xf8] sm:$0xff] %vm1000_vm4, %v1568_v20  ;;  %2275 = vmatprep.mubr.f32.mxu0 %v1959_v29  ;;  %v1118_v35 = vpop.permute.xlu1 %1117 }
 0x127   : > { %1394 = vrot.lane.b32.xlu0 %v11628_v14, %s10924_s16  ;;  %2276 = vmatmul.mubr.f32.gmra.mrb[18].mxu0 %v1958_v26  ;;  %1204 = vst.msk [vmem:[#allocation3 + $0xf0] sm:$0xff] %vm1193_vm5, %v1118_v35 }
 0x128   : > { %944 = vrot.lane.b32.xlu1 %v11582_v39, %s10923_s15  ;;  %v11968_v39 = vpop.f32.mrb[2].mxu1  ;;  %645 = vst.msk [vmem:[#allocation3 + $0x2d0] sm:$0xff] %vm472_vm0, %v613_v6 }
 0x129   : > { %v1760_v24 = vpop.permute.xlu0 %1759  ;;  %v11971_v40 = vpop.f32.mrb[3].mxu1 }
 0x12a   : > { %1845 = vst.msk [vmem:[#allocation3 + $0xf8] sm:$0xff] %vm1193_vm5, %v1760_v24  ;;  %v734_v16 = vpop.permute.xlu1 %733 }
 0x12b   : > { %1587 = vrot.lane.b32.xlu0 %v11949_v31, %s10923_s15  ;;  %819 = vst.msk [vmem:[#allocation3 + $0x108] sm:$0xff] %vm807_vm3, %v734_v16 }
 0x12c   : > { %1137 = vrot.lane.b32.xlu1 %v11893_v27, %s10925_s17  ;;  %v605_v27 = vld [vmem:[#allocation2 + $0x108] sm:$0xff] }
 0x12d   : > { %v1377_v30 = vpop.permute.xlu0 %1376  ;;  %637 = vst.msk [vmem:[#allocation3 + $0x210] sm:$0xff] %vm472_vm0, %v605_v27 }
 0x12e   : > { %1461 = vst.msk [vmem:[#allocation3 + $0x110] sm:$0xff] %vm807_vm3, %v1377_v30  ;;  %v927_v53 = vpop.permute.xlu1 %926  ;;  %v1961_v59 = vld [vmem:[#allocation3 + $0xf0] sm:$0xff] }
 0x12f   : > { %1779 = vrot.lane.b32.xlu0 %v11644_v18, %s10925_s17  ;;  %1012 = vst.msk [vmem:[#allocation3 + $0x108] sm:$0xff] %vm1000_vm4, %v927_v53  ;;  %v608_v53 = vld [vmem:[#allocation2 + $0x128] sm:$0xff] }
 0x130   : > { %753 = vrot.lane.b32.xlu1 %v11572_v55, %s10924_s16  ;;  %640 = vst.msk [vmem:[#allocation3 + $0x258] sm:$0xff] %vm472_vm0, %v608_v53 }
 0x131   : > { %v1570_v60 = vpop.permute.xlu0 %1569  ;;  %v1962_v58 = vld [vmem:[#allocation3 + $0xf8] sm:$0xff] }
 0x132   : > { %1654 = vst.msk [vmem:[#allocation3 + $0x110] sm:$0xff] %vm1000_vm4, %v1570_v60  ;;  %2280 = vmatprep.mubr.f32.mxu0 %v1962_v58  ;;  %v1120_v34 = vpop.permute.xlu1 %1119  ;;  %v12055_v58 = vld [vmem:[#allocation2 + $0x150] sm:$0xff] }
 0x133   : > { %1396 = vrot.lane.b32.xlu0 %v11658_v25, %s10924_s16  ;;  %2281 = vmatmul.mubr.f32.gmra.mrb[20].mxu0 %v1961_v59  ;;  %1205 = vst.msk [vmem:[#allocation3 + $0x108] sm:$0xff] %vm1193_vm5, %v1120_v34 }
 0x134   : > { %946 = vrot.lane.b32.xlu1 %v11603_v44, %s10923_s15 }
 0x135   : > { %v1762_v55 = vpop.permute.xlu0 %1761 }
 0x136   : > { %1846 = vst.msk [vmem:[#allocation3 + $0x110] sm:$0xff] %vm1193_vm5, %v1762_v55  ;;  %v736_v9 = vpop.permute.xlu1 %735  ;;  %v2008_v55 = vld [vmem:[#allocation3 + $0x268] sm:$0xff] }
 0x137   : > { %1589 = vrot.lane.b32.xlu0 %v11984_v57, %s10923_s15  ;;  %820 = vst.msk [vmem:[#allocation3 + $0x120] sm:$0xff] %vm807_vm3, %v736_v9 }
 0x138   : > { %1139 = vrot.lane.b32.xlu1 %v11924_v36, %s10925_s17 }
 0x139   : > { %v1379_v61 = vpop.permute.xlu0 %1378 }
 0x13a   : > { %1462 = vst.msk [vmem:[#allocation3 + $0x128] sm:$0xff] %vm807_vm3, %v1379_v61  ;;  %v929_v45 = vpop.permute.xlu1 %928  ;;  %v1964_v44 = vld [vmem:[#allocation3 + $0x108] sm:$0xff] }
 0x13b   : > { %1781 = vrot.lane.b32.xlu0 %v11676_v48, %s10925_s17  ;;  %1013 = vst.msk [vmem:[#allocation3 + $0x120] sm:$0xff] %vm1000_vm4, %v929_v45 }
 0x13c   : > { %755 = vrot.lane.b32.xlu1 %v11593_v54, %s10924_s16  ;;  %v12009_v54 = vpop.f32.mrb[4].mxu1 }
 0x13d   : > { %v1572_v17 = vpop.permute.xlu0 %1571  ;;  %v1965_v7 = vld [vmem:[#allocation3 + $0x110] sm:$0xff]  ;;  %v12011_v36 = vpop.f32.mrb[5].mxu1 }
 0x13e   : > { %1655 = vst.msk [vmem:[#allocation3 + $0x128] sm:$0xff] %vm1000_vm4, %v1572_v17  ;;  %2285 = vmatprep.mubr.f32.mxu0 %v1965_v7  ;;  %v1122_v49 = vpop.permute.xlu1 %1121  ;;  %v609_v17 = vld [vmem:[#allocation2 + $0x138] sm:$0xff] }
 0x13f   : > { %1398 = vrot.lane.b32.xlu0 %v11688_v33, %s10924_s16  ;;  %2286 = vmatmul.mubr.f32.gmra.mrb[22].mxu0 %v1964_v44  ;;  %1206 = vst.msk [vmem:[#allocation3 + $0x120] sm:$0xff] %vm1193_vm5, %v1122_v49 }
 0x140   : > { %948 = vrot.lane.b32.xlu1 %v11628_v14, %s10923_s15  ;;  %641 = vst.msk [vmem:[#allocation3 + $0x270] sm:$0xff] %vm472_vm0, %v609_v17 }
 0x141   : > { %v1764_v21 = vpop.permute.xlu0 %1763 }
 0x142   : > { %1847 = vst.msk [vmem:[#allocation3 + $0x128] sm:$0xff] %vm1193_vm5, %v1764_v21  ;;  %v738_v5 = vpop.permute.xlu1 %737 }
 0x143   : > { %1591 = vrot.lane.b32.xlu0 %v12005_v19, %s10923_s15  ;;  %821 = vst.msk [vmem:[#allocation3 + $0x138] sm:$0xff] %vm807_vm3, %v738_v5 }
 0x144   : > { %1141 = vrot.lane.b32.xlu1 %v11949_v31, %s10925_s17  ;;  %v12032_v31 = vld [vmem:[#allocation2 + $0x140] sm:$0xff] }
 0x145   : > { %v1381_v14 = vpop.permute.xlu0 %1380 }
 0x146   : > { %1463 = vst.msk [vmem:[#allocation3 + $0x140] sm:$0xff] %vm807_vm3, %v1381_v14  ;;  %v931_v38 = vpop.permute.xlu1 %930  ;;  %v1967_v26 = vld [vmem:[#allocation3 + $0x120] sm:$0xff] }
 0x147   : > { %1783 = vrot.lane.b32.xlu0 %v11705_v63, %s10925_s17  ;;  %1014 = vst.msk [vmem:[#allocation3 + $0x138] sm:$0xff] %vm1000_vm4, %v931_v38 }
 0x148   : > { %757 = vrot.lane.b32.xlu1 %v11616_v62, %s10924_s16 }
 0x149   : > { %v1574_v20 = vpop.permute.xlu0 %1573  ;;  %v1968_v29 = vld [vmem:[#allocation3 + $0x128] sm:$0xff] }
 0x14a   : > { %1656 = vst.msk [vmem:[#allocation3 + $0x140] sm:$0xff] %vm1000_vm4, %v1574_v20  ;;  %2290 = vmatprep.mubr.f32.mxu0 %v1968_v29  ;;  %v1124_v35 = vpop.permute.xlu1 %1123 }
 0x14b   : > { %1400 = vrot.lane.b32.xlu0 %v11717_v15, %s10924_s16  ;;  %2291 = vmatmul.mubr.f32.gmra.mrb[24].mxu0 %v1967_v26  ;;  %1207 = vst.msk [vmem:[#allocation3 + $0x138] sm:$0xff] %vm1193_vm5, %v1124_v35  ;;  %v12103_v26 = vld [vmem:[#allocation2 + $0x168] sm:$0xff] }
 0x14c   : > { %950 = vrot.lane.b32.xlu1 %v11658_v25, %s10923_s15  ;;  %v2014_v35 = vld [vmem:[#allocation3 + $0x298] sm:$0xff] }
 0x14d   : > { %v1766_v62 = vpop.permute.xlu0 %1765 }
 0x14e   : > { %1848 = vst.msk [vmem:[#allocation3 + $0x140] sm:$0xff] %vm1193_vm5, %v1766_v62  ;;  %v740_v24 = vpop.permute.xlu1 %739 }
 0x14f   : > { %1593 = vrot.lane.b32.xlu0 %v12032_v31, %s10923_s15  ;;  %822 = vst.msk [vmem:[#allocation3 + $0x150] sm:$0xff] %vm807_vm3, %v740_v24 }
 0x150   : > { %1143 = vrot.lane.b32.xlu1 %v11984_v57, %s10925_s17  ;;  %v12053_v60 = vpop.f32.mrb[6].mxu1  ;;  %v2005_v57 = vld [vmem:[#allocation3 + $0x250] sm:$0xff] }
 0x151   : > { %v1383_v16 = vpop.permute.xlu0 %1382  ;;  %10605 = vmatprep.mubr.msk.f32.mxu1 %vm472_vm0, %v2005_v57 }
 0x152   : > { %1464 = vst.msk [vmem:[#allocation3 + $0x158] sm:$0xff] %vm807_vm3, %v1383_v16  ;;  %v933_v3 = vpop.permute.xlu1 %932  ;;  %v1970_v25 = vld [vmem:[#allocation3 + $0x138] sm:$0xff]  ;;  %10606 = vmatmul.mubr.msk.f32.gmra.mrb[24].mxu1 %vm472_vm0, %v2008_v55 }
 0x153   : > { %1785 = vrot.lane.b32.xlu0 %v11736_v41, %s10925_s17  ;;  %1015 = vst.msk [vmem:[#allocation3 + $0x150] sm:$0xff] %vm1000_vm4, %v933_v3  ;;  %10608 = vmatprep.mubr.msk.f32.mxu1 %vm472_vm0, %v2011_v22  ;;  %v611_v3 = vld [vmem:[#allocation2 + $0x150] sm:$0xff] }
 0x154   : > { %759 = vrot.lane.b32.xlu1 %v11644_v18, %s10924_s16  ;;  %v12059_v18 = vpop.f32.mrb[7].mxu1  ;;  %643 = vst.msk [vmem:[#allocation3 + $0x2a0] sm:$0xff] %vm472_vm0, %v611_v3 }
 0x155   : > { %v1576_v56 = vpop.permute.xlu0 %1575  ;;  %v1971_v30 = vld [vmem:[#allocation3 + $0x140] sm:$0xff] }
 0x156   : > { %1657 = vst.msk [vmem:[#allocation3 + $0x158] sm:$0xff] %vm1000_vm4, %v1576_v56  ;;  %2295 = vmatprep.mubr.f32.mxu0 %v1971_v30  ;;  %v1126_v59 = vpop.permute.xlu1 %1125  ;;  %10609 = vmatmul.mubr.msk.f32.gmra.mrb[26].mxu1 %vm472_vm0, %v2014_v35  ;;  %v12128_v56 = vld [vmem:[#allocation2 + $0x170] sm:$0xff] }
 0x157   : > { %1402 = vrot.lane.b32.xlu0 %v11748_v28, %s10924_s16  ;;  %2296 = vmatmul.mubr.f32.gmra.mrb[26].mxu0 %v1970_v25  ;;  %1208 = vst.msk [vmem:[#allocation3 + $0x150] sm:$0xff] %vm1193_vm5, %v1126_v59 }
 0x158   : > { %952 = vrot.lane.b32.xlu1 %v11688_v33, %s10923_s15 }
 0x159   : > { %v1768_v27 = vpop.permute.xlu0 %1767 }
 0x15a   : > { %1849 = vst.msk [vmem:[#allocation3 + $0x158] sm:$0xff] %vm1193_vm5, %v1768_v27  ;;  %v742_v34 = vpop.permute.xlu1 %741 }
 0x15b   : > { %1595 = vrot.lane.b32.xlu0 %v12055_v58, %s10923_s15  ;;  %823 = vst.msk [vmem:[#allocation3 + $0x168] sm:$0xff] %vm807_vm3, %v742_v34  ;;  %v612_v34 = vld [vmem:[#allocation2 + $0x158] sm:$0xff] }
 0x15c   : > { %1145 = vrot.lane.b32.xlu1 %v12005_v19, %s10925_s17  ;;  %644 = vst.msk [vmem:[#allocation3 + $0x2b8] sm:$0xff] %vm472_vm0, %v612_v34  ;;  %v12228_v34 = vld [vmem:[#allocation2 + $0x199] sm:$0xff] }
 0x15d   : > { %v1385_v33 = vpop.permute.xlu0 %1384 }
 0x15e   : > { %1465 = vst.msk [vmem:[#allocation3 + $0x170] sm:$0xff] %vm807_vm3, %v1385_v33  ;;  %v935_v9 = vpop.permute.xlu1 %934  ;;  %v1973_v61 = vld [vmem:[#allocation3 + $0x150] sm:$0xff] }
 0x15f   : > { %1787 = vrot.lane.b32.xlu0 %v11764_v51, %s10925_s17  ;;  %1016 = vst.msk [vmem:[#allocation3 + $0x168] sm:$0xff] %vm1000_vm4, %v935_v9  ;;  %v12151_v33 = vld [vmem:[#allocation2 + $0x180] sm:$0xff] }
 0x160   : > { %761 = vrot.lane.b32.xlu1 %v11676_v48, %s10924_s16 }
 0x161   : > { %v1578_v45 = vpop.permute.xlu0 %1577  ;;  %v1974_v44 = vld [vmem:[#allocation3 + $0x158] sm:$0xff] }
 0x162   : > { %1658 = vst.msk [vmem:[#allocation3 + $0x170] sm:$0xff] %vm1000_vm4, %v1578_v45  ;;  %2300 = vmatprep.mubr.f32.mxu0 %v1974_v44  ;;  %v1128_v7 = vpop.permute.xlu1 %1127  ;;  %v2017_v45 = vld [vmem:[#allocation3 + $0x2b0] sm:$0xff]  ;;  %v2020_v44 = vld [vmem:[#allocation3 + $0x2c8] sm:$0xff] }
 0x163   : > { %1404 = vrot.lane.b32.xlu0 %v11776_v10, %s10924_s16  ;;  %2301 = vmatmul.mubr.f32.gmra.mrb[28].mxu0 %v1973_v61  ;;  %1209 = vst.msk [vmem:[#allocation3 + $0x168] sm:$0xff] %vm1193_vm5, %v1128_v7 }
 0x164   : > { %954 = vrot.lane.b32.xlu1 %v11717_v15, %s10923_s15  ;;  %10611 = vmatprep.mubr.msk.f32.mxu1 %vm472_vm0, %v2017_v45 }
 0x165   : > { %v1770_v48 = vpop.permute.xlu0 %1769  ;;  %10612 = vmatmul.mubr.msk.f32.gmra.mrb[28].mxu1 %vm472_vm0, %v2020_v44 }
 0x166   : > { %1850 = vst.msk [vmem:[#allocation3 + $0x170] sm:$0xff] %vm1193_vm5, %v1770_v48  ;;  %v744_v49 = vpop.permute.xlu1 %743 }
 0x167   : > { %1597 = vrot.lane.b32.xlu0 %v12080_v12, %s10923_s15  ;;  %824 = vst.msk [vmem:[#allocation3 + $0x180] sm:$0xff] %vm807_vm3, %v744_v49 }
 0x168   : > { %1147 = vrot.lane.b32.xlu1 %v12032_v31, %s10925_s17  ;;  %v12101_v38 = vpop.f32.mrb[8].mxu1 }
 0x169   : > { %v1387_v19 = vpop.permute.xlu0 %1386 }
 0x16a   : > { %1466 = vst.msk [vmem:[#allocation3 + $0x188] sm:$0xff] %vm807_vm3, %v1387_v19  ;;  %v937_v21 = vpop.permute.xlu1 %936  ;;  %v1976_v15 = vld [vmem:[#allocation3 + $0x168] sm:$0xff]  ;;  %v12175_v19 = vstv %s468_s18 }
 0x16b   : > { %1789 = vrot.lane.b32.xlu0 %v11794_v13, %s10925_s17  ;;  %1017 = vst.msk [vmem:[#allocation3 + $0x180] sm:$0xff] %vm1000_vm4, %v937_v21 }
 0x16c   : > { %763 = vrot.lane.b32.xlu1 %v11705_v63, %s10924_s16  ;;  %v12107_v63 = vpop.f32.mrb[9].mxu1 }
 0x16d   : > { %v1580_v5 = vpop.permute.xlu0 %1579  ;;  %v1977_v23 = vld [vmem:[#allocation3 + $0x170] sm:$0xff]  ;;  %v12149_v55 = vpop.f32.mrb[10].mxu1 }
 0x16e   : > { %1659 = vst.msk [vmem:[#allocation3 + $0x188] sm:$0xff] %vm1000_vm4, %v1580_v5  ;;  %2305 = vmatprep.mubr.f32.mxu0 %v1977_v23  ;;  %v1130_v14 = vpop.permute.xlu1 %1129 }
 0x16f   : > { %1406 = vrot.lane.b32.xlu0 %v11806_v2, %s10924_s16  ;;  %2306 = vmatmul.mubr.f32.gmra.mrb[30].mxu0 %v1976_v15  ;;  %1210 = vst.msk [vmem:[#allocation3 + $0x180] sm:$0xff] %vm1193_vm5, %v1130_v14 }
 0x170   : > { %956 = vrot.lane.b32.xlu1 %v11748_v28, %s10923_s15 }
 0x171   : > { %v1772_v20 = vpop.permute.xlu0 %1771 }
 0x172   : > { %1851 = vst.msk [vmem:[#allocation3 + $0x188] sm:$0xff] %vm1193_vm5, %v1772_v20  ;;  %v746_v29 = vpop.permute.xlu1 %745 }
 0x173   : > { %1599 = vrot.lane.b32.xlu0 %v12103_v26, %s10923_s15  ;;  %825 = vst.msk [vmem:[#allocation3 + $0x198] sm:$0xff] %vm807_vm3, %v746_v29 }
 0x174   : > { %1149 = vrot.lane.b32.xlu1 %v12055_v58, %s10925_s17 }
 0x175   : > { %v1389_v28 = vpop.permute.xlu0 %1388 }
 0x176   : > { %1467 = vst.msk [vmem:[#allocation3 + $0x1a0] sm:$0xff] %vm807_vm3, %v1389_v28  ;;  %v939_v31 = vpop.permute.xlu1 %938  ;;  %v1979_v62 = vld [vmem:[#allocation3 + $0x180] sm:$0xff] }
 0x177   : > { %1791 = vrot.lane.b32.xlu0 %v11822_v8, %s10925_s17  ;;  %1018 = vst.msk [vmem:[#allocation3 + $0x198] sm:$0xff] %vm1000_vm4, %v939_v31 }
 0x178   : > { %765 = vrot.lane.b32.xlu1 %v11736_v41, %s10924_s16 }
 0x179   : > { %v1582_v24 = vpop.permute.xlu0 %1581  ;;  %v1980_v16 = vld [vmem:[#allocation3 + $0x188] sm:$0xff] }
 0x17a   : > { %1660 = vst.msk [vmem:[#allocation3 + $0x1a0] sm:$0xff] %vm1000_vm4, %v1582_v24  ;;  %2310 = vmatprep.mubr.f32.mxu0 %v1980_v16  ;;  %v1132_v25 = vpop.permute.xlu1 %1131  ;;  %v1898_v16 = vld [vmem:[#allocation2 + $0x1a2] sm:$0xff] }
 0x17b   : > { %1408 = vrot.lane.b32.xlu0 %v11836_v11, %s10924_s16  ;;  %2311 = vmatmul.mubr.f32.gmra.mrb[32].mxu0 %v1979_v62  ;;  %1211 = vst.msk [vmem:[#allocation3 + $0x198] sm:$0xff] %vm1193_vm5, %v1132_v25  ;;  %v1897_v62 = vld [vmem:[#allocation2 + $0x19a] sm:$0xff] }
 0x17c   : > { %958 = vrot.lane.b32.xlu1 %v11776_v10, %s10923_s15  ;;  %1929 = vst.msk [vmem:[#allocation3 + $0x2e0] sm:$0xff] %vm472_vm0, %v1897_v62  ;;  %1930 = vst.msk [vmem:[#allocation3 + $0x2f8] sm:$0xff] %vm472_vm0, %v1898_v16 }
 0x17d   : > { %v1774_v41 = vpop.permute.xlu0 %1773 }
 0x17e   : > { %1852 = vst.msk [vmem:[#allocation3 + $0x1a0] sm:$0xff] %vm1193_vm5, %v1774_v41  ;;  %v748_v30 = vpop.permute.xlu1 %747  ;;  %v614_v41 = vld [vmem:[#allocation2 + $0x170] sm:$0xff] }
 0x17f   : > { %1601 = vrot.lane.b32.xlu0 %v12128_v56, %s10923_s15  ;;  %826 = vst.msk [vmem:[#allocation3 + $0x1b0] sm:$0xff] %vm807_vm3, %v748_v30 }
 0x180   : > { %1151 = vrot.lane.b32.xlu1 %v12080_v12, %s10925_s17  ;;  %646 = vst.msk [vmem:[#allocation3 + $0x2e8] sm:$0xff] %vm472_vm0, %v614_v41 }
 0x181   : > { %v1391_v53 = vpop.permute.xlu0 %1390 }
 0x182   : > { %1468 = vst.msk [vmem:[#allocation3 + $0x1b8] sm:$0xff] %vm807_vm3, %v1391_v53  ;;  %v941_v59 = vpop.permute.xlu1 %940  ;;  %v1982_v10 = vld [vmem:[#allocation3 + $0x198] sm:$0xff] }
 0x183   : > { %1793 = vrot.lane.b32.xlu0 %v11854_v37, %s10925_s17  ;;  %1019 = vst.msk [vmem:[#allocation3 + $0x1b0] sm:$0xff] %vm1000_vm4, %v941_v59 }
 0x184   : > { %767 = vrot.lane.b32.xlu1 %v11764_v51, %s10924_s16  ;;  %v12155_v51 = vpop.f32.mrb[11].mxu1 }
 0x185   : > { %v1584_v58 = vpop.permute.xlu0 %1583  ;;  %v1983_v27 = vld [vmem:[#allocation3 + $0x1a0] sm:$0xff] }
 0x186   : > { %1661 = vst.msk [vmem:[#allocation3 + $0x1b8] sm:$0xff] %vm1000_vm4, %v1584_v58  ;;  %2315 = vmatprep.mubr.f32.mxu0 %v1983_v27  ;;  %v1134_v57 = vpop.permute.xlu1 %1133  ;;  %v2023_v27 = vld [vmem:[#allocation3 + $0x2e0] sm:$0xff] }
 0x187   : > { %1410 = vrot.lane.b32.xlu0 %v11868_v46, %s10924_s16  ;;  %2316 = vmatmul.mubr.f32.gmra.mrb[34].mxu0 %v1982_v10  ;;  %1212 = vst.msk [vmem:[#allocation3 + $0x1b0] sm:$0xff] %vm1193_vm5, %v1134_v57 }
 0x188   : > { %960 = vrot.lane.b32.xlu1 %v11806_v2, %s10923_s15  ;;  %v12165_v2 = vld [vmem:[%s15559_s4] ss:$0 sm:$0xff]  ;;  %10614 = vmatprep.mubr.msk.f32.mxu1 %vm472_vm0, %v2023_v27  ;;  %9282 = vst.msk [vmem:[#allocation3 + $0x2e0] sm:$0xff] %vm472_vm0, %v1897_v62  ;;  %v8196_v62 = vld [vmem:[#allocation2 + $0x2] sm:$0xff] }
 0x189   : > { %v1776_v9 = vpop.permute.xlu0 %1775 }
 0x18a   : > { %1853 = vst.msk [vmem:[#allocation3 + $0x1b8] sm:$0xff] %vm1193_vm5, %v1776_v9  ;;  %v750_v61 = vpop.permute.xlu1 %749 }
 0x18b   : > { %1603 = vrot.lane.b32.xlu0 %v12151_v33, %s10923_s15  ;;  %827 = vst.msk [vmem:[#allocation3 + $0x1c8] sm:$0xff] %vm807_vm3, %v750_v61 }
 0x18c   : > { %1153 = vrot.lane.b32.xlu1 %v12103_v26, %s10925_s17 }
 0x18d   : > { %v1393_v17 = vpop.permute.xlu0 %1392 }
 0x18e   : > { %1469 = vst.msk [vmem:[#allocation3 + $0x1d0] sm:$0xff] %vm807_vm3, %v1393_v17  ;;  %v2232_v7 = vpop.f32.mrb[0].mxu0  ;;  %v943_v12 = vpop.permute.xlu1 %942  ;;  %v1985_v21 = vld [vmem:[#allocation3 + $0x1b0] sm:$0xff] }
 0x18f   : > { %1795 = vrot.lane.b32.xlu0 %v11884_v43, %s10925_s17  ;;  %v2233_v48 = vadd.f32 %v12165_v2, %v2232_v7  ;;  %v2234_v49 = vpop.f32.mrb[1].mxu0  ;;  %1020 = vst.msk [vmem:[#allocation3 + $0x1c8] sm:$0xff] %vm1000_vm4, %v943_v12 }
 0x190   : > { %769 = vrot.lane.b32.xlu1 %v11794_v13, %s10924_s16  ;;  %v12186_v13 = vld [vmem:[#allocation2 + $0x188] sm:$0xff] }
 0x191   : > { %v2458_v15 = vadd.f32 %v11955_v50, %v2233_v48  ;;  %v1586_v5 = vpop.permute.xlu0 %1585  ;;  %v1986_v23 = vld [vmem:[#allocation3 + $0x1b8] sm:$0xff] }
 0x192   : > { %1662 = vst.msk [vmem:[#allocation3 + $0x1d0] sm:$0xff] %vm1000_vm4, %v1586_v5  ;;  %2320 = vmatprep.mubr.f32.mxu0 %v1986_v23  ;;  %v1136_v43 = vpop.permute.xlu1 %1135 }
 0x193   : > { %vm2616_vm6 = vcmp.ge.f32.partialorder %v2458_v15, 0.0  ;;  %v2649_v14 = vmul.f32 %v12175_v19, %v2458_v15  ;;  %1412 = vrot.lane.b32.xlu0 %v11898_v52, %s10924_s16  ;;  %2321 = vmatmul.mubr.f32.gmra.mrb[36].mxu0 %v1985_v21  ;;  %1213 = vst.msk [vmem:[#allocation3 + $0x1c8] sm:$0xff] %vm1193_vm5, %v1136_v43  ;;  %v1514_v21 = vld [vmem:[#allocation2 + $0x1a0] sm:$0xff] }
 0x194   : > { %962 = vrot.lane.b32.xlu1 %v11836_v11, %s10923_s15 }
 0x195   : > { %v2681_v50 = vsel %vm2616_vm6, %v2458_v15, %v2649_v14  ;;  %v1778_v26 = vpop.permute.xlu0 %1777  ;;  %vm2910_vm6 = vcmask 1042434  }
 0x196   : > { %v2745_v20 = vcombine.high %v2681_v50, %v2681_v50  ;;  %2810 = vst.msk [vmem:[#allocation4] sm:$0xf] %vm2809_vm7, %v2681_v50  ;;  %v752_v29 = vpop.permute.xlu1 %751 }
 0x197   : > { %1854 = vst.msk [vmem:[#allocation3 + $0x1d0] sm:$0xff] %vm1193_vm5, %v1778_v26  ;;  %1605 = vrot.lane.b32.xlu0 %v12186_v13, %s10923_s15 }
 0x198   : > { %828 = vst.msk [vmem:[#allocation3 + $0x1e0] sm:$0xff] %vm807_vm3, %v752_v29  ;;  %1155 = vrot.lane.b32.xlu1 %v12128_v56, %s10925_s17 }
 0x199   : > { %2811 = vst.msk [vmem:[#allocation4 + $0x4] sm:$0xf] %vm2809_vm7, %v2745_v20  ;;  %v1395_v22 = vpop.permute.xlu0 %1394  ;;  %v8004_v20 = vld [vmem:[#allocation2 + $0x1] sm:$0xff] }
 0x19a   : > { %1470 = vst.msk [vmem:[#allocation3 + $0x1e8] sm:$0xff] %vm807_vm3, %v1395_v22  ;;  %v2237_v11 = vpop.f32.mrb[2].mxu0  ;;  %v945_v35 = vpop.permute.xlu1 %944  ;;  %v1988_v24 = vld [vmem:[#allocation3 + $0x1c8] sm:$0xff] }
 0x19b   : > { %v2238_v28 = vadd.f32 %v12165_v2, %v2237_v11  ;;  %1797 = vrot.lane.b32.xlu0 %v11917_v47, %s10925_s17  ;;  %v2239_v31 = vpop.f32.mrb[3].mxu0  ;;  %1021 = vst.msk [vmem:[#allocation3 + $0x1e0] sm:$0xff] %vm1000_vm4, %v945_v35  ;;  %v8197_v11 = vld [vmem:[#allocation2 + $0xa] sm:$0xff] }
 0x19c   : > { %771 = vrot.lane.b32.xlu1 %v11822_v8, %s10924_s16  ;;  %v12214_v8 = vpop.f32.mrb[12].mxu1 }
 0x19d   : > { %v2463_v3 = vadd.f32 %v11953_v42, %v2238_v28  ;;  %v1588_v25 = vpop.permute.xlu0 %1587  ;;  %v12216_v42 = vld [vmem:[#allocation2 + $0x198] sm:$0xff]  ;;  %v12220_v53 = vpop.f32.mrb[13].mxu1 }
 0x19e   : > { %v1989_v56 = vld [vmem:[#allocation3 + $0x1d0] sm:$0xff]  ;;  %1663 = vst.msk [vmem:[#allocation3 + $0x1e8] sm:$0xff] %vm1000_vm4, %v1588_v25  ;;  %v1138_v47 = vpop.permute.xlu1 %1137  ;;  %v12268_v31 = vpop.f32.mrb[14].mxu1 }
 0x19f   : > { %2325 = vmatprep.mubr.f32.mxu0 %v1989_v56  ;;  %vm2617_vm8 = vcmp.ge.f32.partialorder %v2463_v3, 0.0  ;;  %v2650_v30 = vmul.f32 %v12175_v19, %v2463_v3  ;;  %1414 = vrot.lane.b32.xlu0 %v11929_v1, %s10924_s16  ;;  %1214 = vst.msk [vmem:[#allocation3 + $0x1e0] sm:$0xff] %vm1193_vm5, %v1138_v47 }
 0x1a0   : > { %2326 = vmatmul.mubr.f32.gmra.mrb[38].mxu0 %v1988_v24  ;;  %964 = vrot.lane.b32.xlu1 %v11868_v46, %s10923_s15  ;;  %v2026_v46 = vld [vmem:[#allocation3 + $0x2f8] sm:$0xff] }
 0x1a1   : > { %v2682_v59 = vsel %vm2617_vm8, %v2463_v3, %v2650_v30  ;;  %v1780_v10 = vpop.permute.xlu0 %1779  ;;  %10615 = vmatmul.mubr.msk.f32.gmra.mrb[30].mxu1 %vm472_vm0, %v2026_v46  ;;  %9283 = vst.msk [vmem:[#allocation3 + $0x2f8] sm:$0xff] %vm472_vm0, %v1898_v16  ;;  %vm2913_vm8 = vcmask 1043459  }
 0x1a2   : > { %v2746_v58 = vcombine.high %v2682_v59, %v2682_v59  ;;  %2812 = vst.msk [vmem:[#allocation4 + $0x8] sm:$0xf] %vm2809_vm7, %v2682_v59  ;;  %v754_v1 = vpop.permute.xlu1 %753 }
 0x1a3   : > { %1855 = vst.msk [vmem:[#allocation3 + $0x1e8] sm:$0xff] %vm1193_vm5, %v1780_v10  ;;  %1607 = vrot.lane.b32.xlu0 %v12216_v42, %s10923_s15 }
 0x1a4   : > { %829 = vst.msk [vmem:[#allocation3 + $0x1f8] sm:$0xff] %vm807_vm3, %v754_v1  ;;  %1157 = vrot.lane.b32.xlu1 %v12151_v33, %s10925_s17 }
 0x1a5   : > { %2813 = vst.msk [vmem:[#allocation4 + $0xc] sm:$0xf] %vm2809_vm7, %v2746_v58  ;;  %v1397_v57 = vpop.permute.xlu0 %1396 }
 0x1a6   : > { %1471 = vst.msk [vmem:[#allocation3 + $0x200] sm:$0xff] %vm807_vm3, %v1397_v57  ;;  %v2242_v9 = vpop.f32.mrb[4].mxu0  ;;  %v947_v61 = vpop.permute.xlu1 %946  ;;  %v1991_v44 = vld [vmem:[#allocation3 + $0x1e0] sm:$0xff] }
 0x1a7   : > { %v2243_v45 = vadd.f32 %v12165_v2, %v2242_v9  ;;  %1799 = vrot.lane.b32.xlu0 %v12228_v34, %s10925_s17  ;;  %v2244_v33 = vpop.f32.mrb[5].mxu0  ;;  %1022 = vst.msk [vmem:[#allocation3 + $0x1f8] sm:$0xff] %vm1000_vm4, %v947_v61 }
 0x1a8   : > { %773 = vrot.lane.b32.xlu1 %v11854_v37, %s10924_s16 }
 0x1a9   : > { %v2468_v17 = vadd.f32 %v11971_v40, %v2243_v45  ;;  %v1590_v7 = vpop.permute.xlu0 %1589 }
 0x1aa   : > { %v1992_v12 = vld [vmem:[#allocation3 + $0x1e8] sm:$0xff]  ;;  %1664 = vst.msk [vmem:[#allocation3 + $0x200] sm:$0xff] %vm1000_vm4, %v1590_v7  ;;  %v1140_v48 = vpop.permute.xlu1 %1139 }
 0x1ab   : > { %2330 = vmatprep.mubr.f32.mxu0 %v1992_v12  ;;  %vm2618_vm9 = vcmp.ge.f32.partialorder %v2468_v17, 0.0  ;;  %v2651_v49 = vmul.f32 %v12175_v19, %v2468_v17  ;;  %1416 = vrot.lane.b32.xlu0 %v11958_v32, %s10924_s16  ;;  %1215 = vst.msk [vmem:[#allocation3 + $0x1f8] sm:$0xff] %vm1193_vm5, %v1140_v48  ;;  %v1706_v32 = vld [vmem:[#allocation2 + $0x1a1] sm:$0xff] }
 0x1ac   : > { %2331 = vmatmul.mubr.f32.gmra.mrb[40].mxu0 %v1991_v44  ;;  %966 = vrot.lane.b32.xlu1 %v11898_v52, %s10923_s15  ;;  %v8005_v52 = vld [vmem:[#allocation2 + $0x9] sm:$0xff] }
 0x1ad   : > { %v2683_v37 = vsel %vm2618_vm9, %v2468_v17, %v2651_v49  ;;  %v1782_v40 = vpop.permute.xlu0 %1781  ;;  %vm2916_vm9 = vcmask 1044484  }
 0x1ae   : > { %v2747_v15 = vcombine.high %v2683_v37, %v2683_v37  ;;  %2814 = vst.msk [vmem:[#allocation4 + $0x10] sm:$0xf] %vm2809_vm7, %v2683_v37  ;;  %v756_v5 = vpop.permute.xlu1 %755 }
 0x1af   : > { %1856 = vst.msk [vmem:[#allocation3 + $0x200] sm:$0xff] %vm1193_vm5, %v1782_v40  ;;  %1609 = vrot.lane.b32.xlu0 %v1514_v21, %s10923_s15 }
 0x1b0   : > { %830 = vst.msk [vmem:[#allocation3 + $0x210] sm:$0xff] %vm807_vm3, %v756_v5  ;;  %1159 = vrot.lane.b32.xlu1 %v12186_v13, %s10925_s17 }
 0x1b1   : > { %2815 = vst.msk [vmem:[#allocation4 + $0x14] sm:$0xf] %vm2809_vm7, %v2747_v15  ;;  %v1399_v23 = vpop.permute.xlu0 %1398 }
 0x1b2   : > { %1472 = vst.msk [vmem:[#allocation3 + $0x218] sm:$0xff] %vm807_vm3, %v1399_v23  ;;  %v2247_v6 = vpop.f32.mrb[6].mxu0  ;;  %v949_v43 = vpop.permute.xlu1 %948  ;;  %v1994_v26 = vld [vmem:[#allocation3 + $0x1f8] sm:$0xff] }
 0x1b3   : > { %v2248_v14 = vadd.f32 %v12165_v2, %v2247_v6  ;;  %1801 = vrot.lane.b32.xlu0 %v1706_v32, %s10925_s17  ;;  %v2249_v50 = vpop.f32.mrb[7].mxu0  ;;  %1023 = vst.msk [vmem:[#allocation3 + $0x210] sm:$0xff] %vm1000_vm4, %v949_v43 }
 0x1b4   : > { %8070 = vrot.lane.b32.xlu1 %v8005_v52, %s10924_s16 }
 0x1b5   : > { %v2473_v29 = vadd.f32 %v11968_v39, %v2248_v14  ;;  %v1592_v13 = vpop.permute.xlu0 %1591  ;;  %v12271_v39 = vpop.f32.mrb[15].mxu1 }
 0x1b6   : > { %v1995_v22 = vld [vmem:[#allocation3 + $0x200] sm:$0xff]  ;;  %1665 = vst.msk [vmem:[#allocation3 + $0x218] sm:$0xff] %vm1000_vm4, %v1592_v13  ;;  %v1142_v35 = vpop.permute.xlu1 %1141  ;;  %v12300_v40 = vpop.f32.mrb[16].mxu1  ;;  %v3964_v13 = vld [vmem:[%s15560_s5] sm:$0xff] }
 0x1b7   : > { %2335 = vmatprep.mubr.f32.mxu0 %v1995_v22  ;;  %vm2619_vm10 = vcmp.ge.f32.partialorder %v2473_v29, 0.0  ;;  %v2652_v28 = vmul.f32 %v12175_v19, %v2473_v29  ;;  %1216 = vst.msk [vmem:[#allocation3 + $0x210] sm:$0xff] %vm1193_vm5, %v1142_v35  ;;  %8068 = vrot.lane.b32.xlu0 %v8004_v20, %s10924_s16  ;;  %v12302_v15 = vpop.f32.mrb[17].mxu1  ;;  %v3980_v20 = vld [vmem:[%s15560_s5 + $0x80] sm:$0xff] }
 0x1b8   : > { %2336 = vmatmul.mubr.f32.gmra.mrb[42].mxu0 %v1994_v26  ;;  %8262 = vrot.lane.b32.xlu1 %v8197_v11, %s10923_s15 }
 0x1b9   : > { %v2684_v24 = vsel %vm2619_vm10, %v2473_v29, %v2652_v28  ;;  %v1784_v16 = vpop.permute.xlu0 %1783  ;;  %v3981_v29 = vld [vmem:[%s15560_s5 + $0x88] sm:$0xff] }
 0x1ba   : > { %v2748_v3 = vcombine.high %v2684_v24, %v2684_v24  ;;  %2816 = vst.msk [vmem:[#allocation4 + $0x18] sm:$0xf] %vm2809_vm7, %v2684_v24  ;;  %v758_v25 = vpop.permute.xlu1 %757  ;;  %v10729_v28 = vpack.c.bf16 %v3981_v29, %v3980_v20  ;;  %v3965_v24 = vld [vmem:[%s15560_s5 + $0x8] sm:$0xff] }
 0x1bb   : > { %1857 = vst.msk [vmem:[#allocation3 + $0x218] sm:$0xff] %vm1193_vm5, %v1784_v16  ;;  %8260 = vrot.lane.b32.xlu0 %v8196_v62, %s10923_s15 }
 0x1bc   : > { %831 = vst.msk [vmem:[#allocation3 + $0x228] sm:$0xff] %vm807_vm3, %v758_v25  ;;  %10730 = vmatprep.subr.bf16.mxu0 %v10729_v28  ;;  %v12370_v28 = vld [vmem:[#allocation4 + $0x6] sm:$0x1] }
 0x1bd   : > { %2817 = vst.msk [vmem:[#allocation4 + $0x1c] sm:$0xf] %vm2809_vm7, %v2748_v3  ;;  %v1401_v56 = vpop.permute.xlu0 %1400  ;;  %v10731_v3 = vpack.c.bf16 %v3965_v24, %v3964_v13 }
 0x1be   : > { %1473 = vst.msk [vmem:[#allocation3 + $0x230] sm:$0xff] %vm807_vm3, %v1401_v56  ;;  %v2252_v47 = vpop.f32.mrb[8].mxu0  ;;  %v951_v41 = vpop.permute.xlu1 %950  ;;  %v1997_v10 = vld [vmem:[#allocation3 + $0x210] sm:$0xff] }
 0x1bf   : > { %v2253_v30 = vadd.f32 %v12165_v2, %v2252_v47  ;;  %v2254_v59 = vpop.f32.mrb[9].mxu0  ;;  %1024 = vst.msk [vmem:[#allocation3 + $0x228] sm:$0xff] %vm1000_vm4, %v951_v41  ;;  %8960 = vrot.lane.b32.xlu0 %v12216_v42, %s10923_s15  ;;  %10732 = vmatpush3.bf16.msra.mxu0 %v10731_v3  ;;  %v12373_v3 = vld [vmem:[#allocation4 + $0x4] sm:$0x1] }
 0x1c1   : > { %v2478_v58 = vadd.f32 %v12011_v36, %v2253_v30  ;;  %v1594_v1 = vpop.permute.xlu0 %1593 }
 0x1c2   : > { %v1998_v27 = vld [vmem:[#allocation3 + $0x218] sm:$0xff]  ;;  %1666 = vst.msk [vmem:[#allocation3 + $0x230] sm:$0xff] %vm1000_vm4, %v1594_v1  ;;  %v1144_v46 = vpop.permute.xlu1 %1143 }
 0x1c3   : > { %2340 = vmatprep.mubr.f32.mxu0 %v1998_v27  ;;  %vm2620_vm11 = vcmp.ge.f32.partialorder %v2478_v58, 0.0  ;;  %v2653_v57 = vmul.f32 %v12175_v19, %v2478_v58  ;;  %1217 = vst.msk [vmem:[#allocation3 + $0x228] sm:$0xff] %vm1193_vm5, %v1144_v46  ;;  %9152 = vrot.lane.b32.xlu0 %v12228_v34, %s10925_s17  ;;  %v3982_v27 = vld [vmem:[%s15560_s5 + $0x90] sm:$0xff]  ;;  %v3983_v46 = vld [vmem:[%s15560_s5 + $0x98] sm:$0xff] }
 0x1c4   : > { %2341 = vmatmul.mubr.f32.gmra.mrb[44].mxu0 %v1997_v10 }
 0x1c5   : > { %v2685_v9 = vsel %vm2620_vm11, %v2478_v58, %v2653_v57  ;;  %v1786_v42 = vpop.permute.xlu0 %1785  ;;  %v3966_v57 = vld [vmem:[%s15560_s5 + $0x10] sm:$0xff]  ;;  %vm2919_vm11 = vcmask 1045509  }
 0x1c6   : > { %v2749_v61 = vcombine.high %v2685_v9, %v2685_v9  ;;  %2818 = vst.msk [vmem:[#allocation4 + $0x20] sm:$0xf] %vm2809_vm7, %v2685_v9  ;;  %v760_v36 = vpop.permute.xlu1 %759 }
 0x1c7   : > { %1858 = vst.msk [vmem:[#allocation3 + $0x230] sm:$0xff] %vm1193_vm5, %v1786_v42 }
 0x1c8   : > { %832 = vst.msk [vmem:[#allocation3 + $0x240] sm:$0xff] %vm807_vm3, %v760_v36  ;;  %v10733_v36 = vpack.c.bf16 %v3983_v46, %v3982_v27 }
 0x1c9   : > { %2819 = vst.msk [vmem:[#allocation4 + $0x24] sm:$0xf] %vm2809_vm7, %v2749_v61  ;;  %v1403_v45 = vpop.permute.xlu0 %1402 }
 0x1ca   : > { %1474 = vst.msk [vmem:[#allocation3 + $0x248] sm:$0xff] %vm807_vm3, %v1403_v45  ;;  %v2257_v33 = vpop.f32.mrb[10].mxu0  ;;  %v953_v44 = vpop.permute.xlu1 %952  ;;  %v2000_v7 = vld [vmem:[#allocation3 + $0x228] sm:$0xff]  ;;  %10734 = vmatprep.subr.bf16.mxu0 %v10733_v36  ;;  %v2906_v36 = vrot.slane %v12373_v3, 7  ;;  %v2874_v3 = vld [vmem:[#allocation4] sm:$0x1] }
 0x1cb   : > { %v2258_v17 = vadd.f32 %v12165_v2, %v2257_v33  ;;  %v2259_v34 = vpop.f32.mrb[11].mxu0  ;;  %1025 = vst.msk [vmem:[#allocation3 + $0x240] sm:$0xff] %vm1000_vm4, %v953_v44  ;;  %v3967_v33 = vld [vmem:[%s15560_s5 + $0x18] sm:$0xff] }
 0x1cd   : > { %v2483_v12 = vadd.f32 %v12009_v54, %v2258_v17  ;;  %v1596_v48 = vpop.permute.xlu0 %1595  ;;  %v10735_v17 = vpack.c.bf16 %v3967_v33, %v3966_v57  ;;  %v3081_v33 = vld [vmem:[#allocation4 + $0x3] sm:$0x1] }
 0x1ce   : > { %v2001_v49 = vld [vmem:[#allocation3 + $0x230] sm:$0xff]  ;;  %1667 = vst.msk [vmem:[#allocation3 + $0x248] sm:$0xff] %vm1000_vm4, %v1596_v48  ;;  %v1146_v21 = vpop.permute.xlu1 %1145 }
 0x1cf   : > { %2345 = vmatprep.mubr.f32.mxu0 %v2001_v49  ;;  %vm2621_vm12 = vcmp.ge.f32.partialorder %v2483_v12, 0.0  ;;  %v2654_v37 = vmul.f32 %v12175_v19, %v2483_v12  ;;  %1218 = vst.msk [vmem:[#allocation3 + $0x240] sm:$0xff] %vm1193_vm5, %v1146_v21  ;;  %10736 = vmatpush3.bf16.msra.mxu0 %v10735_v17  ;;  %v2945_v17 = vld [vmem:[#allocation4 + $0x1] sm:$0x1] }
 0x1d0   : > { %2346 = vmatmul.mubr.f32.gmra.mrb[46].mxu0 %v2000_v7 }
 0x1d1   : > { %v2686_v5 = vsel %vm2621_vm12, %v2483_v12, %v2654_v37  ;;  %v1788_v32 = vpop.permute.xlu0 %1787  ;;  %vm2922_vm12 = vcmask 1046534  }
 0x1d2   : > { %v2750_v23 = vcombine.high %v2686_v5, %v2686_v5  ;;  %2820 = vst.msk [vmem:[#allocation4 + $0x28] sm:$0xf] %vm2809_vm7, %v2686_v5  ;;  %v762_v54 = vpop.permute.xlu1 %761 }
 0x1d3   : > { %1859 = vst.msk [vmem:[#allocation3 + $0x248] sm:$0xff] %vm1193_vm5, %v1788_v32 }
 0x1d4   : > { %833 = vst.msk [vmem:[#allocation3 + $0x258] sm:$0xff] %vm807_vm3, %v762_v54 }
 0x1d5   : > { %2821 = vst.msk [vmem:[#allocation4 + $0x2c] sm:$0xf] %vm2809_vm7, %v2750_v23  ;;  %v1405_v52 = vpop.permute.xlu0 %1404 }
 0x1d6   : > { %1475 = vst.msk [vmem:[#allocation3 + $0x260] sm:$0xff] %vm807_vm3, %v1405_v52  ;;  %v2262_v6 = vpop.f32.mrb[12].mxu0  ;;  %v955_v43 = vpop.permute.xlu1 %954  ;;  %v2003_v26 = vld [vmem:[#allocation3 + $0x240] sm:$0xff]  ;;  %v7940_v52 = vld [vmem:[#allocation2] sm:$0xff] }
 0x1d7   : > { %v2263_v14 = vadd.f32 %v12165_v2, %v2262_v6  ;;  %v2264_v50 = vpop.f32.mrb[13].mxu0  ;;  %1026 = vst.msk [vmem:[#allocation3 + $0x258] sm:$0xff] %vm1000_vm4, %v955_v43 }
 0x1d8   : > { %7972 = vst.msk [vmem:[#allocation3] sm:$0xff] %vm472_vm0, %v7940_v52  ;;  %v3013_v52 = vld [vmem:[#allocation4 + $0x2] sm:$0x1] }
 0x1d9   : > { %v2488_v22 = vadd.f32 %v12059_v18, %v2263_v14  ;;  %v1598_v11 = vpop.permute.xlu0 %1597 }
 0x1da   : > { %v2004_v35 = vld [vmem:[#allocation3 + $0x248] sm:$0xff]  ;;  %1668 = vst.msk [vmem:[#allocation3 + $0x260] sm:$0xff] %vm1000_vm4, %v1598_v11  ;;  %v1148_v62 = vpop.permute.xlu1 %1147  ;;  %v3082_v11 = vld [vmem:[#allocation4 + $0x7] sm:$0x1] }
 0x1db   : > { %2350 = vmatprep.mubr.f32.mxu0 %v2004_v35  ;;  %vm2622_vm13 = vcmp.ge.f32.partialorder %v2488_v22, 0.0  ;;  %v2655_v16 = vmul.f32 %v12175_v19, %v2488_v22  ;;  %1219 = vst.msk [vmem:[#allocation3 + $0x258] sm:$0xff] %vm1193_vm5, %v1148_v62  ;;  %v2946_v35 = vld [vmem:[#allocation4 + $0x5] sm:$0x1] }
 0x1dc   : > { %2351 = vmatmul.mubr.f32.gmra.mrb[48].mxu0 %v2003_v26 }
 0x1dd   : > { %v2687_v18 = vsel %vm2622_vm13, %v2488_v22, %v2655_v16  ;;  %v1790_v25 = vpop.permute.xlu0 %1789  ;;  %v3083_v16 = vld [vmem:[#allocation4 + $0xb] sm:$0x1]  ;;  %vm2925_vm13 = vcmask 1047559  }
 0x1de   : > { %v2751_v56 = vcombine.high %v2687_v18, %v2687_v18  ;;  %2822 = vst.msk [vmem:[#allocation4 + $0x30] sm:$0xf] %vm2809_vm7, %v2687_v18  ;;  %v764_v47 = vpop.permute.xlu1 %763 }
 0x1df   : > { %1860 = vst.msk [vmem:[#allocation3 + $0x260] sm:$0xff] %vm1193_vm5, %v1790_v25 }
 0x1e0   : > { %834 = vst.msk [vmem:[#allocation3 + $0x270] sm:$0xff] %vm807_vm3, %v764_v47  ;;  %v2947_v47 = vld [vmem:[#allocation4 + $0x9] sm:$0x1] }
 0x1e1   : > { %2823 = vst.msk [vmem:[#allocation4 + $0x34] sm:$0xf] %vm2809_vm7, %v2751_v56  ;;  %v1407_v41 = vpop.permute.xlu0 %1406 }
 0x1e2   : > { %1476 = vst.msk [vmem:[#allocation3 + $0x278] sm:$0xff] %vm807_vm3, %v1407_v41  ;;  %v2267_v30 = vpop.f32.mrb[14].mxu0  ;;  %v957_v59 = vpop.permute.xlu1 %956  ;;  %v2006_v1 = vld [vmem:[#allocation3 + $0x258] sm:$0xff]  ;;  %v12377_v41 = vld [vmem:[#allocation4 + $0xa] sm:$0x1] }
 0x1e3   : > { %v2268_v10 = vadd.f32 %v12165_v2, %v2267_v30  ;;  %v2269_v58 = vpop.f32.mrb[15].mxu0  ;;  %1027 = vst.msk [vmem:[#allocation3 + $0x270] sm:$0xff] %vm1000_vm4, %v957_v59  ;;  %v3113_v30 = vrot.slane %v3082_v11, 7  ;;  %v2977_v59 = vrot.slane %v2946_v35, 7 }
 0x1e4   : > { %v3985_v58 = vld [vmem:[%s15560_s5 + $0xa8] sm:$0xff] }
 0x1e5   : > { %v2493_v9 = vadd.f32 %v12053_v60, %v2268_v10  ;;  %v1600_v42 = vpop.permute.xlu0 %1599  ;;  %v12350_v60 = vpop.f32.mrb[18].mxu1  ;;  %v3984_v10 = vld [vmem:[%s15560_s5 + $0xa0] sm:$0xff] }
 0x1e6   : > { %v2007_v61 = vld [vmem:[#allocation3 + $0x260] sm:$0xff]  ;;  %1669 = vst.msk [vmem:[#allocation3 + $0x278] sm:$0xff] %vm1000_vm4, %v1600_v42  ;;  %v1150_v45 = vpop.permute.xlu1 %1149  ;;  %v12352_v34 = vpop.f32.mrb[19].mxu1  ;;  %v3045_v42 = vrot.slane %v12370_v28, 7 }
 0x1e7   : > { %2355 = vmatprep.mubr.f32.mxu0 %v2007_v61  ;;  %vm2623_vm14 = vcmp.ge.f32.partialorder %v2493_v9, 0.0  ;;  %v2656_v44 = vmul.f32 %v12175_v19, %v2493_v9  ;;  %1220 = vst.msk [vmem:[#allocation3 + $0x270] sm:$0xff] %vm1193_vm5, %v1150_v45  ;;  %v10737_v61 = vpack.c.bf16 %v3985_v58, %v3984_v10 }
 0x1e8   : > { %2356 = vmatmul.mubr.f32.gmra.mrb[50].mxu0 %v2006_v1  ;;  %v3968_v1 = vld [vmem:[%s15560_s5 + $0x20] sm:$0xff] }
 0x1e9   : > { %v2688_v7 = vsel %vm2623_vm14, %v2493_v9, %v2656_v44  ;;  %v1792_v12 = vpop.permute.xlu0 %1791  ;;  %v12389_v9 = vld [vmem:[#allocation4 + $0xf] sm:$0x1]  ;;  %v3115_v44 = vrot.slane %v3083_v16, 6  ;;  %10738 = vmatprep.subr.bf16.mxu0 %v10737_v61 }
 0x1ea   : > { %v2752_v48 = vcombine.high %v2688_v7, %v2688_v7  ;;  %2824 = vst.msk [vmem:[#allocation4 + $0x38] sm:$0xf] %vm2809_vm7, %v2688_v7  ;;  %v766_v49 = vpop.permute.xlu1 %765  ;;  %v2979_v7 = vrot.slane %v2947_v47, 6  ;;  %v3046_v47 = vsel %vm2907_vm1, %v3045_v42, %v3013_v52 }
 0x1eb   : > { %1861 = vst.msk [vmem:[#allocation3 + $0x278] sm:$0xff] %vm1193_vm5, %v1792_v12  ;;  %v7941_v12 = vld [vmem:[#allocation2 + $0x8] sm:$0xff] }
 0x1ec   : > { %835 = vst.msk [vmem:[#allocation3 + $0x288] sm:$0xff] %vm807_vm3, %v766_v49 }
 0x1ed   : > { %2825 = vst.msk [vmem:[#allocation4 + $0x3c] sm:$0xf] %vm2809_vm7, %v2752_v48  ;;  %v1409_v21 = vpop.permute.xlu0 %1408  ;;  %v2876_v48 = vld [vmem:[#allocation4 + $0x8] sm:$0x1] }
 0x1ee   : > { %1477 = vst.msk [vmem:[#allocation3 + $0x290] sm:$0xff] %vm807_vm3, %v1409_v21  ;;  %v2272_v37 = vpop.f32.mrb[16].mxu0  ;;  %v959_v5 = vpop.permute.xlu1 %958  ;;  %v2009_v54 = vld [vmem:[#allocation3 + $0x270] sm:$0xff] }
 0x1ef   : > { %v2273_v32 = vadd.f32 %v12165_v2, %v2272_v37  ;;  %v2274_v23 = vpop.f32.mrb[17].mxu0  ;;  %1028 = vst.msk [vmem:[#allocation3 + $0x288] sm:$0xff] %vm1000_vm4, %v959_v5  ;;  %v2948_v37 = vld [vmem:[#allocation4 + $0xd] sm:$0x1]  ;;  %v3047_v5 = vrot.slane %v12377_v41, 6 }
 0x1f0   : > { %7973 = vst.msk [vmem:[#allocation3 + $0x18] sm:$0xff] %vm472_vm0, %v7941_v12  ;;  %v3117_v23 = vrot.slane %v12389_v9, 5  ;;  %v2981_v16 = vrot.slane %v2948_v37, 5 }
 0x1f1   : > { %v2498_v6 = vadd.f32 %v12107_v63, %v2273_v32  ;;  %v1602_v43 = vpop.permute.xlu0 %1601  ;;  %v3048_v10 = vsel %vm2910_vm6, %v3047_v5, %v3046_v47 }
 0x1f2   : > { %v2010_v14 = vld [vmem:[#allocation3 + $0x278] sm:$0xff]  ;;  %1670 = vst.msk [vmem:[#allocation3 + $0x290] sm:$0xff] %vm1000_vm4, %v1602_v43  ;;  %v1152_v50 = vpop.permute.xlu1 %1151  ;;  %v12402_v43 = vpop.f32.mrb[20].mxu1 }
 0x1f3   : > { %2360 = vmatprep.mubr.f32.mxu0 %v2010_v14  ;;  %vm2624_vm15 = vcmp.ge.f32.partialorder %v2498_v6, 0.0  ;;  %v2657_v26 = vmul.f32 %v12175_v19, %v2498_v6  ;;  %1221 = vst.msk [vmem:[#allocation3 + $0x288] sm:$0xff] %vm1193_vm5, %v1152_v50 }
 0x1f4   : > { %2361 = vmatmul.mubr.f32.gmra.mrb[52].mxu0 %v2009_v54 }
 0x1f5   : > { %v2689_v20 = vsel %vm2624_vm15, %v2498_v6, %v2657_v26  ;;  %v1794_v29 = vpop.permute.xlu0 %1793  ;;  %v3016_v6 = vld [vmem:[#allocation4 + $0xe] sm:$0x1]  ;;  %v3114_v26 = vsel %vm2907_vm1, %v3113_v30, %v3081_v33 }
 0x1f6   : > { %v2753_v13 = vcombine.high %v2689_v20, %v2689_v20  ;;  %2826 = vst.msk [vmem:[#allocation4 + $0x40] sm:$0xf] %vm2809_vm7, %v2689_v20  ;;  %v768_v63 = vpop.permute.xlu1 %767  ;;  %v2978_v20 = vsel %vm2907_vm1, %v2977_v59, %v2945_v17  ;;  %v3049_v41 = vrot.slane %v3016_v6, 5 }
 0x1f7   : > { %1862 = vst.msk [vmem:[#allocation3 + $0x290] sm:$0xff] %vm1193_vm5, %v1794_v29 }
 0x1f8   : > { %836 = vst.msk [vmem:[#allocation3 + $0x2a0] sm:$0xff] %vm807_vm3, %v768_v63  ;;  %v2877_v63 = vld [vmem:[#allocation4 + $0xc] sm:$0x1] }
 0x1f9   : > { %2827 = vst.msk [vmem:[#allocation4 + $0x44] sm:$0xf] %vm2809_vm7, %v2753_v13  ;;  %v1411_v22 = vpop.permute.xlu0 %1410  ;;  %v12406_v13 = vpop.f32.mrb[21].mxu1 }
 0x1fa   : > { %1478 = vst.msk [vmem:[#allocation3 + $0x2a8] sm:$0xff] %vm807_vm3, %v1411_v22  ;;  %v2277_v62 = vpop.f32.mrb[18].mxu0  ;;  %v961_v24 = vpop.permute.xlu1 %960  ;;  %v2012_v56 = vld [vmem:[#allocation3 + $0x288] sm:$0xff]  ;;  %v2909_v22 = vrot.slane %v2876_v48, 6 }
 0x1fb   : > { %v2278_v18 = vadd.f32 %v12165_v2, %v2277_v62  ;;  %v2279_v25 = vpop.f32.mrb[19].mxu0  ;;  %1029 = vst.msk [vmem:[#allocation3 + $0x2a0] sm:$0xff] %vm1000_vm4, %v961_v24  ;;  %v3116_v62 = vsel %vm2910_vm6, %v3115_v44, %v3114_v26 }
 0x1fc   : > { %v2980_v25 = vsel %vm2910_vm6, %v2979_v7, %v2978_v20 }
 0x1fd   : > { %v2503_v27 = vadd.f32 %v12101_v38, %v2278_v18  ;;  %v1604_v46 = vpop.permute.xlu0 %1603  ;;  %v3969_v38 = vld [vmem:[%s15560_s5 + $0x28] sm:$0xff]  ;;  %v3085_v21 = vld [vmem:[#allocation4 + $0x43] sm:$0x1]  ;;  %v2949_v54 = vld [vmem:[#allocation4 + $0x41] sm:$0x1]  ;;  %v2982_v44 = vsel %vm2913_vm8, %v2981_v16, %v2980_v25 }
 0x1fe   : > { %v2013_v57 = vld [vmem:[#allocation3 + $0x290] sm:$0xff]  ;;  %1671 = vst.msk [vmem:[#allocation3 + $0x2a8] sm:$0xff] %vm1000_vm4, %v1604_v46  ;;  %v1154_v45 = vpop.permute.xlu1 %1153  ;;  %v10739_v32 = vpack.c.bf16 %v3969_v38, %v3968_v1  ;;  %v3017_v29 = vld [vmem:[#allocation4 + $0x42] sm:$0x1]  ;;  %v3119_v24 = vrot.slane %v3085_v21, 4  ;;  %v2908_v1 = vsel %vm2907_vm1, %v2906_v36, %v2874_v3 }
 0x1ff   : > { %2365 = vmatprep.mubr.f32.mxu0 %v2013_v57  ;;  %vm2625_vm10 = vcmp.ge.f32.partialorder %v2503_v27, 0.0  ;;  %v2658_v49 = vmul.f32 %v12175_v19, %v2503_v27  ;;  %1222 = vst.msk [vmem:[#allocation3 + $0x2a0] sm:$0xff] %vm1193_vm5, %v1154_v45  ;;  %v2878_v30 = vld [vmem:[#allocation4 + $0x40] sm:$0x1]  ;;  %v3051_v58 = vrot.slane %v3017_v29, 4  ;;  %v3118_v57 = vsel %vm2913_vm8, %v3117_v23, %v3116_v62 }
 0x200   : > { %2366 = vmatmul.mubr.f32.gmra.mrb[54].mxu0 %v2012_v56  ;;  %v3086_v28 = vld [vmem:[#allocation4 + $0x47] sm:$0x1]  ;;  %v2950_v18 = vld [vmem:[#allocation4 + $0x45] sm:$0x1]  ;;  %v2983_v56 = vrot.slane %v2949_v54, 4  ;;  %v2911_v61 = vsel %vm2910_vm6, %v2909_v22, %v2908_v1  ;;  %v3120_v33 = vsel %vm2916_vm9, %v3119_v24, %v3118_v57  ;;  %v2915_v7 = vrot.slane %v2878_v30, 4 }
 0x201   : > { %v2690_v14 = vsel %vm2625_vm10, %v2503_v27, %v2658_v49  ;;  %v1796_v50 = vpop.permute.xlu0 %1795  ;;  %10740 = vmatpush3.bf16.msra.mxu0 %v10739_v32  ;;  %v3018_v59 = vld [vmem:[#allocation4 + $0x46] sm:$0x1]  ;;  %v2912_v27 = vrot.slane %v2877_v63, 5  ;;  %v3121_v9 = vrot.slane %v3086_v28, 3  ;;  %v2985_v17 = vrot.slane %v2950_v18, 3  ;;  %v3987_v54 = vld [vmem:[%s15560_s5 + $0xb8] sm:$0xff] }
 0x202   : > { %v2754_v11 = vcombine.high %v2690_v14, %v2690_v14  ;;  %2828 = vst.msk [vmem:[#allocation4 + $0x48] sm:$0xf] %vm2809_vm7, %v2690_v14  ;;  %v770_v35 = vpop.permute.xlu1 %769  ;;  %v2879_v38 = vld [vmem:[#allocation4 + $0x44] sm:$0x1]  ;;  %v2984_v48 = vsel %vm2916_vm9, %v2983_v56, %v2982_v44  ;;  %v3050_v49 = vsel %vm2913_vm8, %v3049_v41, %v3048_v10  ;;  %v3053_v21 = vrot.slane %v3018_v59, 3 }
 0x203   : > { %1863 = vst.msk [vmem:[#allocation3 + $0x2a8] sm:$0xff] %vm1193_vm5, %v1796_v50  ;;  %v3052_v5 = vsel %vm2916_vm9, %v3051_v58, %v3050_v49  ;;  %v2914_v32 = vsel %vm2913_vm8, %v2912_v27, %v2911_v61  ;;  %v3986_v23 = vld [vmem:[%s15560_s5 + $0xb0] sm:$0xff]  ;;  %v3122_v26 = vsel %vm2919_vm11, %v3121_v9, %v3120_v33  ;;  %v2918_v29 = vrot.slane %v2879_v38, 3 }
 0x204   : > { %837 = vst.msk [vmem:[#allocation3 + $0x2b8] sm:$0xff] %vm807_vm3, %v770_v35  ;;  %v10741_v63 = vpack.c.bf16 %v3987_v54, %v3986_v23  ;;  %v2986_v35 = vsel %vm2919_vm11, %v2985_v17, %v2984_v48  ;;  %v3970_v16 = vld [vmem:[%s15560_s5 + $0x30] sm:$0xff]  ;;  %v3054_v56 = vsel %vm2919_vm11, %v3053_v21, %v3052_v5  ;;  %v3215_v21 = vld [vmem:[#allocation4 + $0x15] sm:$0x1]  ;;  %v3351_v54 = vld [vmem:[#allocation4 + $0x17] sm:$0x1] }
 0x205   : > { %2829 = vst.msk [vmem:[#allocation4 + $0x4c] sm:$0xf] %vm2809_vm7, %v2754_v11  ;;  %v1413_v46 = vpop.permute.xlu0 %1412 }
 0x206   : > { %1479 = vst.msk [vmem:[#allocation3 + $0x2c0] sm:$0xff] %vm807_vm3, %v1413_v46  ;;  %v2282_v42 = vpop.f32.mrb[20].mxu0  ;;  %v963_v45 = vpop.permute.xlu1 %962  ;;  %v2015_v37 = vld [vmem:[#allocation3 + $0x2a0] sm:$0xff]  ;;  %10742 = vmatprep.subr.bf16.mxu0 %v10741_v63  ;;  %v3988_v63 = vld [vmem:[%s15560_s5 + $0xc0] sm:$0xff] }
 0x207   : > { %v2283_v36 = vadd.f32 %v12165_v2, %v2282_v42  ;;  %v2284_v12 = vpop.f32.mrb[21].mxu0  ;;  %1030 = vst.msk [vmem:[#allocation3 + $0x2b8] sm:$0xff] %vm1000_vm4, %v963_v45  ;;  %v3971_v42 = vld [vmem:[%s15560_s5 + $0x38] sm:$0xff] }
 0x208   : > { %v10743_v12 = vpack.c.bf16 %v3971_v42, %v3970_v16  ;;  %v3153_v42 = vld [vmem:[#allocation4 + $0x1c] sm:$0x1] }
 0x209   : > { %v2508_v52 = vadd.f32 %v12155_v51, %v2283_v36  ;;  %v1606_v6 = vpop.permute.xlu0 %1605  ;;  %v3087_v50 = vld [vmem:[#allocation4 + $0x4b] sm:$0x1]  ;;  %v2951_v20 = vld [vmem:[#allocation4 + $0x49] sm:$0x1]  ;;  %v3019_v62 = vld [vmem:[#allocation4 + $0x4a] sm:$0x1]  ;;  %v2917_v51 = vsel %vm2916_vm9, %v2915_v7, %v2914_v32 }
 0x20a   : > { %v2016_v14 = vld [vmem:[#allocation3 + $0x2a8] sm:$0xff]  ;;  %1672 = vst.msk [vmem:[#allocation3 + $0x2c0] sm:$0xff] %vm1000_vm4, %v1606_v6  ;;  %v1156_v22 = vpop.permute.xlu1 %1155  ;;  %v3123_v11 = vrot.slane %v3087_v50, 2  ;;  %v2987_v28 = vrot.slane %v2951_v20, 2  ;;  %v3055_v47 = vrot.slane %v3019_v62, 2  ;;  %v2920_v61 = vsel %vm2919_vm11, %v2918_v29, %v2917_v51  ;;  %10744 = vmatpush3.bf16.msra.mxu0 %v10743_v12  ;;  %v3997_v12 = vld [vmem:[%s15560_s5 + $0x108] sm:$0xff] }
 0x20b   : > { %2370 = vmatprep.mubr.f32.mxu0 %v2016_v14  ;;  %v2880_v24 = vld [vmem:[#allocation4 + $0x48] sm:$0x1]  ;;  %vm2626_vm14 = vcmp.ge.f32.partialorder %v2508_v52, 0.0  ;;  %v2659_v3 = vmul.f32 %v12175_v19, %v2508_v52  ;;  %1223 = vst.msk [vmem:[#allocation3 + $0x2b8] sm:$0xff] %vm1193_vm5, %v1156_v22  ;;  %v3216_v50 = vld [vmem:[#allocation4 + $0x19] sm:$0x1] }
 0x20c   : > { %2371 = vmatmul.mubr.f32.gmra.mrb[56].mxu0 %v2015_v37  ;;  %v3088_v18 = vld [vmem:[#allocation4 + $0x4f] sm:$0x1]  ;;  %v2952_v25 = vld [vmem:[#allocation4 + $0x4d] sm:$0x1]  ;;  %v3124_v41 = vsel %vm2922_vm12, %v3123_v11, %v3122_v26  ;;  %v2988_v59 = vsel %vm2922_vm12, %v2987_v28, %v2986_v35  ;;  %v3020_v58 = vld [vmem:[#allocation4 + $0x4e] sm:$0x1]  ;;  %v3056_v38 = vsel %vm2922_vm12, %v3055_v47, %v3054_v56 }
 0x20d   : > { %v3125_v30 = vrot.slane %v3088_v18, 1  ;;  %v2989_v10 = vrot.slane %v2952_v25, 1  ;;  %v2881_v1 = vld [vmem:[#allocation4 + $0x4c] sm:$0x1]  ;;  %v2691_v27 = vsel %vm2626_vm14, %v2508_v52, %v2659_v3  ;;  %v1798_v46 = vpop.permute.xlu0 %1797  ;;  %v3057_v57 = vrot.slane %v3020_v58, 1  ;;  %v3972_v22 = vld [vmem:[%s15560_s5 + $0x40] sm:$0xff] }
 0x20e   : > { %v2921_v9 = vrot.slane %v2880_v24, 2  ;;  %v2755_v45 = vcombine.high %v2691_v27, %v2691_v27  ;;  %2830 = vst.msk [vmem:[#allocation4 + $0x50] sm:$0xf] %vm2809_vm7, %v2691_v27  ;;  %v772_v17 = vpop.permute.xlu1 %771  ;;  %v2924_v7 = vrot.slane %v2881_v1, 1  ;;  %v12462_v37 = vld [vmem:[#allocation4 + $0x16] sm:$0x1] }
 0x20f   : > { %1864 = vst.msk [vmem:[#allocation3 + $0x2c0] sm:$0xff] %vm1193_vm5, %v1798_v46  ;;  %v3126_v33 = vsel %vm2925_vm13, %v3125_v30, %v3124_v41  ;;  %v2990_v44 = vsel %vm2925_vm13, %v2989_v10, %v2988_v59  ;;  %v3058_v32 = vsel %vm2925_vm13, %v3057_v57, %v3056_v38  ;;  %v12470_v26 = vld [vmem:[#allocation4 + $0x14] sm:$0x1]  ;;  %v3246_v20 = vrot.slane %v3215_v21, 7  ;;  %v3284_v62 = vld [vmem:[#allocation4 + $0x1a] sm:$0x1] }
 0x210   : > { %3141 = vrot.lane.b32.xlu0 %v3126_v33, %s10925_s17  ;;  %3005 = vrot.lane.b32.xlu1 %v2990_v44, %s10924_s16  ;;  %838 = vst.msk [vmem:[#allocation3 + $0x2d0] sm:$0xff] %vm807_vm3, %v772_v17  ;;  %v2923_v36 = vsel %vm2922_vm12, %v2921_v9, %v2920_v61  ;;  %v3314_v29 = vrot.slane %v12462_v37, 7  ;;  %v12483_v24 = vld [vmem:[#allocation4 + $0x1b] sm:$0x1]  ;;  %v3382_v51 = vrot.slane %v3351_v54, 7  ;;  %v3248_v30 = vrot.slane %v3216_v50, 6 }
 0x211   : > { %2831 = vst.msk [vmem:[#allocation4 + $0x54] sm:$0xf] %vm2809_vm7, %v2755_v45  ;;  %v2926_v48 = vsel %vm2925_vm13, %v2924_v7, %v2923_v36  ;;  %v1415_v49 = vpop.permute.xlu0 %1414  ;;  %v3214_v18 = vld [vmem:[#allocation4 + $0x11] sm:$0x1]  ;;  %v12486_v25 = vld [vmem:[#allocation4 + $0x1d] sm:$0x1] }
 0x212   : > { %2943 = vst.msk [vmem:[#allocation5] sm:$0xff] %vm472_vm0, %v2926_v48  ;;  %v2287_v5 = vpop.f32.mrb[22].mxu0  ;;  %v965_v23 = vpop.permute.xlu1 %964  ;;  %v2018_v14 = vld [vmem:[#allocation3 + $0x2b8] sm:$0xff]  ;;  %v3282_v59 = vld [vmem:[#allocation4 + $0x12] sm:$0x1]  ;;  %v3316_v46 = vrot.slane %v3284_v62, 6  ;;  %v3247_v17 = vsel %vm2907_vm1, %v3246_v20, %v3214_v18 }
 0x213   : > { %1480 = vst.msk [vmem:[#allocation3 + $0x2d8] sm:$0xff] %vm807_vm3, %v1415_v49  ;;  %v2288_v52 = vadd.f32 %v12165_v2, %v2287_v5  ;;  %v2289_v6 = vpop.f32.mrb[23].mxu0  ;;  %v3989_v2 = vld [vmem:[%s15560_s5 + $0xc8] sm:$0xff]  ;;  %v3350_v58 = vld [vmem:[#allocation4 + $0x13] sm:$0x1]  ;;  %v3384_v57 = vrot.slane %v12483_v24, 6  ;;  %v3315_v5 = vsel %vm2907_vm1, %v3314_v29, %v3282_v59 }
 0x214   : > { %3073 = vrot.lane.b32.xlu1 %v3058_v32, %s10923_s15  ;;  %1031 = vst.msk [vmem:[#allocation3 + $0x2d0] sm:$0xff] %vm1000_vm4, %v965_v23  ;;  %v10745_v16 = vpack.c.bf16 %v3989_v2, %v3988_v63  ;;  %v3973_v56 = vld [vmem:[%s15560_s5 + $0x48] sm:$0xff]  ;;  %v4012_v9 = vld [vmem:[%s15560_s5 + $0x180] sm:$0xff]  ;;  %v12507_v38 = vpop.f32.mrb[22].mxu1  ;;  %v3383_v32 = vsel %vm2907_vm1, %v3382_v51, %v3350_v58  ;;  %v3249_v6 = vsel %vm2910_vm6, %v3248_v30, %v3247_v17 }
 0x215   : > { %v2513_v11 = vadd.f32 %v12149_v55, %v2288_v52  ;;  %v1608_v35 = vpop.permute.xlu0 %1607  ;;  %v3152_v47 = vld [vmem:[#allocation4 + $0x18] sm:$0x1]  ;;  %v3182_v55 = vrot.slane %v12470_v26, 7  ;;  %v12494_v10 = vld [vmem:[#allocation4 + $0x1e] sm:$0x1]  ;;  %v10747_v27 = vpack.c.bf16 %v3973_v56, %v3972_v22  ;;  %v3996_v36 = vld [vmem:[%s15560_s5 + $0x100] sm:$0xff]  ;;  %v3317_v22 = vsel %vm2910_vm6, %v3316_v46, %v3315_v5 }
 0x216   : > { %v2019_v28 = vld [vmem:[#allocation3 + $0x2c0] sm:$0xff]  ;;  %1673 = vst.msk [vmem:[#allocation3 + $0x2d8] sm:$0xff] %vm1000_vm4, %v1608_v35  ;;  %v1158_v3 = vpop.permute.xlu1 %1157  ;;  %v12496_v1 = vld [vmem:[#allocation4 + $0x1f] sm:$0x1]  ;;  %10746 = vmatprep.subr.bf16.mxu0 %v10745_v16  ;;  %v3218_v44 = vld [vmem:[#allocation4 + $0x51] sm:$0x1]  ;;  %v10763_v23 = vpack.c.bf16 %v3997_v12, %v3996_v36  ;;  %v3385_v51 = vsel %vm2910_vm6, %v3384_v57, %v3383_v32 }
 0x217   : > { %2375 = vmatprep.mubr.f32.mxu0 %v2019_v28  ;;  %vm2627_vm15 = vcmp.ge.f32.partialorder %v2513_v11, 0.0  ;;  %v2660_v41 = vmul.f32 %v12175_v19, %v2513_v11  ;;  %1224 = vst.msk [vmem:[#allocation3 + $0x2d0] sm:$0xff] %vm1193_vm5, %v1158_v3  ;;  %v4013_v61 = vld [vmem:[%s15560_s5 + $0x188] sm:$0xff]  ;;  %10748 = vmatpush3.bf16.msra.mxu0 %v10747_v27  ;;  %v3184_v48 = vrot.slane %v3152_v47, 6  ;;  %v3286_v37 = vld [vmem:[#allocation4 + $0x52] sm:$0x1] }
 0x218   : > { %2376 = vmatmul.mubr.f32.gmra.mrb[58].mxu0 %v2018_v14  ;;  %v10761_v7 = vpack.c.bf16 %v4013_v61, %v4012_v9  ;;  %v12519_v54 = vpop.f32.mrb[23].mxu1  ;;  %v3150_v52 = vld [vmem:[#allocation4 + $0x10] sm:$0x1]  ;;  %v3250_v14 = vrot.slane %v12486_v25, 5  ;;  %v3318_v50 = vrot.slane %v12494_v10, 5  ;;  %v3252_v2 = vrot.slane %v3218_v44, 4 }
 0x219   : > { %v2692_v45 = vsel %vm2627_vm15, %v2513_v11, %v2660_v41  ;;  %v1800_v33 = vpop.permute.xlu0 %1799  ;;  %v3354_v26 = vld [vmem:[#allocation4 + $0x53] sm:$0x1]  ;;  %v3154_v20 = vld [vmem:[#allocation4 + $0x50] sm:$0x1]  ;;  %v3183_v63 = vsel %vm2907_vm1, %v3182_v55, %v3150_v52  ;;  %v3219_v29 = vld [vmem:[#allocation4 + $0x55] sm:$0x1] }
 0x21a   : > { %v2756_v49 = vcombine.high %v2692_v45, %v2692_v45  ;;  %2832 = vst.msk [vmem:[#allocation4 + $0x58] sm:$0xf] %vm2809_vm7, %v2692_v45  ;;  %v774_v21 = vpop.permute.xlu1 %773  ;;  %10762 = vmatprep.subr.bf16.mxu1 %v10761_v7  ;;  %v3386_v11 = vrot.slane %v12496_v1, 5  ;;  %v3186_v35 = vrot.slane %v3153_v42, 5  ;;  %v3287_v62 = vld [vmem:[#allocation4 + $0x56] sm:$0x1]  ;;  %v3185_v16 = vsel %vm2910_vm6, %v3184_v48, %v3183_v63 }
 0x21b   : > { %1865 = vst.msk [vmem:[#allocation3 + $0x2d8] sm:$0xff] %vm1193_vm5, %v1800_v33  ;;  %10764 = vmatpush3.bf16.msra.mxu1 %v10763_v23  ;;  %v3320_v24 = vrot.slane %v3286_v37, 4  ;;  %v3388_v25 = vrot.slane %v3354_v26, 4  ;;  %v3155_v56 = vld [vmem:[#allocation4 + $0x54] sm:$0x1]  ;;  %v3188_v47 = vrot.slane %v3154_v20, 4  ;;  %v3251_v59 = vsel %vm2913_vm8, %v3250_v14, %v3249_v6 }
 0x21c   : > { %839 = vst.msk [vmem:[#allocation3 + $0x2e8] sm:$0xff] %vm807_vm3, %v774_v21  ;;  %v12535_v55 = vld [vmem:[%s15559_s4] ss:$0 sm:$0xff]  ;;  %v3254_v10 = vrot.slane %v3219_v29, 3  ;;  %v3319_v58 = vsel %vm2913_vm8, %v3318_v50, %v3317_v22  ;;  %v12541_v1 = vld [vmem:[#allocation4 + $0x57] sm:$0x1]  ;;  %v3253_v46 = vsel %vm2916_vm9, %v3252_v2, %v3251_v59  ;;  %v3387_v9 = vsel %vm2913_vm8, %v3386_v11, %v3385_v51 }
 0x21d   : > { %2833 = vst.msk [vmem:[#allocation4 + $0x5c] sm:$0xf] %vm2809_vm7, %v2756_v49  ;;  %v1417_v28 = vpop.permute.xlu0 %1416  ;;  %v3322_v57 = vrot.slane %v3287_v62, 3  ;;  %v3187_v61 = vsel %vm2913_vm8, %v3186_v35, %v3185_v16  ;;  %v4014_v42 = vld [vmem:[%s15560_s5 + $0x190] sm:$0xff]  ;;  %v4015_v45 = vld [vmem:[%s15560_s5 + $0x198] sm:$0xff]  ;;  %v3321_v12 = vsel %vm2916_vm9, %v3320_v24, %v3319_v58  ;;  %v3190_v48 = vrot.slane %v3155_v56, 3 }
 0x21e   : > { %1481 = vst.msk [vmem:[#allocation3 + $0x2f0] sm:$0xff] %vm807_vm3, %v1417_v28  ;;  %v2292_v3 = vpop.f32.mrb[24].mxu0  ;;  %v967_v18 = vpop.permute.xlu1 %966  ;;  %v2021_v27 = vld [vmem:[#allocation3 + $0x2d0] sm:$0xff]  ;;  %v10765_v49 = vpack.c.bf16 %v4015_v45, %v4014_v42  ;;  %v3389_v32 = vsel %vm2916_vm9, %v3388_v25, %v3387_v9  ;;  %v3255_v14 = vsel %vm2919_vm11, %v3254_v10, %v3253_v46  ;;  %v3390_v2 = vrot.slane %v12541_v1, 3  ;;  %v3990_v11 = vld [vmem:[%s15560_s5 + $0xd0] sm:$0xff]  ;;  %v3999_v25 = vld [vmem:[%s15560_s5 + $0x118] sm:$0xff] }
 0x21f   : > { %v2293_v41 = vadd.f32 %v12535_v55, %v2292_v3  ;;  %v2294_v30 = vpop.f32.mrb[25].mxu0  ;;  %1032 = vst.msk [vmem:[#allocation3 + $0x2e8] sm:$0xff] %vm1000_vm4, %v967_v18  ;;  %v3323_v29 = vsel %vm2919_vm11, %v3322_v57, %v3321_v12  ;;  %v3991_v3 = vld [vmem:[%s15560_s5 + $0xd8] sm:$0xff]  ;;  %v3998_v18 = vld [vmem:[%s15560_s5 + $0x110] sm:$0xff]  ;;  %v3992_v1 = vld [vmem:[%s15560_s5 + $0xe0] sm:$0xff] }
 0x220   : > { %10766 = vmatprep.subr.bf16.mxu1 %v10765_v49  ;;  %v3974_v10 = vld [vmem:[%s15560_s5 + $0x50] sm:$0xff]  ;;  %v3975_v58 = vld [vmem:[%s15560_s5 + $0x58] sm:$0xff]  ;;  %v10749_v57 = vpack.c.bf16 %v3991_v3, %v3990_v11  ;;  %v10767_v9 = vpack.c.bf16 %v3999_v25, %v3998_v18  ;;  %v3976_v42 = vld [vmem:[%s15560_s5 + $0x60] sm:$0xff] }
 0x221   : > { %v2518_v33 = vadd.f32 %v12220_v53, %v2293_v41  ;;  %v1610_v44 = vpop.permute.xlu0 %1609  ;;  %v3220_v7 = vld [vmem:[#allocation4 + $0x59] sm:$0x1]  ;;  %v3288_v36 = vld [vmem:[#allocation4 + $0x5a] sm:$0x1]  ;;  %v12555_v5 = vld [vmem:[#allocation4 + $0x5b] sm:$0x1]  ;;  %v3189_v53 = vsel %vm2916_vm9, %v3188_v47, %v3187_v61 }
 0x222   : > { %v2022_v17 = vld [vmem:[#allocation3 + $0x2d8] sm:$0xff]  ;;  %1674 = vst.msk [vmem:[#allocation3 + $0x2f0] sm:$0xff] %vm1000_vm4, %v1610_v44  ;;  %v1160_v21 = vpop.permute.xlu1 %1159  ;;  %v3256_v37 = vrot.slane %v3220_v7, 2  ;;  %v3324_v26 = vrot.slane %v3288_v36, 2  ;;  %v3392_v24 = vrot.slane %v12555_v5, 2  ;;  %v3191_v16 = vsel %vm2919_vm11, %v3190_v48, %v3189_v53  ;;  %10750 = vmatprep.subr.bf16.mxu0 %v10749_v57  ;;  %10768 = vmatpush3.bf16.msra.mxu1 %v10767_v9  ;;  %v3994_v48 = vld [vmem:[%s15560_s5 + $0xf0] sm:$0xff] }
 0x223   : > { %2380 = vmatprep.mubr.f32.mxu0 %v2022_v17  ;;  %v3156_v23 = vld [vmem:[#allocation4 + $0x58] sm:$0x1]  ;;  %vm2628_vm10 = vcmp.ge.f32.partialorder %v2518_v33, 0.0  ;;  %v2661_v52 = vmul.f32 %v12175_v19, %v2518_v33  ;;  %1225 = vst.msk [vmem:[#allocation3 + $0x2e8] sm:$0xff] %vm1193_vm5, %v1160_v21  ;;  %v10751_v17 = vpack.c.bf16 %v3975_v58, %v3974_v10  ;;  %v12610_v36 = vld [vmem:[#allocation4 + $0x26] sm:$0x1]  ;;  %v3391_v5 = vsel %vm2919_vm11, %v3390_v2, %v3389_v32 }
 0x224   : > { %2381 = vmatmul.mubr.f32.gmra.mrb[60].mxu0 %v2021_v27  ;;  %v3221_v6 = vld [vmem:[#allocation4 + $0x5d] sm:$0x1]  ;;  %v3289_v50 = vld [vmem:[#allocation4 + $0x5e] sm:$0x1]  ;;  %v3257_v20 = vsel %vm2922_vm12, %v3256_v37, %v3255_v14  ;;  %v3157_v22 = vld [vmem:[#allocation4 + $0x5c] sm:$0x1]  ;;  %v3325_v27 = vsel %vm2922_vm12, %v3324_v26, %v3323_v29 }
 0x225   : > { %v3258_v63 = vrot.slane %v3221_v6, 1  ;;  %v2693_v35 = vsel %vm2628_vm10, %v2518_v33, %v2661_v52  ;;  %v1802_v28 = vpop.permute.xlu0 %1801  ;;  %v12568_v62 = vld [vmem:[#allocation4 + $0x5f] sm:$0x1]  ;;  %v3192_v51 = vrot.slane %v3156_v23, 2  ;;  %v3326_v41 = vrot.slane %v3289_v50, 1  ;;  %v3995_v49 = vld [vmem:[%s15560_s5 + $0xf8] sm:$0xff]  ;;  %10752 = vmatpush3.bf16.msra.mxu0 %v10751_v17 }
 0x226   : > { %v2757_v56 = vcombine.high %v2693_v35, %v2693_v35  ;;  %2834 = vst.msk [vmem:[#allocation4 + $0x60] sm:$0xf] %vm2809_vm7, %v2693_v35  ;;  %v8071_v30 = vpop.permute.xlu1 %8070  ;;  %v3194_v59 = vrot.slane %v3157_v22, 1  ;;  %v3993_v61 = vld [vmem:[%s15560_s5 + $0xe8] sm:$0xff]  ;;  %v12607_v33 = vld [vmem:[#allocation4 + $0x25] sm:$0x1] }
 0x227   : > { %1866 = vst.msk [vmem:[#allocation3 + $0x2f0] sm:$0xff] %vm1193_vm5, %v1802_v28  ;;  %v3259_v47 = vsel %vm2925_vm13, %v3258_v63, %v3257_v20  ;;  %v3193_v46 = vsel %vm2922_vm12, %v3192_v51, %v3191_v16  ;;  %v3977_v45 = vld [vmem:[%s15560_s5 + $0x68] sm:$0xff]  ;;  %v10753_v7 = vpack.c.bf16 %v3993_v61, %v3992_v1  ;;  %v3327_v37 = vsel %vm2925_vm13, %v3326_v41, %v3325_v27  ;;  %v12622_v53 = vld [vmem:[#allocation4 + $0x29] sm:$0x1]  ;;  %v12624_v52 = vld [vmem:[#allocation4 + $0x27] sm:$0x1] }
 0x228   : > { %3274 = vrot.lane.b32.xlu0 %v3259_v47, %s10924_s16  ;;  %8165 = vst.msk [vmem:[#allocation3 + $0x18] sm:$0xff] %vm807_vm3, %v8071_v30  ;;  %v3195_v44 = vsel %vm2925_vm13, %v3194_v59, %v3193_v46  ;;  %v3394_v23 = vrot.slane %v12568_v62, 1  ;;  %v10755_v14 = vpack.c.bf16 %v3977_v45, %v3976_v42  ;;  %v3393_v63 = vsel %vm2922_vm12, %v3392_v24, %v3391_v5  ;;  %v3978_v32 = vld [vmem:[%s15560_s5 + $0x70] sm:$0xff]  ;;  %v3979_v29 = vld [vmem:[%s15560_s5 + $0x78] sm:$0xff]  ;;  %v4016_v11 = vld [vmem:[%s15560_s5 + $0x1a0] sm:$0xff] }
 0x229   : > { %2835 = vst.msk [vmem:[#allocation4 + $0x64] sm:$0xf] %vm2809_vm7, %v2757_v56  ;;  %v8069_v12 = vpop.permute.xlu0 %8068  ;;  %10754 = vmatprep.subr.bf16.mxu0 %v10753_v7  ;;  %v12637_v2 = vld [vmem:[#allocation4 + $0x24] sm:$0x1]  ;;  %v3515_v22 = vrot.slane %v12607_v33, 7  ;;  %v4017_v35 = vld [vmem:[%s15560_s5 + $0x1a8] sm:$0xff]  ;;  %v10757_v28 = vpack.c.bf16 %v3995_v49, %v3994_v48  ;;  %v10759_v10 = vpack.c.bf16 %v3979_v29, %v3978_v32 }
 0x22a   : > { %3212 = vst.msk [vmem:[#allocation5 + $0x8] sm:$0xff] %vm472_vm0, %v3195_v44  ;;  %v2297_v21 = vpop.f32.mrb[26].mxu0  ;;  %v8263_v6 = vpop.permute.xlu1 %8262  ;;  %v2024_v20 = vld [vmem:[#allocation3 + $0x2e8] sm:$0xff]  ;;  %v4000_v62 = vld [vmem:[%s15560_s5 + $0x120] sm:$0xff]  ;;  %v3583_v3 = vrot.slane %v12610_v36, 7  ;;  %v10769_v56 = vpack.c.bf16 %v4017_v35, %v4016_v11  ;;  %v3395_v47 = vsel %vm2925_vm13, %v3394_v23, %v3393_v63  ;;  %v3651_v59 = vrot.slane %v12624_v52, 7  ;;  %10756 = vmatpush3.bf16.msra.mxu0 %v10755_v14 }
 0x22b   : > { %8164 = vst.msk [vmem:[#allocation3] sm:$0xff] %vm807_vm3, %v8069_v12  ;;  %v2298_v50 = vadd.f32 %v12535_v55, %v2297_v21  ;;  %v2299_v26 = vpop.f32.mrb[27].mxu0  ;;  %v3553_v16 = vld [vmem:[#allocation4 + $0x2a] sm:$0x1]  ;;  %v12651_v18 = vld [vmem:[#allocation4 + $0x2b] sm:$0x1]  ;;  %10758 = vmatprep.subr.bf16.mxu0 %v10757_v28 }
 0x22c   : > { %3342 = vrot.lane.b32.xlu0 %v3327_v37, %s10923_s15  ;;  %8357 = vst.msk [vmem:[#allocation3 + $0x18] sm:$0xff] %vm1000_vm4, %v8263_v6  ;;  %v3483_v41 = vld [vmem:[#allocation4 + $0x21] sm:$0x1]  ;;  %v3486_v30 = vld [vmem:[#allocation4 + $0x2d] sm:$0x1]  ;;  %v3517_v27 = vrot.slane %v12622_v53, 6  ;;  %10770 = vmatprep.subr.bf16.mxu1 %v10769_v56 }
 0x22d   : > { %v2523_v24 = vadd.f32 %v12214_v8, %v2298_v50  ;;  %v8261_v25 = vpop.permute.xlu0 %8260  ;;  %v4001_v8 = vld [vmem:[%s15560_s5 + $0x128] sm:$0xff]  ;;  %v3421_v58 = vld [vmem:[#allocation4 + $0x28] sm:$0x1]  ;;  %v3554_v46 = vld [vmem:[#allocation4 + $0x2e] sm:$0x1]  ;;  %v3585_v45 = vrot.slane %v3553_v16, 6  ;;  %v3516_v36 = vsel %vm2907_vm1, %v3515_v22, %v3483_v41 }
 0x22e   : > { %v2025_v51 = vld [vmem:[#allocation3 + $0x2f0] sm:$0xff]  ;;  %8356 = vst.msk [vmem:[#allocation3] sm:$0xff] %vm1000_vm4, %v8261_v25  ;;  %v10771_v57 = vpack.c.bf16 %v4001_v8, %v4000_v62  ;;  %v3422_v9 = vld [vmem:[#allocation4 + $0x2c] sm:$0x1]  ;;  %v3487_v61 = vld [vmem:[#allocation4 + $0x61] sm:$0x1]  ;;  %10760 = vmatpush3.bf16.msra.mxu0 %v10759_v10 }
 0x22f   : > { %2385 = vmatprep.mubr.f32.mxu0 %v2025_v51  ;;  %vm2629_vm14 = vcmp.ge.f32.partialorder %v2523_v24, 0.0  ;;  %v2662_v1 = vmul.f32 %v12175_v19, %v2523_v24  ;;  %v3551_v42 = vld [vmem:[#allocation4 + $0x22] sm:$0x1]  ;;  %v4019_v44 = vld [vmem:[%s15560_s5 + $0x1b8] sm:$0xff]  ;;  %v3451_v17 = vrot.slane %v12637_v2, 7  ;;  %v12671_v49 = vpop.f32.mrb[24].mxu1 }
 0x230   : > { %2386 = vmatmul.mubr.f32.gmra.mrb[62].mxu0 %v2024_v20  ;;  %3410 = vrot.lane.b32.xlu0 %v3395_v47, %s10925_s17  ;;  %v4018_v33 = vld [vmem:[%s15560_s5 + $0x1b0] sm:$0xff]  ;;  %v4003_v37 = vld [vmem:[%s15560_s5 + $0x138] sm:$0xff]  ;;  %v3453_v5 = vrot.slane %v3421_v58, 6  ;;  %v3519_v53 = vrot.slane %v3486_v30, 5  ;;  %v3653_v52 = vrot.slane %v12651_v18, 6  ;;  %v12681_v14 = vpop.f32.mrb[25].mxu1  ;;  %v3518_v20 = vsel %vm2910_vm6, %v3517_v27, %v3516_v36 }
 0x231   : > { %v2694_v7 = vsel %vm2629_vm14, %v2523_v24, %v2662_v1  ;;  %v3555_v12 = vld [vmem:[#allocation4 + $0x62] sm:$0x1]  ;;  %10772 = vmatpush3.bf16.msra.mxu1 %v10771_v57  ;;  %v10773_v48 = vpack.c.bf16 %v4019_v44, %v4018_v33  ;;  %v3419_v50 = vld [vmem:[#allocation4 + $0x20] sm:$0x1]  ;;  %v3488_v26 = vld [vmem:[#allocation4 + $0x65] sm:$0x1]  ;;  %v3584_v32 = vsel %vm2907_vm1, %v3583_v3, %v3551_v42 }
 0x232   : > { %v4002_v21 = vld [vmem:[%s15560_s5 + $0x130] sm:$0xff]  ;;  %v2758_v23 = vcombine.high %v2694_v7, %v2694_v7  ;;  %2836 = vst.msk [vmem:[#allocation4 + $0x68] sm:$0xf] %vm2809_vm7, %v2694_v7  ;;  %v3521_v63 = vrot.slane %v3487_v61, 4  ;;  %v3587_v29 = vrot.slane %v3554_v46, 5  ;;  %v3586_v22 = vsel %vm2910_vm6, %v3585_v45, %v3584_v32  ;;  %v4020_v42 = vld [vmem:[%s15560_s5 + $0x1c0] sm:$0xff] }
 0x233   : > { %v10775_v6 = vpack.c.bf16 %v4003_v37, %v4002_v21  ;;  %10774 = vmatprep.subr.bf16.mxu1 %v10773_v48  ;;  %v3423_v2 = vld [vmem:[#allocation4 + $0x60] sm:$0x1]  ;;  %v3589_v11 = vrot.slane %v3555_v12, 4  ;;  %v3619_v35 = vld [vmem:[#allocation4 + $0x23] sm:$0x1]  ;;  %v3455_v28 = vrot.slane %v3422_v9, 5  ;;  %v3452_v62 = vsel %vm2907_vm1, %v3451_v17, %v3419_v50 }
 0x234   : > { %2837 = vst.msk [vmem:[#allocation4 + $0x6c] sm:$0xf] %vm2809_vm7, %v2758_v23  ;;  %v3556_v24 = vld [vmem:[#allocation4 + $0x66] sm:$0x1]  ;;  %v3622_v51 = vld [vmem:[#allocation4 + $0x2f] sm:$0x1]  ;;  %v3454_v18 = vsel %vm2910_vm6, %v3453_v5, %v3452_v62  ;;  %v3520_v25 = vsel %vm2913_vm8, %v3519_v53, %v3518_v20  ;;  %v3652_v47 = vsel %vm2907_vm1, %v3651_v59, %v3619_v35  ;;  %v3588_v1 = vsel %vm2913_vm8, %v3587_v29, %v3586_v22 }
 0x235   : > { %v12688_v16 = vld [vmem:[#allocation4 + $0x63] sm:$0x1]  ;;  %10776 = vmatpush3.bf16.msra.mxu1 %v10775_v6  ;;  %v3523_v56 = vrot.slane %v3488_v26, 3  ;;  %v3424_v41 = vld [vmem:[#allocation4 + $0x64] sm:$0x1]  ;;  %v3457_v30 = vrot.slane %v3423_v2, 4  ;;  %v3522_v58 = vsel %vm2916_vm9, %v3521_v63, %v3520_v25  ;;  %v3654_v46 = vsel %vm2910_vm6, %v3653_v52, %v3652_v47 }
 0x236   : > { %v2302_v3 = vpop.f32.mrb[28].mxu0  ;;  %v12696_v27 = vld [vmem:[#allocation4 + $0x67] sm:$0x1]  ;;  %v3590_v57 = vsel %vm2916_vm9, %v3589_v11, %v3588_v1  ;;  %v3655_v9 = vrot.slane %v3622_v51, 5  ;;  %v3657_v61 = vrot.slane %v12688_v16, 4  ;;  %v3456_v59 = vsel %vm2913_vm8, %v3455_v28, %v3454_v18  ;;  %v4021_v45 = vld [vmem:[%s15560_s5 + $0x1c8] sm:$0xff] }
 0x237   : > { %v2303_v8 = vadd.f32 %v12535_v55, %v2302_v3  ;;  %v2304_v10 = vpop.f32.mrb[29].mxu0  ;;  %v4004_v33 = vld [vmem:[%s15560_s5 + $0x140] sm:$0xff]  ;;  %v3591_v36 = vrot.slane %v3556_v24, 3  ;;  %v3459_v12 = vrot.slane %v3424_v41, 3  ;;  %v10777_v48 = vpack.c.bf16 %v4021_v45, %v4020_v42  ;;  %v4005_v52 = vld [vmem:[%s15560_s5 + $0x148] sm:$0xff] }
 0x238   : > { %v3524_v21 = vsel %vm2919_vm11, %v3523_v56, %v3522_v58  ;;  %v3458_v53 = vsel %vm2916_vm9, %v3457_v30, %v3456_v59  ;;  %v10779_v20 = vpack.c.bf16 %v4005_v52, %v4004_v33  ;;  %v3656_v2 = vsel %vm2913_vm8, %v3655_v9, %v3654_v46  ;;  %v3753_v62 = vld [vmem:[#allocation4 + $0x35] sm:$0x1]  ;;  %v3821_v58 = vld [vmem:[#allocation4 + $0x36] sm:$0x1]  ;;  %v12731_v1 = vld [vmem:[#allocation4 + $0x37] sm:$0x1] }
 0x239   : > { %v2528_v44 = vadd.f32 %v12271_v39, %v2303_v8  ;;  %v3489_v17 = vld [vmem:[#allocation4 + $0x69] sm:$0x1]  ;;  %v3557_v7 = vld [vmem:[#allocation4 + $0x6a] sm:$0x1]  ;;  %v3425_v23 = vld [vmem:[#allocation4 + $0x68] sm:$0x1]  ;;  %10778 = vmatprep.subr.bf16.mxu1 %v10777_v48  ;;  %v3592_v28 = vsel %vm2919_vm11, %v3591_v36, %v3590_v57  ;;  %v3460_v51 = vsel %vm2919_vm11, %v3459_v12, %v3458_v53  ;;  %v3658_v41 = vsel %vm2916_vm9, %v3657_v61, %v3656_v2 }
 0x23a   : > { %v3525_v37 = vrot.slane %v3489_v17, 2  ;;  %v3593_v5 = vrot.slane %v3557_v7, 2  ;;  %v3461_v26 = vrot.slane %v3425_v23, 2  ;;  %v3625_v29 = vld [vmem:[#allocation4 + $0x6b] sm:$0x1]  ;;  %v3659_v22 = vrot.slane %v12696_v27, 3  ;;  %10780 = vmatpush3.bf16.msra.mxu1 %v10779_v20 }
 0x23b   : > { %vm2630_vm15 = vcmp.ge.f32.partialorder %v2528_v44, 0.0  ;;  %v2663_v6 = vmul.f32 %v12175_v19, %v2528_v44  ;;  %v3490_v39 = vld [vmem:[#allocation4 + $0x6d] sm:$0x1]  ;;  %v3558_v50 = vld [vmem:[#allocation4 + $0x6e] sm:$0x1]  ;;  %v3661_v30 = vrot.slane %v3625_v29, 2 }
 0x23c   : > { %v3526_v63 = vsel %vm2922_vm12, %v3525_v37, %v3524_v21  ;;  %v3527_v32 = vrot.slane %v3490_v39, 1  ;;  %v3426_v11 = vld [vmem:[#allocation4 + $0x6c] sm:$0x1]  ;;  %v3595_v3 = vrot.slane %v3558_v50, 1  ;;  %v3462_v25 = vsel %vm2922_vm12, %v3461_v26, %v3460_v51  ;;  %v3626_v47 = vld [vmem:[#allocation4 + $0x6f] sm:$0x1] }
 0x23d   : > { %v2695_v35 = vsel %vm2630_vm15, %v2528_v44, %v2663_v6  ;;  %v3463_v24 = vrot.slane %v3426_v11, 1  ;;  %v3594_v56 = vsel %vm2922_vm12, %v3593_v5, %v3592_v28  ;;  %v3784_v10 = vrot.slane %v3753_v62, 7  ;;  %v3754_v27 = vld [vmem:[#allocation4 + $0x39] sm:$0x1]  ;;  %v3822_v46 = vld [vmem:[#allocation4 + $0x3a] sm:$0x1] }
 0x23e   : > { %v2759_v16 = vcombine.high %v2695_v35, %v2695_v35  ;;  %2838 = vst.msk [vmem:[#allocation4 + $0x70] sm:$0xf] %vm2809_vm7, %v2695_v35  ;;  %v3528_v18 = vsel %vm2925_vm13, %v3527_v32, %v3526_v63  ;;  %v3689_v57 = vld [vmem:[#allocation4 + $0x34] sm:$0x1]  ;;  %v3596_v59 = vsel %vm2925_vm13, %v3595_v3, %v3594_v56  ;;  %v3660_v42 = vsel %vm2919_vm11, %v3659_v22, %v3658_v41  ;;  %v12736_v45 = vld [vmem:[#allocation4 + $0x3b] sm:$0x1] }
 0x23f   : > { %3543 = vrot.lane.b32.xlu1 %v3528_v18, %s10924_s16  ;;  %v3464_v8 = vsel %vm2925_vm13, %v3463_v24, %v3462_v25  ;;  %v3663_v61 = vrot.slane %v3626_v47, 1  ;;  %v12738_v33 = vld [vmem:[#allocation4 + $0x38] sm:$0x1]  ;;  %v3662_v7 = vsel %vm2922_vm12, %v3661_v30, %v3660_v42  ;;  %v12743_v36 = vld [vmem:[#allocation4 + $0x3d] sm:$0x1]  ;;  %v3852_v48 = vrot.slane %v3821_v58, 7 }
 0x240   : > { %2839 = vst.msk [vmem:[#allocation4 + $0x74] sm:$0xf] %vm2809_vm7, %v2759_v16  ;;  %v12745_v12 = vld [vmem:[#allocation4 + $0x3e] sm:$0x1]  ;;  %v3752_v21 = vld [vmem:[#allocation4 + $0x31] sm:$0x1] }
 0x241   : > { %3481 = vst.msk [vmem:[#allocation5 + $0x10] sm:$0xff] %vm472_vm0, %v3464_v8  ;;  %v3786_v37 = vrot.slane %v3754_v27, 6  ;;  %v3920_v5 = vrot.slane %v12731_v1, 7  ;;  %v4022_v23 = vld [vmem:[%s15560_s5 + $0x1d0] sm:$0xff]  ;;  %v4023_v53 = vld [vmem:[%s15560_s5 + $0x1d8] sm:$0xff]  ;;  %v3720_v6 = vrot.slane %v3689_v57, 7  ;;  %v3664_v29 = vsel %vm2925_vm13, %v3663_v61, %v3662_v7 }
 0x242   : > { %v2307_v9 = vpop.f32.mrb[30].mxu0  ;;  %v4006_v52 = vld [vmem:[%s15560_s5 + $0x150] sm:$0xff]  ;;  %v3820_v50 = vld [vmem:[#allocation4 + $0x32] sm:$0x1]  ;;  %v3854_v26 = vrot.slane %v3822_v46, 6  ;;  %v3922_v20 = vrot.slane %v12736_v45, 6  ;;  %v10781_v63 = vpack.c.bf16 %v4023_v53, %v4022_v23  ;;  %v3785_v24 = vsel %vm2907_vm1, %v3784_v10, %v3752_v21 }
 0x243   : > { %v2308_v44 = vadd.f32 %v12535_v55, %v2307_v9  ;;  %v2309_v17 = vpop.f32.mrb[31].mxu0  ;;  %3611 = vrot.lane.b32.xlu1 %v3596_v59, %s10923_s15  ;;  %v3688_v32 = vld [vmem:[#allocation4 + $0x30] sm:$0x1]  ;;  %v3788_v2 = vrot.slane %v12743_v36, 5  ;;  %v3856_v22 = vrot.slane %v12745_v12, 5  ;;  %v4007_v11 = vld [vmem:[%s15560_s5 + $0x158] sm:$0xff]  ;;  %v3787_v3 = vsel %vm2910_vm6, %v3786_v37, %v3785_v24 }
 0x244   : > { %v3691_v35 = vld [vmem:[#allocation4 + $0x3c] sm:$0x1]  ;;  %v3722_v28 = vrot.slane %v12738_v33, 6  ;;  %10782 = vmatprep.subr.bf16.mxu1 %v10781_v63  ;;  %v10783_v16 = vpack.c.bf16 %v4007_v11, %v4006_v52  ;;  %v4024_v18 = vld [vmem:[%s15560_s5 + $0x1e0] sm:$0xff]  ;;  %v3853_v25 = vsel %vm2907_vm1, %v3852_v48, %v3820_v50  ;;  %v3891_v47 = vld [vmem:[#allocation4 + $0x3f] sm:$0x1]  ;;  %v3721_v10 = vsel %vm2907_vm1, %v3720_v6, %v3688_v32 }
 0x245   : > { %v2533_v39 = vadd.f32 %v12268_v31, %v2308_v44  ;;  %v3756_v62 = vld [vmem:[#allocation4 + $0x71] sm:$0x1]  ;;  %v3824_v51 = vld [vmem:[#allocation4 + $0x72] sm:$0x1]  ;;  %v3888_v56 = vld [vmem:[#allocation4 + $0x33] sm:$0x1]  ;;  %v3855_v1 = vsel %vm2910_vm6, %v3854_v26, %v3853_v25  ;;  %v3789_v52 = vsel %vm2913_vm8, %v3788_v2, %v3787_v3 }
 0x246   : > { %v4025_v41 = vld [vmem:[%s15560_s5 + $0x1e8] sm:$0xff]  ;;  %v12777_v30 = vpop.f32.mrb[26].mxu1  ;;  %v3692_v8 = vld [vmem:[#allocation4 + $0x70] sm:$0x1]  ;;  %v3892_v27 = vld [vmem:[#allocation4 + $0x73] sm:$0x1]  ;;  %10784 = vmatpush3.bf16.msra.mxu1 %v10783_v16  ;;  %v3921_v36 = vsel %vm2907_vm1, %v3920_v5, %v3888_v56  ;;  %v3723_v21 = vsel %vm2910_vm6, %v3722_v28, %v3721_v10 }
 0x247   : > { %vm2631_vm10 = vcmp.ge.f32.partialorder %v2533_v39, 0.0  ;;  %v2664_v31 = vmul.f32 %v12175_v19, %v2533_v39  ;;  %3679 = vrot.lane.b32.xlu1 %v3664_v29, %s10925_s17  ;;  %v10785_v46 = vpack.c.bf16 %v4025_v41, %v4024_v18  ;;  %v4008_v57 = vld [vmem:[%s15560_s5 + $0x160] sm:$0xff]  ;;  %v4009_v9 = vld [vmem:[%s15560_s5 + $0x168] sm:$0xff]  ;;  %v12788_v59 = vpop.f32.mrb[27].mxu1  ;;  %v3724_v42 = vrot.slane %v3691_v35, 5  ;;  %v4027_v24 = vld [vmem:[%s15560_s5 + $0x1f8] sm:$0xff] }
 0x248   : > { %v3757_v45 = vld [vmem:[#allocation4 + $0x75] sm:$0x1]  ;;  %v3790_v33 = vrot.slane %v3756_v62, 4  ;;  %v3825_v44 = vld [vmem:[#allocation4 + $0x76] sm:$0x1]  ;;  %v3858_v17 = vrot.slane %v3824_v51, 4  ;;  %v10787_v7 = vpack.c.bf16 %v4009_v9, %v4008_v57  ;;  %v3923_v23 = vsel %vm2910_vm6, %v3922_v20, %v3921_v36 }
 0x249   : > { %v2696_v58 = vsel %vm2631_vm10, %v2533_v39, %v2664_v31  ;;  %v3924_v12 = vrot.slane %v3891_v47, 5  ;;  %10786 = vmatprep.subr.bf16.mxu1 %v10785_v46  ;;  %v3693_v48 = vld [vmem:[#allocation4 + $0x74] sm:$0x1]  ;;  %v3726_v37 = vrot.slane %v3692_v8, 4  ;;  %v3926_v53 = vrot.slane %v3892_v27, 4  ;;  %v4026_v62 = vld [vmem:[%s15560_s5 + $0x1f0] sm:$0xff] }
 0x24a   : > { %v2760_v61 = vcombine.high %v2696_v58, %v2696_v58  ;;  %2840 = vst.msk [vmem:[#allocation4 + $0x78] sm:$0xf] %vm2809_vm7, %v2696_v58  ;;  %v3792_v6 = vrot.slane %v3757_v45, 3  ;;  %v3857_v39 = vsel %vm2913_vm8, %v3856_v22, %v3855_v1  ;;  %v3860_v50 = vrot.slane %v3825_v44, 3  ;;  %v3893_v26 = vld [vmem:[#allocation4 + $0x77] sm:$0x1]  ;;  %10788 = vmatpush3.bf16.msra.mxu1 %v10787_v7 }
 0x24b   : > { %v3791_v63 = vsel %vm2916_vm9, %v3790_v33, %v3789_v52  ;;  %v3859_v32 = vsel %vm2916_vm9, %v3858_v17, %v3857_v39  ;;  %v3725_v29 = vsel %vm2913_vm8, %v3724_v42, %v3723_v21  ;;  %v3728_v11 = vrot.slane %v3693_v48, 3  ;;  %v4010_v51 = vld [vmem:[%s15560_s5 + $0x170] sm:$0xff]  ;;  %v4011_v46 = vld [vmem:[%s15560_s5 + $0x178] sm:$0xff] }
 0x24c   : > { %2841 = vst.msk [vmem:[#allocation4 + $0x7c] sm:$0xf] %vm2809_vm7, %v2760_v61  ;;  %v3925_v28 = vsel %vm2913_vm8, %v3924_v12, %v3923_v23  ;;  %v3727_v2 = vsel %vm2916_vm9, %v3726_v37, %v3725_v29  ;;  %v3928_v31 = vrot.slane %v3893_v26, 3  ;;  %v3793_v3 = vsel %vm2919_vm11, %v3792_v6, %v3791_v63 }
 0x24d   : > { %v3927_v22 = vsel %vm2916_vm9, %v3926_v53, %v3925_v28  ;;  %v3861_v56 = vsel %vm2919_vm11, %v3860_v50, %v3859_v32  ;;  %v10789_v41 = vpack.c.bf16 %v4027_v24, %v4026_v62  ;;  %v3729_v27 = vsel %vm2919_vm11, %v3728_v11, %v3727_v2 }
 0x24e   : > { %v2312_v5 = vpop.f32.mrb[32].mxu0  ;;  %v10791_v61 = vpack.c.bf16 %v4011_v46, %v4010_v51  ;;  %v3929_v48 = vsel %vm2919_vm11, %v3928_v31, %v3927_v22 }
 0x24f   : > { %v2313_v35 = vadd.f32 %v12535_v55, %v2312_v5  ;;  %v2314_v20 = vpop.f32.mrb[33].mxu0  ;;  %10790 = vmatprep.subr.bf16.mxu1 %v10789_v41 }
 0x250   : > { %10792 = vmatpush3.bf16.msra.mxu1 %v10791_v61 }
 0x251   : > { %v2538_v16 = vadd.f32 %v12302_v15, %v2313_v35  ;;  %v3758_v18 = vld [vmem:[#allocation4 + $0x79] sm:$0x1]  ;;  %v3826_v25 = vld [vmem:[#allocation4 + $0x7a] sm:$0x1]  ;;  %v3894_v47 = vld [vmem:[#allocation4 + $0x7b] sm:$0x1] }
 0x252   : > { %v3794_v8 = vrot.slane %v3758_v18, 2  ;;  %v3862_v10 = vrot.slane %v3826_v25, 2  ;;  %v3930_v58 = vrot.slane %v3894_v47, 2  ;;  %v3694_v1 = vld [vmem:[#allocation4 + $0x78] sm:$0x1]  ;;  %v12839_v35 = vpop.f32.mrb[28].mxu1 }
 0x253   : > { %vm2632_vm14 = vcmp.ge.f32.partialorder %v2538_v16, 0.0  ;;  %v2665_v15 = vmul.f32 %v12175_v19, %v2538_v16  ;;  %v3759_v57 = vld [vmem:[#allocation4 + $0x7d] sm:$0x1]  ;;  %v3827_v9 = vld [vmem:[#allocation4 + $0x7e] sm:$0x1]  ;;  %v3730_v42 = vrot.slane %v3694_v1, 2 }
 0x254   : > { %v3795_v45 = vsel %vm2922_vm12, %v3794_v8, %v3793_v3  ;;  %v3796_v33 = vrot.slane %v3759_v57, 1  ;;  %v3863_v44 = vsel %vm2922_vm12, %v3862_v10, %v3861_v56  ;;  %v3864_v17 = vrot.slane %v3827_v9, 1  ;;  %v3895_v7 = vld [vmem:[#allocation4 + $0x7f] sm:$0x1]  ;;  %v3695_v36 = vld [vmem:[#allocation4 + $0x7c] sm:$0x1] }
 0x255   : > { %v2697_v12 = vsel %vm2632_vm14, %v2538_v16, %v2665_v15  ;;  %v3932_v21 = vrot.slane %v3895_v7, 1  ;;  %v3731_v37 = vsel %vm2922_vm12, %v3730_v42, %v3729_v27  ;;  %v3732_v6 = vrot.slane %v3695_v36, 1  ;;  %v12841_v20 = vpop.f32.mrb[29].mxu1 }
 0x256   : > { %v2761_v23 = vcombine.high %v2697_v12, %v2697_v12  ;;  %2842 = vst.msk [vmem:[#allocation4 + $0x80] sm:$0xf] %vm2809_vm7, %v2697_v12  ;;  %v3797_v53 = vsel %vm2925_vm13, %v3796_v33, %v3795_v45  ;;  %v3865_v52 = vsel %vm2925_vm13, %v3864_v17, %v3863_v44  ;;  %v3931_v39 = vsel %vm2922_vm12, %v3930_v58, %v3929_v48  ;;  %v12858_v58 = vpop.permute.xlu0 %8960 }
 0x257   : > { %3812 = vrot.lane.b32.xlu1 %v3797_v53, %s10924_s16  ;;  %3880 = vrot.lane.b32.xlu0 %v3865_v52, %s10923_s15  ;;  %v3733_v50 = vsel %vm2925_vm13, %v3732_v6, %v3731_v37  ;;  %v3933_v5 = vsel %vm2925_vm13, %v3932_v21, %v3931_v39  ;;  %15569 = vst [vmem:[#allocation9_spill] sm:$0xff] %v12858_v58 }
 0x258   : > { %2843 = vst.msk [vmem:[#allocation4 + $0x84] sm:$0xf] %vm2809_vm7, %v2761_v23 }
 0x259   : > { %3750 = vst.msk [vmem:[#allocation5 + $0x18] sm:$0xff] %vm472_vm0, %v3733_v50 }
 0x25a   : > { %v2317_v26 = vpop.f32.mrb[34].mxu0 }
 0x25b   : > { %v2318_v63 = vadd.f32 %v12535_v55, %v2317_v26  ;;  %v2319_v32 = vpop.f32.mrb[35].mxu0  ;;  %3948 = vrot.lane.b32.xlu0 %v3933_v5, %s10925_s17 }
 0x25d   : > { %v2543_v29 = vadd.f32 %v12300_v40, %v2318_v63 }
 0x25f   : > { %vm2633_vm15 = vcmp.ge.f32.partialorder %v2543_v29, 0.0  ;;  %v2666_v11 = vmul.f32 %v12175_v19, %v2543_v29 }
 0x261   : > { %v2698_v28 = vsel %vm2633_vm15, %v2543_v29, %v2666_v11 }
 0x262   : > { %v2762_v2 = vcombine.high %v2698_v28, %v2698_v28  ;;  %2844 = vst.msk [vmem:[#allocation4 + $0x88] sm:$0xf] %vm2809_vm7, %v2698_v28 }
 0x264   : > { %2845 = vst.msk [vmem:[#allocation4 + $0x8c] sm:$0xf] %vm2809_vm7, %v2762_v2 }
 0x266   : > { %v2322_v22 = vpop.f32.mrb[36].mxu0 }
 0x267   : > { %v2323_v31 = vadd.f32 %v12535_v55, %v2322_v22  ;;  %v2324_v62 = vpop.f32.mrb[37].mxu0 }
 0x269   : > { %v2548_v24 = vadd.f32 %v12352_v34, %v2323_v31 }
 0x26b   : > { %vm2634_vm10 = vcmp.ge.f32.partialorder %v2548_v24, 0.0  ;;  %v2667_v40 = vmul.f32 %v12175_v19, %v2548_v24 }
 0x26d   : > { %v2699_v51 = vsel %vm2634_vm10, %v2548_v24, %v2667_v40 }
 0x26e   : > { %v2763_v16 = vcombine.high %v2699_v51, %v2699_v51  ;;  %2846 = vst.msk [vmem:[#allocation4 + $0x90] sm:$0xf] %vm2809_vm7, %v2699_v51 }
 0x270   : > { %2847 = vst.msk [vmem:[#allocation4 + $0x94] sm:$0xf] %vm2809_vm7, %v2763_v16 }
 0x273   : > { %v2327_v18 = vpop.f32.mrb[38].mxu0 }
 0x274   : > { %v2328_v3 = vadd.f32 %v12535_v55, %v2327_v18  ;;  %v2329_v25 = vpop.f32.mrb[39].mxu0  ;;  %v12853_v41 = vpop.f32.mrb[30].mxu1 }
 0x275   : > { %v12855_v8 = vpop.f32.mrb[31].mxu1 }
 0x276   : > { %v2553_v56 = vadd.f32 %v12350_v60, %v2328_v3  ;;  %v12862_v60 = vpop.permute.xlu0 %9152 }
 0x277   : > { %15570 = vst [vmem:[#allocation10_spill] sm:$0xff] %v12862_v60 }
 0x278   : > { %vm2635_vm14 = vcmp.ge.f32.partialorder %v2553_v56, 0.0  ;;  %v2668_v47 = vmul.f32 %v12175_v19, %v2553_v56 }
 0x27a   : > { %v2700_v34 = vsel %vm2635_vm14, %v2553_v56, %v2668_v47  ;;  %v2954_v56 = vld [vmem:[#allocation4 + $0x85] sm:$0x1]  ;;  %v3090_v47 = vld [vmem:[#allocation4 + $0x87] sm:$0x1] }
 0x27b   : > { %v2764_v10 = vcombine.high %v2700_v34, %v2700_v34  ;;  %2848 = vst.msk [vmem:[#allocation4 + $0x98] sm:$0xf] %vm2809_vm7, %v2700_v34 }
 0x27d   : > { %2849 = vst.msk [vmem:[#allocation4 + $0x9c] sm:$0xf] %vm2809_vm7, %v2764_v10 }
 0x27f   : > { %v2332_v1 = vpop.f32.mrb[40].mxu0 }
 0x280   : > { %v2333_v27 = vadd.f32 %v12535_v55, %v2332_v1  ;;  %v2334_v46 = vpop.f32.mrb[41].mxu0  ;;  %v2955_v1 = vld [vmem:[#allocation4 + $0x89] sm:$0x1] }
 0x281   : > { %v2991_v46 = vrot.slane %v2954_v56, 7 }
 0x282   : > { %v2558_v15 = vadd.f32 %v12406_v13, %v2333_v27  ;;  %v3006_v57 = vpop.permute.xlu1 %3005  ;;  %v3142_v33 = vpop.permute.xlu0 %3141  ;;  %v2883_v27 = vld [vmem:[#allocation4 + $0x84] sm:$0x1] }
 0x283   : > { %3011 = vst.msk [vmem:[#allocation5] sm:$0xff] %vm807_vm3, %v3006_v57 }
 0x284   : > { %vm2636_vm15 = vcmp.ge.f32.partialorder %v2558_v15, 0.0  ;;  %v2669_v9 = vmul.f32 %v12175_v19, %v2558_v15 }
 0x286   : > { %v2701_v42 = vsel %vm2636_vm15, %v2558_v15, %v2669_v9  ;;  %v3074_v61 = vpop.permute.xlu1 %3073  ;;  %v3091_v15 = vld [vmem:[#allocation4 + $0x8b] sm:$0x1]  ;;  %v2953_v9 = vld [vmem:[#allocation4 + $0x81] sm:$0x1] }
 0x287   : > { %v2765_v45 = vcombine.high %v2701_v42, %v2701_v42  ;;  %2850 = vst.msk [vmem:[#allocation4 + $0xa0] sm:$0xf] %vm2809_vm7, %v2701_v42  ;;  %v3127_v42 = vrot.slane %v3090_v47, 7 }
 0x288   : > { %3079 = vst.msk [vmem:[#allocation5] sm:$0xff] %vm1000_vm4, %v3074_v61  ;;  %v3022_v61 = vld [vmem:[#allocation4 + $0x86] sm:$0x1] }
 0x289   : > { %3147 = vst.msk [vmem:[#allocation5] sm:$0xff] %vm1193_vm5, %v3142_v33  ;;  %v2956_v33 = vld [vmem:[#allocation4 + $0x8d] sm:$0x1] }
 0x28a   : > { %2851 = vst.msk [vmem:[#allocation4 + $0xa4] sm:$0xf] %vm2809_vm7, %v2765_v45  ;;  %v2884_v45 = vld [vmem:[#allocation4 + $0x88] sm:$0x1] }
 0x28b   : > { %v2337_v44 = vpop.f32.mrb[42].mxu0 }
 0x28c   : > { %v2338_v13 = vadd.f32 %v12535_v55, %v2337_v44  ;;  %v2339_v17 = vpop.f32.mrb[43].mxu0  ;;  %v2993_v44 = vrot.slane %v2955_v1, 6 }
 0x28d   : > { %v3023_v17 = vld [vmem:[#allocation4 + $0x8a] sm:$0x1] }
 0x28e   : > { %v2563_v7 = vadd.f32 %v12402_v43, %v2338_v13  ;;  %v3089_v13 = vld [vmem:[#allocation4 + $0x83] sm:$0x1] }
 0x290   : > { %vm2637_vm10 = vcmp.ge.f32.partialorder %v2563_v7, 0.0  ;;  %v2670_v36 = vmul.f32 %v12175_v19, %v2563_v7  ;;  %v3956_v22 = vld [vmem:[#allocation5] sm:$0xff] }
 0x292   : > { %v2702_v12 = vsel %vm2637_vm10, %v2563_v7, %v2670_v36  ;;  %v2927_v7 = vrot.slane %v2883_v27, 7 }
 0x293   : > { %v2766_v48 = vcombine.high %v2702_v12, %v2702_v12  ;;  %2852 = vst.msk [vmem:[#allocation4 + $0xa8] sm:$0xf] %vm2809_vm7, %v2702_v12  ;;  %v3092_v12 = vld [vmem:[#allocation4 + $0x8f] sm:$0x1] }
 0x295   : > { %2853 = vst.msk [vmem:[#allocation4 + $0xac] sm:$0xf] %vm2809_vm7, %v2766_v48  ;;  %v3129_v48 = vrot.slane %v3091_v15, 6  ;;  %v12916_v15 = vld [vmem:[%s15559_s4] ss:$0 sm:$0xff] }
 0x297   : > { %v2342_v21 = vpop.f32.mrb[44].mxu0 }
 0x298   : > { %v2343_v37 = vadd.f32 %v12535_v55, %v2342_v21  ;;  %v2344_v23 = vpop.f32.mrb[45].mxu0  ;;  %v2992_v21 = vsel %vm2907_vm1, %v2991_v46, %v2953_v9 }
 0x299   : > { %v3059_v23 = vrot.slane %v3022_v61, 7 }
 0x29a   : > { %v2568_v53 = vadd.f32 %v12519_v54, %v2343_v37  ;;  %v3275_v52 = vpop.permute.xlu0 %3274 }
 0x29b   : > { %3280 = vst.msk [vmem:[#allocation5 + $0x8] sm:$0xff] %vm807_vm3, %v3275_v52  ;;  %v2929_v52 = vrot.slane %v2884_v45, 6 }
 0x29c   : > { %vm2638_vm14 = vcmp.ge.f32.partialorder %v2568_v53, 0.0  ;;  %v2671_v43 = vmul.f32 %v12175_v19, %v2568_v53 }
 0x29e   : > { %v2703_v6 = vsel %vm2638_vm14, %v2568_v53, %v2671_v43  ;;  %v3343_v39 = vpop.permute.xlu0 %3342  ;;  %v2885_v53 = vld [vmem:[#allocation4 + $0x8c] sm:$0x1] }
 0x29f   : > { %v2767_v50 = vcombine.high %v2703_v6, %v2703_v6  ;;  %2854 = vst.msk [vmem:[#allocation4 + $0xb0] sm:$0xf] %vm2809_vm7, %v2703_v6  ;;  %v2995_v6 = vrot.slane %v2956_v33, 5 }
 0x2a0   : > { %3348 = vst.msk [vmem:[#allocation5 + $0x8] sm:$0xff] %vm1000_vm4, %v3343_v39  ;;  %v3128_v39 = vsel %vm2907_vm1, %v3127_v42, %v3089_v13 }
 0x2a1   : > { %2855 = vst.msk [vmem:[#allocation4 + $0xb4] sm:$0xf] %vm2809_vm7, %v2767_v50  ;;  %v3024_v50 = vld [vmem:[#allocation4 + $0x8e] sm:$0x1] }
 0x2a2   : > { %v3411_v26 = vpop.permute.xlu0 %3410 }
 0x2a3   : > { %3416 = vst.msk [vmem:[#allocation5 + $0x8] sm:$0xff] %vm1193_vm5, %v3411_v26  ;;  %v2347_v5 = vpop.f32.mrb[46].mxu0  ;;  %v3061_v26 = vrot.slane %v3023_v17, 6 }
 0x2a4   : > { %v2348_v54 = vadd.f32 %v12535_v55, %v2347_v5  ;;  %v2349_v63 = vpop.f32.mrb[47].mxu0 }
 0x2a6   : > { %v2573_v32 = vadd.f32 %v12507_v38, %v2348_v54 }
 0x2a8   : > { %vm2639_vm15 = vcmp.ge.f32.partialorder %v2573_v32, 0.0  ;;  %v2672_v29 = vmul.f32 %v12175_v19, %v2573_v32 }
 0x2aa   : > { %v2704_v11 = vsel %vm2639_vm15, %v2573_v32, %v2672_v29  ;;  %v3957_v28 = vld [vmem:[#allocation5 + $0x8] sm:$0xff]  ;;  %v2994_v32 = vsel %vm2910_vm6, %v2993_v44, %v2992_v21 }
 0x2ab   : > { %v2768_v2 = vcombine.high %v2704_v11, %v2704_v11  ;;  %2856 = vst.msk [vmem:[#allocation4 + $0xb8] sm:$0xf] %vm2809_vm7, %v2704_v11  ;;  %4099 = vmatprep.mubr.f32.mxu0 %v3957_v28  ;;  %v3131_v11 = vrot.slane %v3092_v12, 5 }
 0x2ac   : > { %4100 = vmatmul.mubr.f32.vlgmr.msra.gmra.mrb[64].mxu0 %v3956_v22  ;;  %v3130_v22 = vsel %vm2910_vm6, %v3129_v48, %v3128_v39 }
 0x2ad   : > { %2857 = vst.msk [vmem:[#allocation4 + $0xbc] sm:$0xf] %vm2809_vm7, %v2768_v2  ;;  %v3132_v27 = vsel %vm2913_vm8, %v3131_v11, %v3130_v22 }
 0x2af   : > { %v2352_v31 = vpop.f32.mrb[48].mxu0 }
 0x2b0   : > { %v2353_v62 = vadd.f32 %v12535_v55, %v2352_v31  ;;  %v2354_v24 = vpop.f32.mrb[49].mxu0 }
 0x2b1   : > { %v3544_v38 = vpop.permute.xlu1 %3543 }
 0x2b2   : > { %v2578_v40 = vadd.f32 %v12681_v14, %v2353_v62  ;;  %3549 = vst.msk [vmem:[#allocation5 + $0x10] sm:$0xff] %vm807_vm3, %v3544_v38  ;;  %v3021_v62 = vld [vmem:[#allocation4 + $0x82] sm:$0x1] }
 0x2b3   : > { %v3060_v38 = vsel %vm2907_vm1, %v3059_v23, %v3021_v62 }
 0x2b4   : > { %vm2640_vm10 = vcmp.ge.f32.partialorder %v2578_v40, 0.0  ;;  %v2673_v51 = vmul.f32 %v12175_v19, %v2578_v40  ;;  %v3062_v47 = vsel %vm2910_vm6, %v3061_v26, %v3060_v38 }
 0x2b5   : > { %v3612_v18 = vpop.permute.xlu1 %3611 }
 0x2b6   : > { %v2705_v16 = vsel %vm2640_vm10, %v2578_v40, %v2673_v51  ;;  %3617 = vst.msk [vmem:[#allocation5 + $0x10] sm:$0xff] %vm1000_vm4, %v3612_v18  ;;  %v2931_v40 = vrot.slane %v2885_v53, 5  ;;  %v3063_v51 = vrot.slane %v3024_v50, 5 }
 0x2b7   : > { %v2769_v3 = vcombine.high %v2705_v16, %v2705_v16  ;;  %2858 = vst.msk [vmem:[#allocation4 + $0xc0] sm:$0xf] %vm2809_vm7, %v2705_v16 }
 0x2b8   : > { %v3064_v33 = vsel %vm2913_vm8, %v3063_v51, %v3062_v47  ;;  %v3223_v47 = vld [vmem:[#allocation4 + $0x95] sm:$0x1] }
 0x2b9   : > { %2859 = vst.msk [vmem:[#allocation4 + $0xc4] sm:$0xf] %vm2809_vm7, %v2769_v3  ;;  %v3680_v25 = vpop.permute.xlu1 %3679 }
 0x2ba   : > { %3685 = vst.msk [vmem:[#allocation5 + $0x10] sm:$0xff] %vm1193_vm5, %v3680_v25  ;;  %v2996_v25 = vsel %vm2913_vm8, %v2995_v6, %v2994_v32 }
 0x2bb   : > { %v2357_v14 = vpop.f32.mrb[50].mxu0 }
 0x2bc   : > { %v2358_v34 = vadd.f32 %v12535_v55, %v2357_v14  ;;  %v2359_v10 = vpop.f32.mrb[51].mxu0 }
 0x2be   : > { %v2583_v57 = vadd.f32 %v12671_v49, %v2358_v34  ;;  %v2957_v55 = vld [vmem:[#allocation4 + $0xc1] sm:$0x1]  ;;  %v3093_v37 = vld [vmem:[#allocation4 + $0xc3] sm:$0x1]  ;;  %v2882_v49 = vld [vmem:[#allocation4 + $0x80] sm:$0x1] }
 0x2bf   : > { %v2886_v5 = vld [vmem:[#allocation4 + $0xc0] sm:$0x1]  ;;  %v2997_v29 = vrot.slane %v2957_v55, 4  ;;  %v3025_v28 = vld [vmem:[#allocation4 + $0xc2] sm:$0x1]  ;;  %v3133_v31 = vrot.slane %v3093_v37, 4  ;;  %v2928_v24 = vsel %vm2907_vm1, %v2927_v7, %v2882_v49 }
 0x2c0   : > { %vm2641_vm14 = vcmp.ge.f32.partialorder %v2583_v57, 0.0  ;;  %v2674_v36 = vmul.f32 %v12175_v19, %v2583_v57  ;;  %v2958_v63 = vld [vmem:[#allocation4 + $0xc5] sm:$0x1]  ;;  %v3094_v2 = vld [vmem:[#allocation4 + $0xc7] sm:$0x1]  ;;  %v2930_v18 = vsel %vm2910_vm6, %v2929_v52, %v2928_v24  ;;  %v2933_v3 = vrot.slane %v2886_v5, 4 }
 0x2c1   : > { %v2887_v16 = vld [vmem:[#allocation4 + $0xc4] sm:$0x1]  ;;  %v2999_v56 = vrot.slane %v2958_v63, 3  ;;  %v3026_v14 = vld [vmem:[#allocation4 + $0xc6] sm:$0x1]  ;;  %v3065_v34 = vrot.slane %v3025_v28, 4  ;;  %v2998_v1 = vsel %vm2916_vm9, %v2997_v29, %v2996_v25  ;;  %v3134_v42 = vsel %vm2916_vm9, %v3133_v31, %v3132_v27 }
 0x2c2   : > { %v2706_v43 = vsel %vm2641_vm14, %v2583_v57, %v2674_v36  ;;  %v3135_v46 = vrot.slane %v3094_v2, 3  ;;  %v2932_v61 = vsel %vm2913_vm8, %v2931_v40, %v2930_v18  ;;  %v2935_v45 = vrot.slane %v2887_v16, 3 }
 0x2c3   : > { %v2770_v54 = vcombine.high %v2706_v43, %v2706_v43  ;;  %2860 = vst.msk [vmem:[#allocation4 + $0xc8] sm:$0xf] %vm2809_vm7, %v2706_v43  ;;  %v3067_v44 = vrot.slane %v3026_v14, 3  ;;  %v2934_v13 = vsel %vm2916_vm9, %v2933_v3, %v2932_v61  ;;  %v3000_v12 = vsel %vm2919_vm11, %v2999_v56, %v2998_v1  ;;  %v3292_v61 = vld [vmem:[#allocation4 + $0x9a] sm:$0x1] }
 0x2c4   : > { %v3066_v37 = vsel %vm2916_vm9, %v3065_v34, %v3064_v33  ;;  %v3136_v49 = vsel %vm2919_vm11, %v3135_v46, %v3134_v42  ;;  %v2936_v50 = vsel %vm2919_vm11, %v2935_v45, %v2934_v13  ;;  %v3291_v34 = vld [vmem:[#allocation4 + $0x96] sm:$0x1]  ;;  %v3224_v46 = vld [vmem:[#allocation4 + $0x99] sm:$0x1]  ;;  %v3260_v42 = vrot.slane %v3223_v47, 7 }
 0x2c5   : > { %2861 = vst.msk [vmem:[#allocation4 + $0xcc] sm:$0xf] %vm2809_vm7, %v2770_v54  ;;  %v3068_v22 = vsel %vm2919_vm11, %v3067_v44, %v3066_v37  ;;  %v3160_v45 = vld [vmem:[#allocation4 + $0x98] sm:$0x1]  ;;  %v3328_v44 = vrot.slane %v3291_v34, 7 }
 0x2c6   : > { %v3360_v13 = vld [vmem:[#allocation4 + $0x9b] sm:$0x1] }
 0x2c7   : > { %v2362_v10 = vpop.f32.mrb[52].mxu0 }
 0x2c8   : > { %v2363_v57 = vadd.f32 %v12916_v15, %v2362_v10  ;;  %v2364_v9 = vpop.f32.mrb[53].mxu0  ;;  %v3359_v10 = vld [vmem:[#allocation4 + $0x97] sm:$0x1] }
 0x2c9   : > { %v3813_v7 = vpop.permute.xlu1 %3812  ;;  %v3881_v36 = vpop.permute.xlu0 %3880  ;;  %v3958_v9 = vld [vmem:[#allocation5 + $0x10] sm:$0xff] }
 0x2ca   : > { %v2588_v17 = vadd.f32 %v12788_v59, %v2363_v57  ;;  %v2959_v55 = vld [vmem:[#allocation4 + $0xc9] sm:$0x1]  ;;  %v3095_v48 = vld [vmem:[#allocation4 + $0xcb] sm:$0x1]  ;;  %v3027_v21 = vld [vmem:[#allocation4 + $0xca] sm:$0x1] }
 0x2cb   : > { %3818 = vst.msk [vmem:[#allocation5 + $0x18] sm:$0xff] %vm807_vm3, %v3813_v7  ;;  %v3001_v23 = vrot.slane %v2959_v55, 2  ;;  %v3137_v53 = vrot.slane %v3095_v48, 2  ;;  %v3069_v52 = vrot.slane %v3027_v21, 2  ;;  %v2888_v43 = vld [vmem:[#allocation4 + $0xc8] sm:$0x1] }
 0x2cc   : > { %vm2642_vm15 = vcmp.ge.f32.partialorder %v2588_v17, 0.0  ;;  %v2675_v59 = vmul.f32 %v12175_v19, %v2588_v17  ;;  %3886 = vst.msk [vmem:[#allocation5 + $0x18] sm:$0xff] %vm1000_vm4, %v3881_v36  ;;  %v2960_v6 = vld [vmem:[#allocation4 + $0xcd] sm:$0x1]  ;;  %v3096_v39 = vld [vmem:[#allocation4 + $0xcf] sm:$0x1] }
 0x2cd   : > { %v2937_v26 = vrot.slane %v2888_v43, 2  ;;  %v3002_v5 = vsel %vm2922_vm12, %v3001_v23, %v3000_v12  ;;  %v3003_v54 = vrot.slane %v2960_v6, 1  ;;  %v3138_v63 = vsel %vm2922_vm12, %v3137_v53, %v3136_v49  ;;  %v3028_v29 = vld [vmem:[#allocation4 + $0xce] sm:$0x1]  ;;  %v2889_v11 = vld [vmem:[#allocation4 + $0xcc] sm:$0x1]  ;;  %v3949_v2 = vpop.permute.xlu0 %3948 }
 0x2ce   : > { %v3139_v32 = vrot.slane %v3096_v39, 1  ;;  %v2707_v28 = vsel %vm2642_vm15, %v2588_v17, %v2675_v59  ;;  %v3071_v31 = vrot.slane %v3028_v29, 1  ;;  %3954 = vst.msk [vmem:[#allocation5 + $0x18] sm:$0xff] %vm1193_vm5, %v3949_v2  ;;  %v2939_v51 = vrot.slane %v2889_v11, 1  ;;  %v3159_v57 = vld [vmem:[#allocation4 + $0x94] sm:$0x1] }
 0x2cf   : > { %v2938_v62 = vsel %vm2922_vm12, %v2937_v26, %v2936_v50  ;;  %v2771_v24 = vcombine.high %v2707_v28, %v2707_v28  ;;  %2862 = vst.msk [vmem:[#allocation4 + $0xd0] sm:$0xf] %vm2809_vm7, %v2707_v28  ;;  %v3004_v40 = vsel %vm2925_vm13, %v3003_v54, %v3002_v5  ;;  %v3070_v16 = vsel %vm2922_vm12, %v3069_v52, %v3068_v22  ;;  %v3222_v7 = vld [vmem:[#allocation4 + $0x91] sm:$0x1]  ;;  %v3225_v36 = vld [vmem:[#allocation4 + $0x9d] sm:$0x1] }
 0x2d0   : > { %v3140_v38 = vsel %vm2925_vm13, %v3139_v32, %v3138_v63  ;;  %3007 = vrot.lane.b32.xlu1 %v3004_v40, %s10924_s16  ;;  %v2940_v18 = vsel %vm2925_vm13, %v2939_v51, %v2938_v62  ;;  %v3072_v25 = vsel %vm2925_vm13, %v3071_v31, %v3070_v16  ;;  %v3396_v17 = vrot.slane %v3359_v10, 7  ;;  %v3290_v12 = vld [vmem:[#allocation4 + $0x92] sm:$0x1]  ;;  %v3161_v49 = vld [vmem:[#allocation4 + $0x9c] sm:$0x1] }
 0x2d1   : > { %3143 = vrot.lane.b32.xlu0 %v3140_v38, %s10925_s17  ;;  %2863 = vst.msk [vmem:[#allocation4 + $0xd4] sm:$0xf] %vm2809_vm7, %v2771_v24  ;;  %v3262_v55 = vrot.slane %v3224_v46, 6  ;;  %v3196_v48 = vrot.slane %v3159_v57, 7  ;;  %v3330_v23 = vrot.slane %v3292_v61, 6  ;;  %v3198_v53 = vrot.slane %v3160_v45, 6 }
 0x2d2   : > { %2944 = vst.msk [vmem:[#allocation5 + $0x20] sm:$0xff] %vm472_vm0, %v2940_v18  ;;  %v3358_v43 = vld [vmem:[#allocation4 + $0x93] sm:$0x1]  ;;  %v3398_v59 = vrot.slane %v3360_v13, 6  ;;  %v3261_v39 = vsel %vm2907_vm1, %v3260_v42, %v3222_v7  ;;  %v3264_v50 = vrot.slane %v3225_v36, 5  ;;  %v3329_v5 = vsel %vm2907_vm1, %v3328_v44, %v3290_v12 }
 0x2d3   : > { %v2367_v3 = vpop.f32.mrb[54].mxu0  ;;  %v3158_v63 = vld [vmem:[#allocation4 + $0x90] sm:$0x1]  ;;  %v3263_v29 = vsel %vm2910_vm6, %v3262_v55, %v3261_v39  ;;  %v3361_v28 = vld [vmem:[#allocation4 + $0x9f] sm:$0x1]  ;;  %v3200_v22 = vrot.slane %v3161_v49, 5  ;;  %v3331_v31 = vsel %vm2910_vm6, %v3330_v23, %v3329_v5  ;;  %v3397_v62 = vsel %vm2907_vm1, %v3396_v17, %v3358_v43 }
 0x2d4   : > { %v2368_v56 = vadd.f32 %v12916_v15, %v2367_v3  ;;  %v2369_v14 = vpop.f32.mrb[55].mxu0  ;;  %3075 = vrot.lane.b32.xlu1 %v3072_v25, %s10923_s15  ;;  %v3197_v2 = vsel %vm2907_vm1, %v3196_v48, %v3158_v63  ;;  %v3399_v25 = vsel %vm2910_vm6, %v3398_v59, %v3397_v62  ;;  %v3265_v47 = vsel %vm2913_vm8, %v3264_v50, %v3263_v29 }
 0x2d5   : > { %v3959_v27 = vld [vmem:[#allocation5 + $0x18] sm:$0xff]  ;;  %v3199_v40 = vsel %vm2910_vm6, %v3198_v53, %v3197_v2  ;;  %v3400_v10 = vrot.slane %v3361_v28, 5 }
 0x2d6   : > { %v2593_v1 = vadd.f32 %v12777_v30, %v2368_v56  ;;  %4174 = vmatprep.mubr.f32.mxu1 %v3959_v27  ;;  %v3293_v30 = vld [vmem:[#allocation4 + $0x9e] sm:$0x1]  ;;  %v3226_v37 = vld [vmem:[#allocation4 + $0xd1] sm:$0x1]  ;;  %v3162_v6 = vld [vmem:[#allocation4 + $0xd0] sm:$0x1]  ;;  %v3201_v46 = vsel %vm2913_vm8, %v3200_v22, %v3199_v40 }
 0x2d7   : > { %4175 = vmatmul.mubr.f32.vlgmr.msra.gmra.mrb[32].mxu1 %v3958_v9  ;;  %v3294_v26 = vld [vmem:[#allocation4 + $0xd2] sm:$0x1]  ;;  %v3332_v54 = vrot.slane %v3293_v30, 5  ;;  %v3266_v11 = vrot.slane %v3226_v37, 4  ;;  %v3202_v38 = vrot.slane %v3162_v6, 4  ;;  %v3401_v53 = vsel %vm2913_vm8, %v3400_v10, %v3399_v25 }
 0x2d8   : > { %vm2643_vm10 = vcmp.ge.f32.partialorder %v2593_v1, 0.0  ;;  %v2676_v33 = vmul.f32 %v12175_v19, %v2593_v1  ;;  %v3227_v32 = vld [vmem:[#allocation4 + $0xd5] sm:$0x1]  ;;  %v3163_v24 = vld [vmem:[#allocation4 + $0xd4] sm:$0x1]  ;;  %v3334_v18 = vrot.slane %v3294_v26, 4 }
 0x2d9   : > { %v3295_v16 = vld [vmem:[#allocation4 + $0xd6] sm:$0x1]  ;;  %v3362_v3 = vld [vmem:[#allocation4 + $0xd3] sm:$0x1]  ;;  %v3268_v34 = vrot.slane %v3227_v32, 3  ;;  %v3333_v27 = vsel %vm2913_vm8, %v3332_v54, %v3331_v31  ;;  %v3204_v57 = vrot.slane %v3163_v24, 3  ;;  %v3203_v44 = vsel %vm2916_vm9, %v3202_v38, %v3201_v46 }
 0x2da   : > { %v2708_v21 = vsel %vm2643_vm10, %v2593_v1, %v2676_v33  ;;  %v3267_v1 = vsel %vm2916_vm9, %v3266_v11, %v3265_v47  ;;  %v3336_v45 = vrot.slane %v3295_v16, 3  ;;  %v3402_v33 = vrot.slane %v3362_v3, 4  ;;  %v3363_v36 = vld [vmem:[#allocation4 + $0xd7] sm:$0x1]  ;;  %v3492_v16 = vld [vmem:[#allocation4 + $0xa5] sm:$0x1] }
 0x2db   : > { %v2772_v52 = vcombine.high %v2708_v21, %v2708_v21  ;;  %2864 = vst.msk [vmem:[#allocation4 + $0xd8] sm:$0xf] %vm2809_vm7, %v2708_v21  ;;  %v3335_v17 = vsel %vm2916_vm9, %v3334_v18, %v3333_v27  ;;  %v3269_v48 = vsel %vm2919_vm11, %v3268_v34, %v3267_v1  ;;  %v3205_v43 = vsel %vm2919_vm11, %v3204_v57, %v3203_v44  ;;  %v3560_v18 = vld [vmem:[#allocation4 + $0xa6] sm:$0x1]  ;;  %v3628_v3 = vld [vmem:[#allocation4 + $0xa7] sm:$0x1] }
 0x2dc   : > { %v3337_v6 = vsel %vm2919_vm11, %v3336_v45, %v3335_v17  ;;  %v3404_v39 = vrot.slane %v3363_v36, 3  ;;  %v3403_v11 = vsel %vm2916_vm9, %v3402_v33, %v3401_v53  ;;  %v3529_v34 = vrot.slane %v3492_v16, 7  ;;  %v3561_v10 = vld [vmem:[#allocation4 + $0xaa] sm:$0x1]  ;;  %v3429_v1 = vld [vmem:[#allocation4 + $0xa8] sm:$0x1] }
 0x2dd   : > { %2865 = vst.msk [vmem:[#allocation4 + $0xdc] sm:$0xf] %vm2809_vm7, %v2772_v52  ;;  %v3597_v46 = vrot.slane %v3560_v18, 7  ;;  %v3629_v57 = vld [vmem:[#allocation4 + $0xab] sm:$0x1] }
 0x2de   : > { %v3405_v62 = vsel %vm2919_vm11, %v3404_v39, %v3403_v11  ;;  %v3559_v33 = vld [vmem:[#allocation4 + $0xa2] sm:$0x1]  ;;  %v3430_v36 = vld [vmem:[#allocation4 + $0xac] sm:$0x1]  ;;  %v3630_v39 = vld [vmem:[#allocation4 + $0xaf] sm:$0x1] }
 0x2df   : > { %v2372_v51 = vpop.f32.mrb[56].mxu0 }
 0x2e0   : > { %v2373_v56 = vadd.f32 %v12916_v15, %v2372_v51  ;;  %v2374_v14 = vpop.f32.mrb[57].mxu0 }
 0x2e1   : > { %v3428_v14 = vld [vmem:[#allocation4 + $0xa4] sm:$0x1] }
 0x2e2   : > { %v2598_v9 = vadd.f32 %v12841_v20, %v2373_v56  ;;  %v3228_v42 = vld [vmem:[#allocation4 + $0xd9] sm:$0x1]  ;;  %v3296_v61 = vld [vmem:[#allocation4 + $0xda] sm:$0x1]  ;;  %v3164_v55 = vld [vmem:[#allocation4 + $0xd8] sm:$0x1] }
 0x2e3   : > { %v3270_v13 = vrot.slane %v3228_v42, 2  ;;  %v3338_v7 = vrot.slane %v3296_v61, 2  ;;  %v3206_v20 = vrot.slane %v3164_v55, 2  ;;  %v3364_v49 = vld [vmem:[#allocation4 + $0xdb] sm:$0x1]  ;;  %v3465_v44 = vrot.slane %v3428_v14, 7 }
 0x2e4   : > { %vm2644_vm14 = vcmp.ge.f32.partialorder %v2598_v9, 0.0  ;;  %v2677_v12 = vmul.f32 %v12175_v19, %v2598_v9  ;;  %v3229_v30 = vld [vmem:[#allocation4 + $0xdd] sm:$0x1]  ;;  %v3297_v21 = vld [vmem:[#allocation4 + $0xde] sm:$0x1]  ;;  %v3406_v28 = vrot.slane %v3364_v49, 2  ;;  %v3598_v49 = vsel %vm2907_vm1, %v3597_v46, %v3559_v33 }
 0x2e5   : > { %v3271_v37 = vsel %vm2922_vm12, %v3270_v13, %v3269_v48  ;;  %v3272_v23 = vrot.slane %v3229_v30, 1  ;;  %v3165_v52 = vld [vmem:[#allocation4 + $0xdc] sm:$0x1]  ;;  %v3207_v50 = vsel %vm2922_vm12, %v3206_v20, %v3205_v43  ;;  %v3340_v54 = vrot.slane %v3297_v21, 1  ;;  %v3365_v29 = vld [vmem:[#allocation4 + $0xdf] sm:$0x1] }
 0x2e6   : > { %v2709_v59 = vsel %vm2644_vm14, %v2598_v9, %v2677_v12  ;;  %v3208_v63 = vrot.slane %v3165_v52, 1  ;;  %v3339_v32 = vsel %vm2922_vm12, %v3338_v7, %v3337_v6  ;;  %v3408_v24 = vrot.slane %v3365_v29, 1  ;;  %v3493_v56 = vld [vmem:[#allocation4 + $0xa9] sm:$0x1]  ;;  %v3491_v42 = vld [vmem:[#allocation4 + $0xa1] sm:$0x1] }
 0x2e7   : > { %v2773_v26 = vcombine.high %v2709_v59, %v2709_v59  ;;  %2866 = vst.msk [vmem:[#allocation4 + $0xe0] sm:$0xf] %vm2809_vm7, %v2709_v59  ;;  %v3273_v5 = vsel %vm2925_vm13, %v3272_v23, %v3271_v37  ;;  %v3341_v31 = vsel %vm2925_vm13, %v3340_v54, %v3339_v32  ;;  %v3407_v51 = vsel %vm2922_vm12, %v3406_v28, %v3405_v62  ;;  %v3494_v61 = vld [vmem:[#allocation4 + $0xad] sm:$0x1]  ;;  %v3627_v30 = vld [vmem:[#allocation4 + $0xa3] sm:$0x1] }
 0x2e8   : > { %3276 = vrot.lane.b32.xlu0 %v3273_v5, %s10924_s16  ;;  %v3209_v2 = vsel %vm2925_vm13, %v3208_v63, %v3207_v50  ;;  %v3409_v47 = vsel %vm2925_vm13, %v3408_v24, %v3407_v51  ;;  %v3665_v9 = vrot.slane %v3628_v3, 7  ;;  %v3531_v45 = vrot.slane %v3493_v56, 6  ;;  %v3427_v52 = vld [vmem:[#allocation4 + $0xa0] sm:$0x1] }
 0x2e9   : > { %2867 = vst.msk [vmem:[#allocation4 + $0xe4] sm:$0xf] %vm2809_vm7, %v2773_v26  ;;  %v3599_v7 = vrot.slane %v3561_v10, 6  ;;  %v3467_v55 = vrot.slane %v3429_v1, 6  ;;  %v3667_v48 = vrot.slane %v3629_v57, 6  ;;  %v3530_v20 = vsel %vm2907_vm1, %v3529_v34, %v3491_v42 }
 0x2ea   : > { %3213 = vst.msk [vmem:[#allocation5 + $0x28] sm:$0xff] %vm472_vm0, %v3209_v2  ;;  %v3533_v37 = vrot.slane %v3494_v61, 5  ;;  %v3532_v59 = vsel %vm2910_vm6, %v3531_v45, %v3530_v20  ;;  %v3466_v50 = vsel %vm2907_vm1, %v3465_v44, %v3427_v52  ;;  %v3469_v26 = vrot.slane %v3430_v36, 5 }
 0x2eb   : > { %v2377_v22 = vpop.f32.mrb[58].mxu0  ;;  %v3600_v5 = vsel %vm2910_vm6, %v3599_v7, %v3598_v49  ;;  %v3666_v54 = vsel %vm2907_vm1, %v3665_v9, %v3627_v30  ;;  %v3468_v32 = vsel %vm2910_vm6, %v3467_v55, %v3466_v50  ;;  %v3669_v51 = vrot.slane %v3630_v39, 5  ;;  %v3761_v39 = vld [vmem:[#allocation4 + $0xb5] sm:$0x1] }
 0x2ec   : > { %v2378_v40 = vadd.f32 %v12916_v15, %v2377_v22  ;;  %v2379_v38 = vpop.f32.mrb[59].mxu0  ;;  %3344 = vrot.lane.b32.xlu0 %v3341_v31, %s10923_s15  ;;  %v3668_v31 = vsel %vm2910_vm6, %v3667_v48, %v3666_v54  ;;  %v3470_v3 = vsel %vm2913_vm8, %v3469_v26, %v3468_v32  ;;  %v3897_v32 = vld [vmem:[#allocation4 + $0xb7] sm:$0x1] }
 0x2ed   : > { %v3670_v7 = vsel %vm2913_vm8, %v3669_v51, %v3668_v31  ;;  %v3830_v31 = vld [vmem:[#allocation4 + $0xba] sm:$0x1] }
 0x2ee   : > { %v2603_v25 = vadd.f32 %v12839_v35, %v2378_v40  ;;  %v3562_v35 = vld [vmem:[#allocation4 + $0xae] sm:$0x1]  ;;  %v3495_v17 = vld [vmem:[#allocation4 + $0xe1] sm:$0x1]  ;;  %v3431_v21 = vld [vmem:[#allocation4 + $0xe0] sm:$0x1]  ;;  %v3534_v40 = vsel %vm2913_vm8, %v3533_v37, %v3532_v59 }
 0x2ef   : > { %v3563_v23 = vld [vmem:[#allocation4 + $0xe2] sm:$0x1]  ;;  %v3601_v53 = vrot.slane %v3562_v35, 5  ;;  %v3535_v6 = vrot.slane %v3495_v17, 4  ;;  %v3471_v29 = vrot.slane %v3431_v21, 4 }
 0x2f0   : > { %vm2645_vm15 = vcmp.ge.f32.partialorder %v2603_v25, 0.0  ;;  %v2678_v27 = vmul.f32 %v12175_v19, %v2603_v25  ;;  %3412 = vrot.lane.b32.xlu0 %v3409_v47, %s10925_s17  ;;  %v3496_v43 = vld [vmem:[#allocation4 + $0xe5] sm:$0x1]  ;;  %v3432_v63 = vld [vmem:[#allocation4 + $0xe4] sm:$0x1]  ;;  %v3603_v2 = vrot.slane %v3563_v23, 4 }
 0x2f1   : > { %v3564_v28 = vld [vmem:[#allocation4 + $0xe6] sm:$0x1]  ;;  %v3631_v22 = vld [vmem:[#allocation4 + $0xe3] sm:$0x1]  ;;  %v3537_v38 = vrot.slane %v3496_v43, 3  ;;  %v3536_v16 = vsel %vm2916_vm9, %v3535_v6, %v3534_v40  ;;  %v3602_v18 = vsel %vm2913_vm8, %v3601_v53, %v3600_v5  ;;  %v3472_v1 = vsel %vm2916_vm9, %v3471_v29, %v3470_v3 }
 0x2f2   : > { %v2710_v13 = vsel %vm2645_vm15, %v2603_v25, %v2678_v27  ;;  %v3473_v25 = vrot.slane %v3432_v63, 3  ;;  %v3605_v34 = vrot.slane %v3564_v28, 3  ;;  %v3671_v10 = vrot.slane %v3631_v22, 4  ;;  %v3632_v9 = vld [vmem:[#allocation4 + $0xe7] sm:$0x1] }
 0x2f3   : > { %v2774_v12 = vcombine.high %v2710_v13, %v2710_v13  ;;  %2868 = vst.msk [vmem:[#allocation4 + $0xe8] sm:$0xf] %vm2809_vm7, %v2710_v13  ;;  %v3604_v46 = vsel %vm2916_vm9, %v3603_v2, %v3602_v18  ;;  %v3538_v33 = vsel %vm2919_vm11, %v3537_v38, %v3536_v16  ;;  %v3673_v48 = vrot.slane %v3632_v9, 3  ;;  %v3829_v63 = vld [vmem:[#allocation4 + $0xb6] sm:$0x1] }
 0x2f4   : > { %v3474_v55 = vsel %vm2919_vm11, %v3473_v25, %v3472_v1  ;;  %v3606_v30 = vsel %vm2919_vm11, %v3605_v34, %v3604_v46  ;;  %v3672_v43 = vsel %vm2916_vm9, %v3671_v10, %v3670_v7  ;;  %v3762_v2 = vld [vmem:[#allocation4 + $0xb9] sm:$0x1]  ;;  %v3697_v22 = vld [vmem:[#allocation4 + $0xb4] sm:$0x1]  ;;  %v3866_v40 = vrot.slane %v3829_v63, 7 }
 0x2f5   : > { %2869 = vst.msk [vmem:[#allocation4 + $0xec] sm:$0xf] %vm2809_vm7, %v2774_v12  ;;  %v3674_v5 = vsel %vm2919_vm11, %v3673_v48, %v3672_v43  ;;  %v3934_v38 = vrot.slane %v3897_v32, 7  ;;  %v3760_v16 = vld [vmem:[#allocation4 + $0xb1] sm:$0x1]  ;;  %v3800_v18 = vrot.slane %v3762_v2, 6 }
 0x2f6   : > { %v3828_v3 = vld [vmem:[#allocation4 + $0xb2] sm:$0x1]  ;;  %v3898_v25 = vld [vmem:[#allocation4 + $0xbb] sm:$0x1]  ;;  %v3831_v34 = vld [vmem:[#allocation4 + $0xbe] sm:$0x1] }
 0x2f7   : > { %v2382_v11 = vpop.f32.mrb[60].mxu0  ;;  %v3868_v10 = vrot.slane %v3830_v31, 6  ;;  %v3867_v9 = vsel %vm2907_vm1, %v3866_v40, %v3828_v3 }
 0x2f8   : > { %v2383_v62 = vadd.f32 %v12916_v15, %v2382_v11  ;;  %v2384_v24 = vpop.f32.mrb[61].mxu0 }
 0x2f9   : > { %v3798_v24 = vrot.slane %v3761_v39, 7  ;;  %v3869_v48 = vsel %vm2910_vm6, %v3868_v10, %v3867_v9 }
 0x2fa   : > { %v2608_v56 = vadd.f32 %v12855_v8, %v2383_v62  ;;  %v3497_v14 = vld [vmem:[#allocation4 + $0xe9] sm:$0x1]  ;;  %v3565_v47 = vld [vmem:[#allocation4 + $0xea] sm:$0x1]  ;;  %v3433_v42 = vld [vmem:[#allocation4 + $0xe8] sm:$0x1] }
 0x2fb   : > { %v3539_v27 = vrot.slane %v3497_v14, 2  ;;  %v3607_v57 = vrot.slane %v3565_v47, 2  ;;  %v3475_v8 = vrot.slane %v3433_v42, 2  ;;  %v3633_v17 = vld [vmem:[#allocation4 + $0xeb] sm:$0x1] }
 0x2fc   : > { %vm2646_vm10 = vcmp.ge.f32.partialorder %v2608_v56, 0.0  ;;  %v2679_v61 = vmul.f32 %v12175_v19, %v2608_v56  ;;  %v3498_v45 = vld [vmem:[#allocation4 + $0xed] sm:$0x1]  ;;  %v3566_v35 = vld [vmem:[#allocation4 + $0xee] sm:$0x1]  ;;  %v3675_v59 = vrot.slane %v3633_v17, 2 }
 0x2fd   : > { %v3540_v44 = vsel %vm2922_vm12, %v3539_v27, %v3538_v33  ;;  %v3541_v13 = vrot.slane %v3498_v45, 1  ;;  %v3434_v36 = vld [vmem:[#allocation4 + $0xec] sm:$0x1]  ;;  %v3476_v21 = vsel %vm2922_vm12, %v3475_v8, %v3474_v55  ;;  %v3609_v23 = vrot.slane %v3566_v35, 1  ;;  %v3634_v52 = vld [vmem:[#allocation4 + $0xef] sm:$0x1] }
 0x2fe   : > { %v2711_v12 = vsel %vm2646_vm10, %v2608_v56, %v2679_v61  ;;  %v3477_v49 = vrot.slane %v3434_v36, 1  ;;  %v3608_v53 = vsel %vm2922_vm12, %v3607_v57, %v3606_v30  ;;  %v3677_v54 = vrot.slane %v3634_v52, 1  ;;  %v3763_v47 = vld [vmem:[#allocation4 + $0xbd] sm:$0x1]  ;;  %v3899_v27 = vld [vmem:[#allocation4 + $0xbf] sm:$0x1] }
 0x2ff   : > { %v2775_v20 = vcombine.high %v2711_v12, %v2711_v12  ;;  %2870 = vst.msk [vmem:[#allocation4 + $0xf0] sm:$0xf] %vm2809_vm7, %v2711_v12  ;;  %v3542_v37 = vsel %vm2925_vm13, %v3541_v13, %v3540_v44  ;;  %v3610_v26 = vsel %vm2925_vm13, %v3609_v23, %v3608_v53  ;;  %v3676_v28 = vsel %vm2922_vm12, %v3675_v59, %v3674_v5  ;;  %v3896_v42 = vld [vmem:[#allocation4 + $0xb3] sm:$0x1]  ;;  %v3699_v8 = vld [vmem:[#allocation4 + $0xbc] sm:$0x1] }
 0x300   : > { %3545 = vrot.lane.b32.xlu1 %v3542_v37, %s10924_s16  ;;  %v3478_v6 = vsel %vm2925_vm13, %v3477_v49, %v3476_v21  ;;  %v3678_v51 = vsel %vm2925_vm13, %v3677_v54, %v3676_v28  ;;  %v3734_v56 = vrot.slane %v3697_v22, 7  ;;  %v3799_v57 = vsel %vm2907_vm1, %v3798_v24, %v3760_v16  ;;  %v3696_v55 = vld [vmem:[#allocation4 + $0xb0] sm:$0x1] }
 0x301   : > { %2871 = vst.msk [vmem:[#allocation4 + $0xf4] sm:$0xf] %vm2809_vm7, %v2775_v20  ;;  %v3936_v61 = vrot.slane %v3898_v25, 6  ;;  %v3802_v33 = vrot.slane %v3763_v47, 5  ;;  %v3870_v17 = vrot.slane %v3831_v34, 5  ;;  %v3938_v36 = vrot.slane %v3899_v27, 5 }
 0x302   : > { %3482 = vst.msk [vmem:[#allocation5 + $0x30] sm:$0xff] %vm472_vm0, %v3478_v6  ;;  %v3935_v21 = vsel %vm2907_vm1, %v3934_v38, %v3896_v42  ;;  %v3735_v53 = vsel %vm2907_vm1, %v3734_v56, %v3696_v55  ;;  %v3738_v52 = vrot.slane %v3699_v8, 5 }
 0x303   : > { %v2387_v50 = vpop.f32.mrb[62].mxu0  ;;  %v3937_v23 = vsel %vm2910_vm6, %v3936_v61, %v3935_v21  ;;  %v3871_v39 = vsel %vm2913_vm8, %v3870_v17, %v3869_v48  ;;  %v4190_v17 = vld [vmem:[%s15562_s7 + $0x8] sm:$0xff]  ;;  %v4189_v48 = vld [vmem:[%s15562_s7] sm:$0xff] }
 0x304   : > { %v2388_v29 = vadd.f32 %v12916_v15, %v2387_v50  ;;  %v2389_v11 = vpop.f32.mrb[63].mxu0  ;;  %3613 = vrot.lane.b32.xlu1 %v3610_v26, %s10923_s15  ;;  %v3698_v15 = vld [vmem:[#allocation4 + $0xb8] sm:$0x1]  ;;  %v3939_v32 = vsel %vm2913_vm8, %v3938_v36, %v3937_v23  ;;  %v4191_v36 = vld [vmem:[%s15562_s7 + $0x10] sm:$0xff]  ;;  %v4193_v21 = vld [vmem:[%s15562_s7 + $0x20] sm:$0xff] }
 0x305   : > { %v3736_v44 = vrot.slane %v3698_v15, 6  ;;  %v4204_v23 = vld [vmem:[%s15562_s7 + $0x78] sm:$0xff] }
 0x306   : > { %v2613_v62 = vadd.f32 %v12853_v41, %v2388_v29  ;;  %v3764_v41 = vld [vmem:[#allocation4 + $0xf1] sm:$0x1]  ;;  %v3832_v1 = vld [vmem:[#allocation4 + $0xf2] sm:$0x1]  ;;  %v3900_v35 = vld [vmem:[#allocation4 + $0xf3] sm:$0x1] }
 0x307   : > { %v3804_v13 = vrot.slane %v3764_v41, 4  ;;  %v3872_v7 = vrot.slane %v3832_v1, 4  ;;  %v3700_v20 = vld [vmem:[#allocation4 + $0xf0] sm:$0x1]  ;;  %v3940_v49 = vrot.slane %v3900_v35, 4  ;;  %v3737_v59 = vsel %vm2910_vm6, %v3736_v44, %v3735_v53  ;;  %v4196_v35 = vld [vmem:[%s15562_s7 + $0x38] sm:$0xff] }
 0x308   : > { %vm2647_vm14 = vcmp.ge.f32.partialorder %v2613_v62, 0.0  ;;  %v2680_v14 = vmul.f32 %v12175_v19, %v2613_v62  ;;  %3681 = vrot.lane.b32.xlu1 %v3678_v51, %s10925_s17  ;;  %v3801_v19 = vsel %vm2910_vm6, %v3800_v18, %v3799_v57  ;;  %v3765_v12 = vld [vmem:[#allocation4 + $0xf5] sm:$0x1]  ;;  %v3833_v30 = vld [vmem:[#allocation4 + $0xf6] sm:$0x1]  ;;  %v3740_v5 = vrot.slane %v3700_v20, 4 }
 0x309   : > { %v3901_v37 = vld [vmem:[#allocation4 + $0xf7] sm:$0x1]  ;;  %v3803_v43 = vsel %vm2913_vm8, %v3802_v33, %v3801_v19  ;;  %v3806_v6 = vrot.slane %v3765_v12, 3  ;;  %v3874_v50 = vrot.slane %v3833_v30, 3  ;;  %v3701_v26 = vld [vmem:[#allocation4 + $0xf4] sm:$0x1]  ;;  %v3873_v63 = vsel %vm2916_vm9, %v3872_v7, %v3871_v39 }
 0x30a   : > { %v2712_v46 = vsel %vm2647_vm14, %v2613_v62, %v2680_v14  ;;  %v3805_v54 = vsel %vm2916_vm9, %v3804_v13, %v3803_v43  ;;  %v3942_v29 = vrot.slane %v3901_v37, 3  ;;  %v3941_v22 = vsel %vm2916_vm9, %v3940_v49, %v3939_v32  ;;  %v4192_v33 = vld [vmem:[%s15562_s7 + $0x18] sm:$0xff]  ;;  %v4194_v7 = vld [vmem:[%s15562_s7 + $0x28] sm:$0xff]  ;;  %v4195_v12 = vld [vmem:[%s15562_s7 + $0x30] sm:$0xff] }
 0x30b   : > { %v2776_v45 = vcombine.high %v2712_v46, %v2712_v46  ;;  %2872 = vst.msk [vmem:[#allocation4 + $0xf8] sm:$0xf] %vm2809_vm7, %v2712_v46  ;;  %v3739_v31 = vsel %vm2913_vm8, %v3738_v52, %v3737_v59  ;;  %v3742_v51 = vrot.slane %v3701_v26, 3  ;;  %v3807_v18 = vsel %vm2919_vm11, %v3806_v6, %v3805_v54  ;;  %v4200_v37 = vld [vmem:[%s15562_s7 + $0x58] sm:$0xff]  ;;  %v4198_v49 = vld [vmem:[%s15562_s7 + $0x48] sm:$0xff]  ;;  %v4199_v43 = vld [vmem:[%s15562_s7 + $0x50] sm:$0xff] }
 0x30c   : > { %v3875_v25 = vsel %vm2919_vm11, %v3874_v50, %v3873_v63  ;;  %v3741_v56 = vsel %vm2916_vm9, %v3740_v5, %v3739_v31  ;;  %v3943_v1 = vsel %vm2919_vm11, %v3942_v29, %v3941_v22  ;;  %v10801_v44 = vpack.c.bf16 %v4196_v35, %v4192_v33  ;;  %v4202_v52 = vld [vmem:[%s15562_s7 + $0x68] sm:$0xff]  ;;  %v4203_v59 = vld [vmem:[%s15562_s7 + $0x70] sm:$0xff]  ;;  %v4197_v50 = vld [vmem:[%s15562_s7 + $0x40] sm:$0xff] }
 0x30d   : > { %2873 = vst.msk [vmem:[#allocation4 + $0xfc] sm:$0xf] %vm2809_vm7, %v2776_v45  ;;  %v3743_v61 = vsel %vm2919_vm11, %v3742_v51, %v3741_v56  ;;  %v10793_v55 = vpack.c.bf16 %v4194_v7, %v4190_v17  ;;  %v10803_v30 = vpack.c.bf16 %v4195_v12, %v4191_v36  ;;  %v10795_v20 = vpack.c.bf16 %v4193_v21, %v4189_v48  ;;  %v4201_v26 = vld [vmem:[%s15562_s7 + $0x60] sm:$0xff]  ;;  %v4186_v33 = vld [vmem:[%s462_s29 + $0x8] sm:$0xff] }
 0x30e   : > { %10802 = vmatprep.subr.bf16.mxu1 %v10801_v44  ;;  %v10805_v53 = vpack.c.bf16 %v4204_v23, %v4200_v37  ;;  %v10797_v6 = vpack.c.bf16 %v4202_v52, %v4198_v49  ;;  %v10807_v39 = vpack.c.bf16 %v4203_v59, %v4199_v43  ;;  %v10799_v5 = vpack.c.bf16 %v4201_v26, %v4197_v50  ;;  %v10369_v56 = vld [vmem:[%s15561_s6] ss:$0 sm:$0xff] }
 0x30f   : > { %10794 = vmatprep.subr.bf16.mxu0 %v10793_v55  ;;  %10804 = vmatpush1.bf16.msra.mxu1 %v10803_v30  ;;  %v4207_v44 = vlaneseq  ;;  %v4205_v7 = vld [vmem:[%s15563_s8] sm:$0xf]  ;;  %v10926_v36 = vmov 1966171168  }
 0x310   : > { %10796 = vmatpush1.bf16.msra.mxu0 %v10795_v20  ;;  %10806 = vmatprep.subr.bf16.mxu1 %v10805_v53  ;;  %v4426_v55 = vunpack.c.l.s4 %v10926_v36  ;;  %v13158_v53 = vstv %s10333_s22 }
 0x311   : > { %10798 = vmatprep.subr.bf16.mxu0 %v10797_v6 }
 0x312   : > { %v3766_v11 = vld [vmem:[#allocation4 + $0xf9] sm:$0x1]  ;;  %v3834_v28 = vld [vmem:[#allocation4 + $0xfa] sm:$0x1]  ;;  %v3902_v2 = vld [vmem:[#allocation4 + $0xfb] sm:$0x1]  ;;  %v4427_v20 = vunpack.c.0.s8 %v4426_v55 }
 0x313   : > { %v3808_v62 = vrot.slane %v3766_v11, 2  ;;  %v3876_v24 = vrot.slane %v3834_v28, 2  ;;  %v3944_v40 = vrot.slane %v3902_v2, 2  ;;  %v3702_v38 = vld [vmem:[#allocation4 + $0xf8] sm:$0x1]  ;;  %10808 = vmatpush1.bf16.msra.mxu1 %v10807_v39 }
 0x314   : > { %v3767_v16 = vld [vmem:[#allocation4 + $0xfd] sm:$0x1]  ;;  %v3835_v3 = vld [vmem:[#allocation4 + $0xfe] sm:$0x1]  ;;  %v3903_v15 = vld [vmem:[#allocation4 + $0xff] sm:$0x1]  ;;  %10800 = vmatpush1.bf16.msra.mxu0 %v10799_v5  ;;  %10809 = vmatprep.subr.bf16.mxu1 %v10922_v4 }
 0x315   : > { %v3809_v14 = vsel %vm2922_vm12, %v3808_v62, %v3807_v18  ;;  %v3810_v47 = vrot.slane %v3767_v16, 1  ;;  %v3877_v34 = vsel %vm2922_vm12, %v3876_v24, %v3875_v25  ;;  %v3878_v10 = vrot.slane %v3835_v3, 1  ;;  %v3703_v41 = vld [vmem:[#allocation4 + $0xfc] sm:$0x1] }
 0x316   : > { %v3744_v27 = vrot.slane %v3702_v38, 2  ;;  %v3746_v46 = vrot.slane %v3703_v41, 1  ;;  %v3946_v42 = vrot.slane %v3903_v15, 1  ;;  %v3945_v45 = vsel %vm2922_vm12, %v3944_v40, %v3943_v1  ;;  %v4185_v41 = vld [vmem:[%s462_s29] sm:$0xff] }
 0x317   : > { %v3811_v57 = vsel %vm2925_vm13, %v3810_v47, %v3809_v14  ;;  %v3879_v9 = vsel %vm2925_vm13, %v3878_v10, %v3877_v34 }
 0x318   : > { %3814 = vrot.lane.b32.xlu1 %v3811_v57, %s10924_s16  ;;  %3882 = vrot.lane.b32.xlu0 %v3879_v9, %s10923_s15  ;;  %v3745_v19 = vsel %vm2922_vm12, %v3744_v27, %v3743_v61  ;;  %v3947_v13 = vsel %vm2925_vm13, %v3946_v42, %v3945_v45 }
 0x319   : > { %v3747_v8 = vsel %vm2925_vm13, %v3746_v46, %v3745_v19 }
 0x31a   : > { %3751 = vst.msk [vmem:[#allocation5 + $0x38] sm:$0xff] %vm472_vm0, %v3747_v8 }
 0x31c   : > { %3950 = vrot.lane.b32.xlu0 %v3947_v13, %s10925_s17  ;;  %v4208_v13 = vshrl.u32 %v4207_v44, 7 }
 0x31e   : > { %v13144_v17 = vsub.s32 0, %v4208_v13  ;;  %v4213_v12 = vsub.s32 1, %v4208_v13  ;;  %v4221_v30 = vsub.s32 3, %v4208_v13  ;;  %v13162_v50 = vsub.s32 %v4427_v20, %v4208_v13 }
 0x320   : > { %v13150_v48 = vrot.slane %v4205_v7, %v13144_v17  ;;  %v13154_v37 = vrot.slane %v4205_v7, %v4213_v12  ;;  %v13156_v23 = vrot.slane %v4205_v7, %v4221_v30 }
 0x342   : > { %v3008_v54 = vpop.permute.xlu1 %3007 }
 0x343   : > { %3012 = vst.msk [vmem:[#allocation5 + $0x20] sm:$0xff] %vm807_vm3, %v3008_v54  ;;  %v3144_v32 = vpop.permute.xlu0 %3143 }
 0x346   : > { %v3076_v63 = vpop.permute.xlu1 %3075 }
 0x347   : > { %3080 = vst.msk [vmem:[#allocation5 + $0x20] sm:$0xff] %vm1000_vm4, %v3076_v63 }
 0x348   : > { %3148 = vst.msk [vmem:[#allocation5 + $0x20] sm:$0xff] %vm1193_vm5, %v3144_v32 }
 0x34f   : > { %v3960_v22 = vld [vmem:[#allocation5 + $0x20] sm:$0xff] }
 0x35a   : > { %v3277_v29 = vpop.permute.xlu0 %3276 }
 0x35b   : > { %3281 = vst.msk [vmem:[#allocation5 + $0x28] sm:$0xff] %vm807_vm3, %v3277_v29 }
 0x35e   : > { %v3345_v11 = vpop.permute.xlu0 %3344 }
 0x35f   : > { %3349 = vst.msk [vmem:[#allocation5 + $0x28] sm:$0xff] %vm1000_vm4, %v3345_v11 }
 0x362   : > { %v3413_v28 = vpop.permute.xlu0 %3412 }
 0x363   : > { %3417 = vst.msk [vmem:[#allocation5 + $0x28] sm:$0xff] %vm1193_vm5, %v3413_v28 }
 0x36a   : > { %v3961_v2 = vld [vmem:[#allocation5 + $0x28] sm:$0xff] }
 0x36b   : > { %4104 = vmatprep.mubr.f32.mxu0 %v3961_v2 }
 0x36c   : > { %4105 = vmatmul.mubr.f32.gmra.mrb[66].mxu0 %v3960_v22 }
 0x36d   : > { %4297 = vmatprep.mubr.f32.mxu0 %v10921_v0 }
 0x372   : > { %v3546_v31 = vpop.permute.xlu1 %3545 }
 0x373   : > { %3550 = vst.msk [vmem:[#allocation5 + $0x30] sm:$0xff] %vm807_vm3, %v3546_v31 }
 0x376   : > { %v3614_v62 = vpop.permute.xlu1 %3613 }
 0x377   : > { %3618 = vst.msk [vmem:[#allocation5 + $0x30] sm:$0xff] %vm1000_vm4, %v3614_v62 }
 0x37a   : > { %v3682_v24 = vpop.permute.xlu1 %3681 }
 0x37b   : > { %3686 = vst.msk [vmem:[#allocation5 + $0x30] sm:$0xff] %vm1193_vm5, %v3682_v24 }
 0x37f   : > { %v10481_v40 = vpop.f32.mrb[64].mxu0 }
 0x380   : > { %v10482_v38 = vpop.f32.mrb[65].mxu0 }
 0x381   : > { %v10483_v51 = vadd.f32 %v10482_v38, %v10481_v40 }
 0x382   : > { %v3962_v15 = vld [vmem:[#allocation5 + $0x30] sm:$0xff] }
 0x383   : > { %v4102_v34 = vadd.f32 %v10483_v51, %v10369_v56 }
 0x38a   : > { %v3815_v16 = vpop.permute.xlu1 %3814  ;;  %v3883_v18 = vpop.permute.xlu0 %3882 }
 0x38b   : > { %3819 = vst.msk [vmem:[#allocation5 + $0x38] sm:$0xff] %vm807_vm3, %v3815_v16 }
 0x38c   : > { %3887 = vst.msk [vmem:[#allocation5 + $0x38] sm:$0xff] %vm1000_vm4, %v3883_v18 }
 0x38e   : > { %v3951_v3 = vpop.permute.xlu0 %3950 }
 0x38f   : > { %3955 = vst.msk [vmem:[#allocation5 + $0x38] sm:$0xff] %vm1193_vm5, %v3951_v3 }
 0x396   : > { %v3963_v25 = vld [vmem:[#allocation5 + $0x38] sm:$0xff] }
 0x397   : > { %4179 = vmatprep.mubr.f32.mxu1 %v3963_v25 }
 0x398   : > { %4180 = vmatmul.mubr.f32.gmra.mrb[34].mxu1 %v3962_v15 }
 0x399   : > { %4374 = vmatprep.mubr.f32.mxu1 %v10921_v0 }
 0x3aa   : > { %v10519_v14 = vpop.f32.mrb[32].mxu1 }
 0x3ab   : > { %v10520_v47 = vpop.f32.mrb[33].mxu1 }
 0x3ac   : > { %v10521_v10 = vadd.f32 %v10520_v47, %v10519_v14 }
 0x3ae   : > { %v4177_v1 = vadd.f32 %v10521_v10, %v4102_v34 }
 0x3b0   : > { %v4187_v27 = vsub.f32 %v4177_v1, %v4185_v41 }
 0x3b2   : > { %10370 = vmatmul.mubr.msk.f32.vlgmr.msra.gmra.mrb[68].mxu0 %vm472_vm0, %v4187_v27  ;;  %10372 = vmatmul.mubr.msk.f32.vlgmr.msra.gmra.mrb[36].mxu1 %vm472_vm0, %v4187_v27 }
 0x3b3   : > { %4303 = vmatprep.mubr.f32.mxu0 %v10921_v0  ;;  %4380 = vmatprep.mubr.f32.mxu1 %v10921_v0  ;;  %v4217_v0 = vsub.s32 2, %v4208_v13 }
 0x3b5   : > { %v13152_v21 = vrot.slane %v4205_v7, %v4217_v0 }
 0x43f   : > { %v10484_v46 = vpop.f32.mrb[66].mxu0 }
 0x440   : > { %v10485_v57 = vpop.f32.mrb[67].mxu0 }
 0x441   : > { %v10486_v9 = vadd.f32 %v10485_v57, %v10484_v46 }
 0x443   : > { %v4107_v45 = vadd.f32 %v10486_v9, %v10369_v56 }
 0x46b   : > { %v10522_v42 = vpop.f32.mrb[34].mxu1 }
 0x46c   : > { %v10523_v61 = vpop.f32.mrb[35].mxu1 }
 0x46d   : > { %v10524_v19 = vadd.f32 %v10523_v61, %v10522_v42 }
 0x46f   : > { %v4182_v35 = vadd.f32 %v10524_v19, %v4107_v45 }
 0x471   : > { %v4188_v8 = vsub.f32 %v4182_v35, %v4186_v33 }
 0x473   : > { %10371 = vmatmul.mubr.msk.f32.gmra.mrb[70].mxu0 %vm472_vm0, %v4188_v8  ;;  %10373 = vmatmul.mubr.msk.f32.gmra.mrb[38].mxu1 %vm472_vm0, %v4188_v8 }
 0x485   : > { %v4299_v49 = vpop.f32.mrb[68].mxu0  ;;  %v4376_v52 = vpop.f32.mrb[36].mxu1 }
 0x486   : > { %v4300_v43 = vadd.f32 %v4299_v49, %v13150_v48  ;;  %v4377_v59 = vadd.f32 %v4376_v52, %v13152_v21  ;;  %v4301_v6 = vpop.f32.mrb[69].mxu0  ;;  %v4378_v39 = vpop.f32.mrb[37].mxu1 }
 0x487   : > { %v4302_v26 = vadd.f32 %v4301_v6, %v13154_v37  ;;  %v4379_v5 = vadd.f32 %v4378_v39, %v13156_v23 }
 0x488   : > { %vm4387_vm7 = vcmp.ge.f32.partialorder %v4300_v43, 0.0  ;;  %v4396_v54 = vmul.f32 %v13158_v53, %v4300_v43  ;;  %vm4389_vm1 = vcmp.ge.f32.partialorder %v4377_v59, 0.0  ;;  %v4398_v63 = vmul.f32 %v13158_v53, %v4377_v59 }
 0x489   : > { %vm4388_vm6 = vcmp.ge.f32.partialorder %v4302_v26, 0.0  ;;  %v4397_v32 = vmul.f32 %v13158_v53, %v4302_v26  ;;  %vm4390_vm8 = vcmp.ge.f32.partialorder %v4379_v5, 0.0  ;;  %v4399_v29 = vmul.f32 %v13158_v53, %v4379_v5 }
 0x48a   : > { %v4404_v11 = vsel %vm4387_vm7, %v4300_v43, %v4396_v54  ;;  %v4406_v28 = vsel %vm4389_vm1, %v4377_v59, %v4398_v63 }
 0x48b   : > { %4412 = vst [vmem:[#allocation5] sm:$0xff] %v4404_v11  ;;  %v4424_v2 = vcombine.high %v4404_v11, %v4404_v11  ;;  %v4431_v22 = vrot.slane %v4404_v11, %v13162_v50  ;;  %4414 = vst [vmem:[#allocation5 + $0x10] sm:$0xff] %v4406_v28  ;;  %v6072_v31 = vcombine.high %v4406_v28, %v4406_v28 }
 0x48c   : > { %v6079_v62 = vrot.slane %v4406_v28, %v13162_v50  ;;  %v4405_v24 = vsel %vm4388_vm6, %v4302_v26, %v4397_v32  ;;  %v4407_v40 = vsel %vm4390_vm8, %v4379_v5, %v4399_v29 }
 0x48d   : > { %v4438_v38 = vrot.slane %v4424_v2, %v13162_v50  ;;  %v4439_v51 = vcombine.high %v4431_v22, %v4431_v22  ;;  %v4447_v16 = vrot.slane %v4431_v22, %v13162_v50  ;;  %v6086_v18 = vrot.slane %v6072_v31, %v13162_v50  ;;  %4413 = vst [vmem:[#allocation5 + $0x8] sm:$0xff] %v4405_v24 }
 0x48e   : > { %4415 = vst [vmem:[#allocation5 + $0x18] sm:$0xff] %v4407_v40  ;;  %v6087_v3 = vcombine.high %v6079_v62, %v6079_v62  ;;  %v13176_v25 = vrot.slane %v6079_v62, %v13162_v50  ;;  %v5248_v15 = vcombine.high %v4405_v24, %v4405_v24  ;;  %v5255_v56 = vrot.slane %v4405_v24, %v13162_v50 }
 0x48f   : > { %v4440_v14 = vcombine.high %v4438_v38, %v4438_v38  ;;  %v13180_v47 = vrot.slane %v4438_v38, %v13162_v50  ;;  %v13183_v34 = vrot.slane %v4439_v51, %v13162_v50  ;;  %v13185_v10 = vcombine.high %v4447_v16, %v4447_v16  ;;  %4538 = vst.msk [vmem:[#allocation4] sm:$0x1] %vm481_vm2, %v4447_v16 }
 0x490   : > { %v6088_v41 = vcombine.high %v6086_v18, %v6086_v18  ;;  %v13189_v1 = vrot.slane %v6086_v18, %v13162_v50  ;;  %v13192_v27 = vrot.slane %v6087_v3, %v13162_v50  ;;  %v13196_v46 = vcombine.high %v13176_v25, %v13176_v25  ;;  %6186 = vst.msk [vmem:[#allocation4 + $0x20] sm:$0x1] %vm481_vm2, %v13176_v25 }
 0x491   : > { %v13201_v57 = vrot.slane %v4440_v14, %v13162_v50  ;;  %v13205_v9 = vcombine.high %v13180_v47, %v13180_v47  ;;  %v13209_v42 = vcombine.high %v13183_v34, %v13183_v34  ;;  %4539 = vst.msk [vmem:[#allocation4 + $0x4] sm:$0x1] %vm481_vm2, %v13183_v34  ;;  %4540 = vst.msk [vmem:[#allocation4 + $0x8] sm:$0x1] %vm481_vm2, %v13185_v10 }
 0x492   : > { %4542 = vst.msk [vmem:[#allocation4 + $0x40] sm:$0x1] %vm481_vm2, %v13180_v47  ;;  %v5262_v61 = vrot.slane %v5248_v15, %v13162_v50  ;;  %v13219_v45 = vrot.slane %v6088_v41, %v13162_v50  ;;  %v13223_v19 = vcombine.high %v13189_v1, %v13189_v1  ;;  %v13227_v33 = vcombine.high %v13192_v27, %v13192_v27 }
 0x493   : > { %6187 = vst.msk [vmem:[#allocation4 + $0x24] sm:$0x1] %vm481_vm2, %v13192_v27  ;;  %6188 = vst.msk [vmem:[#allocation4 + $0x28] sm:$0x1] %vm481_vm2, %v13196_v46  ;;  %v5263_v35 = vcombine.high %v5255_v56, %v5255_v56  ;;  %v13237_v8 = vcombine.high %v13201_v57, %v13201_v57  ;;  %v5271_v13 = vrot.slane %v5255_v56, %v13162_v50 }
 0x494   : > { %6190 = vst.msk [vmem:[#allocation4 + $0x60] sm:$0x1] %vm481_vm2, %v13189_v1  ;;  %4541 = vst.msk [vmem:[#allocation4 + $0xc] sm:$0x1] %vm481_vm2, %v13209_v42  ;;  %v5264_v44 = vcombine.high %v5262_v61, %v5262_v61  ;;  %v13247_v0 = vrot.slane %v5262_v61, %v13162_v50  ;;  %v13251_v7 = vcombine.high %v13219_v45, %v13219_v45 }
 0x495   : > { %4543 = vst.msk [vmem:[#allocation4 + $0x44] sm:$0x1] %vm481_vm2, %v13201_v57  ;;  %4544 = vst.msk [vmem:[#allocation4 + $0x48] sm:$0x1] %vm481_vm2, %v13205_v9  ;;  %v5285_v36 = vrot.slane %v5263_v35, %v13162_v50  ;;  %v6896_v55 = vcombine.high %v4407_v40, %v4407_v40  ;;  %v6903_v12 = vrot.slane %v4407_v40, %v13162_v50 }
 0x496   : > { %6189 = vst.msk [vmem:[#allocation4 + $0x2c] sm:$0x1] %vm481_vm2, %v13227_v33  ;;  %6191 = vst.msk [vmem:[#allocation4 + $0x64] sm:$0x1] %vm481_vm2, %v13219_v45  ;;  %v13264_v30 = vrot.slane %v5264_v44, %v13162_v50  ;;  %v13266_v20 = vcombine.high %v5271_v13, %v5271_v13  ;;  %v13270_v49 = vcombine.high %v13247_v0, %v13247_v0 }
 0x497   : > { %6192 = vst.msk [vmem:[#allocation4 + $0x68] sm:$0x1] %vm481_vm2, %v13223_v19  ;;  %4545 = vst.msk [vmem:[#allocation4 + $0x4c] sm:$0x1] %vm481_vm2, %v13237_v8  ;;  %v4659_v52 = vrot.slane %v4447_v16, %v13144_v17  ;;  %v13278_v43 = vcombine.high %v5285_v36, %v5285_v36  ;;  %v6910_v59 = vrot.slane %v6896_v55, %v13162_v50 }
 0x498   : > { %5362 = vst.msk [vmem:[#allocation4 + $0x10] sm:$0x1] %vm481_vm2, %v5271_v13  ;;  %5366 = vst.msk [vmem:[#allocation4 + $0x50] sm:$0x1] %vm481_vm2, %v13247_v0  ;;  %v6911_v6 = vcombine.high %v6903_v12, %v6903_v12  ;;  %v6919_v39 = vrot.slane %v6903_v12, %v13162_v50  ;;  %v13285_v26 = vcombine.high %v13264_v30, %v13264_v30 }
 0x499   : > { %6193 = vst.msk [vmem:[#allocation4 + $0x6c] sm:$0x1] %vm481_vm2, %v13251_v7  ;;  %5363 = vst.msk [vmem:[#allocation4 + $0x14] sm:$0x1] %vm481_vm2, %v5285_v36  ;;  %4720 = vrot.lane.b32.xlu0 %v4659_v52, %s10925_s17  ;;  %v6912_v5 = vcombine.high %v6910_v59, %v6910_v59  ;;  %v6926_v54 = vrot.slane %v6910_v59, %v13162_v50  ;;  %v4663_v31 = vrot.slane %v13183_v34, %v13144_v17 }
 0x49a   : > { %5364 = vst.msk [vmem:[#allocation4 + $0x18] sm:$0x1] %vm481_vm2, %v13266_v20  ;;  %5367 = vst.msk [vmem:[#allocation4 + $0x54] sm:$0x1] %vm481_vm2, %v13264_v30  ;;  %v6933_v63 = vrot.slane %v6911_v6, %v13162_v50  ;;  %v13298_v32 = vcombine.high %v6919_v39, %v6919_v39  ;;  %v7361_v29 = vrot.slane %v6919_v39, %v13144_v17 }
 0x49b   : > { %5368 = vst.msk [vmem:[#allocation4 + $0x58] sm:$0x1] %vm481_vm2, %v13270_v49  ;;  %5365 = vst.msk [vmem:[#allocation4 + $0x1c] sm:$0x1] %vm481_vm2, %v13278_v43  ;;  %v13305_v11 = vrot.slane %v6912_v5, %v13162_v50  ;;  %v13307_v28 = vcombine.high %v6926_v54, %v6926_v54  ;;  %v6307_v62 = vrot.slane %v13176_v25, %v13144_v17 }
 0x49c   : > { %7010 = vst.msk [vmem:[#allocation4 + $0x30] sm:$0x1] %vm481_vm2, %v6919_v39  ;;  %5369 = vst.msk [vmem:[#allocation4 + $0x5c] sm:$0x1] %vm481_vm2, %v13285_v26  ;;  %v13309_v2 = vcombine.high %v6933_v63, %v6933_v63  ;;  %7422 = vrot.lane.b32.xlu1 %v7361_v29, %s10923_s15  ;;  %v6311_v24 = vrot.slane %v13192_v27, %v13144_v17  ;;  %v5483_v40 = vrot.slane %v5271_v13, %v13144_v17  ;;  %v9415_v39 = vld [vmem:[%s15564_s9 + $0x118] sm:$0xff] }
 0x49d   : > { %7011 = vst.msk [vmem:[#allocation4 + $0x34] sm:$0x1] %vm481_vm2, %v6933_v63  ;;  %7012 = vst.msk [vmem:[#allocation4 + $0x38] sm:$0x1] %vm481_vm2, %v13298_v32  ;;  %4950 = vrot.lane.b32.xlu0 %v4659_v52, %s10923_s15  ;;  %v13319_v22 = vcombine.high %v13305_v11, %v13305_v11  ;;  %v5487_v38 = vrot.slane %v5285_v36, %v13144_v17  ;;  %v4667_v51 = vrot.slane %v13185_v10, %v13144_v17 }
 0x49e   : > { %7014 = vst.msk [vmem:[#allocation4 + $0x70] sm:$0x1] %vm481_vm2, %v6926_v54  ;;  %7013 = vst.msk [vmem:[#allocation4 + $0x3c] sm:$0x1] %vm481_vm2, %v13309_v2  ;;  %v4675_v16 = vrot.slane %v13180_v47, %v13144_v17  ;;  %v7135_v18 = vrot.slane %v6933_v63, %v13144_v17  ;;  %v13365_v3 = vrot.slane %v6926_v54, %v13144_v17 }
 0x49f   : > { %7015 = vst.msk [vmem:[#allocation4 + $0x74] sm:$0x1] %vm481_vm2, %v13305_v11  ;;  %7016 = vst.msk [vmem:[#allocation4 + $0x78] sm:$0x1] %vm481_vm2, %v13307_v28  ;;  %v4671_v25 = vrot.slane %v13209_v42, %v13144_v17  ;;  %v4679_v15 = vrot.slane %v13201_v57, %v13144_v17  ;;  %v6315_v56 = vrot.slane %v13196_v46, %v13144_v17 }
 0x4a0   : > { %7017 = vst.msk [vmem:[#allocation4 + $0x7c] sm:$0x1] %vm481_vm2, %v13319_v22  ;;  %7652 = vrot.lane.b32.xlu1 %v7361_v29, %s10924_s16  ;;  %v6323_v14 = vrot.slane %v13189_v1, %v13144_v17  ;;  %v6319_v47 = vrot.slane %v13227_v33, %v13144_v17  ;;  %v6327_v34 = vrot.slane %v13219_v45, %v13144_v17 }
 0x4a1   : > { %5180 = vrot.lane.b32.xlu0 %v4659_v52, %s10924_s16  ;;  %v5491_v10 = vrot.slane %v13266_v20, %v13144_v17  ;;  %v5499_v41 = vrot.slane %v13247_v0, %v13144_v17  ;;  %v5495_v1 = vrot.slane %v13278_v43, %v13144_v17  ;;  %v5503_v27 = vrot.slane %v13264_v30, %v13144_v17  ;;  %v9412_v20 = vld [vmem:[%s15564_s9 + $0x100] sm:$0xff]  ;;  %v9413_v52 = vld [vmem:[%s15564_s9 + $0x108] sm:$0xff] }
 0x4a2   : > { %v7139_v46 = vrot.slane %v13298_v32, %v13144_v17  ;;  %v7143_v0 = vrot.slane %v13309_v2, %v13144_v17  ;;  %v4683_v30 = vrot.slane %v13205_v9, %v13144_v17  ;;  %v10857_v6 = vpack.c.bf16 %v9413_v52, %v9412_v20  ;;  %v9414_v9 = vld [vmem:[%s15564_s9 + $0x110] sm:$0xff] }
 0x4a3   : > { %v10861_v5 = vpack.c.bf16 %v9415_v39, %v9414_v9 }
 0x4a4   : > { %4722 = vrot.lane.b32.xlu1 %v4663_v31, %s10925_s17  ;;  %10858 = vmatprep.subr.bf16.mxu0 %v10857_v6 }
 0x4a5   : > { %6368 = vrot.lane.b32.xlu0 %v6307_v62, %s10925_s17  ;;  %10860 = vmatpush3.bf16.msra.mxu0 %v10857_v6 }
 0x4a6   : > { %10862 = vmatprep.subr.bf16.mxu0 %v10861_v5 }
 0x4a8   : > { %4952 = vrot.lane.b32.xlu1 %v4663_v31, %s10923_s15 }
 0x4a9   : > { %6598 = vrot.lane.b32.xlu0 %v6307_v62, %s10923_s15  ;;  %10864 = vmatpush3.bf16.msra.mxu0 %v10861_v5 }
 0x4ac   : > { %5182 = vrot.lane.b32.xlu1 %v4663_v31, %s10924_s16 }
 0x4ad   : > { %6828 = vrot.lane.b32.xlu0 %v6307_v62, %s10924_s16 }
 0x4b0   : > { %6370 = vrot.lane.b32.xlu1 %v6311_v24, %s10925_s17 }
 0x4b1   : > { %5544 = vrot.lane.b32.xlu0 %v5483_v40, %s10925_s17 }
 0x4b4   : > { %6600 = vrot.lane.b32.xlu1 %v6311_v24, %s10923_s15 }
 0x4b5   : > { %5774 = vrot.lane.b32.xlu0 %v5483_v40, %s10923_s15 }
 0x4b8   : > { %6830 = vrot.lane.b32.xlu1 %v6311_v24, %s10924_s16 }
 0x4b9   : > { %6004 = vrot.lane.b32.xlu0 %v5483_v40, %s10924_s16  ;;  %v6331_v40 = vrot.slane %v13223_v19, %v13144_v17 }
 0x4bc   : > { %5546 = vrot.lane.b32.xlu1 %v5487_v38, %s10925_s17 }
 0x4bd   : > { %7192 = vrot.lane.b32.xlu0 %v7361_v29, %s10925_s17  ;;  %v13469_v29 = vrot.slane %v13305_v11, %v13144_v17  ;;  %v7385_v11 = vrot.slane %v13307_v28, %v13144_v17 }
 0x4c0   : > { %5776 = vrot.lane.b32.xlu1 %v5487_v38, %s10923_s15 }
 0x4c1   : > { %4724 = vrot.lane.b32.xlu0 %v4667_v51, %s10925_s17 }
 0x4c4   : > { %6006 = vrot.lane.b32.xlu1 %v5487_v38, %s10924_s16 }
 0x4c5   : > { %4728 = vrot.lane.b32.xlu0 %v4675_v16, %s10925_s17 }
 0x4c8   : > { %7194 = vrot.lane.b32.xlu1 %v7135_v18, %s10925_s17 }
 0x4c9   : > { %4954 = vrot.lane.b32.xlu0 %v4667_v51, %s10923_s15 }
 0x4cc   : > { %7430 = vrot.lane.b32.xlu1 %v13365_v3, %s10923_s15 }
 0x4cd   : > { %4958 = vrot.lane.b32.xlu0 %v4675_v16, %s10923_s15 }
 0x4d0   : > { %7660 = vrot.lane.b32.xlu1 %v13365_v3, %s10924_s16 }
 0x4d1   : > { %5184 = vrot.lane.b32.xlu0 %v4667_v51, %s10924_s16 }
 0x4d4   : > { %4726 = vrot.lane.b32.xlu1 %v4671_v25, %s10925_s17 }
 0x4d5   : > { %5188 = vrot.lane.b32.xlu0 %v4675_v16, %s10924_s16 }
 0x4d8   : > { %4730 = vrot.lane.b32.xlu1 %v4679_v15, %s10925_s17 }
 0x4d9   : > { %6372 = vrot.lane.b32.xlu0 %v6315_v56, %s10925_s17 }
 0x4dc   : > { %4956 = vrot.lane.b32.xlu1 %v4671_v25, %s10923_s15 }
 0x4dd   : > { %6376 = vrot.lane.b32.xlu0 %v6323_v14, %s10925_s17 }
 0x4e0   : > { %4960 = vrot.lane.b32.xlu1 %v4679_v15, %s10923_s15 }
 0x4e1   : > { %6602 = vrot.lane.b32.xlu0 %v6315_v56, %s10923_s15 }
 0x4e4   : > { %5186 = vrot.lane.b32.xlu1 %v4671_v25, %s10924_s16  ;;  %v4687_v25 = vrot.slane %v13237_v8, %v13144_v17 }
 0x4e5   : > { %6606 = vrot.lane.b32.xlu0 %v6323_v14, %s10923_s15 }
 0x4e8   : > { %5190 = vrot.lane.b32.xlu1 %v4679_v15, %s10924_s16 }
 0x4e9   : > { %6832 = vrot.lane.b32.xlu0 %v6315_v56, %s10924_s16 }
 0x4ec   : > { %6374 = vrot.lane.b32.xlu1 %v6319_v47, %s10925_s17 }
 0x4ed   : > { %6836 = vrot.lane.b32.xlu0 %v6323_v14, %s10924_s16 }
 0x4f0   : > { %6378 = vrot.lane.b32.xlu1 %v6327_v34, %s10925_s17 }
 0x4f1   : > { %5548 = vrot.lane.b32.xlu0 %v5491_v10, %s10925_s17 }
 0x4f4   : > { %6604 = vrot.lane.b32.xlu1 %v6319_v47, %s10923_s15 }
 0x4f5   : > { %5552 = vrot.lane.b32.xlu0 %v5499_v41, %s10925_s17 }
 0x4f8   : > { %6608 = vrot.lane.b32.xlu1 %v6327_v34, %s10923_s15 }
 0x4f9   : > { %5778 = vrot.lane.b32.xlu0 %v5491_v10, %s10923_s15 }
 0x4fc   : > { %6834 = vrot.lane.b32.xlu1 %v6319_v47, %s10924_s16 }
 0x4fd   : > { %5782 = vrot.lane.b32.xlu0 %v5499_v41, %s10923_s15 }
 0x500   : > { %6838 = vrot.lane.b32.xlu1 %v6327_v34, %s10924_s16  ;;  %v5507_v34 = vrot.slane %v13270_v49, %v13144_v17 }
 0x501   : > { %6008 = vrot.lane.b32.xlu0 %v5491_v10, %s10924_s16 }
 0x504   : > { %5550 = vrot.lane.b32.xlu1 %v5495_v1, %s10925_s17 }
 0x505   : > { %6012 = vrot.lane.b32.xlu0 %v5499_v41, %s10924_s16 }
 0x508   : > { %5554 = vrot.lane.b32.xlu1 %v5503_v27, %s10925_s17 }
 0x509   : > { %7196 = vrot.lane.b32.xlu0 %v7139_v46, %s10925_s17 }
 0x50b   : > { %v4721_v57 = vpop.permute.xlu0 %4720 }
 0x50c   : > { %4768 = vst.msk [vmem:[#allocation4 + $0x1] sm:$0x1] %vm481_vm2, %v4721_v57  ;;  %5780 = vrot.lane.b32.xlu1 %v5495_v1, %s10923_s15  ;;  %v6335_v57 = vrot.slane %v13251_v7, %v13144_v17 }
 0x50d   : > { %7424 = vrot.lane.b32.xlu0 %v7135_v18, %s10923_s15 }
 0x50e   : > { %v7423_v42 = vpop.permute.xlu1 %7422 }
 0x50f   : > { %v4951_v61 = vpop.permute.xlu0 %4950  ;;  %7470 = vst.msk [vmem:[#allocation4 + $0x32] sm:$0x1] %vm481_vm2, %v7423_v42 }
 0x510   : > { %4998 = vst.msk [vmem:[#allocation4 + $0x2] sm:$0x1] %vm481_vm2, %v4951_v61  ;;  %5784 = vrot.lane.b32.xlu1 %v5503_v27, %s10923_s15 }
 0x511   : > { %7654 = vrot.lane.b32.xlu0 %v7135_v18, %s10924_s16 }
 0x512   : > { %v7653_v45 = vpop.permute.xlu1 %7652 }
 0x513   : > { %v5181_v33 = vpop.permute.xlu0 %5180  ;;  %7700 = vst.msk [vmem:[#allocation4 + $0x33] sm:$0x1] %vm481_vm2, %v7653_v45 }
 0x514   : > { %5228 = vst.msk [vmem:[#allocation4 + $0x3] sm:$0x1] %vm481_vm2, %v5181_v33  ;;  %6010 = vrot.lane.b32.xlu1 %v5495_v1, %s10924_s16 }
 0x515   : > { %7426 = vrot.lane.b32.xlu0 %v7139_v46, %s10923_s15 }
 0x516   : > { %v4723_v35 = vpop.permute.xlu1 %4722 }
 0x517   : > { %v6369_v44 = vpop.permute.xlu0 %6368  ;;  %4769 = vst.msk [vmem:[#allocation4 + $0x5] sm:$0x1] %vm481_vm2, %v4723_v35 }
 0x518   : > { %6416 = vst.msk [vmem:[#allocation4 + $0x21] sm:$0x1] %vm481_vm2, %v6369_v44  ;;  %6014 = vrot.lane.b32.xlu1 %v5503_v27, %s10924_s16  ;;  %v13535_v44 = vrot.slane %v13285_v26, %v13144_v17 }
 0x519   : > { %7656 = vrot.lane.b32.xlu0 %v7139_v46, %s10924_s16 }
 0x51a   : > { %v4953_v13 = vpop.permute.xlu1 %4952 }
 0x51b   : > { %v6599_v36 = vpop.permute.xlu0 %6598  ;;  %4999 = vst.msk [vmem:[#allocation4 + $0x6] sm:$0x1] %vm481_vm2, %v4953_v13  ;;  %v7716_v54 = vld [vmem:[#allocation4] sm:$0xf] }
 0x51c   : > { %6646 = vst.msk [vmem:[#allocation4 + $0x22] sm:$0x1] %vm481_vm2, %v6599_v36  ;;  %7198 = vrot.lane.b32.xlu1 %v7143_v0, %s10925_s17 }
 0x51d   : > { %7200 = vrot.lane.b32.xlu0 %v13365_v3, %s10925_s17 }
 0x51e   : > { %v5183_v55 = vpop.permute.xlu1 %5182 }
 0x51f   : > { %v6829_v12 = vpop.permute.xlu0 %6828  ;;  %5229 = vst.msk [vmem:[#allocation4 + $0x7] sm:$0x1] %vm481_vm2, %v5183_v55  ;;  %v13541_v55 = vrot.slane %v13319_v22, %v13144_v17 }
 0x520   : > { %6876 = vst.msk [vmem:[#allocation4 + $0x23] sm:$0x1] %vm481_vm2, %v6829_v12  ;;  %7428 = vrot.lane.b32.xlu1 %v7143_v0, %s10923_s15 }
 0x521   : > { %4732 = vrot.lane.b32.xlu0 %v4683_v30, %s10925_s17 }
 0x522   : > { %v6371_v43 = vpop.permute.xlu1 %6370 }
 0x523   : > { %v5545_v59 = vpop.permute.xlu0 %5544  ;;  %6417 = vst.msk [vmem:[#allocation4 + $0x25] sm:$0x1] %vm481_vm2, %v6371_v43 }
 0x524   : > { %5592 = vst.msk [vmem:[#allocation4 + $0x11] sm:$0x1] %vm481_vm2, %v5545_v59  ;;  %7658 = vrot.lane.b32.xlu1 %v7143_v0, %s10924_s16 }
 0x525   : > { %4962 = vrot.lane.b32.xlu0 %v4683_v30, %s10923_s15 }
 0x526   : > { %v7717_v63 = vld [vmem:[#allocation4 + $0x4] sm:$0xf]  ;;  %v6601_v32 = vpop.permute.xlu1 %6600 }
 0x527   : > { %v5775_v2 = vpop.permute.xlu0 %5774  ;;  %v7844_v31 = vcombine.low %v7716_v54, %v7717_v63  ;;  %6647 = vst.msk [vmem:[#allocation4 + $0x26] sm:$0x1] %vm481_vm2, %v6601_v32  ;;  %v7724_v16 = vld [vmem:[#allocation4 + $0x20] sm:$0xf] }
 0x528   : > { %5822 = vst.msk [vmem:[#allocation4 + $0x12] sm:$0x1] %vm481_vm2, %v5775_v2  ;;  %7202 = vrot.lane.b32.xlu1 %v13469_v29, %s10925_s17 }
 0x529   : > { %5192 = vrot.lane.b32.xlu0 %v4683_v30, %s10924_s16  ;;  %7908 = vst.msk [vmem:[#allocation2 + $0x19] sm:$0xff] %vm472_vm0, %v7844_v31 }
 0x52a   : > { %v6831_v62 = vpop.permute.xlu1 %6830 }
 0x52b   : > { %v6005_v24 = vpop.permute.xlu0 %6004  ;;  %6877 = vst.msk [vmem:[#allocation4 + $0x27] sm:$0x1] %vm481_vm2, %v6831_v62 }
 0x52c   : > { %6052 = vst.msk [vmem:[#allocation4 + $0x13] sm:$0x1] %vm481_vm2, %v6005_v24  ;;  %7434 = vrot.lane.b32.xlu1 %v7385_v11, %s10923_s15 }
 0x52d   : > { %6380 = vrot.lane.b32.xlu0 %v6331_v40, %s10925_s17 }
 0x52e   : > { %v5547_v38 = vpop.permute.xlu1 %5546 }
 0x52f   : > { %v7193_v51 = vpop.permute.xlu0 %7192  ;;  %5593 = vst.msk [vmem:[#allocation4 + $0x15] sm:$0x1] %vm481_vm2, %v5547_v38 }
 0x530   : > { %7240 = vst.msk [vmem:[#allocation4 + $0x31] sm:$0x1] %vm481_vm2, %v7193_v51  ;;  %7664 = vrot.lane.b32.xlu1 %v7385_v11, %s10924_s16  ;;  %v13489_v19 = vld [vmem:[#allocation2 + $0x19] sm:$0xff] }
 0x531   : > { %6610 = vrot.lane.b32.xlu0 %v6331_v40, %s10923_s15  ;;  %v13491_v28 = vld [vmem:[#allocation2 + $0x18] sm:$0xff]  ;;  %8612 = vst.msk [vmem:[#allocation3 + $0x8] sm:$0xff] %vm472_vm0, %v13489_v19 }
 0x532   : > { %7974 = vst.msk [vmem:[#allocation3 + $0x30] sm:$0xff] %vm472_vm0, %v13491_v28  ;;  %v7725_v18 = vld [vmem:[#allocation4 + $0x24] sm:$0xf]  ;;  %v5777_v3 = vpop.permute.xlu1 %5776 }
 0x533   : > { %v4725_v15 = vpop.permute.xlu0 %4724  ;;  %v7848_v56 = vcombine.low %v7724_v16, %v7725_v18  ;;  %5823 = vst.msk [vmem:[#allocation4 + $0x16] sm:$0x1] %vm481_vm2, %v5777_v3  ;;  %v7720_v1 = vld [vmem:[#allocation4 + $0x10] sm:$0xf] }
 0x534   : > { %4770 = vst.msk [vmem:[#allocation4 + $0x9] sm:$0x1] %vm481_vm2, %v4725_v15  ;;  %4734 = vrot.lane.b32.xlu1 %v4687_v25, %s10925_s17 }
 0x535   : > { %6840 = vrot.lane.b32.xlu0 %v6331_v40, %s10924_s16  ;;  %7912 = vst.msk [vmem:[#allocation2 + $0x49] sm:$0xff] %vm472_vm0, %v7848_v56 }
 0x536   : > { %v6007_v14 = vpop.permute.xlu1 %6006 }
 0x537   : > { %v4729_v47 = vpop.permute.xlu0 %4728  ;;  %6053 = vst.msk [vmem:[#allocation4 + $0x17] sm:$0x1] %vm481_vm2, %v6007_v14 }
 0x538   : > { %4772 = vst.msk [vmem:[#allocation4 + $0x41] sm:$0x1] %vm481_vm2, %v4729_v47  ;;  %4964 = vrot.lane.b32.xlu1 %v4687_v25, %s10923_s15 }
 0x539   : > { %5556 = vrot.lane.b32.xlu0 %v5507_v34, %s10925_s17 }
 0x53a   : > { %v7195_v8 = vpop.permute.xlu1 %7194 }
 0x53b   : > { %v4955_v10 = vpop.permute.xlu0 %4954  ;;  %7241 = vst.msk [vmem:[#allocation4 + $0x35] sm:$0x1] %vm481_vm2, %v7195_v8 }
 0x53c   : > { %5000 = vst.msk [vmem:[#allocation4 + $0xa] sm:$0x1] %vm481_vm2, %v4955_v10  ;;  %5194 = vrot.lane.b32.xlu1 %v4687_v25, %s10924_s16  ;;  %v13514_v41 = vld [vmem:[#allocation2 + $0x48] sm:$0xff] }
 0x53d   : > { %5786 = vrot.lane.b32.xlu0 %v5507_v34, %s10923_s15  ;;  %v13516_v49 = vld [vmem:[#allocation2 + $0x49] sm:$0xff]  ;;  %7978 = vst.msk [vmem:[#allocation3 + $0x90] sm:$0xff] %vm472_vm0, %v13514_v41 }
 0x53e   : > { %8616 = vst.msk [vmem:[#allocation3 + $0x68] sm:$0xff] %vm472_vm0, %v13516_v49  ;;  %v7721_v27 = vld [vmem:[#allocation4 + $0x14] sm:$0xf]  ;;  %v7431_v46 = vpop.permute.xlu1 %7430 }
 0x53f   : > { %v4959_v42 = vpop.permute.xlu0 %4958  ;;  %v7846_v61 = vcombine.low %v7720_v1, %v7721_v27  ;;  %7474 = vst.msk [vmem:[#allocation4 + $0x72] sm:$0x1] %vm481_vm2, %v7431_v46 }
 0x540   : > { %5002 = vst.msk [vmem:[#allocation4 + $0x42] sm:$0x1] %vm481_vm2, %v4959_v42  ;;  %6382 = vrot.lane.b32.xlu1 %v6335_v57, %s10925_s17 }
 0x541   : > { %6016 = vrot.lane.b32.xlu0 %v5507_v34, %s10924_s16  ;;  %7910 = vst.msk [vmem:[#allocation2 + $0x31] sm:$0xff] %vm472_vm0, %v7846_v61 }
 0x542   : > { %v7661_v45 = vpop.permute.xlu1 %7660 }
 0x543   : > { %v5185_v33 = vpop.permute.xlu0 %5184  ;;  %7704 = vst.msk [vmem:[#allocation4 + $0x73] sm:$0x1] %vm481_vm2, %v7661_v45 }
 0x544   : > { %5230 = vst.msk [vmem:[#allocation4 + $0xb] sm:$0x1] %vm481_vm2, %v5185_v33  ;;  %6612 = vrot.lane.b32.xlu1 %v6335_v57, %s10923_s15 }
 0x545   : > { %7204 = vrot.lane.b32.xlu0 %v7385_v11, %s10925_s17 }
 0x546   : > { %v4727_v7 = vpop.permute.xlu1 %4726  ;;  %v4305_v35 = vpop.f32.mrb[70].mxu0 }
 0x547   : > { %4771 = vst.msk [vmem:[#allocation4 + $0xd] sm:$0x1] %vm481_vm2, %v4727_v7  ;;  %v4306_v13 = vadd.f32 %v4305_v35, %v13150_v48  ;;  %v4382_v0 = vpop.f32.mrb[38].mxu1  ;;  %v4307_v36 = vpop.f32.mrb[71].mxu0 }
 0x548   : > { %v4383_v12 = vadd.f32 %v4382_v0, %v13152_v21  ;;  %v4308_v30 = vadd.f32 %v4307_v36, %v13154_v37  ;;  %v4384_v20 = vpop.f32.mrb[39].mxu1  ;;  %6842 = vrot.lane.b32.xlu1 %v6335_v57, %s10924_s16  ;;  %v5189_v52 = vpop.permute.xlu0 %5188  ;;  %v13548_v26 = vld [vmem:[#allocation2 + $0x30] sm:$0xff] }
 0x549   : > { %7432 = vrot.lane.b32.xlu0 %v13469_v29, %s10923_s15  ;;  %v8582_v48 = vld [vmem:[#allocation2 + $0x31] sm:$0xff]  ;;  %vm4391_vm9 = vcmp.ge.f32.partialorder %v4306_v13, 0.0  ;;  %v4400_v43 = vmul.f32 %v13158_v53, %v4306_v13  ;;  %v4385_v22 = vadd.f32 %v4384_v20, %v13156_v23  ;;  %5232 = vst.msk [vmem:[#allocation4 + $0x43] sm:$0x1] %vm481_vm2, %v5189_v52 }
 0x54a   : > { %7976 = vst.msk [vmem:[#allocation3 + $0x60] sm:$0xff] %vm472_vm0, %v13548_v26  ;;  %8614 = vst.msk [vmem:[#allocation3 + $0x38] sm:$0xff] %vm472_vm0, %v8582_v48  ;;  %vm4393_vm11 = vcmp.ge.f32.partialorder %v4383_v12, 0.0  ;;  %v4402_v21 = vmul.f32 %v13158_v53, %v4383_v12  ;;  %vm4392_vm12 = vcmp.ge.f32.partialorder %v4308_v30, 0.0  ;;  %v4401_v37 = vmul.f32 %v13158_v53, %v4308_v30  ;;  %v4731_v59 = vpop.permute.xlu1 %4730 }
 0x54b   : > { %v4408_v6 = vsel %vm4391_vm9, %v4306_v13, %v4400_v43  ;;  %vm4394_vm13 = vcmp.ge.f32.partialorder %v4385_v22, 0.0  ;;  %v4403_v9 = vmul.f32 %v13158_v53, %v4385_v22  ;;  %4773 = vst.msk [vmem:[#allocation4 + $0x45] sm:$0x1] %vm481_vm2, %v4731_v59 }
 0x54c   : > { %4416 = vst [vmem:[#allocation5 + $0x20] sm:$0xff] %v4408_v6  ;;  %v4473_v23 = vcombine.high %v4408_v6, %v4408_v6  ;;  %v4480_v39 = vrot.slane %v4408_v6, %v13162_v50  ;;  %v4410_v5 = vsel %vm4393_vm11, %v4383_v12, %v4402_v21  ;;  %v4409_v54 = vsel %vm4392_vm12, %v4308_v30, %v4401_v37  ;;  %v6373_v63 = vpop.permute.xlu0 %6372 }
 0x54d   : > { %5558 = vrot.lane.b32.xlu1 %v13535_v44, %s10925_s17  ;;  %4418 = vst [vmem:[#allocation5 + $0x30] sm:$0xff] %v4410_v5  ;;  %v6121_v32 = vcombine.high %v4410_v5, %v4410_v5  ;;  %v6128_v2 = vrot.slane %v4410_v5, %v13162_v50  ;;  %4417 = vst [vmem:[#allocation5 + $0x28] sm:$0xff] %v4409_v54  ;;  %v5297_v31 = vcombine.high %v4409_v54, %v4409_v54 }
 0x54e   : > { %v5304_v53 = vrot.slane %v4409_v54, %v13162_v50  ;;  %6418 = vst.msk [vmem:[#allocation4 + $0x29] sm:$0x1] %vm481_vm2, %v6373_v63  ;;  %7662 = vrot.lane.b32.xlu0 %v13469_v29, %s10924_s16  ;;  %v4487_v62 = vrot.slane %v4473_v23, %v13162_v50  ;;  %v4488_v11 = vcombine.high %v4480_v39, %v4480_v39  ;;  %v4957_v38 = vpop.permute.xlu1 %4956 }
 0x54f   : > { %v13570_v24 = vrot.slane %v4480_v39, %v13162_v50  ;;  %v13573_v40 = vsel %vm4394_vm13, %v4385_v22, %v4403_v9  ;;  %v6135_v51 = vrot.slane %v6121_v32, %v13162_v50  ;;  %v6136_v16 = vcombine.high %v6128_v2, %v6128_v2  ;;  %5001 = vst.msk [vmem:[#allocation4 + $0xe] sm:$0x1] %vm481_vm2, %v4957_v38 }
 0x550   : > { %v13577_v18 = vrot.slane %v6128_v2, %v13162_v50  ;;  %v5311_v3 = vrot.slane %v5297_v31, %v13162_v50  ;;  %4419 = vst [vmem:[#allocation5 + $0x38] sm:$0xff] %v13573_v40  ;;  %v4489_v29 = vcombine.high %v4487_v62, %v4487_v62  ;;  %v13583_v25 = vrot.slane %v4487_v62, %v13162_v50  ;;  %v6377_v14 = vpop.permute.xlu0 %6376 }
 0x551   : > { %v13586_v15 = vrot.slane %v4488_v11, %v13162_v50  ;;  %v13590_v56 = vcombine.high %v13570_v24, %v13570_v24  ;;  %4546 = vst.msk [vmem:[#allocation4 + $0x80] sm:$0x1] %vm481_vm2, %v13570_v24  ;;  %5788 = vrot.lane.b32.xlu1 %v13535_v44, %s10923_s15  ;;  %v6137_v47 = vcombine.high %v6135_v51, %v6135_v51  ;;  %6420 = vst.msk [vmem:[#allocation4 + $0x61] sm:$0x1] %vm481_vm2, %v6377_v14 }
 0x552   : > { %v13597_v34 = vrot.slane %v6135_v51, %v13162_v50  ;;  %v13600_v8 = vrot.slane %v6136_v16, %v13162_v50  ;;  %v13604_v10 = vcombine.high %v13577_v18, %v13577_v18  ;;  %6194 = vst.msk [vmem:[#allocation4 + $0xa0] sm:$0x1] %vm481_vm2, %v13577_v18  ;;  %7436 = vrot.lane.b32.xlu0 %v13541_v55, %s10923_s15  ;;  %4550 = vst.msk [vmem:[#allocation4 + $0xc0] sm:$0x1] %vm481_vm2, %v13583_v25  ;;  %v4961_v42 = vpop.permute.xlu1 %4960 }
 0x553   : > { %v13612_v1 = vrot.slane %v4489_v29, %v13162_v50  ;;  %v13616_v27 = vcombine.high %v13583_v25, %v13583_v25  ;;  %v13620_v46 = vcombine.high %v13586_v15, %v13586_v15  ;;  %4547 = vst.msk [vmem:[#allocation4 + $0x84] sm:$0x1] %vm481_vm2, %v13586_v15  ;;  %4548 = vst.msk [vmem:[#allocation4 + $0x88] sm:$0x1] %vm481_vm2, %v13590_v56  ;;  %v7732_v29 = vld [vmem:[#allocation4 + $0x40] sm:$0xf] }
 0x554   : > { %v5312_v57 = vcombine.high %v5304_v53, %v5304_v53  ;;  %v13629_v61 = vrot.slane %v6137_v47, %v13162_v50  ;;  %v13633_v45 = vcombine.high %v13597_v34, %v13597_v34  ;;  %v13637_v33 = vcombine.high %v13600_v8, %v13600_v8  ;;  %6195 = vst.msk [vmem:[#allocation4 + $0xa4] sm:$0x1] %vm481_vm2, %v13600_v8  ;;  %v6603_v12 = vpop.permute.xlu0 %6602 }
 0x555   : > { %6196 = vst.msk [vmem:[#allocation4 + $0xa8] sm:$0x1] %vm481_vm2, %v13604_v10  ;;  %6198 = vst.msk [vmem:[#allocation4 + $0xe0] sm:$0x1] %vm481_vm2, %v13597_v34  ;;  %v5313_v7 = vcombine.high %v5311_v3, %v5311_v3  ;;  %v13648_v35 = vcombine.high %v13612_v1, %v13612_v1  ;;  %v13657_v13 = vrot.slane %v5304_v53, %v13162_v50  ;;  %6018 = vrot.lane.b32.xlu1 %v13535_v44, %s10924_s16 }
 0x556   : > { %5003 = vst.msk [vmem:[#allocation4 + $0x46] sm:$0x1] %vm481_vm2, %v4961_v42  ;;  %4549 = vst.msk [vmem:[#allocation4 + $0x8c] sm:$0x1] %vm481_vm2, %v13620_v46  ;;  %v13660_v0 = vrot.slane %v5311_v3, %v13162_v50  ;;  %v13663_v36 = vrot.slane %v5312_v57, %v13162_v50  ;;  %v13669_v30 = vcombine.high %v13629_v61, %v13629_v61  ;;  %7666 = vrot.lane.b32.xlu0 %v13541_v55, %s10924_s16  ;;  %v5187_v21 = vpop.permute.xlu1 %5186 }
 0x557   : > { %4551 = vst.msk [vmem:[#allocation4 + $0xc4] sm:$0x1] %vm481_vm2, %v13612_v1  ;;  %4552 = vst.msk [vmem:[#allocation4 + $0xc8] sm:$0x1] %vm481_vm2, %v13616_v27  ;;  %v13678_v20 = vrot.slane %v5313_v7, %v13162_v50  ;;  %v6945_v44 = vcombine.high %v13573_v40, %v13573_v40  ;;  %v6952_v52 = vrot.slane %v13573_v40, %v13162_v50 }
 0x558   : > { %6197 = vst.msk [vmem:[#allocation4 + $0xac] sm:$0x1] %vm481_vm2, %v13637_v33  ;;  %6199 = vst.msk [vmem:[#allocation4 + $0xe4] sm:$0x1] %vm481_vm2, %v13629_v61  ;;  %v13691_v48 = vcombine.high %v13657_v13, %v13657_v13  ;;  %v13695_v43 = vcombine.high %v13660_v0, %v13660_v0  ;;  %v13699_v22 = vcombine.high %v13663_v36, %v13663_v36  ;;  %v6607_v39 = vpop.permute.xlu0 %6606 }
 0x559   : > { %6200 = vst.msk [vmem:[#allocation4 + $0xe8] sm:$0x1] %vm481_vm2, %v13633_v45  ;;  %6648 = vst.msk [vmem:[#allocation4 + $0x2a] sm:$0x1] %vm481_vm2, %v6603_v12  ;;  %v4691_v37 = vrot.slane %v13570_v24, %v13144_v17  ;;  %v13713_v59 = vcombine.high %v13678_v20, %v13678_v20  ;;  %v6959_v6 = vrot.slane %v6945_v44, %v13162_v50  ;;  %7206 = vrot.lane.b32.xlu1 %v13541_v55, %s10925_s17  ;;  %v7718_v24 = vld [vmem:[#allocation4 + $0x8] sm:$0xf] }
 0x55a   : > { %4553 = vst.msk [vmem:[#allocation4 + $0xcc] sm:$0x1] %vm481_vm2, %v13648_v35  ;;  %5370 = vst.msk [vmem:[#allocation4 + $0x90] sm:$0x1] %vm481_vm2, %v13657_v13  ;;  %v6960_v9 = vcombine.high %v6952_v52, %v6952_v52  ;;  %v6968_v23 = vrot.slane %v6952_v52, %v13162_v50  ;;  %v5191_v55 = vpop.permute.xlu1 %5190  ;;  %v4695_v51 = vrot.slane %v13586_v15, %v13144_v17 }
 0x55b   : > { %5371 = vst.msk [vmem:[#allocation4 + $0x94] sm:$0x1] %vm481_vm2, %v13663_v36  ;;  %5374 = vst.msk [vmem:[#allocation4 + $0xd0] sm:$0x1] %vm481_vm2, %v13660_v0  ;;  %v6961_v5 = vcombine.high %v6959_v6, %v6959_v6  ;;  %v13731_v54 = vrot.slane %v6959_v6, %v13162_v50  ;;  %4736 = vrot.lane.b32.xlu0 %v4691_v37, %s10925_s17  ;;  %v6339_v15 = vrot.slane %v13577_v18, %v13144_v17 }
 0x55c   : > { %6201 = vst.msk [vmem:[#allocation4 + $0xec] sm:$0x1] %vm481_vm2, %v13669_v30  ;;  %5375 = vst.msk [vmem:[#allocation4 + $0xd4] sm:$0x1] %vm481_vm2, %v13678_v20  ;;  %v13734_v63 = vrot.slane %v6960_v9, %v13162_v50  ;;  %v13736_v32 = vcombine.high %v6968_v23, %v6968_v23  ;;  %v13742_v2 = vrot.slane %v6968_v23, %v13144_v17 }
 0x55d   : > { %5231 = vst.msk [vmem:[#allocation4 + $0xf] sm:$0x1] %vm481_vm2, %v5187_v21  ;;  %5372 = vst.msk [vmem:[#allocation4 + $0x98] sm:$0x1] %vm481_vm2, %v13691_v48  ;;  %v13745_v31 = vrot.slane %v6961_v5, %v13162_v50  ;;  %v13749_v53 = vcombine.high %v13731_v54, %v13731_v54  ;;  %v6833_v50 = vpop.permute.xlu0 %6832  ;;  %v6343_v21 = vrot.slane %v13600_v8, %v13144_v17 }
 0x55e   : > { %5373 = vst.msk [vmem:[#allocation4 + $0x9c] sm:$0x1] %vm481_vm2, %v13699_v22  ;;  %5376 = vst.msk [vmem:[#allocation4 + $0xd8] sm:$0x1] %vm481_vm2, %v13695_v43  ;;  %v13753_v62 = vcombine.high %v13734_v63, %v13734_v63  ;;  %7668 = vrot.lane.b32.xlu1 %v13742_v2, %s10924_s16  ;;  %v6375_v38 = vpop.permute.xlu1 %6374 }
 0x55f   : > { %5377 = vst.msk [vmem:[#allocation4 + $0xdc] sm:$0x1] %vm481_vm2, %v13713_v59  ;;  %7018 = vst.msk [vmem:[#allocation4 + $0xb0] sm:$0x1] %vm481_vm2, %v6968_v23  ;;  %v13766_v11 = vcombine.high %v13745_v31, %v13745_v31  ;;  %4966 = vrot.lane.b32.xlu0 %v4691_v37, %s10923_s15  ;;  %v5515_v23 = vrot.slane %v13657_v13, %v13144_v17 }
 0x560   : > { %6650 = vst.msk [vmem:[#allocation4 + $0x62] sm:$0x1] %vm481_vm2, %v6607_v39  ;;  %7019 = vst.msk [vmem:[#allocation4 + $0xb4] sm:$0x1] %vm481_vm2, %v13734_v63 }
 0x561   : > { %7020 = vst.msk [vmem:[#allocation4 + $0xb8] sm:$0x1] %vm481_vm2, %v13736_v32  ;;  %7022 = vst.msk [vmem:[#allocation4 + $0xf0] sm:$0x1] %vm481_vm2, %v13731_v54  ;;  %v6837_v3 = vpop.permute.xlu0 %6836 }
 0x562   : > { %5233 = vst.msk [vmem:[#allocation4 + $0x47] sm:$0x1] %vm481_vm2, %v5191_v55  ;;  %7021 = vst.msk [vmem:[#allocation4 + $0xbc] sm:$0x1] %vm481_vm2, %v13753_v62  ;;  %4738 = vrot.lane.b32.xlu1 %v4695_v51, %s10925_s17  ;;  %v6379_v47 = vpop.permute.xlu1 %6378 }
 0x563   : > { %7023 = vst.msk [vmem:[#allocation4 + $0xf4] sm:$0x1] %vm481_vm2, %v13745_v31  ;;  %7024 = vst.msk [vmem:[#allocation4 + $0xf8] sm:$0x1] %vm481_vm2, %v13749_v53  ;;  %5196 = vrot.lane.b32.xlu0 %v4691_v37, %s10924_s16 }
 0x564   : > { %6878 = vst.msk [vmem:[#allocation4 + $0x2b] sm:$0x1] %vm481_vm2, %v6833_v50  ;;  %v7719_v40 = vld [vmem:[#allocation4 + $0xc] sm:$0xf]  ;;  %7025 = vst.msk [vmem:[#allocation4 + $0xfc] sm:$0x1] %vm481_vm2, %v13766_v11 }
 0x565   : > { %v7845_v16 = vcombine.low %v7718_v24, %v7719_v40  ;;  %6419 = vst.msk [vmem:[#allocation4 + $0x2d] sm:$0x1] %vm481_vm2, %v6375_v38  ;;  %6880 = vst.msk [vmem:[#allocation4 + $0x63] sm:$0x1] %vm481_vm2, %v6837_v3  ;;  %v5549_v42 = vpop.permute.xlu0 %5548  ;;  %v5519_v40 = vrot.slane %v13663_v36, %v13144_v17 }
 0x566   : > { %6421 = vst.msk [vmem:[#allocation4 + $0x65] sm:$0x1] %vm481_vm2, %v6379_v47  ;;  %4968 = vrot.lane.b32.xlu1 %v4695_v51, %s10923_s15  ;;  %5594 = vst.msk [vmem:[#allocation4 + $0x19] sm:$0x1] %vm481_vm2, %v5549_v42  ;;  %v6605_v7 = vpop.permute.xlu1 %6604 }
 0x567   : > { %7909 = vst.msk [vmem:[#allocation2 + $0x21] sm:$0xff] %vm472_vm0, %v7845_v16  ;;  %6384 = vrot.lane.b32.xlu0 %v6339_v15, %s10925_s17 }
 0x568   : > { %6649 = vst.msk [vmem:[#allocation4 + $0x2e] sm:$0x1] %vm481_vm2, %v6605_v7 }
 0x569   : > { %v7733_v14 = vld [vmem:[#allocation4 + $0x44] sm:$0xf]  ;;  %v5553_v12 = vpop.permute.xlu0 %5552 }
 0x56a   : > { %v7852_v57 = vcombine.low %v7732_v29, %v7733_v14  ;;  %5198 = vrot.lane.b32.xlu1 %v4695_v51, %s10924_s16  ;;  %5596 = vst.msk [vmem:[#allocation4 + $0x51] sm:$0x1] %vm481_vm2, %v5553_v12  ;;  %v6609_v52 = vpop.permute.xlu1 %6608 }
 0x56b   : > { %6614 = vrot.lane.b32.xlu0 %v6339_v15, %s10923_s15  ;;  %6651 = vst.msk [vmem:[#allocation4 + $0x66] sm:$0x1] %vm481_vm2, %v6609_v52  ;;  %v7726_v50 = vld [vmem:[#allocation4 + $0x28] sm:$0xf]  ;;  %v13852_v52 = vrot.slane %v13734_v63, %v13144_v17 }
 0x56c   : > { %7916 = vst.msk [vmem:[#allocation2 + $0x79] sm:$0xff] %vm472_vm0, %v7852_v57  ;;  %v7740_v16 = vld [vmem:[#allocation4 + $0x60] sm:$0xf] }
 0x56d   : > { %v5779_v37 = vpop.permute.xlu0 %5778 }
 0x56e   : > { %v13796_v18 = vld [vmem:[#allocation2 + $0x20] sm:$0xff]  ;;  %6386 = vrot.lane.b32.xlu1 %v6343_v21, %s10925_s17  ;;  %5824 = vst.msk [vmem:[#allocation4 + $0x1a] sm:$0x1] %vm481_vm2, %v5779_v37  ;;  %v6835_v8 = vpop.permute.xlu1 %6834 }
 0x56f   : > { %v13798_v44 = vld [vmem:[#allocation2 + $0x21] sm:$0xff]  ;;  %7975 = vst.msk [vmem:[#allocation3 + $0x48] sm:$0xff] %vm472_vm0, %v13796_v18  ;;  %6844 = vrot.lane.b32.xlu0 %v6339_v15, %s10924_s16 }
 0x570   : > { %8613 = vst.msk [vmem:[#allocation3 + $0x20] sm:$0xff] %vm472_vm0, %v13798_v44 }
 0x571   : > { %6879 = vst.msk [vmem:[#allocation4 + $0x2f] sm:$0x1] %vm481_vm2, %v6835_v8  ;;  %v5783_v39 = vpop.permute.xlu0 %5782  ;;  %v13867_v8 = vrot.slane %v13736_v32, %v13144_v17  ;;  %v7728_v32 = vld [vmem:[#allocation4 + $0x30] sm:$0xf] }
 0x572   : > { %6616 = vrot.lane.b32.xlu1 %v6343_v21, %s10923_s15  ;;  %5826 = vst.msk [vmem:[#allocation4 + $0x52] sm:$0x1] %vm481_vm2, %v5783_v39  ;;  %v6839_v5 = vpop.permute.xlu1 %6838 }
 0x573   : > { %v7950_v6 = vld [vmem:[#allocation2 + $0x78] sm:$0xff]  ;;  %5560 = vrot.lane.b32.xlu0 %v5515_v23, %s10925_s17  ;;  %6881 = vst.msk [vmem:[#allocation4 + $0x67] sm:$0x1] %vm481_vm2, %v6839_v5 }
 0x574   : > { %7982 = vst.msk [vmem:[#allocation3 + $0xf0] sm:$0xff] %vm472_vm0, %v7950_v6  ;;  %v8588_v9 = vld [vmem:[#allocation2 + $0x79] sm:$0xff] }
 0x575   : > { %8620 = vst.msk [vmem:[#allocation3 + $0xc8] sm:$0xff] %vm472_vm0, %v8588_v9  ;;  %v6009_v55 = vpop.permute.xlu0 %6008 }
 0x576   : > { %6846 = vrot.lane.b32.xlu1 %v6343_v21, %s10924_s16  ;;  %6054 = vst.msk [vmem:[#allocation4 + $0x1b] sm:$0x1] %vm481_vm2, %v6009_v55  ;;  %v5551_v13 = vpop.permute.xlu1 %5550 }
 0x577   : > { %5790 = vrot.lane.b32.xlu0 %v5515_v23, %s10923_s15  ;;  %5595 = vst.msk [vmem:[#allocation4 + $0x1d] sm:$0x1] %vm481_vm2, %v5551_v13 }
 0x578   : > { %v7727_v24 = vld [vmem:[#allocation4 + $0x2c] sm:$0xf] }
 0x579   : > { %v7849_v38 = vcombine.low %v7726_v50, %v7727_v24  ;;  %v6013_v51 = vpop.permute.xlu0 %6012 }
 0x57a   : > { %5562 = vrot.lane.b32.xlu1 %v5519_v40, %s10925_s17  ;;  %6056 = vst.msk [vmem:[#allocation4 + $0x53] sm:$0x1] %vm481_vm2, %v6013_v51  ;;  %v7741_v3 = vld [vmem:[#allocation4 + $0x64] sm:$0xf]  ;;  %v5555_v29 = vpop.permute.xlu1 %5554 }
 0x57b   : > { %7913 = vst.msk [vmem:[#allocation2 + $0x51] sm:$0xff] %vm472_vm0, %v7849_v38  ;;  %6020 = vrot.lane.b32.xlu0 %v5515_v23, %s10924_s16  ;;  %v7856_v14 = vcombine.low %v7740_v16, %v7741_v3 }
 0x57c   : > { %5597 = vst.msk [vmem:[#allocation4 + $0x55] sm:$0x1] %vm481_vm2, %v5555_v29 }
 0x57d   : > { %v7197_v36 = vpop.permute.xlu0 %7196  ;;  %7920 = vst.msk [vmem:[#allocation2 + $0xa9] sm:$0xff] %vm472_vm0, %v7856_v14 }
 0x57e   : > { %5792 = vrot.lane.b32.xlu1 %v5519_v40, %s10923_s15  ;;  %7242 = vst.msk [vmem:[#allocation4 + $0x39] sm:$0x1] %vm481_vm2, %v7197_v36  ;;  %v5781_v47 = vpop.permute.xlu1 %5780 }
 0x57f   : > { %7208 = vrot.lane.b32.xlu0 %v13742_v2, %s10925_s17  ;;  %5825 = vst.msk [vmem:[#allocation4 + $0x1e] sm:$0x1] %vm481_vm2, %v5781_v47  ;;  %v4703_v47 = vrot.slane %v13620_v46, %v13144_v17 }
 0x581   : > { %v7425_v57 = vpop.permute.xlu0 %7424  ;;  %v7736_v16 = vld [vmem:[#allocation4 + $0x50] sm:$0xf] }
 0x582   : > { %6022 = vrot.lane.b32.xlu1 %v5519_v40, %s10924_s16  ;;  %v13837_v15 = vld [vmem:[#allocation2 + $0x4a] sm:$0xff]  ;;  %v13839_v42 = vld [vmem:[#allocation2 + $0x52] sm:$0xff]  ;;  %7471 = vst.msk [vmem:[#allocation4 + $0x36] sm:$0x1] %vm481_vm2, %v7425_v57  ;;  %v5785_v12 = vpop.permute.xlu1 %5784  ;;  %v13884_v40 = vrot.slane %v13731_v54, %v13144_v17 }
 0x583   : > { %7438 = vrot.lane.b32.xlu0 %v13742_v2, %s10923_s15  ;;  %9254 = vst.msk [vmem:[#allocation3 + $0x40] sm:$0xff] %vm472_vm0, %v13837_v15  ;;  %9255 = vst.msk [vmem:[#allocation3 + $0x58] sm:$0xff] %vm472_vm0, %v13839_v42  ;;  %v13848_v7 = vld [vmem:[#allocation2 + $0x51] sm:$0xff]  ;;  %v4699_v2 = vrot.slane %v13590_v56, %v13144_v17  ;;  %v4707_v56 = vrot.slane %v13583_v25, %v13144_v17  ;;  %v7722_v25 = vld [vmem:[#allocation4 + $0x18] sm:$0xf] }
 0x584   : > { %8617 = vst.msk [vmem:[#allocation3 + $0x80] sm:$0xff] %vm472_vm0, %v13848_v7  ;;  %v7947_v21 = vld [vmem:[#allocation2 + $0x50] sm:$0xff]  ;;  %v7954_v6 = vld [vmem:[#allocation2 + $0xa8] sm:$0xff] }
 0x585   : > { %5827 = vst.msk [vmem:[#allocation4 + $0x56] sm:$0x1] %vm481_vm2, %v5785_v12  ;;  %v7655_v37 = vpop.permute.xlu0 %7654  ;;  %v8592_v63 = vld [vmem:[#allocation2 + $0xa9] sm:$0xff] }
 0x586   : > { %7979 = vst.msk [vmem:[#allocation3 + $0xa8] sm:$0xff] %vm472_vm0, %v7947_v21  ;;  %7210 = vrot.lane.b32.xlu1 %v13852_v52, %s10925_s17  ;;  %7986 = vst.msk [vmem:[#allocation3 + $0x150] sm:$0xff] %vm472_vm0, %v7954_v6  ;;  %v6011_v9 = vpop.permute.xlu1 %6010 }
 0x587   : > { %7701 = vst.msk [vmem:[#allocation4 + $0x37] sm:$0x1] %vm481_vm2, %v7655_v37  ;;  %4740 = vrot.lane.b32.xlu0 %v4699_v2, %s10925_s17  ;;  %6055 = vst.msk [vmem:[#allocation4 + $0x1f] sm:$0x1] %vm481_vm2, %v6011_v9 }
 0x588   : > { %8624 = vst.msk [vmem:[#allocation3 + $0x128] sm:$0xff] %vm472_vm0, %v8592_v63  ;;  %v4711_v63 = vrot.slane %v13612_v1, %v13144_v17 }
 0x589   : > { %v7427_v23 = vpop.permute.xlu0 %7426 }
 0x58a   : > { %7442 = vrot.lane.b32.xlu1 %v13867_v8, %s10923_s15  ;;  %7472 = vst.msk [vmem:[#allocation4 + $0x3a] sm:$0x1] %vm481_vm2, %v7427_v23  ;;  %v6015_v39 = vpop.permute.xlu1 %6014  ;;  %v6347_v23 = vrot.slane %v13604_v10, %v13144_v17  ;;  %v6355_v10 = vrot.slane %v13597_v34, %v13144_v17 }
 0x58b   : > { %4744 = vrot.lane.b32.xlu0 %v4707_v56, %s10925_s17  ;;  %6057 = vst.msk [vmem:[#allocation4 + $0x57] sm:$0x1] %vm481_vm2, %v6015_v39 }
 0x58d   : > { %v7657_v55 = vpop.permute.xlu0 %7656 }
 0x58e   : > { %v7729_v5 = vld [vmem:[#allocation4 + $0x34] sm:$0xf]  ;;  %7672 = vrot.lane.b32.xlu1 %v13867_v8, %s10924_s16  ;;  %7702 = vst.msk [vmem:[#allocation4 + $0x3b] sm:$0x1] %vm481_vm2, %v7657_v55  ;;  %v7723_v24 = vld [vmem:[#allocation4 + $0x1c] sm:$0xf]  ;;  %v7199_v13 = vpop.permute.xlu1 %7198 }
 0x58f   : > { %v7850_v50 = vcombine.low %v7728_v32, %v7729_v5  ;;  %4970 = vrot.lane.b32.xlu0 %v4699_v2, %s10923_s15  ;;  %v7847_v38 = vcombine.low %v7722_v25, %v7723_v24  ;;  %7243 = vst.msk [vmem:[#allocation4 + $0x3d] sm:$0x1] %vm481_vm2, %v7199_v13 }
 0x591   : > { %7914 = vst.msk [vmem:[#allocation2 + $0x61] sm:$0xff] %vm472_vm0, %v7850_v50  ;;  %v7201_v51 = vpop.permute.xlu0 %7200  ;;  %7911 = vst.msk [vmem:[#allocation2 + $0x39] sm:$0xff] %vm472_vm0, %v7847_v38 }
 0x592   : > { %7446 = vrot.lane.b32.xlu1 %v13884_v40, %s10923_s15  ;;  %7244 = vst.msk [vmem:[#allocation4 + $0x71] sm:$0x1] %vm481_vm2, %v7201_v51  ;;  %v7737_v3 = vld [vmem:[#allocation4 + $0x54] sm:$0xf]  ;;  %v7429_v29 = vpop.permute.xlu1 %7428  ;;  %v9292_v51 = vld [vmem:[#allocation3 + $0x40] sm:$0xff] }
 0x593   : > { %4974 = vrot.lane.b32.xlu0 %v4707_v56, %s10923_s15  ;;  %v7854_v54 = vcombine.low %v7736_v16, %v7737_v3  ;;  %7473 = vst.msk [vmem:[#allocation4 + $0x3e] sm:$0x1] %vm481_vm2, %v7429_v29  ;;  %v9295_v16 = vld [vmem:[#allocation3 + $0x58] sm:$0xff] }
 0x595   : > { %v4733_v14 = vpop.permute.xlu0 %4732  ;;  %7918 = vst.msk [vmem:[#allocation2 + $0x91] sm:$0xff] %vm472_vm0, %v7854_v54  ;;  %v7730_v32 = vld [vmem:[#allocation4 + $0x38] sm:$0xf] }
 0x596   : > { %7676 = vrot.lane.b32.xlu1 %v13884_v40, %s10924_s16  ;;  %4774 = vst.msk [vmem:[#allocation4 + $0x49] sm:$0x1] %vm481_vm2, %v4733_v14  ;;  %v7659_v36 = vpop.permute.xlu1 %7658 }
 0x597   : > { %5200 = vrot.lane.b32.xlu0 %v4699_v2, %s10924_s16  ;;  %7703 = vst.msk [vmem:[#allocation4 + $0x3f] sm:$0x1] %vm481_vm2, %v7659_v36 }
 0x598   : > { %v13901_v57 = vld [vmem:[#allocation2 + $0x60] sm:$0xff]  ;;  %v9220_v37 = vld [vmem:[#allocation2 + $0x32] sm:$0xff] }
 0x599   : > { %v8586_v12 = vld [vmem:[#allocation2 + $0x61] sm:$0xff]  ;;  %7980 = vst.msk [vmem:[#allocation3 + $0xc0] sm:$0xff] %vm472_vm0, %v13901_v57  ;;  %v4963_v21 = vpop.permute.xlu0 %4962  ;;  %9252 = vst.msk [vmem:[#allocation3 + $0x10] sm:$0xff] %vm472_vm0, %v9220_v37  ;;  %v13912_v46 = vld [vmem:[#allocation2 + $0x39] sm:$0xff] }
 0x59a   : > { %8618 = vst.msk [vmem:[#allocation3 + $0x98] sm:$0xff] %vm472_vm0, %v8586_v12  ;;  %4742 = vrot.lane.b32.xlu1 %v4703_v47, %s10925_s17  ;;  %v9221_v6 = vld [vmem:[#allocation2 + $0x3a] sm:$0xff]  ;;  %v7203_v2 = vpop.permute.xlu1 %7202  ;;  %8615 = vst.msk [vmem:[#allocation3 + $0x50] sm:$0xff] %vm472_vm0, %v13912_v46 }
 0x59b   : > { %5004 = vst.msk [vmem:[#allocation4 + $0x4a] sm:$0x1] %vm481_vm2, %v4963_v21  ;;  %5204 = vrot.lane.b32.xlu0 %v4707_v56, %s10924_s16  ;;  %v7945_v9 = vld [vmem:[#allocation2 + $0x38] sm:$0xff]  ;;  %7245 = vst.msk [vmem:[#allocation4 + $0x75] sm:$0x1] %vm481_vm2, %v7203_v2 }
 0x59c   : > { %9253 = vst.msk [vmem:[#allocation3 + $0x28] sm:$0xff] %vm472_vm0, %v9221_v6  ;;  %7977 = vst.msk [vmem:[#allocation3 + $0x78] sm:$0xff] %vm472_vm0, %v7945_v9  ;;  %v7952_v39 = vld [vmem:[#allocation2 + $0x90] sm:$0xff]  ;;  %v6351_v6 = vrot.slane %v13637_v33, %v13144_v17  ;;  %v5523_v33 = vrot.slane %v13691_v48, %v13144_v17 }
 0x59d   : > { %v5193_v56 = vpop.permute.xlu0 %5192  ;;  %7984 = vst.msk [vmem:[#allocation3 + $0x120] sm:$0xff] %vm472_vm0, %v7952_v39  ;;  %v8590_v1 = vld [vmem:[#allocation2 + $0x91] sm:$0xff] }
 0x59e   : > { %4746 = vrot.lane.b32.xlu1 %v4711_v63, %s10925_s17  ;;  %5234 = vst.msk [vmem:[#allocation4 + $0x4b] sm:$0x1] %vm481_vm2, %v5193_v56  ;;  %v7731_v5 = vld [vmem:[#allocation4 + $0x3c] sm:$0xf]  ;;  %v7435_v55 = vpop.permute.xlu1 %7434 }
 0x59f   : > { %6388 = vrot.lane.b32.xlu0 %v6347_v23, %s10925_s17  ;;  %8622 = vst.msk [vmem:[#allocation3 + $0xf8] sm:$0xff] %vm472_vm0, %v8590_v1  ;;  %v7851_v50 = vcombine.low %v7730_v32, %v7731_v5 }
 0x5a0   : > { %7476 = vst.msk [vmem:[#allocation4 + $0x7a] sm:$0x1] %vm481_vm2, %v7435_v55  ;;  %v9286_v24 = vld [vmem:[#allocation3 + $0x10] sm:$0xff] }
 0x5a1   : > { %v6381_v25 = vpop.permute.xlu0 %6380  ;;  %7915 = vst.msk [vmem:[#allocation2 + $0x69] sm:$0xff] %vm472_vm0, %v7851_v50  ;;  %10625 = vmatprep.mubr.msk.f32.mxu0 %vm472_vm0, %v9286_v24 }
 0x5a2   : > { %4972 = vrot.lane.b32.xlu1 %v4703_v47, %s10923_s15  ;;  %6422 = vst.msk [vmem:[#allocation4 + $0x69] sm:$0x1] %vm481_vm2, %v6381_v25  ;;  %v7665_v38 = vpop.permute.xlu1 %7664 }
 0x5a3   : > { %v9289_v13 = vld [vmem:[#allocation3 + $0x28] sm:$0xff]  ;;  %6392 = vrot.lane.b32.xlu0 %v6355_v10, %s10925_s17  ;;  %7706 = vst.msk [vmem:[#allocation4 + $0x7b] sm:$0x1] %vm481_vm2, %v7665_v38 }
 0x5a4   : > { %10626 = vmatmul.mubr.msk.f32.vlgmr.msra.gmra.mrb[72].mxu0 %vm472_vm0, %v9289_v13 }
 0x5a5   : > { %10628 = vmatprep.mubr.msk.f32.mxu0 %vm472_vm0, %v9292_v51  ;;  %v6611_v34 = vpop.permute.xlu0 %6610  ;;  %v7734_v1 = vld [vmem:[#allocation4 + $0x48] sm:$0xf] }
 0x5a6   : > { %4976 = vrot.lane.b32.xlu1 %v4711_v63, %s10923_s15  ;;  %6652 = vst.msk [vmem:[#allocation4 + $0x6a] sm:$0x1] %vm481_vm2, %v6611_v34  ;;  %v4735_v3 = vpop.permute.xlu1 %4734 }
 0x5a7   : > { %6618 = vrot.lane.b32.xlu0 %v6347_v23, %s10923_s15  ;;  %4775 = vst.msk [vmem:[#allocation4 + $0x4d] sm:$0x1] %vm481_vm2, %v4735_v3 }
 0x5a8   : > { %10629 = vmatmul.mubr.msk.f32.gmra.mrb[74].mxu0 %vm472_vm0, %v9295_v16  ;;  %v9224_v54 = vld [vmem:[#allocation2 + $0x62] sm:$0xff]  ;;  %v9225_v14 = vld [vmem:[#allocation2 + $0x6a] sm:$0xff] }
 0x5a9   : > { %v6841_v29 = vpop.permute.xlu0 %6840  ;;  %9256 = vst.msk [vmem:[#allocation3 + $0x70] sm:$0xff] %vm472_vm0, %v9224_v54  ;;  %9257 = vst.msk [vmem:[#allocation3 + $0x88] sm:$0xff] %vm472_vm0, %v9225_v14  ;;  %v13948_v36 = vld [vmem:[#allocation2 + $0x69] sm:$0xff] }
 0x5aa   : > { %5202 = vrot.lane.b32.xlu1 %v4703_v47, %s10924_s16  ;;  %6882 = vst.msk [vmem:[#allocation4 + $0x6b] sm:$0x1] %vm481_vm2, %v6841_v29  ;;  %v4965_v12 = vpop.permute.xlu1 %4964  ;;  %v7949_v21 = vld [vmem:[#allocation2 + $0x68] sm:$0xff] }
 0x5ab   : > { %6622 = vrot.lane.b32.xlu0 %v6355_v10, %s10923_s15  ;;  %8619 = vst.msk [vmem:[#allocation3 + $0xb0] sm:$0xff] %vm472_vm0, %v13948_v36  ;;  %7981 = vst.msk [vmem:[#allocation3 + $0xd8] sm:$0xff] %vm472_vm0, %v7949_v21  ;;  %v7744_v21 = vld [vmem:[#allocation4 + $0x70] sm:$0xf] }
 0x5ac   : > { %5005 = vst.msk [vmem:[#allocation4 + $0x4e] sm:$0x1] %vm481_vm2, %v4965_v12  ;;  %v5527_v12 = vrot.slane %v13699_v22, %v13144_v17  ;;  %v5535_v22 = vrot.slane %v13678_v20, %v13144_v17 }
 0x5ad   : > { %v5557_v47 = vpop.permute.xlu0 %5556 }
 0x5ae   : > { %5206 = vrot.lane.b32.xlu1 %v4711_v63, %s10924_s16  ;;  %5598 = vst.msk [vmem:[#allocation4 + $0x59] sm:$0x1] %vm481_vm2, %v5557_v47  ;;  %v5195_v37 = vpop.permute.xlu1 %5194 }
 0x5af   : > { %6848 = vrot.lane.b32.xlu0 %v6347_v23, %s10924_s16  ;;  %5235 = vst.msk [vmem:[#allocation4 + $0x4f] sm:$0x1] %vm481_vm2, %v5195_v37  ;;  %v6359_v23 = vrot.slane %v13629_v61, %v13144_v17  ;;  %v5531_v61 = vrot.slane %v13660_v0, %v13144_v17 }
 0x5b0   : > { %v9298_v9 = vld [vmem:[#allocation3 + $0x70] sm:$0xff]  ;;  %v9301_v56 = vld [vmem:[#allocation3 + $0x88] sm:$0xff] }
 0x5b1   : > { %v5787_v2 = vpop.permute.xlu0 %5786  ;;  %10631 = vmatprep.mubr.msk.f32.mxu0 %vm472_vm0, %v9298_v9  ;;  %v7742_v51 = vld [vmem:[#allocation4 + $0x68] sm:$0xf] }
 0x5b2   : > { %6390 = vrot.lane.b32.xlu1 %v6351_v6, %s10925_s17  ;;  %5828 = vst.msk [vmem:[#allocation4 + $0x5a] sm:$0x1] %vm481_vm2, %v5787_v2  ;;  %10632 = vmatmul.mubr.msk.f32.gmra.mrb[76].mxu0 %vm472_vm0, %v9301_v56  ;;  %v6383_v63 = vpop.permute.xlu1 %6382 }
 0x5b3   : > { %6852 = vrot.lane.b32.xlu0 %v6355_v10, %s10924_s16  ;;  %6423 = vst.msk [vmem:[#allocation4 + $0x6d] sm:$0x1] %vm481_vm2, %v6383_v63 }
 0x5b5   : > { %v6017_v39 = vpop.permute.xlu0 %6016 }
 0x5b6   : > { %6394 = vrot.lane.b32.xlu1 %v6359_v23, %s10925_s17  ;;  %6058 = vst.msk [vmem:[#allocation4 + $0x5b] sm:$0x1] %vm481_vm2, %v6017_v39  ;;  %v7735_v32 = vld [vmem:[#allocation4 + $0x4c] sm:$0xf]  ;;  %v6613_v5 = vpop.permute.xlu1 %6612 }
 0x5b7   : > { %5564 = vrot.lane.b32.xlu0 %v5523_v33, %s10925_s17  ;;  %v7853_v55 = vcombine.low %v7734_v1, %v7735_v32  ;;  %6653 = vst.msk [vmem:[#allocation4 + $0x6e] sm:$0x1] %vm481_vm2, %v6613_v5 }
 0x5b9   : > { %v7205_v50 = vpop.permute.xlu0 %7204  ;;  %7917 = vst.msk [vmem:[#allocation2 + $0x81] sm:$0xff] %vm472_vm0, %v7853_v55 }
 0x5ba   : > { %6620 = vrot.lane.b32.xlu1 %v6351_v6, %s10923_s15  ;;  %7246 = vst.msk [vmem:[#allocation4 + $0x79] sm:$0x1] %vm481_vm2, %v7205_v50  ;;  %v6843_v48 = vpop.permute.xlu1 %6842 }
 0x5bb   : > { %5568 = vrot.lane.b32.xlu0 %v5531_v61, %s10925_s17  ;;  %6883 = vst.msk [vmem:[#allocation4 + $0x6f] sm:$0x1] %vm481_vm2, %v6843_v48 }
 0x5bd   : > { %v7433_v10 = vpop.permute.xlu0 %7432  ;;  %v7738_v1 = vld [vmem:[#allocation4 + $0x58] sm:$0xf] }
 0x5be   : > { %6624 = vrot.lane.b32.xlu1 %v6359_v23, %s10923_s15  ;;  %7475 = vst.msk [vmem:[#allocation4 + $0x76] sm:$0x1] %vm481_vm2, %v7433_v10 }
 0x5bf   : > { %5794 = vrot.lane.b32.xlu0 %v5523_v33, %s10923_s15  ;;  %v5559_v0 = vpop.permute.xlu1 %5558 }
 0x5c0   : > { %5599 = vst.msk [vmem:[#allocation4 + $0x5d] sm:$0x1] %vm481_vm2, %v5559_v0  ;;  %v9226_v24 = vld [vmem:[#allocation2 + $0x7a] sm:$0xff]  ;;  %v9227_v13 = vld [vmem:[#allocation2 + $0x82] sm:$0xff] }
 0x5c1   : > { %v7663_v25 = vpop.permute.xlu0 %7662  ;;  %9258 = vst.msk [vmem:[#allocation3 + $0xa0] sm:$0xff] %vm472_vm0, %v9226_v24  ;;  %9259 = vst.msk [vmem:[#allocation3 + $0xb8] sm:$0xff] %vm472_vm0, %v9227_v13  ;;  %v13990_v38 = vld [vmem:[#allocation2 + $0x81] sm:$0xff] }
 0x5c2   : > { %6850 = vrot.lane.b32.xlu1 %v6351_v6, %s10924_s16  ;;  %7705 = vst.msk [vmem:[#allocation4 + $0x77] sm:$0x1] %vm481_vm2, %v7663_v25  ;;  %v7743_v34 = vld [vmem:[#allocation4 + $0x6c] sm:$0xf]  ;;  %v7951_v3 = vld [vmem:[#allocation2 + $0x80] sm:$0xff] }
 0x5c3   : > { %5798 = vrot.lane.b32.xlu0 %v5531_v61, %s10923_s15  ;;  %v5789_v16 = vpop.permute.xlu1 %5788  ;;  %8621 = vst.msk [vmem:[#allocation3 + $0xe0] sm:$0xff] %vm472_vm0, %v13990_v38  ;;  %v7857_v29 = vcombine.low %v7742_v51, %v7743_v34  ;;  %7983 = vst.msk [vmem:[#allocation3 + $0x108] sm:$0xff] %vm472_vm0, %v7951_v3 }
 0x5c4   : > { %5829 = vst.msk [vmem:[#allocation4 + $0x5e] sm:$0x1] %vm481_vm2, %v5789_v16 }
 0x5c5   : > { %v7437_v54 = vpop.permute.xlu0 %7436  ;;  %7921 = vst.msk [vmem:[#allocation2 + $0xb1] sm:$0xff] %vm472_vm0, %v7857_v29 }
 0x5c6   : > { %6854 = vrot.lane.b32.xlu1 %v6359_v23, %s10924_s16  ;;  %7477 = vst.msk [vmem:[#allocation4 + $0x7e] sm:$0x1] %vm481_vm2, %v7437_v54  ;;  %v4715_v54 = vrot.slane %v13616_v27, %v13144_v17  ;;  %v14069_v27 = vrot.slane %v13753_v62, %v13144_v17 }
 0x5c7   : > { %6024 = vrot.lane.b32.xlu0 %v5523_v33, %s10924_s16  ;;  %v6019_v14 = vpop.permute.xlu1 %6018 }
 0x5c8   : > { %6059 = vst.msk [vmem:[#allocation4 + $0x5f] sm:$0x1] %vm481_vm2, %v6019_v14  ;;  %v9304_v6 = vld [vmem:[#allocation3 + $0xa0] sm:$0xff]  ;;  %v9307_v2 = vld [vmem:[#allocation3 + $0xb8] sm:$0xff] }
 0x5c9   : > { %v7745_v47 = vld [vmem:[#allocation4 + $0x74] sm:$0xf]  ;;  %v7667_v37 = vpop.permute.xlu0 %7666  ;;  %10634 = vmatprep.mubr.msk.f32.mxu0 %vm472_vm0, %v9304_v6 }
 0x5ca   : > { %5566 = vrot.lane.b32.xlu1 %v5527_v12, %s10925_s17  ;;  %v7858_v9 = vcombine.low %v7744_v21, %v7745_v47  ;;  %7707 = vst.msk [vmem:[#allocation4 + $0x7f] sm:$0x1] %vm481_vm2, %v7667_v37  ;;  %10635 = vmatmul.mubr.msk.f32.gmra.mrb[78].mxu0 %vm472_vm0, %v9307_v2 }
 0x5cb   : > { %6028 = vrot.lane.b32.xlu0 %v5531_v61, %s10924_s16  ;;  %v7207_v56 = vpop.permute.xlu1 %7206  ;;  %v7746_v61 = vld [vmem:[#allocation4 + $0x78] sm:$0xf] }
 0x5cc   : > { %7922 = vst.msk [vmem:[#allocation2 + $0xc1] sm:$0xff] %vm472_vm0, %v7858_v9  ;;  %v9230_v23 = vld [vmem:[#allocation2 + $0xaa] sm:$0xff]  ;;  %v9231_v33 = vld [vmem:[#allocation2 + $0xb2] sm:$0xff] }
 0x5cd   : > { %7247 = vst.msk [vmem:[#allocation4 + $0x7d] sm:$0x1] %vm481_vm2, %v7207_v56  ;;  %v4737_v63 = vpop.permute.xlu0 %4736  ;;  %v14013_v39 = vld [vmem:[#allocation2 + $0xb0] sm:$0xff] }
 0x5ce   : > { %5570 = vrot.lane.b32.xlu1 %v5535_v22, %s10925_s17  ;;  %4776 = vst.msk [vmem:[#allocation4 + $0x81] sm:$0x1] %vm481_vm2, %v4737_v63  ;;  %v14020_v20 = vld [vmem:[#allocation2 + $0xb1] sm:$0xff] }
 0x5cf   : > { %7212 = vrot.lane.b32.xlu0 %v13867_v8, %s10925_s17  ;;  %9262 = vst.msk [vmem:[#allocation3 + $0x100] sm:$0xff] %vm472_vm0, %v9230_v23  ;;  %9263 = vst.msk [vmem:[#allocation3 + $0x118] sm:$0xff] %vm472_vm0, %v9231_v33  ;;  %v7739_v32 = vld [vmem:[#allocation4 + $0x5c] sm:$0xf]  ;;  %v14084_v23 = vrot.slane %v13745_v31, %v13144_v17 }
 0x5d0   : > { %7987 = vst.msk [vmem:[#allocation3 + $0x168] sm:$0xff] %vm472_vm0, %v14013_v39  ;;  %v7669_v5 = vpop.permute.xlu1 %7668  ;;  %8625 = vst.msk [vmem:[#allocation3 + $0x140] sm:$0xff] %vm472_vm0, %v14020_v20  ;;  %v7855_v55 = vcombine.low %v7738_v1, %v7739_v32 }
 0x5d1   : > { %7708 = vst.msk [vmem:[#allocation4 + $0xb3] sm:$0x1] %vm481_vm2, %v7669_v5  ;;  %v4967_v8 = vpop.permute.xlu0 %4966 }
 0x5d2   : > { %5796 = vrot.lane.b32.xlu1 %v5527_v12, %s10923_s15  ;;  %7919 = vst.msk [vmem:[#allocation2 + $0x99] sm:$0xff] %vm472_vm0, %v7855_v55  ;;  %v14096_v55 = vrot.slane %v13749_v53, %v13144_v17 }
 0x5d3   : > { %5006 = vst.msk [vmem:[#allocation4 + $0x82] sm:$0x1] %vm481_vm2, %v4967_v8  ;;  %7216 = vrot.lane.b32.xlu0 %v13884_v40, %s10925_s17  ;;  %v7956_v0 = vld [vmem:[#allocation2 + $0xc0] sm:$0xff]  ;;  %v6363_v8 = vrot.slane %v13633_v45, %v13144_v17 }
 0x5d4   : > { %v7747_v50 = vld [vmem:[#allocation4 + $0x7c] sm:$0xf]  ;;  %v4739_v48 = vpop.permute.xlu1 %4738  ;;  %v8594_v25 = vld [vmem:[#allocation2 + $0xc1] sm:$0xff]  ;;  %7988 = vst.msk [vmem:[#allocation3 + $0x180] sm:$0xff] %vm472_vm0, %v7956_v0 }
 0x5d5   : > { %v7859_v10 = vcombine.low %v7746_v61, %v7747_v50  ;;  %4777 = vst.msk [vmem:[#allocation4 + $0x85] sm:$0x1] %vm481_vm2, %v4739_v48  ;;  %v5197_v24 = vpop.permute.xlu0 %5196 }
 0x5d6   : > { %5800 = vrot.lane.b32.xlu1 %v5535_v22, %s10923_s15  ;;  %8626 = vst.msk [vmem:[#allocation3 + $0x158] sm:$0xff] %vm472_vm0, %v8594_v25  ;;  %v9316_v63 = vld [vmem:[#allocation3 + $0x100] sm:$0xff]  ;;  %v9319_v32 = vld [vmem:[#allocation3 + $0x118] sm:$0xff] }
 0x5d7   : > { %7923 = vst.msk [vmem:[#allocation2 + $0xc9] sm:$0xff] %vm472_vm0, %v7859_v10  ;;  %7440 = vrot.lane.b32.xlu0 %v13852_v52, %s10923_s15 }
 0x5d8   : > { %5236 = vst.msk [vmem:[#allocation4 + $0x83] sm:$0x1] %vm481_vm2, %v5197_v24  ;;  %v4969_v40 = vpop.permute.xlu1 %4968 }
 0x5d9   : > { %5007 = vst.msk [vmem:[#allocation4 + $0x86] sm:$0x1] %vm481_vm2, %v4969_v40  ;;  %v6385_v13 = vpop.permute.xlu0 %6384  ;;  %v9228_v51 = vld [vmem:[#allocation2 + $0x92] sm:$0xff]  ;;  %v9229_v34 = vld [vmem:[#allocation2 + $0x9a] sm:$0xff]  ;;  %v4719_v40 = vrot.slane %v13648_v35, %v13144_v17 }
 0x5da   : > { %6026 = vrot.lane.b32.xlu1 %v5527_v12, %s10924_s16  ;;  %v14042_v16 = vld [vmem:[#allocation2 + $0x98] sm:$0xff]  ;;  %6424 = vst.msk [vmem:[#allocation4 + $0xa1] sm:$0x1] %vm481_vm2, %v6385_v13 }
 0x5db   : > { %7670 = vrot.lane.b32.xlu0 %v13852_v52, %s10924_s16  ;;  %9260 = vst.msk [vmem:[#allocation3 + $0xd0] sm:$0xff] %vm472_vm0, %v9228_v51  ;;  %9261 = vst.msk [vmem:[#allocation3 + $0xe8] sm:$0xff] %vm472_vm0, %v9229_v34  ;;  %v14049_v3 = vld [vmem:[#allocation2 + $0x99] sm:$0xff] }
 0x5dc   : > { %7985 = vst.msk [vmem:[#allocation3 + $0x138] sm:$0xff] %vm472_vm0, %v14042_v16  ;;  %v5199_v29 = vpop.permute.xlu1 %5198  ;;  %8623 = vst.msk [vmem:[#allocation3 + $0x110] sm:$0xff] %vm472_vm0, %v14049_v3 }
 0x5dd   : > { %5237 = vst.msk [vmem:[#allocation4 + $0x87] sm:$0x1] %vm481_vm2, %v5199_v29  ;;  %v6615_v52 = vpop.permute.xlu0 %6614  ;;  %v5539_v29 = vrot.slane %v13695_v43, %v13144_v17 }
 0x5de   : > { %6030 = vrot.lane.b32.xlu1 %v5535_v22, %s10924_s16  ;;  %v9232_v14 = vld [vmem:[#allocation2 + $0xc2] sm:$0xff]  ;;  %v9233_v12 = vld [vmem:[#allocation2 + $0xca] sm:$0xff]  ;;  %6654 = vst.msk [vmem:[#allocation4 + $0xa2] sm:$0x1] %vm481_vm2, %v6615_v52 }
 0x5df   : > { %4748 = vrot.lane.b32.xlu0 %v4715_v54, %s10925_s17  ;;  %9264 = vst.msk [vmem:[#allocation3 + $0x130] sm:$0xff] %vm472_vm0, %v9232_v14  ;;  %9265 = vst.msk [vmem:[#allocation3 + $0x148] sm:$0xff] %vm472_vm0, %v9233_v12  ;;  %v14063_v21 = vld [vmem:[#allocation2 + $0xc8] sm:$0xff]  ;;  %v7748_v62 = vld [vmem:[#allocation4 + $0x80] sm:$0xf] }
 0x5e0   : > { %v14065_v47 = vld [vmem:[#allocation2 + $0xc9] sm:$0xff]  ;;  %v6387_v37 = vpop.permute.xlu1 %6386  ;;  %7989 = vst.msk [vmem:[#allocation3 + $0x198] sm:$0xff] %vm472_vm0, %v14063_v21 }
 0x5e1   : > { %8627 = vst.msk [vmem:[#allocation3 + $0x170] sm:$0xff] %vm472_vm0, %v14065_v47  ;;  %v6845_v6 = vpop.permute.xlu0 %6844 }
 0x5e2   : > { %6425 = vst.msk [vmem:[#allocation4 + $0xa5] sm:$0x1] %vm481_vm2, %v6387_v37  ;;  %7214 = vrot.lane.b32.xlu1 %v14069_v27, %s10925_s17  ;;  %v9310_v2 = vld [vmem:[#allocation3 + $0xd0] sm:$0xff]  ;;  %v9313_v9 = vld [vmem:[#allocation3 + $0xe8] sm:$0xff]  ;;  %6884 = vst.msk [vmem:[#allocation4 + $0xa3] sm:$0x1] %vm481_vm2, %v6845_v6 }
 0x5e3   : > { %10637 = vmatprep.mubr.msk.f32.mxu0 %vm472_vm0, %v9310_v2  ;;  %4978 = vrot.lane.b32.xlu0 %v4715_v54, %s10923_s15  ;;  %v6367_v2 = vrot.slane %v13669_v30, %v13144_v17  ;;  %v9380_v30 = vld [vmem:[%s15564_s9] sm:$0xff] }
 0x5e4   : > { %v7749_v56 = vld [vmem:[#allocation4 + $0x84] sm:$0xf]  ;;  %v6617_v22 = vpop.permute.xlu1 %6616  ;;  %10638 = vmatmul.mubr.msk.f32.gmra.mrb[80].mxu0 %vm472_vm0, %v9313_v9 }
 0x5e5   : > { %v7860_v33 = vcombine.low %v7748_v62, %v7749_v56  ;;  %6655 = vst.msk [vmem:[#allocation4 + $0xa6] sm:$0x1] %vm481_vm2, %v6617_v22  ;;  %10640 = vmatprep.mubr.msk.f32.mxu0 %vm472_vm0, %v9316_v63  ;;  %v5561_v1 = vpop.permute.xlu0 %5560  ;;  %v9381_v63 = vld [vmem:[%s15564_s9 + $0x8] sm:$0xff] }
 0x5e6   : > { %7218 = vrot.lane.b32.xlu1 %v14084_v23, %s10925_s17  ;;  %5600 = vst.msk [vmem:[#allocation4 + $0x91] sm:$0x1] %vm481_vm2, %v5561_v1  ;;  %v9322_v31 = vld [vmem:[#allocation3 + $0x130] sm:$0xff]  ;;  %v9325_v50 = vld [vmem:[#allocation3 + $0x148] sm:$0xff]  ;;  %v10810_v1 = vpack.c.bf16 %v9381_v63, %v9380_v30  ;;  %v9394_v63 = vld [vmem:[%s15564_s9 + $0x70] sm:$0xff] }
 0x5e7   : > { %7924 = vst.msk [vmem:[#allocation2 + $0xd9] sm:$0xff] %vm472_vm0, %v7860_v33  ;;  %5208 = vrot.lane.b32.xlu0 %v4715_v54, %s10924_s16 }
 0x5e8   : > { %v6847_v5 = vpop.permute.xlu1 %6846  ;;  %10641 = vmatmul.mubr.msk.f32.gmra.mrb[82].mxu0 %vm472_vm0, %v9319_v32  ;;  %10811 = vmatpush1.bf16.msra.mxu1 %v10810_v1 }
 0x5e9   : > { %6885 = vst.msk [vmem:[#allocation4 + $0xa7] sm:$0x1] %vm481_vm2, %v6847_v5  ;;  %10643 = vmatprep.mubr.msk.f32.mxu0 %vm472_vm0, %v9322_v31  ;;  %v5791_v61 = vpop.permute.xlu0 %5790  ;;  %v7756_v0 = vld [vmem:[#allocation4 + $0xa0] sm:$0xf]  ;;  %10812 = vmatprep.subr.bf16.mxu1 %v10922_v4 }
 0x5ea   : > { %7450 = vrot.lane.b32.xlu1 %v14096_v55, %s10923_s15  ;;  %5830 = vst.msk [vmem:[#allocation4 + $0x92] sm:$0x1] %vm481_vm2, %v5791_v61  ;;  %v9382_v61 = vld [vmem:[%s15564_s9 + $0x10] sm:$0xff] }
 0x5eb   : > { %6396 = vrot.lane.b32.xlu0 %v6363_v8, %s10925_s17 }
 0x5ec   : > { %v5563_v48 = vpop.permute.xlu1 %5562  ;;  %10644 = vmatmul.mubr.msk.f32.gmra.mrb[84].mxu0 %vm472_vm0, %v9325_v50  ;;  %v9383_v50 = vld [vmem:[%s15564_s9 + $0x18] sm:$0xff] }
 0x5ed   : > { %5601 = vst.msk [vmem:[#allocation4 + $0x95] sm:$0x1] %vm481_vm2, %v5563_v48  ;;  %v6021_v53 = vpop.permute.xlu0 %6020 }
 0x5ee   : > { %7680 = vrot.lane.b32.xlu1 %v14096_v55, %s10924_s16  ;;  %v14110_v10 = vld [vmem:[#allocation2 + $0xd8] sm:$0xff]  ;;  %6060 = vst.msk [vmem:[#allocation4 + $0x93] sm:$0x1] %vm481_vm2, %v6021_v53  ;;  %v10813_v53 = vpack.c.bf16 %v9383_v50, %v9382_v61 }
 0x5ef   : > { %v14112_v45 = vld [vmem:[#allocation2 + $0xd9] sm:$0xff]  ;;  %6626 = vrot.lane.b32.xlu0 %v6363_v8, %s10923_s15  ;;  %7990 = vst.msk [vmem:[#allocation3 + $0x1b0] sm:$0xff] %vm472_vm0, %v14110_v10 }
 0x5f0   : > { %8628 = vst.msk [vmem:[#allocation3 + $0x188] sm:$0xff] %vm472_vm0, %v14112_v45  ;;  %v7757_v25 = vld [vmem:[#allocation4 + $0xa4] sm:$0xf]  ;;  %v5793_v24 = vpop.permute.xlu1 %5792  ;;  %10814 = vmatpush1.bf16.msra.mxu1 %v10813_v53 }
 0x5f1   : > { %v7864_v13 = vcombine.low %v7756_v0, %v7757_v25  ;;  %5831 = vst.msk [vmem:[#allocation4 + $0x96] sm:$0x1] %vm481_vm2, %v5793_v24  ;;  %v7209_v51 = vpop.permute.xlu0 %7208  ;;  %10815 = vmatprep.subr.bf16.mxu1 %v10922_v4  ;;  %v9384_v25 = vld [vmem:[%s15564_s9 + $0x20] sm:$0xff] }
 0x5f2   : > { %4750 = vrot.lane.b32.xlu1 %v4719_v40, %s10925_s17  ;;  %7248 = vst.msk [vmem:[#allocation4 + $0xb1] sm:$0x1] %vm481_vm2, %v7209_v51  ;;  %v9387_v51 = vld [vmem:[%s15564_s9 + $0x38] sm:$0xff] }
 0x5f3   : > { %7928 = vst.msk [vmem:[#allocation2 + $0x109] sm:$0xff] %vm472_vm0, %v7864_v13  ;;  %6856 = vrot.lane.b32.xlu0 %v6363_v8, %s10924_s16  ;;  %v5543_v8 = vrot.slane %v13713_v59, %v13144_v17  ;;  %v9386_v13 = vld [vmem:[%s15564_s9 + $0x30] sm:$0xff] }
 0x5f4   : > { %v6023_v34 = vpop.permute.xlu1 %6022 }
 0x5f5   : > { %6061 = vst.msk [vmem:[#allocation4 + $0x97] sm:$0x1] %vm481_vm2, %v6023_v34  ;;  %v7439_v35 = vpop.permute.xlu0 %7438  ;;  %v7752_v43 = vld [vmem:[#allocation4 + $0x90] sm:$0xf] }
 0x5f6   : > { %4980 = vrot.lane.b32.xlu1 %v4719_v40, %s10923_s15  ;;  %7478 = vst.msk [vmem:[#allocation4 + $0xb2] sm:$0x1] %vm481_vm2, %v7439_v35  ;;  %v9388_v35 = vld [vmem:[%s15564_s9 + $0x40] sm:$0xff] }
 0x5f7   : > { %5572 = vrot.lane.b32.xlu0 %v5539_v29, %s10925_s17 }
 0x5f8   : > { %v7211_v54 = vpop.permute.xlu1 %7210 }
 0x5f9   : > { %7249 = vst.msk [vmem:[#allocation4 + $0xb5] sm:$0x1] %vm481_vm2, %v7211_v54  ;;  %v4741_v52 = vpop.permute.xlu0 %4740  ;;  %v9389_v54 = vld [vmem:[%s15564_s9 + $0x48] sm:$0xff] }
 0x5fa   : > { %5210 = vrot.lane.b32.xlu1 %v4719_v40, %s10924_s16  ;;  %v14135_v14 = vld [vmem:[#allocation2 + $0x108] sm:$0xff]  ;;  %4778 = vst.msk [vmem:[#allocation4 + $0x89] sm:$0x1] %vm481_vm2, %v4741_v52 }
 0x5fb   : > { %v14137_v12 = vld [vmem:[#allocation2 + $0x109] sm:$0xff]  ;;  %5802 = vrot.lane.b32.xlu0 %v5539_v29, %s10923_s15  ;;  %7994 = vst.msk [vmem:[#allocation3 + $0x210] sm:$0xff] %vm472_vm0, %v14135_v14 }
 0x5fc   : > { %8632 = vst.msk [vmem:[#allocation3 + $0x1e8] sm:$0xff] %vm472_vm0, %v14137_v12  ;;  %v7753_v37 = vld [vmem:[#allocation4 + $0x94] sm:$0xf]  ;;  %v7443_v6 = vpop.permute.xlu1 %7442 }
 0x5fd   : > { %v7862_v9 = vcombine.low %v7752_v43, %v7753_v37  ;;  %7480 = vst.msk [vmem:[#allocation4 + $0xba] sm:$0x1] %vm481_vm2, %v7443_v6  ;;  %v4745_v62 = vpop.permute.xlu0 %4744  ;;  %v7191_v43 = vrot.slane %v13766_v11, %v13144_v17  ;;  %v9390_v17 = vld [vmem:[%s15564_s9 + $0x50] sm:$0xff]  ;;  %v9391_v11 = vld [vmem:[%s15564_s9 + $0x58] sm:$0xff] }
 0x5fe   : > { %6398 = vrot.lane.b32.xlu1 %v6367_v2, %s10925_s17  ;;  %4780 = vst.msk [vmem:[#allocation4 + $0xc1] sm:$0x1] %vm481_vm2, %v4745_v62  ;;  %v9392_v62 = vld [vmem:[%s15564_s9 + $0x60] sm:$0xff] }
 0x5ff   : > { %7926 = vst.msk [vmem:[#allocation2 + $0xf1] sm:$0xff] %vm472_vm0, %v7862_v9  ;;  %6032 = vrot.lane.b32.xlu0 %v5539_v29, %s10924_s16  ;;  %v10819_v29 = vpack.c.bf16 %v9387_v51, %v9386_v13  ;;  %v10825_v9 = vpack.c.bf16 %v9391_v11, %v9390_v17  ;;  %v9028_v51 = vld [vmem:[#allocation2 + $0x31] sm:$0xff] }
 0x600   : > { %v7673_v56 = vpop.permute.xlu1 %7672  ;;  %v9402_v17 = vld [vmem:[%s15564_s9 + $0xb0] sm:$0xff] }
 0x601   : > { %7710 = vst.msk [vmem:[#allocation4 + $0xbb] sm:$0x1] %vm481_vm2, %v7673_v56  ;;  %v4971_v22 = vpop.permute.xlu0 %4970  ;;  %v9393_v56 = vld [vmem:[%s15564_s9 + $0x68] sm:$0xff] }
 0x602   : > { %6628 = vrot.lane.b32.xlu1 %v6367_v2, %s10923_s15  ;;  %5008 = vst.msk [vmem:[#allocation4 + $0x8a] sm:$0x1] %vm481_vm2, %v4971_v22  ;;  %v10828_v30 = vpack.c.bf16 %v9393_v56, %v9392_v62  ;;  %v14322_v56 = vld [vmem:[#allocation2 + $0x50] sm:$0xff] }
 0x603   : > { %7220 = vrot.lane.b32.xlu0 %v14096_v55, %s10925_s17 }
 0x604   : > { %v7447_v33 = vpop.permute.xlu1 %7446 }
 0x605   : > { %7482 = vst.msk [vmem:[#allocation4 + $0xf2] sm:$0x1] %vm481_vm2, %v7447_v33  ;;  %v4975_v32 = vpop.permute.xlu0 %4974  ;;  %v9395_v33 = vld [vmem:[%s15564_s9 + $0x78] sm:$0xff] }
 0x606   : > { %6858 = vrot.lane.b32.xlu1 %v6367_v2, %s10924_s16  ;;  %v14165_v5 = vld [vmem:[#allocation2 + $0xf0] sm:$0xff]  ;;  %5010 = vst.msk [vmem:[#allocation4 + $0xc2] sm:$0x1] %vm481_vm2, %v4975_v32 }
 0x607   : > { %v14167_v31 = vld [vmem:[#allocation2 + $0xf1] sm:$0xff]  ;;  %7444 = vrot.lane.b32.xlu0 %v14069_v27, %s10923_s15  ;;  %7992 = vst.msk [vmem:[#allocation3 + $0x1e0] sm:$0xff] %vm472_vm0, %v14165_v5 }
 0x608   : > { %8630 = vst.msk [vmem:[#allocation3 + $0x1b8] sm:$0xff] %vm472_vm0, %v14167_v31  ;;  %v7677_v55 = vpop.permute.xlu1 %7676 }
 0x609   : > { %7712 = vst.msk [vmem:[#allocation4 + $0xf3] sm:$0x1] %vm481_vm2, %v7677_v55  ;;  %v5201_v48 = vpop.permute.xlu0 %5200  ;;  %v10831_v55 = vpack.c.bf16 %v9395_v33, %v9394_v63  ;;  %v9404_v63 = vld [vmem:[%s15564_s9 + $0xc0] sm:$0xff]  ;;  %v9405_v33 = vld [vmem:[%s15564_s9 + $0xc8] sm:$0xff] }
 0x60a   : > { %5574 = vrot.lane.b32.xlu1 %v5543_v8, %s10925_s17  ;;  %5238 = vst.msk [vmem:[#allocation4 + $0x8b] sm:$0x1] %vm481_vm2, %v5201_v48 }
 0x60b   : > { %7674 = vrot.lane.b32.xlu0 %v14069_v27, %s10924_s16  ;;  %v9385_v27 = vld [vmem:[%s15564_s9 + $0x28] sm:$0xff] }
 0x60c   : > { %v4743_v59 = vpop.permute.xlu1 %4742  ;;  %v10816_v40 = vpack.c.bf16 %v9385_v27, %v9384_v25  ;;  %v9399_v25 = vld [vmem:[%s15564_s9 + $0x98] sm:$0xff] }
 0x60d   : > { %4779 = vst.msk [vmem:[#allocation4 + $0x8d] sm:$0x1] %vm481_vm2, %v4743_v59  ;;  %v5205_v0 = vpop.permute.xlu0 %5204 }
 0x60e   : > { %5804 = vrot.lane.b32.xlu1 %v5543_v8, %s10923_s15  ;;  %5240 = vst.msk [vmem:[#allocation4 + $0xc3] sm:$0x1] %vm481_vm2, %v5205_v0  ;;  %10817 = vmatpush1.bf16.msra.mxu1 %v10816_v40  ;;  %v9398_v0 = vld [vmem:[%s15564_s9 + $0x90] sm:$0xff] }
 0x60f   : > { %7448 = vrot.lane.b32.xlu0 %v14084_v23, %s10923_s15  ;;  %10818 = vmatprep.subr.bf16.mxu1 %v10922_v4 }
 0x610   : > { %v4747_v24 = vpop.permute.xlu1 %4746 }
 0x611   : > { %4781 = vst.msk [vmem:[#allocation4 + $0xc5] sm:$0x1] %vm481_vm2, %v4747_v24  ;;  %v6389_v34 = vpop.permute.xlu0 %6388  ;;  %v7750_v61 = vld [vmem:[#allocation4 + $0x88] sm:$0xf] }
 0x612   : > { %6034 = vrot.lane.b32.xlu1 %v5543_v8, %s10924_s16  ;;  %6426 = vst.msk [vmem:[#allocation4 + $0xa9] sm:$0x1] %vm481_vm2, %v6389_v34  ;;  %10820 = vmatpush1.bf16.msra.mxu1 %v10819_v29  ;;  %v9397_v8 = vld [vmem:[%s15564_s9 + $0x88] sm:$0xff]  ;;  %v10837_v34 = vpack.c.bf16 %v9399_v25, %v9398_v0  ;;  %v9400_v29 = vld [vmem:[%s15564_s9 + $0xa0] sm:$0xff] }
 0x613   : > { %7678 = vrot.lane.b32.xlu0 %v14084_v23, %s10924_s16  ;;  %v10822_v23 = vpack.c.bf16 %v9389_v54, %v9388_v35  ;;  %10821 = vmatprep.subr.bf16.mxu1 %v10922_v4  ;;  %v9401_v35 = vld [vmem:[%s15564_s9 + $0xa8] sm:$0xff] }
 0x614   : > { %v4973_v52 = vpop.permute.xlu1 %4972 }
 0x615   : > { %5009 = vst.msk [vmem:[#allocation4 + $0x8e] sm:$0x1] %vm481_vm2, %v4973_v52  ;;  %v6393_v37 = vpop.permute.xlu0 %6392  ;;  %v7764_v27 = vld [vmem:[#allocation4 + $0xc0] sm:$0xf]  ;;  %v9032_v52 = vld [vmem:[#allocation2 + $0x61] sm:$0xff] }
 0x616   : > { %7222 = vrot.lane.b32.xlu1 %v7191_v43, %s10925_s17  ;;  %6428 = vst.msk [vmem:[#allocation4 + $0xe1] sm:$0x1] %vm481_vm2, %v6393_v37  ;;  %10823 = vmatpush1.bf16.msra.mxu1 %v10822_v23 }
 0x617   : > { %7452 = vrot.lane.b32.xlu0 %v7191_v43, %s10923_s15  ;;  %10824 = vmatprep.subr.bf16.mxu1 %v10922_v4 }
 0x618   : > { %v4977_v6 = vpop.permute.xlu1 %4976 }
 0x619   : > { %5011 = vst.msk [vmem:[#allocation4 + $0xc6] sm:$0x1] %vm481_vm2, %v4977_v6  ;;  %v6619_v2 = vpop.permute.xlu0 %6618  ;;  %v10840_v6 = vpack.c.bf16 %v9401_v35, %v9400_v29 }
 0x61a   : > { %8072 = vrot.lane.b32.xlu1 %v13489_v19, %s10924_s16  ;;  %6656 = vst.msk [vmem:[#allocation4 + $0xaa] sm:$0x1] %vm481_vm2, %v6619_v2  ;;  %10826 = vmatpush1.bf16.msra.mxu1 %v10825_v9 }
 0x61b   : > { %7682 = vrot.lane.b32.xlu0 %v7191_v43, %s10924_s16  ;;  %10827 = vmatprep.subr.bf16.mxu1 %v10922_v4 }
 0x61c   : > { %v5203_v22 = vpop.permute.xlu1 %5202 }
 0x61d   : > { %5239 = vst.msk [vmem:[#allocation4 + $0x8f] sm:$0x1] %vm481_vm2, %v5203_v22  ;;  %v6623_v19 = vpop.permute.xlu0 %6622 }
 0x61e   : > { %8460 = vrot.lane.b32.xlu1 %v13514_v41, %s10925_s17  ;;  %6658 = vst.msk [vmem:[#allocation4 + $0xe2] sm:$0x1] %vm481_vm2, %v6623_v19  ;;  %10829 = vmatpush1.bf16.msra.mxu1 %v10828_v30 }
 0x61f   : > { %8452 = vrot.lane.b32.xlu0 %v13491_v28, %s10925_s17  ;;  %10830 = vmatprep.subr.bf16.mxu1 %v10922_v4  ;;  %v9396_v28 = vld [vmem:[%s15564_s9 + $0x80] sm:$0xff] }
 0x620   : > { %v5207_v1 = vpop.permute.xlu1 %5206  ;;  %v10834_v59 = vpack.c.bf16 %v9397_v8, %v9396_v28  ;;  %v10846_v8 = vpack.c.bf16 %v9405_v33, %v9404_v63  ;;  %v14417_v63 = vld [vmem:[#allocation2 + $0xa8] sm:$0xff] }
 0x621   : > { %5241 = vst.msk [vmem:[#allocation4 + $0xc7] sm:$0x1] %vm481_vm2, %v5207_v1  ;;  %v6849_v32 = vpop.permute.xlu0 %6848 }
 0x622   : > { %8080 = vrot.lane.b32.xlu1 %v13516_v49, %s10924_s16  ;;  %6886 = vst.msk [vmem:[#allocation4 + $0xab] sm:$0x1] %vm481_vm2, %v6849_v32  ;;  %10832 = vmatpush1.bf16.msra.mxu1 %v10831_v55 }
 0x623   : > { %8904 = vrot.lane.b32.xlu0 %v13514_v41, %s10923_s15  ;;  %10833 = vmatprep.subr.bf16.mxu1 %v10922_v4 }
 0x624   : > { %v7751_v50 = vld [vmem:[#allocation4 + $0x8c] sm:$0xf]  ;;  %v6391_v48 = vpop.permute.xlu1 %6390 }
 0x625   : > { %v7861_v53 = vcombine.low %v7750_v61, %v7751_v50  ;;  %6427 = vst.msk [vmem:[#allocation4 + $0xad] sm:$0x1] %vm481_vm2, %v6391_v48  ;;  %v6853_v41 = vpop.permute.xlu0 %6852  ;;  %v9406_v61 = vld [vmem:[%s15564_s9 + $0xd0] sm:$0xff] }
 0x626   : > { %8900 = vrot.lane.b32.xlu1 %v13548_v26, %s10923_s15  ;;  %6888 = vst.msk [vmem:[#allocation4 + $0xe3] sm:$0x1] %vm481_vm2, %v6853_v41  ;;  %10835 = vmatpush1.bf16.msra.mxu1 %v10834_v59  ;;  %v9408_v41 = vld [vmem:[%s15564_s9 + $0xe0] sm:$0xff]  ;;  %v9409_v59 = vld [vmem:[%s15564_s9 + $0xe8] sm:$0xff] }
 0x627   : > { %7925 = vst.msk [vmem:[#allocation2 + $0xe1] sm:$0xff] %vm472_vm0, %v7861_v53  ;;  %9096 = vrot.lane.b32.xlu0 %v13516_v49, %s10925_s17  ;;  %10836 = vmatprep.subr.bf16.mxu1 %v10922_v4 }
 0x628   : > { %v7765_v24 = vld [vmem:[#allocation4 + $0xc4] sm:$0xf]  ;;  %v6395_v40 = vpop.permute.xlu1 %6394 }
 0x629   : > { %v7868_v13 = vcombine.low %v7764_v27, %v7765_v24  ;;  %6429 = vst.msk [vmem:[#allocation4 + $0xe5] sm:$0x1] %vm481_vm2, %v6395_v40  ;;  %v5565_v49 = vpop.permute.xlu0 %5564  ;;  %v7758_v0 = vld [vmem:[#allocation4 + $0xa8] sm:$0xf] }
 0x62a   : > { %9092 = vrot.lane.b32.xlu1 %v9028_v51, %s10925_s17  ;;  %5602 = vst.msk [vmem:[#allocation4 + $0x99] sm:$0x1] %vm481_vm2, %v5565_v49  ;;  %10838 = vmatpush1.bf16.msra.mxu1 %v10837_v34  ;;  %v8644_v40 = vld [vmem:[#allocation2 + $0x1a] sm:$0xff] }
 0x62b   : > { %7932 = vst.msk [vmem:[#allocation2 + $0x139] sm:$0xff] %vm472_vm0, %v7868_v13  ;;  %8908 = vrot.lane.b32.xlu0 %v13901_v57, %s10923_s15  ;;  %10839 = vmatprep.subr.bf16.mxu1 %v10922_v4  ;;  %v10852_v13 = vpack.c.bf16 %v9409_v59, %v9408_v41  ;;  %v9411_v49 = vld [vmem:[%s15564_s9 + $0xf8] sm:$0xff]  ;;  %v7760_v41 = vld [vmem:[#allocation4 + $0xb0] sm:$0xf] }
 0x62c   : > { %v6621_v54 = vpop.permute.xlu1 %6620 }
 0x62d   : > { %6657 = vst.msk [vmem:[#allocation4 + $0xae] sm:$0x1] %vm481_vm2, %v6621_v54  ;;  %v5569_v43 = vpop.permute.xlu0 %5568  ;;  %v7772_v34 = vld [vmem:[#allocation4 + $0xe0] sm:$0xf] }
 0x62e   : > { %8456 = vrot.lane.b32.xlu1 %v13548_v26, %s10925_s17  ;;  %v9234_v37 = vld [vmem:[#allocation2 + $0xda] sm:$0xff]  ;;  %v9235_v23 = vld [vmem:[#allocation2 + $0xe2] sm:$0xff]  ;;  %5604 = vst.msk [vmem:[#allocation4 + $0xd1] sm:$0x1] %vm481_vm2, %v5569_v43  ;;  %10841 = vmatpush1.bf16.msra.mxu1 %v10840_v6 }
 0x62f   : > { %9100 = vrot.lane.b32.xlu0 %v9032_v52, %s10925_s17  ;;  %9266 = vst.msk [vmem:[#allocation3 + $0x160] sm:$0xff] %vm472_vm0, %v9234_v37  ;;  %9267 = vst.msk [vmem:[#allocation3 + $0x178] sm:$0xff] %vm472_vm0, %v9235_v23  ;;  %v9403_v26 = vld [vmem:[%s15564_s9 + $0xb8] sm:$0xff]  ;;  %v14312_v11 = vld [vmem:[#allocation2 + $0xe0] sm:$0xff]  ;;  %10842 = vmatprep.subr.bf16.mxu1 %v10922_v4 }
 0x630   : > { %v14314_v2 = vld [vmem:[#allocation2 + $0xe1] sm:$0xff]  ;;  %v6625_v9 = vpop.permute.xlu1 %6624  ;;  %7991 = vst.msk [vmem:[#allocation3 + $0x1c8] sm:$0xff] %vm472_vm0, %v14312_v11  ;;  %v10843_v22 = vpack.c.bf16 %v9403_v26, %v9402_v17  ;;  %v14384_v43 = vld [vmem:[#allocation2 + $0x78] sm:$0xff] }
 0x631   : > { %8629 = vst.msk [vmem:[#allocation3 + $0x1a0] sm:$0xff] %vm472_vm0, %v14314_v2  ;;  %v5795_v62 = vpop.permute.xlu0 %5794  ;;  %v14394_v17 = vld [vmem:[#allocation2 + $0x79] sm:$0xff] }
 0x632   : > { %6659 = vst.msk [vmem:[#allocation4 + $0xe6] sm:$0x1] %vm481_vm2, %v6625_v9  ;;  %8076 = vrot.lane.b32.xlu1 %v9028_v51, %s10924_s16  ;;  %v14324_v19 = vld [vmem:[#allocation2 + $0x138] sm:$0xff]  ;;  %5832 = vst.msk [vmem:[#allocation4 + $0x9a] sm:$0x1] %vm481_vm2, %v5795_v62  ;;  %10844 = vmatpush1.bf16.msra.mxu1 %v10843_v22  ;;  %v9410_v51 = vld [vmem:[%s15564_s9 + $0xf0] sm:$0xff] }
 0x633   : > { %v14326_v30 = vld [vmem:[#allocation2 + $0x139] sm:$0xff]  ;;  %8906 = vrot.lane.b32.xlu0 %v14322_v56, %s10923_s15  ;;  %7998 = vst.msk [vmem:[#allocation3 + $0x270] sm:$0xff] %vm472_vm0, %v14324_v19  ;;  %10845 = vmatprep.subr.bf16.mxu1 %v10922_v4  ;;  %v10855_v37 = vpack.c.bf16 %v9411_v49, %v9410_v51 }
 0x634   : > { %8636 = vst.msk [vmem:[#allocation3 + $0x248] sm:$0xff] %vm472_vm0, %v14326_v30  ;;  %v6851_v1 = vpop.permute.xlu1 %6850  ;;  %v14452_v51 = vld [vmem:[#allocation2 + $0x32] sm:$0xff] }
 0x635   : > { %6887 = vst.msk [vmem:[#allocation4 + $0xaf] sm:$0x1] %vm481_vm2, %v6851_v1  ;;  %v5799_v32 = vpop.permute.xlu0 %5798 }
 0x636   : > { %8464 = vrot.lane.b32.xlu1 %v13901_v57, %s10925_s17  ;;  %v9328_v55 = vld [vmem:[#allocation3 + $0x160] sm:$0xff]  ;;  %v9331_v28 = vld [vmem:[#allocation3 + $0x178] sm:$0xff]  ;;  %5834 = vst.msk [vmem:[#allocation4 + $0xd2] sm:$0x1] %vm481_vm2, %v5799_v32  ;;  %v9407_v57 = vld [vmem:[%s15564_s9 + $0xd8] sm:$0xff]  ;;  %10847 = vmatpush1.bf16.msra.mxu1 %v10846_v8 }
 0x637   : > { %10646 = vmatprep.mubr.msk.f32.mxu0 %vm472_vm0, %v9328_v55  ;;  %9098 = vrot.lane.b32.xlu0 %v13848_v7, %s10925_s17  ;;  %v10849_v53 = vpack.c.bf16 %v9407_v57, %v9406_v61  ;;  %v14437_v57 = vld [vmem:[#allocation2 + $0x38] sm:$0xff] }
 0x638   : > { %v6855_v50 = vpop.permute.xlu1 %6854  ;;  %10647 = vmatmul.mubr.msk.f32.gmra.mrb[86].mxu0 %vm472_vm0, %v9331_v28  ;;  %10848 = vmatprep.subr.bf16.mxu1 %v10922_v4  ;;  %v14430_v28 = vld [vmem:[#allocation2 + $0xa9] sm:$0xff] }
 0x639   : > { %6889 = vst.msk [vmem:[#allocation4 + $0xe7] sm:$0x1] %vm481_vm2, %v6855_v50  ;;  %v6025_v48 = vpop.permute.xlu0 %6024 }
 0x63a   : > { %8084 = vrot.lane.b32.xlu1 %v9032_v52, %s10924_s16  ;;  %6062 = vst.msk [vmem:[#allocation4 + $0x9b] sm:$0x1] %vm481_vm2, %v6025_v48  ;;  %10850 = vmatpush1.bf16.msra.mxu1 %v10849_v53  ;;  %v8645_v52 = vld [vmem:[#allocation2 + $0x22] sm:$0xff] }
 0x63b   : > { %8716 = vrot.lane.b32.xlu0 %v13837_v15, %s10924_s16  ;;  %10851 = vmatprep.subr.bf16.mxu1 %v10922_v4 }
 0x63c   : > { %v7759_v25 = vld [vmem:[#allocation4 + $0xac] sm:$0xf]  ;;  %v5567_v27 = vpop.permute.xlu1 %5566 }
 0x63d   : > { %v7865_v24 = vcombine.low %v7758_v0, %v7759_v25  ;;  %5603 = vst.msk [vmem:[#allocation4 + $0x9d] sm:$0x1] %vm481_vm2, %v5567_v27  ;;  %v6029_v15 = vpop.permute.xlu0 %6028 }
 0x63e   : > { %8708 = vrot.lane.b32.xlu1 %v8644_v40, %s10924_s16  ;;  %6064 = vst.msk [vmem:[#allocation4 + $0xd3] sm:$0x1] %vm481_vm2, %v6029_v15  ;;  %10853 = vmatpush1.bf16.msra.mxu1 %v10852_v13  ;;  %v8202_v13 = vld [vmem:[#allocation2 + $0x4a] sm:$0xff] }
 0x63f   : > { %7929 = vst.msk [vmem:[#allocation2 + $0x111] sm:$0xff] %vm472_vm0, %v7865_v24  ;;  %8718 = vrot.lane.b32.xlu0 %v13839_v42, %s10924_s16  ;;  %10854 = vmatprep.subr.bf16.mxu1 %v10922_v4 }
 0x640   : > { %v7773_v29 = vld [vmem:[#allocation4 + $0xe4] sm:$0xf]  ;;  %v5571_v35 = vpop.permute.xlu1 %5570 }
 0x641   : > { %v7872_v54 = vcombine.low %v7772_v34, %v7773_v29  ;;  %5605 = vst.msk [vmem:[#allocation4 + $0xd5] sm:$0x1] %vm481_vm2, %v5571_v35  ;;  %v7213_v42 = vpop.permute.xlu0 %7212  ;;  %v14459_v34 = vld [vmem:[#allocation2 + $0x3a] sm:$0xff] }
 0x642   : > { %8710 = vrot.lane.b32.xlu1 %v8645_v52, %s10924_s16  ;;  %7250 = vst.msk [vmem:[#allocation4 + $0xb9] sm:$0x1] %vm481_vm2, %v7213_v42  ;;  %10856 = vmatpush1.bf16.msra.mxu1 %v10855_v37 }
 0x643   : > { %7936 = vst.msk [vmem:[#allocation2 + $0x169] sm:$0xff] %vm472_vm0, %v7872_v54  ;;  %8912 = vrot.lane.b32.xlu0 %v14384_v43, %s10923_s15 }
 0x644   : > { %v5797_v23 = vpop.permute.xlu1 %5796 }
 0x645   : > { %5833 = vst.msk [vmem:[#allocation4 + $0x9e] sm:$0x1] %vm481_vm2, %v5797_v23  ;;  %v7217_v6 = vpop.permute.xlu0 %7216  ;;  %v7768_v27 = vld [vmem:[#allocation4 + $0xd0] sm:$0xf] }
 0x646   : > { %8454 = vrot.lane.b32.xlu1 %v13796_v18, %s10925_s17  ;;  %v14396_v26 = vld [vmem:[#allocation2 + $0x10a] sm:$0xff]  ;;  %v14398_v9 = vld [vmem:[#allocation2 + $0x112] sm:$0xff]  ;;  %7252 = vst.msk [vmem:[#allocation4 + $0xf1] sm:$0x1] %vm481_vm2, %v7217_v6 }
 0x647   : > { %9104 = vrot.lane.b32.xlu0 %v14394_v17, %s10925_s17  ;;  %9270 = vst.msk [vmem:[#allocation3 + $0x1c0] sm:$0xff] %vm472_vm0, %v14396_v26  ;;  %9271 = vst.msk [vmem:[#allocation3 + $0x1d8] sm:$0xff] %vm472_vm0, %v14398_v9  ;;  %v14407_v4 = vld [vmem:[#allocation2 + $0x110] sm:$0xff] }
 0x648   : > { %v14409_v18 = vld [vmem:[#allocation2 + $0x111] sm:$0xff]  ;;  %v5801_v62 = vpop.permute.xlu1 %5800  ;;  %7995 = vst.msk [vmem:[#allocation3 + $0x228] sm:$0xff] %vm472_vm0, %v14407_v4 }
 0x649   : > { %8633 = vst.msk [vmem:[#allocation3 + $0x200] sm:$0xff] %vm472_vm0, %v14409_v18  ;;  %v7441_v22 = vpop.permute.xlu0 %7440  ;;  %v8203_v6 = vld [vmem:[#allocation2 + $0x52] sm:$0xff] }
 0x64a   : > { %5835 = vst.msk [vmem:[#allocation4 + $0xd6] sm:$0x1] %vm481_vm2, %v5801_v62  ;;  %8264 = vrot.lane.b32.xlu1 %v8644_v40, %s10923_s15  ;;  %v14419_v33 = vld [vmem:[#allocation2 + $0x168] sm:$0xff]  ;;  %7479 = vst.msk [vmem:[#allocation4 + $0xb6] sm:$0x1] %vm481_vm2, %v7441_v22 }
 0x64b   : > { %8920 = vrot.lane.b32.xlu0 %v14417_v63, %s10923_s15  ;;  %8002 = vst.msk [vmem:[#allocation3 + $0x2d0] sm:$0xff] %vm472_vm0, %v14419_v33  ;;  %v8608_v1 = vld [vmem:[#allocation2 + $0x169] sm:$0xff] }
 0x64c   : > { %v6027_v32 = vpop.permute.xlu1 %6026  ;;  %8640 = vst.msk [vmem:[#allocation3 + $0x2a8] sm:$0xff] %vm472_vm0, %v8608_v1  ;;  %v14483_v22 = vld [vmem:[#allocation2 + $0x68] sm:$0xff] }
 0x64d   : > { %6063 = vst.msk [vmem:[#allocation4 + $0x9f] sm:$0x1] %vm481_vm2, %v6027_v32  ;;  %v7671_v55 = vpop.permute.xlu0 %7670 }
 0x64e   : > { %8074 = vrot.lane.b32.xlu1 %v13798_v44, %s10924_s16  ;;  %7709 = vst.msk [vmem:[#allocation4 + $0xb7] sm:$0x1] %vm481_vm2, %v7671_v55  ;;  %v7754_v44 = vld [vmem:[#allocation4 + $0x98] sm:$0xf] }
 0x64f   : > { %9112 = vrot.lane.b32.xlu0 %v14430_v28, %s10925_s17 }
 0x650   : > { %v6031_v8 = vpop.permute.xlu1 %6030 }
 0x651   : > { %6065 = vst.msk [vmem:[#allocation4 + $0xd7] sm:$0x1] %vm481_vm2, %v6031_v8  ;;  %v4749_v61 = vpop.permute.xlu0 %4748 }
 0x652   : > { %8266 = vrot.lane.b32.xlu1 %v8645_v52, %s10923_s15  ;;  %4782 = vst.msk [vmem:[#allocation4 + $0xc9] sm:$0x1] %vm481_vm2, %v4749_v61 }
 0x653   : > { %8902 = vrot.lane.b32.xlu0 %v14437_v57, %s10923_s15 }
 0x654   : > { %v7755_v50 = vld [vmem:[#allocation4 + $0x9c] sm:$0xf]  ;;  %v7215_v48 = vpop.permute.xlu1 %7214 }
 0x655   : > { %v7863_v53 = vcombine.low %v7754_v44, %v7755_v50  ;;  %7251 = vst.msk [vmem:[#allocation4 + $0xbd] sm:$0x1] %vm481_vm2, %v7215_v48  ;;  %v7761_v59 = vld [vmem:[#allocation4 + $0xb4] sm:$0xf]  ;;  %v4979_v0 = vpop.permute.xlu0 %4978  ;;  %v9340_v48 = vld [vmem:[#allocation3 + $0x1c0] sm:$0xff] }
 0x656   : > { %8462 = vrot.lane.b32.xlu1 %v14322_v56, %s10925_s17  ;;  %v7866_v25 = vcombine.low %v7760_v41, %v7761_v59  ;;  %5012 = vst.msk [vmem:[#allocation4 + $0xca] sm:$0x1] %vm481_vm2, %v4979_v0  ;;  %v9343_v41 = vld [vmem:[#allocation3 + $0x1d8] sm:$0xff] }
 0x657   : > { %7927 = vst.msk [vmem:[#allocation2 + $0xf9] sm:$0xff] %vm472_vm0, %v7863_v53  ;;  %9094 = vrot.lane.b32.xlu0 %v13912_v46, %s10925_s17  ;;  %v14508_v53 = vld [vmem:[#allocation2 + $0x62] sm:$0xff] }
 0x658   : > { %v7769_v24 = vld [vmem:[#allocation4 + $0xd4] sm:$0xf]  ;;  %v7219_v40 = vpop.permute.xlu1 %7218  ;;  %7930 = vst.msk [vmem:[#allocation2 + $0x121] sm:$0xff] %vm472_vm0, %v7866_v25  ;;  %v14517_v25 = vld [vmem:[#allocation2 + $0x6a] sm:$0xff] }
 0x659   : > { %v7870_v15 = vcombine.low %v7768_v27, %v7769_v24  ;;  %7253 = vst.msk [vmem:[#allocation4 + $0xf5] sm:$0x1] %vm481_vm2, %v7219_v40  ;;  %v5209_v56 = vpop.permute.xlu0 %5208  ;;  %v14525_v24 = vld [vmem:[#allocation2 + $0x90] sm:$0xff] }
 0x65a   : > { %8272 = vrot.lane.b32.xlu1 %v8202_v13, %s10923_s15  ;;  %5242 = vst.msk [vmem:[#allocation4 + $0xcb] sm:$0x1] %vm481_vm2, %v5209_v56 }
 0x65b   : > { %7934 = vst.msk [vmem:[#allocation2 + $0x151] sm:$0xff] %vm472_vm0, %v7870_v15  ;;  %8712 = vrot.lane.b32.xlu0 %v14452_v51, %s10924_s16 }
 0x65c   : > { %v7451_v49 = vpop.permute.xlu1 %7450 }
 0x65d   : > { %7484 = vst.msk [vmem:[#allocation4 + $0xfa] sm:$0x1] %vm481_vm2, %v7451_v49  ;;  %v6397_v29 = vpop.permute.xlu0 %6396  ;;  %v14533_v49 = vld [vmem:[#allocation2 + $0x91] sm:$0xff] }
 0x65e   : > { %8082 = vrot.lane.b32.xlu1 %v13848_v7, %s10924_s16  ;;  %v9236_v35 = vld [vmem:[#allocation2 + $0xf2] sm:$0xff]  ;;  %v9237_v54 = vld [vmem:[#allocation2 + $0xfa] sm:$0xff]  ;;  %6430 = vst.msk [vmem:[#allocation4 + $0xe9] sm:$0x1] %vm481_vm2, %v6397_v29 }
 0x65f   : > { %v14463_v52 = vld [vmem:[#allocation2 + $0xf8] sm:$0xff]  ;;  %8714 = vrot.lane.b32.xlu0 %v14459_v34, %s10924_s16  ;;  %9268 = vst.msk [vmem:[#allocation3 + $0x190] sm:$0xff] %vm472_vm0, %v9236_v35  ;;  %9269 = vst.msk [vmem:[#allocation3 + $0x1a8] sm:$0xff] %vm472_vm0, %v9237_v54  ;;  %v14474_v37 = vld [vmem:[#allocation2 + $0x120] sm:$0xff] }
 0x660   : > { %v14470_v42 = vld [vmem:[#allocation2 + $0xf9] sm:$0xff]  ;;  %7993 = vst.msk [vmem:[#allocation3 + $0x1f8] sm:$0xff] %vm472_vm0, %v14463_v52  ;;  %v7681_v7 = vpop.permute.xlu1 %7680  ;;  %v8602_v23 = vld [vmem:[#allocation2 + $0x121] sm:$0xff]  ;;  %7996 = vst.msk [vmem:[#allocation3 + $0x240] sm:$0xff] %vm472_vm0, %v14474_v37 }
 0x661   : > { %8631 = vst.msk [vmem:[#allocation3 + $0x1d0] sm:$0xff] %vm472_vm0, %v14470_v42  ;;  %8634 = vst.msk [vmem:[#allocation3 + $0x218] sm:$0xff] %vm472_vm0, %v8602_v23  ;;  %v6627_v62 = vpop.permute.xlu0 %6626  ;;  %v14546_v54 = vld [vmem:[#allocation2 + $0xc0] sm:$0xff] }
 0x662   : > { %7714 = vst.msk [vmem:[#allocation4 + $0xfb] sm:$0x1] %vm481_vm2, %v7681_v7  ;;  %8274 = vrot.lane.b32.xlu1 %v8203_v6, %s10923_s15  ;;  %v14485_v1 = vld [vmem:[#allocation2 + $0x150] sm:$0xff]  ;;  %6660 = vst.msk [vmem:[#allocation4 + $0xea] sm:$0x1] %vm481_vm2, %v6627_v62 }
 0x663   : > { %v14487_v32 = vld [vmem:[#allocation2 + $0x151] sm:$0xff]  ;;  %8910 = vrot.lane.b32.xlu0 %v14483_v22, %s10923_s15  ;;  %8000 = vst.msk [vmem:[#allocation3 + $0x2a0] sm:$0xff] %vm472_vm0, %v14485_v1 }
 0x664   : > { %8638 = vst.msk [vmem:[#allocation3 + $0x278] sm:$0xff] %vm472_vm0, %v14487_v32  ;;  %v4751_v55 = vpop.permute.xlu1 %4750 }
 0x665   : > { %4783 = vst.msk [vmem:[#allocation4 + $0xcd] sm:$0x1] %vm481_vm2, %v4751_v55  ;;  %v6857_v8 = vpop.permute.xlu0 %6856 }
 0x666   : > { %8468 = vrot.lane.b32.xlu1 %v14384_v43, %s10925_s17  ;;  %v9334_v61 = vld [vmem:[#allocation3 + $0x190] sm:$0xff]  ;;  %v9337_v44 = vld [vmem:[#allocation3 + $0x1a8] sm:$0xff]  ;;  %6890 = vst.msk [vmem:[#allocation4 + $0xeb] sm:$0x1] %vm481_vm2, %v6857_v8 }
 0x667   : > { %10649 = vmatprep.mubr.msk.f32.mxu0 %vm472_vm0, %v9334_v61  ;;  %9102 = vrot.lane.b32.xlu0 %v13948_v36, %s10925_s17 }
 0x668   : > { %v4981_v50 = vpop.permute.xlu1 %4980  ;;  %10650 = vmatmul.mubr.msk.f32.gmra.mrb[88].mxu0 %vm472_vm0, %v9337_v44 }
 0x669   : > { %5013 = vst.msk [vmem:[#allocation4 + $0xce] sm:$0x1] %vm481_vm2, %v4981_v50  ;;  %10652 = vmatprep.mubr.msk.f32.mxu0 %vm472_vm0, %v9340_v48  ;;  %v5573_v43 = vpop.permute.xlu0 %5572 }
 0x66a   : > { %8088 = vrot.lane.b32.xlu1 %v14394_v17, %s10924_s16  ;;  %5606 = vst.msk [vmem:[#allocation4 + $0xd9] sm:$0x1] %vm481_vm2, %v5573_v43 }
 0x66b   : > { %8720 = vrot.lane.b32.xlu0 %v14508_v53, %s10924_s16 }
 0x66c   : > { %v5211_v59 = vpop.permute.xlu1 %5210  ;;  %10653 = vmatmul.mubr.msk.f32.gmra.mrb[90].mxu0 %vm472_vm0, %v9343_v41 }
 0x66d   : > { %5243 = vst.msk [vmem:[#allocation4 + $0xcf] sm:$0x1] %vm481_vm2, %v5211_v59  ;;  %v5803_v0 = vpop.permute.xlu0 %5802  ;;  %v7774_v50 = vld [vmem:[#allocation4 + $0xe8] sm:$0xf]  ;;  %v14576_v59 = vld [vmem:[#allocation2 + $0x80] sm:$0xff] }
 0x66e   : > { %8476 = vrot.lane.b32.xlu1 %v14417_v63, %s10925_s17  ;;  %5836 = vst.msk [vmem:[#allocation4 + $0xda] sm:$0x1] %vm481_vm2, %v5803_v0  ;;  %v7766_v63 = vld [vmem:[#allocation4 + $0xc8] sm:$0xf] }
 0x66f   : > { %8722 = vrot.lane.b32.xlu0 %v14517_v25, %s10924_s16 }
 0x670   : > { %v6399_v17 = vpop.permute.xlu1 %6398 }
 0x671   : > { %6431 = vst.msk [vmem:[#allocation4 + $0xed] sm:$0x1] %vm481_vm2, %v6399_v17  ;;  %v6033_v27 = vpop.permute.xlu0 %6032  ;;  %v7762_v17 = vld [vmem:[#allocation4 + $0xb8] sm:$0xf] }
 0x672   : > { %8096 = vrot.lane.b32.xlu1 %v14430_v28, %s10924_s16  ;;  %6066 = vst.msk [vmem:[#allocation4 + $0xdb] sm:$0x1] %vm481_vm2, %v6033_v27 }
 0x673   : > { %8916 = vrot.lane.b32.xlu0 %v14525_v24, %s10923_s15 }
 0x674   : > { %v7767_v40 = vld [vmem:[#allocation4 + $0xcc] sm:$0xf]  ;;  %v6629_v15 = vpop.permute.xlu1 %6628 }
 0x675   : > { %v7869_v13 = vcombine.low %v7766_v63, %v7767_v40  ;;  %6661 = vst.msk [vmem:[#allocation4 + $0xee] sm:$0x1] %vm481_vm2, %v6629_v15  ;;  %v7221_v56 = vpop.permute.xlu0 %7220 }
 0x676   : > { %8458 = vrot.lane.b32.xlu1 %v14437_v57, %s10925_s17  ;;  %7254 = vst.msk [vmem:[#allocation4 + $0xf9] sm:$0x1] %vm481_vm2, %v7221_v56  ;;  %v14594_v56 = vld [vmem:[#allocation2 + $0x7a] sm:$0xff] }
 0x677   : > { %7933 = vst.msk [vmem:[#allocation2 + $0x141] sm:$0xff] %vm472_vm0, %v7869_v13  ;;  %v14537_v28 = vpop.f32.mrb[72].mxu0  ;;  %9108 = vrot.lane.b32.xlu0 %v14533_v49, %s10925_s17 }
 0x678   : > { %v14541_v29 = vpop.f32.mrb[73].mxu0  ;;  %v6859_v35 = vpop.permute.xlu1 %6858 }
 0x679   : > { %6891 = vst.msk [vmem:[#allocation4 + $0xef] sm:$0x1] %vm481_vm2, %v6859_v35  ;;  %v7445_v57 = vpop.permute.xlu0 %7444 }
 0x67a   : > { %8268 = vrot.lane.b32.xlu1 %v14452_v51, %s10923_s15  ;;  %7481 = vst.msk [vmem:[#allocation4 + $0xbe] sm:$0x1] %vm481_vm2, %v7445_v57  ;;  %v14558_v51 = vld [vmem:[#allocation2 + $0xc1] sm:$0xff] }
 0x67b   : > { %v14549_v7 = vpop.f32.mrb[74].mxu0  ;;  %8924 = vrot.lane.b32.xlu0 %v14546_v54, %s10923_s15 }
 0x67c   : > { %v14553_v23 = vpop.f32.mrb[75].mxu0  ;;  %v5575_v6 = vpop.permute.xlu1 %5574 }
 0x67d   : > { %5607 = vst.msk [vmem:[#allocation4 + $0xdd] sm:$0x1] %vm481_vm2, %v5575_v6  ;;  %v7675_v62 = vpop.permute.xlu0 %7674 }
 0x67e   : > { %8078 = vrot.lane.b32.xlu1 %v13912_v46, %s10924_s16  ;;  %v9242_v55 = vld [vmem:[#allocation2 + $0x13a] sm:$0xff]  ;;  %v9243_v8 = vld [vmem:[#allocation2 + $0x142] sm:$0xff]  ;;  %7711 = vst.msk [vmem:[#allocation4 + $0xbf] sm:$0x1] %vm481_vm2, %v7675_v62 }
 0x67f   : > { %9116 = vrot.lane.b32.xlu0 %v14558_v51, %s10925_s17  ;;  %9274 = vst.msk [vmem:[#allocation3 + $0x220] sm:$0xff] %vm472_vm0, %v9242_v55  ;;  %9275 = vst.msk [vmem:[#allocation3 + $0x238] sm:$0xff] %vm472_vm0, %v9243_v8  ;;  %v14565_v61 = vld [vmem:[#allocation2 + $0x140] sm:$0xff] }
 0x680   : > { %v14567_v44 = vld [vmem:[#allocation2 + $0x141] sm:$0xff]  ;;  %v7775_v46 = vld [vmem:[#allocation4 + $0xec] sm:$0xf]  ;;  %v5805_v48 = vpop.permute.xlu1 %5804  ;;  %7999 = vst.msk [vmem:[#allocation3 + $0x288] sm:$0xff] %vm472_vm0, %v14565_v61 }
 0x681   : > { %8637 = vst.msk [vmem:[#allocation3 + $0x260] sm:$0xff] %vm472_vm0, %v14567_v44  ;;  %v7873_v43 = vcombine.low %v7774_v50, %v7775_v46  ;;  %v7449_v41 = vpop.permute.xlu0 %7448  ;;  %v7776_v46 = vld [vmem:[#allocation4 + $0xf0] sm:$0xf] }
 0x682   : > { %5837 = vst.msk [vmem:[#allocation4 + $0xde] sm:$0x1] %vm481_vm2, %v5805_v48  ;;  %8270 = vrot.lane.b32.xlu1 %v14459_v34, %s10923_s15  ;;  %7483 = vst.msk [vmem:[#allocation4 + $0xf6] sm:$0x1] %vm481_vm2, %v7449_v41  ;;  %v14614_v41 = vld [vmem:[#allocation2 + $0x82] sm:$0xff] }
 0x683   : > { %7937 = vst.msk [vmem:[#allocation2 + $0x171] sm:$0xff] %vm472_vm0, %v7873_v43  ;;  %8914 = vrot.lane.b32.xlu0 %v14576_v59, %s10923_s15 }
 0x684   : > { %v6035_v0 = vpop.permute.xlu1 %6034 }
 0x685   : > { %6067 = vst.msk [vmem:[#allocation4 + $0xdf] sm:$0x1] %vm481_vm2, %v6035_v0  ;;  %v7763_v27 = vld [vmem:[#allocation4 + $0xbc] sm:$0xf]  ;;  %v7679_v63 = vpop.permute.xlu0 %7678  ;;  %v14586_v40 = vpop.f32.mrb[76].mxu0 }
 0x686   : > { %8466 = vrot.lane.b32.xlu1 %v14483_v22, %s10925_s17  ;;  %v7867_v34 = vcombine.low %v7762_v17, %v7763_v27  ;;  %7713 = vst.msk [vmem:[#allocation4 + $0xf7] sm:$0x1] %vm481_vm2, %v7679_v63  ;;  %15571 = vst [vmem:[#allocation11_spill] sm:$0xff] %v14586_v40  ;;  %v14590_v15 = vpop.f32.mrb[77].mxu0 }
 0x687   : > { %9106 = vrot.lane.b32.xlu0 %v13990_v38, %s10925_s17  ;;  %15572 = vst [vmem:[#allocation12_spill] sm:$0xff] %v14590_v15  ;;  %v14725_v15 = vld [vmem:[#allocation2 + $0x9a] sm:$0xff] }
 0x688   : > { %v7223_v13 = vpop.permute.xlu1 %7222  ;;  %7931 = vst.msk [vmem:[#allocation2 + $0x129] sm:$0xff] %vm472_vm0, %v7867_v34 }
 0x689   : > { %7255 = vst.msk [vmem:[#allocation4 + $0xfd] sm:$0x1] %vm481_vm2, %v7223_v13  ;;  %v7453_v22 = vpop.permute.xlu0 %7452 }
 0x68a   : > { %8276 = vrot.lane.b32.xlu1 %v14508_v53, %s10923_s15  ;;  %v9246_v35 = vld [vmem:[#allocation2 + $0x16a] sm:$0xff]  ;;  %v9247_v57 = vld [vmem:[#allocation2 + $0x172] sm:$0xff]  ;;  %7485 = vst.msk [vmem:[#allocation4 + $0xfe] sm:$0x1] %vm481_vm2, %v7453_v22 }
 0x68b   : > { %v14598_v6 = vld [vmem:[#allocation2 + $0x170] sm:$0xff]  ;;  %8724 = vrot.lane.b32.xlu0 %v14594_v56, %s10924_s16  ;;  %9278 = vst.msk [vmem:[#allocation3 + $0x280] sm:$0xff] %vm472_vm0, %v9246_v35  ;;  %9279 = vst.msk [vmem:[#allocation3 + $0x298] sm:$0xff] %vm472_vm0, %v9247_v57  ;;  %v7770_v53 = vld [vmem:[#allocation4 + $0xd8] sm:$0xf] }
 0x68c   : > { %v14605_v62 = vld [vmem:[#allocation2 + $0x171] sm:$0xff]  ;;  %8003 = vst.msk [vmem:[#allocation3 + $0x2e8] sm:$0xff] %vm472_vm0, %v14598_v6  ;;  %v7771_v55 = vld [vmem:[#allocation4 + $0xdc] sm:$0xf]  ;;  %v8073_v8 = vpop.permute.xlu1 %8072  ;;  %v7778_v35 = vld [vmem:[#allocation4 + $0xf8] sm:$0xf] }
 0x68d   : > { %8641 = vst.msk [vmem:[#allocation3 + $0x2c0] sm:$0xff] %vm472_vm0, %v14605_v62  ;;  %v7871_v50 = vcombine.low %v7770_v53, %v7771_v55  ;;  %v7777_v48 = vld [vmem:[#allocation4 + $0xf4] sm:$0xf]  ;;  %v7683_v43 = vpop.permute.xlu0 %7682 }
 0x68e   : > { %8166 = vst.msk [vmem:[#allocation3 + $0x30] sm:$0xff] %vm807_vm3, %v8073_v8  ;;  %8086 = vrot.lane.b32.xlu1 %v13948_v36, %s10924_s16  ;;  %v7874_v0 = vcombine.low %v7776_v46, %v7777_v48 }
 0x68f   : > { %7935 = vst.msk [vmem:[#allocation2 + $0x159] sm:$0xff] %vm472_vm0, %v7871_v50  ;;  %8726 = vrot.lane.b32.xlu0 %v14614_v41, %s10924_s16  ;;  %v14622_v27 = vld [vmem:[#allocation2 + $0x122] sm:$0xff]  ;;  %v14624_v63 = vld [vmem:[#allocation2 + $0x12a] sm:$0xff] }
 0x690   : > { %7715 = vst.msk [vmem:[#allocation4 + $0xff] sm:$0x1] %vm481_vm2, %v7683_v43  ;;  %v14620_v17 = vpop.permute.xlu1 %8460  ;;  %v14626_v34 = vld [vmem:[#allocation2 + $0x128] sm:$0xff] }
 0x691   : > { %7938 = vst.msk [vmem:[#allocation2 + $0x181] sm:$0xff] %vm472_vm0, %v7874_v0  ;;  %9272 = vst.msk [vmem:[#allocation3 + $0x1f0] sm:$0xff] %vm472_vm0, %v14622_v27  ;;  %v14633_v36 = vld [vmem:[#allocation2 + $0x129] sm:$0xff]  ;;  %v8453_v13 = vpop.permute.xlu0 %8452 }
 0x692   : > { %9273 = vst.msk [vmem:[#allocation3 + $0x208] sm:$0xff] %vm472_vm0, %v14624_v63  ;;  %7997 = vst.msk [vmem:[#allocation3 + $0x258] sm:$0xff] %vm472_vm0, %v14626_v34  ;;  %8278 = vrot.lane.b32.xlu1 %v14517_v25, %s10923_s15 }
 0x693   : > { %8635 = vst.msk [vmem:[#allocation3 + $0x230] sm:$0xff] %vm472_vm0, %v14633_v36  ;;  %8922 = vrot.lane.b32.xlu0 %v14013_v39, %s10923_s15 }
 0x694   : > { %8548 = vst.msk [vmem:[#allocation3] sm:$0xff] %vm1193_vm5, %v8453_v13  ;;  %v8081_v22 = vpop.permute.xlu1 %8080 }
 0x695   : > { %8170 = vst.msk [vmem:[#allocation3 + $0x90] sm:$0xff] %vm807_vm3, %v8081_v22  ;;  %v14647_v53 = vpop.permute.xlu0 %8904  ;;  %v9352_v22 = vld [vmem:[#allocation3 + $0x220] sm:$0xff] }
 0x696   : > { %8472 = vrot.lane.b32.xlu1 %v14525_v24, %s10925_s17  ;;  %v9244_v25 = vld [vmem:[#allocation2 + $0x152] sm:$0xff]  ;;  %v9245_v55 = vld [vmem:[#allocation2 + $0x15a] sm:$0xff] }
 0x697   : > { %v7779_v57 = vld [vmem:[#allocation4 + $0xfc] sm:$0xf]  ;;  %9114 = vrot.lane.b32.xlu0 %v14020_v20, %s10925_s17  ;;  %9276 = vst.msk [vmem:[#allocation3 + $0x250] sm:$0xff] %vm472_vm0, %v9244_v25  ;;  %9277 = vst.msk [vmem:[#allocation3 + $0x268] sm:$0xff] %vm472_vm0, %v9245_v55  ;;  %v14653_v50 = vld [vmem:[#allocation2 + $0x158] sm:$0xff] }
 0x698   : > { %v7875_v8 = vcombine.low %v7778_v35, %v7779_v57  ;;  %v14655_v46 = vld [vmem:[#allocation2 + $0x159] sm:$0xff]  ;;  %v14657_v48 = vpop.permute.xlu1 %8900  ;;  %8001 = vst.msk [vmem:[#allocation3 + $0x2b8] sm:$0xff] %vm472_vm0, %v14653_v50  ;;  %v14665_v0 = vld [vmem:[#allocation2 + $0x181] sm:$0xff]  ;;  %v14672_v35 = vld [vmem:[#allocation2 + $0xaa] sm:$0xff] }
 0x699   : > { %v9346_v43 = vld [vmem:[#allocation3 + $0x1f0] sm:$0xff]  ;;  %v9349_v24 = vld [vmem:[#allocation3 + $0x208] sm:$0xff]  ;;  %8639 = vst.msk [vmem:[#allocation3 + $0x290] sm:$0xff] %vm472_vm0, %v14655_v46  ;;  %v14669_v13 = vpop.permute.xlu0 %9096  ;;  %8642 = vst.msk [vmem:[#allocation3 + $0x2d8] sm:$0xff] %vm472_vm0, %v14665_v0 }
 0x69a   : > { %7939 = vst.msk [vmem:[#allocation2 + $0x189] sm:$0xff] %vm472_vm0, %v7875_v8  ;;  %10655 = vmatprep.mubr.msk.f32.mxu0 %vm472_vm0, %v9346_v43  ;;  %8092 = vrot.lane.b32.xlu1 %v14533_v49, %s10924_s16  ;;  %v9355_v25 = vld [vmem:[#allocation3 + $0x238] sm:$0xff]  ;;  %v14682_v8 = vld [vmem:[#allocation2 + $0xb2] sm:$0xff] }
 0x69b   : > { %10656 = vmatmul.mubr.msk.f32.gmra.mrb[92].mxu0 %vm472_vm0, %v9349_v24  ;;  %8732 = vrot.lane.b32.xlu0 %v14672_v35, %s10924_s16 }
 0x69c   : > { %10658 = vmatprep.mubr.msk.f32.mxu0 %vm472_vm0, %v9352_v22  ;;  %v9093_v57 = vpop.permute.xlu1 %9092 }
 0x69d   : > { %v8909_v49 = vpop.permute.xlu0 %8908  ;;  %v14684_v43 = vpop.f32.mrb[78].mxu0 }
 0x69e   : > { %8480 = vrot.lane.b32.xlu1 %v14546_v54, %s10925_s17  ;;  %v9358_v55 = vld [vmem:[#allocation3 + $0x250] sm:$0xff]  ;;  %15573 = vst [vmem:[#allocation13_spill] sm:$0xff] %v14684_v43  ;;  %v14691_v22 = vpop.f32.mrb[79].mxu0  ;;  %v9361_v54 = vld [vmem:[#allocation3 + $0x268] sm:$0xff]  ;;  %v9364_v43 = vld [vmem:[#allocation3 + $0x280] sm:$0xff] }
 0x69f   : > { %10659 = vmatmul.mubr.msk.f32.gmra.mrb[94].mxu0 %vm472_vm0, %v9355_v25  ;;  %8734 = vrot.lane.b32.xlu0 %v14682_v8, %s10924_s16  ;;  %15574 = vst [vmem:[#allocation14_spill] sm:$0xff] %v14691_v22 }
 0x6a0   : > { %10661 = vmatprep.mubr.msk.f32.mxu0 %vm472_vm0, %v9358_v55  ;;  %v14689_v24 = vpop.permute.xlu1 %8456 }
 0x6a1   : > { %v9248_v60 = vld [vmem:[#allocation2 + $0x182] sm:$0xff]  ;;  %v9249_v58 = vld [vmem:[#allocation2 + $0x18a] sm:$0xff]  ;;  %v9101_v55 = vpop.permute.xlu0 %9100 }
 0x6a2   : > { %9280 = vst.msk [vmem:[#allocation3 + $0x2b0] sm:$0xff] %vm472_vm0, %v9248_v60  ;;  %9281 = vst.msk [vmem:[#allocation3 + $0x2c8] sm:$0xff] %vm472_vm0, %v9249_v58  ;;  %v14695_v25 = vld [vmem:[#allocation2 + $0x189] sm:$0xff]  ;;  %8100 = vrot.lane.b32.xlu1 %v14558_v51, %s10924_s16 }
 0x6a3   : > { %10662 = vmatmul.mubr.msk.f32.gmra.mrb[96].mxu0 %vm472_vm0, %v9361_v54  ;;  %8643 = vst.msk [vmem:[#allocation3 + $0x2f0] sm:$0xff] %vm472_vm0, %v14695_v25  ;;  %8918 = vrot.lane.b32.xlu0 %v14042_v16, %s10923_s15  ;;  %v9367_v58 = vld [vmem:[#allocation3 + $0x298] sm:$0xff] }
 0x6a4   : > { %10664 = vmatprep.mubr.msk.f32.mxu0 %vm472_vm0, %v9364_v43  ;;  %v8077_v60 = vpop.permute.xlu1 %8076 }
 0x6a5   : > { %8168 = vst.msk [vmem:[#allocation3 + $0x60] sm:$0xff] %vm807_vm3, %v8077_v60  ;;  %v14708_v51 = vpop.permute.xlu0 %8906 }
 0x6a6   : > { %8470 = vrot.lane.b32.xlu1 %v14576_v59, %s10925_s17  ;;  %v8654_v59 = vld [vmem:[#allocation2 + $0x92] sm:$0xff] }
 0x6a7   : > { %10665 = vmatmul.mubr.msk.f32.gmra.mrb[98].mxu0 %vm472_vm0, %v9367_v58  ;;  %9110 = vrot.lane.b32.xlu0 %v14049_v3, %s10925_s17 }
 0x6a8   : > { %v14713_v54 = vpop.permute.xlu1 %8464 }
 0x6a9   : > { %v9370_v43 = vld [vmem:[#allocation3 + $0x2b0] sm:$0xff]  ;;  %v9373_v22 = vld [vmem:[#allocation3 + $0x2c8] sm:$0xff]  ;;  %v14718_v60 = vpop.permute.xlu0 %9098 }
 0x6aa   : > { %10667 = vmatprep.mubr.msk.f32.mxu0 %vm472_vm0, %v9370_v43  ;;  %8280 = vrot.lane.b32.xlu1 %v14594_v56, %s10923_s15  ;;  %v8658_v43 = vld [vmem:[#allocation2 + $0xc2] sm:$0xff] }
 0x6ab   : > { %10668 = vmatmul.mubr.msk.f32.gmra.mrb[100].mxu0 %vm472_vm0, %v9373_v22  ;;  %8728 = vrot.lane.b32.xlu0 %v8654_v59, %s10924_s16 }
 0x6ac   : > { %v8085_v58 = vpop.permute.xlu1 %8084 }
 0x6ad   : > { %8172 = vst.msk [vmem:[#allocation3 + $0xc0] sm:$0xff] %vm807_vm3, %v8085_v58  ;;  %v8717_v40 = vpop.permute.xlu0 %8716  ;;  %v9284_v58 = vld [vmem:[#allocation3] sm:$0xff] }
 0x6ae   : > { %8090 = vrot.lane.b32.xlu1 %v13990_v38, %s10924_s16  ;;  %8808 = vst.msk [vmem:[#allocation3 + $0x68] sm:$0xff] %vm807_vm3, %v8717_v40 }
 0x6af   : > { %8730 = vrot.lane.b32.xlu0 %v14725_v15, %s10924_s16  ;;  %9000 = vst.msk [vmem:[#allocation3 + $0x68] sm:$0xff] %vm1000_vm4, %v8909_v49 }
 0x6b0   : > { %v8709_v56 = vpop.permute.xlu1 %8708  ;;  %9192 = vst.msk [vmem:[#allocation3 + $0x68] sm:$0xff] %vm1193_vm5, %v9101_v55 }
 0x6b1   : > { %8804 = vst.msk [vmem:[#allocation3 + $0x8] sm:$0xff] %vm807_vm3, %v8709_v56  ;;  %v8719_v38 = vpop.permute.xlu0 %8718 }
 0x6b2   : > { %8996 = vst.msk [vmem:[#allocation3 + $0x8] sm:$0xff] %vm1000_vm4, %v14657_v48  ;;  %8282 = vrot.lane.b32.xlu1 %v14614_v41, %s10923_s15 }
 0x6b3   : > { %9188 = vst.msk [vmem:[#allocation3 + $0x8] sm:$0xff] %vm1193_vm5, %v9093_v57  ;;  %8926 = vrot.lane.b32.xlu0 %v14063_v21, %s10923_s15 }
 0x6b4   : > { %8809 = vst.msk [vmem:[#allocation3 + $0x80] sm:$0xff] %vm807_vm3, %v8719_v38  ;;  %v8711_v40 = vpop.permute.xlu1 %8710 }
 0x6b5   : > { %8805 = vst.msk [vmem:[#allocation3 + $0x20] sm:$0xff] %vm807_vm3, %v8711_v40  ;;  %v14744_v49 = vpop.permute.xlu0 %8912  ;;  %v14769_v40 = vld [vmem:[#allocation2 + $0xca] sm:$0xff] }
 0x6b6   : > { %8478 = vrot.lane.b32.xlu1 %v14013_v39, %s10925_s17 }
 0x6b7   : > { %v14746_v48 = vpop.f32.mrb[80].mxu0  ;;  %9118 = vrot.lane.b32.xlu0 %v14065_v47, %s10925_s17 }
 0x6b8   : > { %v8455_v41 = vpop.permute.xlu1 %8454  ;;  %v14750_v57 = vpop.f32.mrb[81].mxu0 }
 0x6b9   : > { %8549 = vst.msk [vmem:[#allocation3 + $0x18] sm:$0xff] %vm1193_vm5, %v8455_v41  ;;  %v14755_v55 = vpop.permute.xlu0 %9104 }
 0x6ba   : > { %8288 = vrot.lane.b32.xlu1 %v14672_v35, %s10923_s15  ;;  %v9285_v22 = vld [vmem:[#allocation3 + $0x8] sm:$0xff] }
 0x6bb   : > { %9583 = vmatprep.mubr.f32.mxu1 %v9285_v22  ;;  %v14757_v39 = vpop.f32.mrb[82].mxu0  ;;  %8736 = vrot.lane.b32.xlu0 %v8658_v43, %s10924_s16 }
 0x6bc   : > { %9584 = vmatmul.mubr.f32.vlgmr.msra.gmra.mrb[40].mxu1 %v9284_v58  ;;  %v8265_v56 = vpop.permute.xlu1 %8264  ;;  %v14760_v38 = vpop.f32.mrb[83].mxu0 }
 0x6bd   : > { %8358 = vst.msk [vmem:[#allocation3 + $0x30] sm:$0xff] %vm1000_vm4, %v8265_v56  ;;  %v14767_v35 = vpop.permute.xlu0 %8920 }
 0x6be   : > { %8550 = vst.msk [vmem:[#allocation3 + $0x30] sm:$0xff] %vm1193_vm5, %v14689_v24  ;;  %8098 = vrot.lane.b32.xlu1 %v14020_v20, %s10924_s16 }
 0x6bf   : > { %v14771_v41 = vpop.f32.mrb[84].mxu0  ;;  %8738 = vrot.lane.b32.xlu0 %v14769_v40, %s10924_s16 }
 0x6c0   : > { %v8075_v22 = vpop.permute.xlu1 %8074  ;;  %v14775_v58 = vpop.f32.mrb[85].mxu0 }
 0x6c1   : > { %8167 = vst.msk [vmem:[#allocation3 + $0x48] sm:$0xff] %vm807_vm3, %v8075_v22  ;;  %v14780_v24 = vpop.permute.xlu0 %9112 }
 0x6c2   : > { %8290 = vrot.lane.b32.xlu1 %v14682_v8, %s10923_s15 }
 0x6c3   : > { %8928 = vrot.lane.b32.xlu0 %v14110_v10, %s10923_s15 }
 0x6c4   : > { %v8267_v20 = vpop.permute.xlu1 %8266 }
 0x6c5   : > { %8359 = vst.msk [vmem:[#allocation3 + $0x48] sm:$0xff] %vm1000_vm4, %v8267_v20  ;;  %v8903_v56 = vpop.permute.xlu0 %8902 }
 0x6c6   : > { %8474 = vrot.lane.b32.xlu1 %v14042_v16, %s10925_s17  ;;  %8997 = vst.msk [vmem:[#allocation3 + $0x20] sm:$0xff] %vm1000_vm4, %v8903_v56  ;;  %v9287_v56 = vld [vmem:[#allocation3 + $0x18] sm:$0xff] }
 0x6c7   : > { %9120 = vrot.lane.b32.xlu0 %v14112_v45, %s10925_s17 }
 0x6c8   : > { %v14790_v22 = vpop.permute.xlu1 %8462 }
 0x6c9   : > { %v9095_v8 = vpop.permute.xlu0 %9094 }
 0x6ca   : > { %8284 = vrot.lane.b32.xlu1 %v8654_v59, %s10923_s15  ;;  %9189 = vst.msk [vmem:[#allocation3 + $0x20] sm:$0xff] %vm1193_vm5, %v9095_v8 }
 0x6cb   : > { %8936 = vrot.lane.b32.xlu0 %v14135_v14, %s10923_s15 }
 0x6cc   : > { %v8273_v20 = vpop.permute.xlu1 %8272 }
 0x6cd   : > { %8362 = vst.msk [vmem:[#allocation3 + $0x90] sm:$0xff] %vm1000_vm4, %v8273_v20  ;;  %v8713_v16 = vpop.permute.xlu0 %8712 }
 0x6ce   : > { %8554 = vst.msk [vmem:[#allocation3 + $0x90] sm:$0xff] %vm1193_vm5, %v14713_v54  ;;  %8094 = vrot.lane.b32.xlu1 %v14049_v3, %s10924_s16 }
 0x6cf   : > { %8806 = vst.msk [vmem:[#allocation3 + $0x38] sm:$0xff] %vm807_vm3, %v8713_v16  ;;  %9128 = vrot.lane.b32.xlu0 %v14137_v12, %s10925_s17 }
 0x6d0   : > { %8998 = vst.msk [vmem:[#allocation3 + $0x38] sm:$0xff] %vm1000_vm4, %v14647_v53  ;;  %v8083_v59 = vpop.permute.xlu1 %8082 }
 0x6d1   : > { %9190 = vst.msk [vmem:[#allocation3 + $0x38] sm:$0xff] %vm1193_vm5, %v14669_v13  ;;  %v8715_v54 = vpop.permute.xlu0 %8714  ;;  %v9288_v3 = vld [vmem:[#allocation3 + $0x20] sm:$0xff] }
 0x6d2   : > { %8171 = vst.msk [vmem:[#allocation3 + $0xa8] sm:$0xff] %vm807_vm3, %v8083_v59  ;;  %8286 = vrot.lane.b32.xlu1 %v14725_v15, %s10923_s15  ;;  %8807 = vst.msk [vmem:[#allocation3 + $0x50] sm:$0xff] %vm807_vm3, %v8715_v54  ;;  %9588 = vmatprep.mubr.f32.mxu1 %v9288_v3  ;;  %v14833_v59 = vld [vmem:[#allocation2 + $0x121] sm:$0xff] }
 0x6d3   : > { %8932 = vrot.lane.b32.xlu0 %v14165_v5, %s10923_s15  ;;  %8999 = vst.msk [vmem:[#allocation3 + $0x50] sm:$0xff] %vm1000_vm4, %v14708_v51  ;;  %9589 = vmatmul.mubr.f32.gmra.mrb[42].mxu1 %v9287_v56  ;;  %v9290_v51 = vld [vmem:[#allocation3 + $0x30] sm:$0xff] }
 0x6d4   : > { %v8275_v53 = vpop.permute.xlu1 %8274  ;;  %9191 = vst.msk [vmem:[#allocation3 + $0x50] sm:$0xff] %vm1193_vm5, %v14718_v60  ;;  %v14857_v3 = vld [vmem:[#allocation2 + $0xda] sm:$0xff] }
 0x6d5   : > { %8363 = vst.msk [vmem:[#allocation3 + $0xa8] sm:$0xff] %vm1000_vm4, %v8275_v53  ;;  %v8911_v15 = vpop.permute.xlu0 %8910  ;;  %v14868_v53 = vld [vmem:[#allocation2 + $0xe2] sm:$0xff] }
 0x6d6   : > { %8482 = vrot.lane.b32.xlu1 %v14063_v21, %s10925_s17  ;;  %9001 = vst.msk [vmem:[#allocation3 + $0x80] sm:$0xff] %vm1000_vm4, %v8911_v15 }
 0x6d7   : > { %9124 = vrot.lane.b32.xlu0 %v14167_v31, %s10925_s17 }
 0x6d8   : > { %v14824_v13 = vpop.permute.xlu1 %8468  ;;  %v9291_v8 = vld [vmem:[#allocation3 + $0x38] sm:$0xff] }
 0x6d9   : > { %9593 = vmatprep.mubr.f32.mxu1 %v9291_v8  ;;  %v9103_v60 = vpop.permute.xlu0 %9102  ;;  %v9297_v8 = vld [vmem:[#allocation3 + $0x68] sm:$0xff] }
 0x6da   : > { %8292 = vrot.lane.b32.xlu1 %v8658_v43, %s10923_s15  ;;  %9594 = vmatmul.mubr.f32.gmra.mrb[44].mxu1 %v9290_v51  ;;  %9193 = vst.msk [vmem:[#allocation3 + $0x80] sm:$0xff] %vm1193_vm5, %v9103_v60 }
 0x6db   : > { %8940 = vrot.lane.b32.xlu0 %v14474_v37, %s10923_s15  ;;  %v9294_v20 = vld [vmem:[#allocation3 + $0x50] sm:$0xff] }
 0x6dc   : > { %v8089_v21 = vpop.permute.xlu1 %8088  ;;  %9598 = vmatprep.mubr.f32.mxu1 %v9294_v20 }
 0x6dd   : > { %8174 = vst.msk [vmem:[#allocation3 + $0xf0] sm:$0xff] %vm807_vm3, %v8089_v21  ;;  %v8721_v16 = vpop.permute.xlu0 %8720 }
 0x6de   : > { %8102 = vrot.lane.b32.xlu1 %v14065_v47, %s10924_s16  ;;  %8810 = vst.msk [vmem:[#allocation3 + $0x98] sm:$0xff] %vm807_vm3, %v8721_v16 }
 0x6df   : > { %9132 = vrot.lane.b32.xlu0 %v14833_v59, %s10925_s17  ;;  %9002 = vst.msk [vmem:[#allocation3 + $0x98] sm:$0xff] %vm1000_vm4, %v14744_v49 }
 0x6e0   : > { %v14840_v43 = vpop.permute.xlu1 %8476  ;;  %9194 = vst.msk [vmem:[#allocation3 + $0x98] sm:$0xff] %vm1193_vm5, %v14755_v55 }
 0x6e1   : > { %v8723_v47 = vpop.permute.xlu0 %8722  ;;  %v9300_v60 = vld [vmem:[#allocation3 + $0x80] sm:$0xff] }
 0x6e2   : > { %8294 = vrot.lane.b32.xlu1 %v14769_v40, %s10923_s15  ;;  %8811 = vst.msk [vmem:[#allocation3 + $0xb0] sm:$0xff] %vm807_vm3, %v8723_v47 }
 0x6e3   : > { %8930 = vrot.lane.b32.xlu0 %v14312_v11, %s10923_s15 }
 0x6e4   : > { %v8097_v54 = vpop.permute.xlu1 %8096 }
 0x6e5   : > { %8178 = vst.msk [vmem:[#allocation3 + $0x150] sm:$0xff] %vm807_vm3, %v8097_v54  ;;  %v8917_v49 = vpop.permute.xlu0 %8916 }
 0x6e6   : > { %8484 = vrot.lane.b32.xlu1 %v14110_v10, %s10925_s17 }
 0x6e7   : > { %9122 = vrot.lane.b32.xlu0 %v14314_v2, %s10925_s17  ;;  %v9303_v16 = vld [vmem:[#allocation3 + $0x98] sm:$0xff] }
 0x6e8   : > { %v8459_v55 = vpop.permute.xlu1 %8458 }
 0x6e9   : > { %8551 = vst.msk [vmem:[#allocation3 + $0x48] sm:$0xff] %vm1193_vm5, %v8459_v55  ;;  %v9109_v40 = vpop.permute.xlu0 %9108 }
 0x6ea   : > { %8104 = vrot.lane.b32.xlu1 %v14112_v45, %s10924_s16 }
 0x6eb   : > { %8740 = vrot.lane.b32.xlu0 %v14857_v3, %s10924_s16 }
 0x6ec   : > { %v8269_v56 = vpop.permute.xlu1 %8268 }
 0x6ed   : > { %8360 = vst.msk [vmem:[#allocation3 + $0x60] sm:$0xff] %vm1000_vm4, %v8269_v56  ;;  %v14866_v10 = vpop.permute.xlu0 %8924 }
 0x6ee   : > { %8552 = vst.msk [vmem:[#allocation3 + $0x60] sm:$0xff] %vm1193_vm5, %v14620_v17  ;;  %8492 = vrot.lane.b32.xlu1 %v14135_v14, %s10925_s17 }
 0x6ef   : > { %8742 = vrot.lane.b32.xlu0 %v14868_v53, %s10924_s16 }
 0x6f0   : > { %v8079_v45 = vpop.permute.xlu1 %8078  ;;  %v9293_v15 = vld [vmem:[#allocation3 + $0x48] sm:$0xff] }
 0x6f1   : > { %8169 = vst.msk [vmem:[#allocation3 + $0x78] sm:$0xff] %vm807_vm3, %v8079_v45  ;;  %9599 = vmatmul.mubr.f32.gmra.mrb[46].mxu1 %v9293_v15  ;;  %v14875_v17 = vpop.permute.xlu0 %9116 }
 0x6f2   : > { %9603 = vmatprep.mubr.f32.mxu1 %v9297_v8  ;;  %8112 = vrot.lane.b32.xlu1 %v14137_v12, %s10924_s16 }
 0x6f3   : > { %8938 = vrot.lane.b32.xlu0 %v14407_v4, %s10923_s15 }
 0x6f4   : > { %v8271_v14 = vpop.permute.xlu1 %8270 }
 0x6f5   : > { %8361 = vst.msk [vmem:[#allocation3 + $0x78] sm:$0xff] %vm1000_vm4, %v8271_v14  ;;  %v9296_v51 = vld [vmem:[#allocation3 + $0x60] sm:$0xff]  ;;  %v8915_v21 = vpop.permute.xlu0 %8914 }
 0x6f6   : > { %8553 = vst.msk [vmem:[#allocation3 + $0x78] sm:$0xff] %vm1193_vm5, %v14790_v22  ;;  %9604 = vmatmul.mubr.f32.gmra.mrb[48].mxu1 %v9296_v51  ;;  %8488 = vrot.lane.b32.xlu1 %v14165_v5, %s10925_s17  ;;  %v14925_v14 = vld [vmem:[#allocation2 + $0x169] sm:$0xff] }
 0x6f7   : > { %9608 = vmatprep.mubr.f32.mxu1 %v9300_v60  ;;  %9003 = vst.msk [vmem:[#allocation3 + $0xb0] sm:$0xff] %vm1000_vm4, %v8915_v21  ;;  %9130 = vrot.lane.b32.xlu0 %v14409_v18, %s10925_s17  ;;  %v14947_v21 = vld [vmem:[#allocation2 + $0xf2] sm:$0xff] }
 0x6f8   : > { %v8467_v12 = vpop.permute.xlu1 %8466 }
 0x6f9   : > { %8555 = vst.msk [vmem:[#allocation3 + $0xa8] sm:$0xff] %vm1193_vm5, %v8467_v12  ;;  %v9107_v20 = vpop.permute.xlu0 %9106 }
 0x6fa   : > { %8108 = vrot.lane.b32.xlu1 %v14167_v31, %s10924_s16  ;;  %9195 = vst.msk [vmem:[#allocation3 + $0xb0] sm:$0xff] %vm1193_vm5, %v9107_v20  ;;  %v14956_v20 = vld [vmem:[#allocation2 + $0xfa] sm:$0xff] }
 0x6fb   : > { %8748 = vrot.lane.b32.xlu0 %v14396_v26, %s10924_s16  ;;  %v9302_v26 = vld [vmem:[#allocation3 + $0x90] sm:$0xff] }
 0x6fc   : > { %v8277_v5 = vpop.permute.xlu1 %8276 }
 0x6fd   : > { %8364 = vst.msk [vmem:[#allocation3 + $0xc0] sm:$0xff] %vm1000_vm4, %v8277_v5  ;;  %v9299_v22 = vld [vmem:[#allocation3 + $0x78] sm:$0xff]  ;;  %v8725_v47 = vpop.permute.xlu0 %8724 }
 0x6fe   : > { %8556 = vst.msk [vmem:[#allocation3 + $0xc0] sm:$0xff] %vm1193_vm5, %v14824_v13  ;;  %9609 = vmatmul.mubr.f32.gmra.mrb[50].mxu1 %v9299_v22  ;;  %8496 = vrot.lane.b32.xlu1 %v14474_v37, %s10925_s17  ;;  %v8219_v22 = vld [vmem:[#allocation2 + $0x112] sm:$0xff] }
 0x6ff   : > { %9613 = vmatprep.mubr.f32.mxu1 %v9303_v16  ;;  %8812 = vst.msk [vmem:[#allocation3 + $0xc8] sm:$0xff] %vm807_vm3, %v8725_v47  ;;  %8750 = vrot.lane.b32.xlu0 %v14398_v9, %s10924_s16 }
 0x700   : > { %9004 = vst.msk [vmem:[#allocation3 + $0xc8] sm:$0xff] %vm1000_vm4, %v8917_v49  ;;  %v8087_v31 = vpop.permute.xlu1 %8086  ;;  %v9305_v54 = vld [vmem:[#allocation3 + $0xa8] sm:$0xff] }
 0x701   : > { %9196 = vst.msk [vmem:[#allocation3 + $0xc8] sm:$0xff] %vm1193_vm5, %v9109_v40  ;;  %v8727_v37 = vpop.permute.xlu0 %8726  ;;  %v9306_v13 = vld [vmem:[#allocation3 + $0xb0] sm:$0xff] }
 0x702   : > { %8173 = vst.msk [vmem:[#allocation3 + $0xd8] sm:$0xff] %vm807_vm3, %v8087_v31  ;;  %9614 = vmatmul.mubr.f32.gmra.mrb[52].mxu1 %v9302_v26  ;;  %8116 = vrot.lane.b32.xlu1 %v14833_v59, %s10924_s16  ;;  %8813 = vst.msk [vmem:[#allocation3 + $0xe0] sm:$0xff] %vm807_vm3, %v8727_v37 }
 0x703   : > { %9618 = vmatprep.mubr.f32.mxu1 %v9306_v13  ;;  %8944 = vrot.lane.b32.xlu0 %v14324_v19, %s10923_s15 }
 0x704   : > { %v8279_v9 = vpop.permute.xlu1 %8278 }
 0x705   : > { %8365 = vst.msk [vmem:[#allocation3 + $0xd8] sm:$0xff] %vm1000_vm4, %v8279_v9  ;;  %v8923_v49 = vpop.permute.xlu0 %8922  ;;  %v9308_v40 = vld [vmem:[#allocation3 + $0xc0] sm:$0xff] }
 0x706   : > { %9619 = vmatmul.mubr.f32.gmra.mrb[54].mxu1 %v9305_v54  ;;  %8486 = vrot.lane.b32.xlu1 %v14312_v11, %s10925_s17 }
 0x707   : > { %9136 = vrot.lane.b32.xlu0 %v14326_v30, %s10925_s17 }
 0x708   : > { %v8473_v59 = vpop.permute.xlu1 %8472  ;;  %v9309_v55 = vld [vmem:[#allocation3 + $0xc8] sm:$0xff] }
 0x709   : > { %9623 = vmatprep.mubr.f32.mxu1 %v9309_v55  ;;  %v9115_v56 = vpop.permute.xlu0 %9114  ;;  %v15005_v55 = vld [vmem:[#allocation2 + $0x180] sm:$0xff] }
 0x70a   : > { %8296 = vrot.lane.b32.xlu1 %v14857_v3, %s10923_s15  ;;  %9624 = vmatmul.mubr.f32.gmra.mrb[56].mxu1 %v9308_v40 }
 0x70b   : > { %v14916_v45 = vpop.f32.mrb[86].mxu0  ;;  %8952 = vrot.lane.b32.xlu0 %v14419_v33, %s10923_s15 }
 0x70c   : > { %v8093_v15 = vpop.permute.xlu1 %8092  ;;  %v14920_v11 = vpop.f32.mrb[87].mxu0 }
 0x70d   : > { %8176 = vst.msk [vmem:[#allocation3 + $0x120] sm:$0xff] %vm807_vm3, %v8093_v15  ;;  %v8733_v8 = vpop.permute.xlu0 %8732 }
 0x70e   : > { %8106 = vrot.lane.b32.xlu1 %v14314_v2, %s10924_s16  ;;  %8816 = vst.msk [vmem:[#allocation3 + $0x128] sm:$0xff] %vm807_vm3, %v8733_v8 }
 0x70f   : > { %9144 = vrot.lane.b32.xlu0 %v14925_v14, %s10925_s17  ;;  %9008 = vst.msk [vmem:[#allocation3 + $0x128] sm:$0xff] %vm1000_vm4, %v14866_v10 }
 0x710   : > { %v8481_v3 = vpop.permute.xlu1 %8480  ;;  %9200 = vst.msk [vmem:[#allocation3 + $0x128] sm:$0xff] %vm1193_vm5, %v14875_v17 }
 0x711   : > { %v8735_v51 = vpop.permute.xlu0 %8734 }
 0x712   : > { %8298 = vrot.lane.b32.xlu1 %v14868_v53, %s10923_s15  ;;  %8817 = vst.msk [vmem:[#allocation3 + $0x140] sm:$0xff] %vm807_vm3, %v8735_v51  ;;  %v8218_v53 = vld [vmem:[#allocation2 + $0x10a] sm:$0xff] }
 0x713   : > { %8934 = vrot.lane.b32.xlu0 %v14463_v52, %s10923_s15 }
 0x714   : > { %v8101_v2 = vpop.permute.xlu1 %8100 }
 0x715   : > { %8180 = vst.msk [vmem:[#allocation3 + $0x180] sm:$0xff] %vm807_vm3, %v8101_v2  ;;  %v8919_v10 = vpop.permute.xlu0 %8918 }
 0x716   : > { %8494 = vrot.lane.b32.xlu1 %v14407_v4, %s10925_s17  ;;  %9005 = vst.msk [vmem:[#allocation3 + $0xe0] sm:$0xff] %vm1000_vm4, %v8919_v10 }
 0x717   : > { %9126 = vrot.lane.b32.xlu0 %v14470_v42, %s10925_s17  ;;  %v9321_v2 = vld [vmem:[#allocation3 + $0x128] sm:$0xff] }
 0x718   : > { %v8471_v17 = vpop.permute.xlu1 %8470 }
 0x719   : > { %8557 = vst.msk [vmem:[#allocation3 + $0xd8] sm:$0xff] %vm1193_vm5, %v8471_v17  ;;  %v9111_v60 = vpop.permute.xlu0 %9110 }
 0x71a   : > { %8304 = vrot.lane.b32.xlu1 %v8218_v53, %s10923_s15  ;;  %9197 = vst.msk [vmem:[#allocation3 + $0xe0] sm:$0xff] %vm1193_vm5, %v9111_v60  ;;  %v8220_v60 = vld [vmem:[#allocation2 + $0x122] sm:$0xff] }
 0x71b   : > { %8744 = vrot.lane.b32.xlu0 %v14947_v21, %s10924_s16 }
 0x71c   : > { %v8281_v4 = vpop.permute.xlu1 %8280 }
 0x71d   : > { %8366 = vst.msk [vmem:[#allocation3 + $0xf0] sm:$0xff] %vm1000_vm4, %v8281_v4  ;;  %v8729_v12 = vpop.permute.xlu0 %8728  ;;  %v8668_v4 = vld [vmem:[#allocation2 + $0x13a] sm:$0xff] }
 0x71e   : > { %8558 = vst.msk [vmem:[#allocation3 + $0xf0] sm:$0xff] %vm1193_vm5, %v8473_v59  ;;  %8114 = vrot.lane.b32.xlu1 %v14409_v18, %s10924_s16 }
 0x71f   : > { %8814 = vst.msk [vmem:[#allocation3 + $0xf8] sm:$0xff] %vm807_vm3, %v8729_v12  ;;  %8746 = vrot.lane.b32.xlu0 %v14956_v20, %s10924_s16 }
 0x720   : > { %9006 = vst.msk [vmem:[#allocation3 + $0xf8] sm:$0xff] %vm1000_vm4, %v14767_v35  ;;  %v8091_v5 = vpop.permute.xlu1 %8090  ;;  %v9311_v47 = vld [vmem:[#allocation3 + $0xd8] sm:$0xff] }
 0x721   : > { %9198 = vst.msk [vmem:[#allocation3 + $0xf8] sm:$0xff] %vm1193_vm5, %v14780_v24  ;;  %v8731_v18 = vpop.permute.xlu0 %8730  ;;  %v9312_v16 = vld [vmem:[#allocation3 + $0xe0] sm:$0xff] }
 0x722   : > { %8175 = vst.msk [vmem:[#allocation3 + $0x108] sm:$0xff] %vm807_vm3, %v8091_v5  ;;  %8306 = vrot.lane.b32.xlu1 %v8219_v22, %s10923_s15  ;;  %8815 = vst.msk [vmem:[#allocation3 + $0x110] sm:$0xff] %vm807_vm3, %v8731_v18  ;;  %9628 = vmatprep.mubr.f32.mxu1 %v9312_v16  ;;  %v8669_v22 = vld [vmem:[#allocation2 + $0x142] sm:$0xff]  ;;  %v8221_v16 = vld [vmem:[#allocation2 + $0x12a] sm:$0xff] }
 0x723   : > { %8942 = vrot.lane.b32.xlu0 %v14626_v34, %s10923_s15  ;;  %9007 = vst.msk [vmem:[#allocation3 + $0x110] sm:$0xff] %vm1000_vm4, %v8923_v49  ;;  %9629 = vmatmul.mubr.f32.gmra.mrb[58].mxu1 %v9311_v47 }
 0x724   : > { %v8283_v35 = vpop.permute.xlu1 %8282  ;;  %9199 = vst.msk [vmem:[#allocation3 + $0x110] sm:$0xff] %vm1193_vm5, %v9115_v56 }
 0x725   : > { %8367 = vst.msk [vmem:[#allocation3 + $0x108] sm:$0xff] %vm1000_vm4, %v8283_v35  ;;  %v8927_v24 = vpop.permute.xlu0 %8926  ;;  %v9314_v37 = vld [vmem:[#allocation3 + $0xf0] sm:$0xff] }
 0x726   : > { %8500 = vrot.lane.b32.xlu1 %v14324_v19, %s10925_s17  ;;  %9009 = vst.msk [vmem:[#allocation3 + $0x140] sm:$0xff] %vm1000_vm4, %v8927_v24 }
 0x727   : > { %9134 = vrot.lane.b32.xlu0 %v14633_v36, %s10925_s17 }
 0x728   : > { %v8479_v31 = vpop.permute.xlu1 %8478  ;;  %v9315_v26 = vld [vmem:[#allocation3 + $0xf8] sm:$0xff] }
 0x729   : > { %9633 = vmatprep.mubr.f32.mxu1 %v9315_v26  ;;  %v9119_v13 = vpop.permute.xlu0 %9118 }
 0x72a   : > { %8120 = vrot.lane.b32.xlu1 %v14326_v30, %s10924_s16  ;;  %9634 = vmatmul.mubr.f32.gmra.mrb[60].mxu1 %v9314_v37  ;;  %9201 = vst.msk [vmem:[#allocation3 + $0x140] sm:$0xff] %vm1193_vm5, %v9119_v13  ;;  %v8672_v37 = vld [vmem:[#allocation2 + $0x16a] sm:$0xff] }
 0x72b   : > { %8752 = vrot.lane.b32.xlu0 %v14622_v27, %s10924_s16  ;;  %v9318_v9 = vld [vmem:[#allocation3 + $0x110] sm:$0xff] }
 0x72c   : > { %v8289_v19 = vpop.permute.xlu1 %8288  ;;  %9638 = vmatprep.mubr.f32.mxu1 %v9318_v9 }
 0x72d   : > { %8370 = vst.msk [vmem:[#allocation3 + $0x150] sm:$0xff] %vm1000_vm4, %v8289_v19  ;;  %v8737_v54 = vpop.permute.xlu0 %8736  ;;  %v15067_v19 = vld [vmem:[#allocation2 + $0x172] sm:$0xff] }
 0x72e   : > { %8562 = vst.msk [vmem:[#allocation3 + $0x150] sm:$0xff] %vm1193_vm5, %v8481_v3  ;;  %8508 = vrot.lane.b32.xlu1 %v14419_v33, %s10925_s17 }
 0x72f   : > { %8818 = vst.msk [vmem:[#allocation3 + $0x158] sm:$0xff] %vm807_vm3, %v8737_v54  ;;  %8754 = vrot.lane.b32.xlu0 %v14624_v63, %s10924_s16 }
 0x730   : > { %v8099_v30 = vpop.permute.xlu1 %8098 }
 0x731   : > { %8179 = vst.msk [vmem:[#allocation3 + $0x168] sm:$0xff] %vm807_vm3, %v8099_v30  ;;  %v8739_v27 = vpop.permute.xlu0 %8738  ;;  %v9324_v17 = vld [vmem:[#allocation3 + $0x140] sm:$0xff] }
 0x732   : > { %8128 = vrot.lane.b32.xlu1 %v14925_v14, %s10924_s16  ;;  %8819 = vst.msk [vmem:[#allocation3 + $0x170] sm:$0xff] %vm807_vm3, %v8739_v27 }
 0x733   : > { %8948 = vrot.lane.b32.xlu0 %v14485_v1, %s10923_s15 }
 0x734   : > { %v8291_v49 = vpop.permute.xlu1 %8290 }
 0x735   : > { %8371 = vst.msk [vmem:[#allocation3 + $0x168] sm:$0xff] %vm1000_vm4, %v8291_v49  ;;  %v8929_v33 = vpop.permute.xlu0 %8928  ;;  %v9326_v47 = vld [vmem:[#allocation3 + $0x150] sm:$0xff] }
 0x736   : > { %8490 = vrot.lane.b32.xlu1 %v14463_v52, %s10925_s17  ;;  %9010 = vst.msk [vmem:[#allocation3 + $0x158] sm:$0xff] %vm1000_vm4, %v8929_v33 }
 0x737   : > { %9140 = vrot.lane.b32.xlu0 %v14487_v32, %s10925_s17 }
 0x738   : > { %v8475_v63 = vpop.permute.xlu1 %8474 }
 0x739   : > { %8559 = vst.msk [vmem:[#allocation3 + $0x108] sm:$0xff] %vm1193_vm5, %v8475_v63  ;;  %v9121_v59 = vpop.permute.xlu0 %9120 }
 0x73a   : > { %8300 = vrot.lane.b32.xlu1 %v14947_v21, %s10923_s15  ;;  %9202 = vst.msk [vmem:[#allocation3 + $0x158] sm:$0xff] %vm1193_vm5, %v9121_v59 }
 0x73b   : > { %v15007_v40 = vpop.f32.mrb[88].mxu0  ;;  %8956 = vrot.lane.b32.xlu0 %v15005_v55, %s10923_s15 }
 0x73c   : > { %v15012_v52 = vpop.f32.mrb[89].mxu0  ;;  %v8285_v56 = vpop.permute.xlu1 %8284 }
 0x73d   : > { %8368 = vst.msk [vmem:[#allocation3 + $0x120] sm:$0xff] %vm1000_vm4, %v8285_v56  ;;  %v15019_v15 = vpop.permute.xlu0 %8936 }
 0x73e   : > { %8560 = vst.msk [vmem:[#allocation3 + $0x120] sm:$0xff] %vm1193_vm5, %v14840_v43  ;;  %8110 = vrot.lane.b32.xlu1 %v14470_v42, %s10924_s16 }
 0x73f   : > { %v15021_v8 = vpop.f32.mrb[90].mxu0  ;;  %9148 = vrot.lane.b32.xlu0 %v14665_v0, %s10925_s17 }
 0x740   : > { %v15025_v14 = vpop.f32.mrb[91].mxu0  ;;  %v8095_v3 = vpop.permute.xlu1 %8094  ;;  %v9317_v51 = vld [vmem:[#allocation3 + $0x108] sm:$0xff] }
 0x741   : > { %8177 = vst.msk [vmem:[#allocation3 + $0x138] sm:$0xff] %vm807_vm3, %v8095_v3  ;;  %9639 = vmatmul.mubr.f32.gmra.mrb[62].mxu1 %v9317_v51  ;;  %v15030_v42 = vpop.permute.xlu0 %9128  ;;  %v9327_v5 = vld [vmem:[#allocation3 + $0x158] sm:$0xff] }
 0x742   : > { %8302 = vrot.lane.b32.xlu1 %v14956_v20, %s10923_s15  ;;  %9643 = vmatprep.mubr.f32.mxu1 %v9321_v2 }
 0x743   : > { %8946 = vrot.lane.b32.xlu0 %v14565_v61, %s10923_s15 }
 0x744   : > { %v8287_v43 = vpop.permute.xlu1 %8286 }
 0x745   : > { %8369 = vst.msk [vmem:[#allocation3 + $0x138] sm:$0xff] %vm1000_vm4, %v8287_v43  ;;  %v9320_v0 = vld [vmem:[#allocation3 + $0x120] sm:$0xff]  ;;  %v8933_v10 = vpop.permute.xlu0 %8932  ;;  %v8671_v43 = vld [vmem:[#allocation2 + $0x15a] sm:$0xff] }
 0x746   : > { %8561 = vst.msk [vmem:[#allocation3 + $0x138] sm:$0xff] %vm1193_vm5, %v8479_v31  ;;  %8498 = vrot.lane.b32.xlu1 %v14626_v34, %s10925_s17  ;;  %9644 = vmatmul.mubr.f32.gmra.mrb[64].mxu1 %v9320_v0 }
 0x747   : > { %9648 = vmatprep.mubr.f32.mxu1 %v9324_v17  ;;  %9138 = vrot.lane.b32.xlu0 %v14567_v44, %s10925_s17 }
 0x748   : > { %v8483_v53 = vpop.permute.xlu1 %8482 }
 0x749   : > { %8563 = vst.msk [vmem:[#allocation3 + $0x168] sm:$0xff] %vm1193_vm5, %v8483_v53  ;;  %v9125_v21 = vpop.permute.xlu0 %9124  ;;  %v15111_v53 = vld [vmem:[#allocation2 + $0x188] sm:$0xff] }
 0x74a   : > { %8308 = vrot.lane.b32.xlu1 %v8220_v60, %s10923_s15 }
 0x74b   : > { %8756 = vrot.lane.b32.xlu0 %v8668_v4, %s10924_s16 }
 0x74c   : > { %v8293_v12 = vpop.permute.xlu1 %8292 }
 0x74d   : > { %8372 = vst.msk [vmem:[#allocation3 + $0x180] sm:$0xff] %vm1000_vm4, %v8293_v12  ;;  %v9323_v34 = vld [vmem:[#allocation3 + $0x138] sm:$0xff]  ;;  %v15046_v20 = vpop.permute.xlu0 %8940 }
 0x74e   : > { %8118 = vrot.lane.b32.xlu1 %v14633_v36, %s10924_s16  ;;  %9649 = vmatmul.mubr.f32.gmra.mrb[66].mxu1 %v9323_v34 }
 0x74f   : > { %9653 = vmatprep.mubr.f32.mxu1 %v9327_v5  ;;  %8758 = vrot.lane.b32.xlu0 %v8669_v22, %s10924_s16 }
 0x750   : > { %v8103_v18 = vpop.permute.xlu1 %8102  ;;  %v9329_v30 = vld [vmem:[#allocation3 + $0x168] sm:$0xff] }
 0x751   : > { %8181 = vst.msk [vmem:[#allocation3 + $0x198] sm:$0xff] %vm807_vm3, %v8103_v18  ;;  %v9133_v35 = vpop.permute.xlu0 %9132 }
 0x752   : > { %8310 = vrot.lane.b32.xlu1 %v8221_v16, %s10923_s15  ;;  %9654 = vmatmul.mubr.f32.gmra.mrb[68].mxu1 %v9326_v47 }
 0x753   : > { %8954 = vrot.lane.b32.xlu0 %v14598_v6, %s10923_s15 }
 0x754   : > { %v8295_v36 = vpop.permute.xlu1 %8294 }
 0x755   : > { %8373 = vst.msk [vmem:[#allocation3 + $0x198] sm:$0xff] %vm1000_vm4, %v8295_v36  ;;  %v8931_v24 = vpop.permute.xlu0 %8930 }
 0x756   : > { %8504 = vrot.lane.b32.xlu1 %v14485_v1, %s10925_s17  ;;  %9011 = vst.msk [vmem:[#allocation3 + $0x170] sm:$0xff] %vm1000_vm4, %v8931_v24  ;;  %v8675_v24 = vld [vmem:[#allocation2 + $0x18a] sm:$0xff] }
 0x757   : > { %9146 = vrot.lane.b32.xlu0 %v14605_v62, %s10925_s17 }
 0x758   : > { %v8485_v31 = vpop.permute.xlu1 %8484 }
 0x759   : > { %8564 = vst.msk [vmem:[#allocation3 + $0x180] sm:$0xff] %vm1193_vm5, %v8485_v31  ;;  %v9123_v26 = vpop.permute.xlu0 %9122 }
 0x75a   : > { %8124 = vrot.lane.b32.xlu1 %v14487_v32, %s10924_s16  ;;  %9203 = vst.msk [vmem:[#allocation3 + $0x170] sm:$0xff] %vm1193_vm5, %v9123_v26  ;;  %v9059_v26 = vld [vmem:[#allocation2 + $0x1a1] sm:$0xff] }
 0x75b   : > { %8764 = vrot.lane.b32.xlu0 %v8672_v37, %s10924_s16 }
 0x75c   : > { %v8105_v13 = vpop.permute.xlu1 %8104 }
 0x75d   : > { %8182 = vst.msk [vmem:[#allocation3 + $0x1b0] sm:$0xff] %vm807_vm3, %v8105_v13  ;;  %v8741_v1 = vpop.permute.xlu0 %8740  ;;  %v9376_v13 = vld [vmem:[#allocation3 + $0x2e0] sm:$0xff] }
 0x75e   : > { %8512 = vrot.lane.b32.xlu1 %v15005_v55, %s10925_s17  ;;  %8820 = vst.msk [vmem:[#allocation3 + $0x188] sm:$0xff] %vm807_vm3, %v8741_v1  ;;  %v8670_v55 = vld [vmem:[#allocation2 + $0x152] sm:$0xff]  ;;  %v9379_v1 = vld [vmem:[#allocation3 + $0x2f8] sm:$0xff]  ;;  %10670 = vmatprep.mubr.msk.f32.mxu0 %vm472_vm0, %v9376_v13 }
 0x75f   : > { %8766 = vrot.lane.b32.xlu0 %v15067_v19, %s10924_s16  ;;  %9012 = vst.msk [vmem:[#allocation3 + $0x188] sm:$0xff] %vm1000_vm4, %v8933_v10  ;;  %10671 = vmatmul.mubr.msk.f32.gmra.mrb[102].mxu0 %vm472_vm0, %v9379_v1  ;;  %v9970_v13 = vld [vmem:[%s11135_s28 + $0x8] sm:$0xff] }
 0x760   : > { %v15073_v32 = vpop.permute.xlu1 %8492  ;;  %9204 = vst.msk [vmem:[#allocation3 + $0x188] sm:$0xff] %vm1193_vm5, %v9125_v21  ;;  %v9332_v63 = vld [vmem:[#allocation3 + $0x180] sm:$0xff]  ;;  %v8867_v21 = vld [vmem:[#allocation2 + $0x1a0] sm:$0xff]  ;;  %v10002_v1 = vld [vmem:[%s15158_s23 + $0x8] sm:$0xff] }
 0x761   : > { %v8743_v9 = vpop.permute.xlu0 %8742  ;;  %v9330_v54 = vld [vmem:[#allocation3 + $0x170] sm:$0xff] }
 0x762   : > { %8502 = vrot.lane.b32.xlu1 %v14565_v61, %s10925_s17  ;;  %8821 = vst.msk [vmem:[#allocation3 + $0x1a0] sm:$0xff] %vm807_vm3, %v8743_v9  ;;  %9658 = vmatprep.mubr.f32.mxu1 %v9330_v54  ;;  %v9969_v9 = vld [vmem:[%s11135_s28] sm:$0xff] }
 0x763   : > { %8950 = vrot.lane.b32.xlu0 %v14653_v50, %s10923_s15  ;;  %9659 = vmatmul.mubr.f32.gmra.mrb[70].mxu1 %v9329_v30  ;;  %v10001_v54 = vld [vmem:[%s15158_s23] sm:$0xff] }
 0x764   : > { %v8113_v27 = vpop.permute.xlu1 %8112 }
 0x765   : > { %8186 = vst.msk [vmem:[#allocation3 + $0x210] sm:$0xff] %vm807_vm3, %v8113_v27  ;;  %v15083_v49 = vpop.permute.xlu0 %8938 }
 0x766   : > { %8312 = vrot.lane.b32.xlu1 %v8668_v4, %s10923_s15 }
 0x767   : > { %9142 = vrot.lane.b32.xlu0 %v14655_v46, %s10925_s17  ;;  %v9333_v33 = vld [vmem:[#allocation3 + $0x188] sm:$0xff] }
 0x768   : > { %v8489_v61 = vpop.permute.xlu1 %8488  ;;  %9663 = vmatprep.mubr.f32.mxu1 %v9333_v33  ;;  %v15175_v33 = vld [vmem:[%s15565_s10] ss:$0 sm:$0xff] }
 0x769   : > { %v15089_v59 = vpop.permute.xlu0 %9130  ;;  %9664 = vmatmul.mubr.f32.gmra.mrb[72].mxu1 %v9332_v63  ;;  %v15177_v63 = vstv %s10334_s14 }
 0x76a   : > { %8122 = vrot.lane.b32.xlu1 %v14567_v44, %s10924_s16 }
 0x76b   : > { %8760 = vrot.lane.b32.xlu0 %v8670_v55, %s10924_s16 }
 0x76c   : > { %v8109_v56 = vpop.permute.xlu1 %8108 }
 0x76d   : > { %8184 = vst.msk [vmem:[#allocation3 + $0x1e0] sm:$0xff] %vm807_vm3, %v8109_v56  ;;  %v8749_v2 = vpop.permute.xlu0 %8748 }
 0x76e   : > { %v15093_v3 = vpop.f32.mrb[92].mxu0  ;;  %8314 = vrot.lane.b32.xlu1 %v8669_v22, %s10923_s15  ;;  %8824 = vst.msk [vmem:[#allocation3 + $0x1e8] sm:$0xff] %vm807_vm3, %v8749_v2 }
 0x76f   : > { %v15096_v51 = vpop.f32.mrb[93].mxu0  ;;  %8762 = vrot.lane.b32.xlu0 %v8671_v43, %s10924_s16  ;;  %9016 = vst.msk [vmem:[#allocation3 + $0x1e8] sm:$0xff] %vm1000_vm4, %v15046_v20 }
 0x770   : > { %v15102_v44 = vpop.permute.xlu1 %8496  ;;  %9208 = vst.msk [vmem:[#allocation3 + $0x1e8] sm:$0xff] %vm1193_vm5, %v9133_v35  ;;  %v8674_v35 = vld [vmem:[#allocation2 + $0x182] sm:$0xff] }
 0x771   : > { %v8751_v17 = vpop.permute.xlu0 %8750 }
 0x772   : > { %v15105_v0 = vpop.f32.mrb[94].mxu0  ;;  %8510 = vrot.lane.b32.xlu1 %v14598_v6, %s10925_s17  ;;  %8825 = vst.msk [vmem:[#allocation3 + $0x200] sm:$0xff] %vm807_vm3, %v8751_v17 }
 0x773   : > { %v15109_v10 = vpop.f32.mrb[95].mxu0  ;;  %8958 = vrot.lane.b32.xlu0 %v15111_v53, %s10923_s15 }
 0x774   : > { %v8117_v60 = vpop.permute.xlu1 %8116 }
 0x775   : > { %8188 = vst.msk [vmem:[#allocation3 + $0x240] sm:$0xff] %vm807_vm3, %v8117_v60  ;;  %v15122_v6 = vpop.permute.xlu0 %8944 }
 0x776   : > { %v15117_v4 = vpop.f32.mrb[96].mxu0  ;;  %8320 = vrot.lane.b32.xlu1 %v8672_v37, %s10923_s15 }
 0x777   : > { %v15120_v12 = vpop.f32.mrb[97].mxu0  ;;  %8962 = vrot.lane.b32.xlu0 %v8867_v21, %s10923_s15  ;;  %v15194_v21 = vstv %s10335_s24 }
 0x778   : > { %v8487_v34 = vpop.permute.xlu1 %8486 }
 0x779   : > { %8565 = vst.msk [vmem:[#allocation3 + $0x198] sm:$0xff] %vm1193_vm5, %v8487_v34  ;;  %v15132_v22 = vpop.permute.xlu0 %9136 }
 0x77a   : > { %v15126_v20 = vpop.f32.mrb[98].mxu0  ;;  %8506 = vrot.lane.b32.xlu1 %v14653_v50, %s10925_s17 }
 0x77b   : > { %v15130_v5 = vpop.f32.mrb[99].mxu0  ;;  %9150 = vrot.lane.b32.xlu0 %v14695_v25, %s10925_s17 }
 0x77c   : > { %v8297_v18 = vpop.permute.xlu1 %8296 }
 0x77d   : > { %8374 = vst.msk [vmem:[#allocation3 + $0x1b0] sm:$0xff] %vm1000_vm4, %v8297_v18  ;;  %v15143_v50 = vpop.permute.xlu0 %8952 }
 0x77e   : > { %v15137_v16 = vpop.f32.mrb[100].mxu0  ;;  %8566 = vst.msk [vmem:[#allocation3 + $0x1b0] sm:$0xff] %vm1193_vm5, %v8489_v61  ;;  %8316 = vrot.lane.b32.xlu1 %v8670_v55, %s10923_s15  ;;  %v10033_v61 = vsub.f32 %v9969_v9, %v10001_v54 }
 0x77f   : > { %v15141_v47 = vpop.f32.mrb[101].mxu0  ;;  %8768 = vrot.lane.b32.xlu0 %v8674_v35, %s10924_s16 }
 0x780   : > { %v8107_v36 = vpop.permute.xlu1 %8106  ;;  %v10066_v2 = vmul.f32 %v15177_v63, %v10033_v61 }
 0x781   : > { %8183 = vst.msk [vmem:[#allocation3 + $0x1c8] sm:$0xff] %vm807_vm3, %v8107_v36  ;;  %v15149_v25 = vpop.permute.xlu0 %9144 }
 0x782   : > { %8126 = vrot.lane.b32.xlu1 %v14655_v46, %s10924_s16 }
 0x783   : > { %8770 = vrot.lane.b32.xlu0 %v8675_v24, %s10924_s16 }
 0x784   : > { %v8299_v31 = vpop.permute.xlu1 %8298 }
 0x785   : > { %8375 = vst.msk [vmem:[#allocation3 + $0x1c8] sm:$0xff] %vm1000_vm4, %v8299_v31  ;;  %v8935_v37 = vpop.permute.xlu0 %8934 }
 0x786   : > { %8318 = vrot.lane.b32.xlu1 %v8671_v43, %s10923_s15  ;;  %9013 = vst.msk [vmem:[#allocation3 + $0x1a0] sm:$0xff] %vm1000_vm4, %v8935_v37 }
 0x787   : > { %9154 = vrot.lane.b32.xlu0 %v9059_v26, %s10925_s17 }
 0x788   : > { %v15162_v46 = vpop.permute.xlu1 %8494 }
 0x789   : > { %v9127_v30 = vpop.permute.xlu0 %9126 }
 0x78a   : > { %8130 = vrot.lane.b32.xlu1 %v14605_v62, %s10924_s16  ;;  %9205 = vst.msk [vmem:[#allocation3 + $0x1a0] sm:$0xff] %vm1193_vm5, %v9127_v30  ;;  %v10034_v30 = vsub.f32 %v9970_v13, %v10002_v1 }
 0x78c   : > { %v8305_v27 = vpop.permute.xlu1 %8304 }
 0x78d   : > { %8378 = vst.msk [vmem:[#allocation3 + $0x210] sm:$0xff] %vm1000_vm4, %v8305_v27  ;;  %v8745_v62 = vpop.permute.xlu0 %8744 }
 0x78e   : > { %8570 = vst.msk [vmem:[#allocation3 + $0x210] sm:$0xff] %vm1193_vm5, %v15102_v44  ;;  %8322 = vrot.lane.b32.xlu1 %v15067_v19, %s10923_s15 }
 0x78f   : > { %v9585_v55 = vpop.f32.mrb[40].mxu1  ;;  %8822 = vst.msk [vmem:[#allocation3 + $0x1b8] sm:$0xff] %vm807_vm3, %v8745_v62  ;;  %v9971_v62 = vld [vmem:[%s11135_s28 + $0x10] sm:$0xff] }
 0x790   : > { %v9586_v56 = vadd.f32 %v15175_v33, %v9585_v55  ;;  %9014 = vst.msk [vmem:[#allocation3 + $0x1b8] sm:$0xff] %vm1000_vm4, %v15019_v15  ;;  %v9587_v43 = vpop.f32.mrb[41].mxu1  ;;  %v8115_v17 = vpop.permute.xlu1 %8114  ;;  %v9335_v15 = vld [vmem:[#allocation3 + $0x198] sm:$0xff]  ;;  %v10003_v55 = vld [vmem:[%s15158_s23 + $0x10] sm:$0xff] }
 0x791   : > { %9206 = vst.msk [vmem:[#allocation3 + $0x1b8] sm:$0xff] %vm1193_vm5, %v15030_v42  ;;  %v8747_v44 = vpop.permute.xlu0 %8746  ;;  %v9336_v60 = vld [vmem:[#allocation3 + $0x1a0] sm:$0xff] }
 0x792   : > { %8187 = vst.msk [vmem:[#allocation3 + $0x228] sm:$0xff] %vm807_vm3, %v8115_v17  ;;  %v9811_v19 = vadd.f32 %v14541_v29, %v9586_v56  ;;  %8514 = vrot.lane.b32.xlu1 %v15111_v53, %s10925_s17  ;;  %8823 = vst.msk [vmem:[#allocation3 + $0x1d0] sm:$0xff] %vm807_vm3, %v8747_v44  ;;  %9668 = vmatprep.mubr.f32.mxu1 %v9336_v60  ;;  %s15207_s17 = scalar_lea.vmem %s15567_s12, %s11122_s19  ;;  %v10067_v56 = vmul.f32 %v15177_v63, %v10034_v30 }
 0x793   : > { %9015 = vst.msk [vmem:[#allocation3 + $0x1d0] sm:$0xff] %vm1000_vm4, %v15083_v49  ;;  %9669 = vmatmul.mubr.f32.gmra.mrb[74].mxu1 %v9335_v15 }
 0x794   : > { %v10098_v34 = vadd.f32 %v10066_v2, %v9811_v19  ;;  %v8307_v42 = vpop.permute.xlu1 %8306  ;;  %9207 = vst.msk [vmem:[#allocation3 + $0x1d0] sm:$0xff] %vm1193_vm5, %v15089_v59  ;;  %v9338_v59 = vld [vmem:[#allocation3 + $0x1b0] sm:$0xff]  ;;  %v10035_v19 = vsub.f32 %v9971_v62, %v10003_v55 }
 0x795   : > { %8379 = vst.msk [vmem:[#allocation3 + $0x228] sm:$0xff] %vm1000_vm4, %v8307_v42  ;;  %v8943_v53 = vpop.permute.xlu0 %8942 }
 0x796   : > { %v10131_v29 = vmul.f32 %v15194_v21, %v10098_v34  ;;  %9017 = vst.msk [vmem:[#allocation3 + $0x200] sm:$0xff] %vm1000_vm4, %v8943_v53 }
 0x798   : > { %v10163_v18 = vsub.f32 %v9969_v9, %v10131_v29  ;;  %v15210_v49 = vpop.permute.xlu1 %8500  ;;  %v9339_v35 = vld [vmem:[#allocation3 + $0x1b8] sm:$0xff]  ;;  %v10068_v29 = vmul.f32 %v15177_v63, %v10035_v19 }
 0x799   : > { %9673 = vmatprep.mubr.f32.mxu1 %v9339_v35  ;;  %v9135_v36 = vpop.permute.xlu0 %9134 }
 0x79a   : > { %10195 = vst.msk [vmem:[%s15207_s17] sm:$0xff] %vm472_vm0, %v10163_v18  ;;  %9674 = vmatmul.mubr.f32.gmra.mrb[76].mxu1 %v9338_v59 }
 0x79b   : > { %9209 = vst.msk [vmem:[#allocation3 + $0x200] sm:$0xff] %vm1193_vm5, %v9135_v36  ;;  %v9342_v31 = vld [vmem:[#allocation3 + $0x1d0] sm:$0xff] }
 0x79c   : > { %v8121_v24 = vpop.permute.xlu1 %8120  ;;  %9678 = vmatprep.mubr.f32.mxu1 %v9342_v31 }
 0x79d   : > { %8190 = vst.msk [vmem:[#allocation3 + $0x270] sm:$0xff] %vm807_vm3, %v8121_v24  ;;  %v8753_v26 = vpop.permute.xlu0 %8752  ;;  %v9345_v24 = vld [vmem:[#allocation3 + $0x1e8] sm:$0xff] }
 0x79e   : > { %8826 = vst.msk [vmem:[#allocation3 + $0x218] sm:$0xff] %vm807_vm3, %v8753_v26 }
 0x79f   : > { %9018 = vst.msk [vmem:[#allocation3 + $0x218] sm:$0xff] %vm1000_vm4, %v15122_v6 }
 0x7a0   : > { %v15219_v37 = vpop.permute.xlu1 %8508  ;;  %9210 = vst.msk [vmem:[#allocation3 + $0x218] sm:$0xff] %vm1193_vm5, %v15132_v22 }
 0x7a1   : > { %v8755_v9 = vpop.permute.xlu0 %8754 }
 0x7a2   : > { %8827 = vst.msk [vmem:[#allocation3 + $0x230] sm:$0xff] %vm807_vm3, %v8755_v9 }
 0x7a4   : > { %v8129_v54 = vpop.permute.xlu1 %8128 }
 0x7a5   : > { %8194 = vst.msk [vmem:[#allocation3 + $0x2d0] sm:$0xff] %vm807_vm3, %v8129_v54  ;;  %v8949_v27 = vpop.permute.xlu0 %8948  ;;  %v9348_v54 = vld [vmem:[#allocation3 + $0x200] sm:$0xff] }
 0x7a6   : > { %v9590_v61 = vpop.f32.mrb[42].mxu1 }
 0x7a7   : > { %v9591_v6 = vadd.f32 %v15175_v33, %v9590_v61  ;;  %v9592_v43 = vpop.f32.mrb[43].mxu1 }
 0x7a8   : > { %v8491_v2 = vpop.permute.xlu1 %8490 }
 0x7a9   : > { %8567 = vst.msk [vmem:[#allocation3 + $0x1c8] sm:$0xff] %vm1193_vm5, %v8491_v2  ;;  %v9816_v22 = vadd.f32 %v14537_v28, %v9591_v6  ;;  %v9141_v17 = vpop.permute.xlu0 %9140  ;;  %v9351_v6 = vld [vmem:[#allocation3 + $0x218] sm:$0xff]  ;;  %v10004_v2 = vld [vmem:[%s15158_s23 + $0x18] sm:$0xff] }
 0x7ab   : > { %v10099_v44 = vadd.f32 %v10067_v56, %v9816_v22  ;;  %v9972_v56 = vld [vmem:[%s11135_s28 + $0x18] sm:$0xff]  ;;  %v9350_v22 = vld [vmem:[#allocation3 + $0x210] sm:$0xff] }
 0x7ac   : > { %v8301_v60 = vpop.permute.xlu1 %8300  ;;  %v10036_v19 = vsub.f32 %v9972_v56, %v10004_v2 }
 0x7ad   : > { %8376 = vst.msk [vmem:[#allocation3 + $0x1e0] sm:$0xff] %vm1000_vm4, %v8301_v60  ;;  %v9595_v15 = vpop.f32.mrb[44].mxu1  ;;  %v10132_v34 = vmul.f32 %v15194_v21, %v10099_v44  ;;  %v15239_v18 = vpop.permute.xlu0 %8956  ;;  %v9973_v60 = vld [vmem:[%s11135_s28 + $0x20] sm:$0xff] }
 0x7ae   : > { %8568 = vst.msk [vmem:[#allocation3 + $0x1e0] sm:$0xff] %vm1193_vm5, %v15073_v32  ;;  %v9596_v42 = vadd.f32 %v15175_v33, %v9595_v15  ;;  %v9597_v53 = vpop.f32.mrb[45].mxu1  ;;  %v10005_v15 = vld [vmem:[%s15158_s23 + $0x20] sm:$0xff] }
 0x7af   : > { %v10164_v28 = vsub.f32 %v9970_v13, %v10132_v34 }
 0x7b0   : > { %v9821_v35 = vadd.f32 %v14553_v23, %v9596_v42  ;;  %v8111_v59 = vpop.permute.xlu1 %8110  ;;  %v9341_v36 = vld [vmem:[#allocation3 + $0x1c8] sm:$0xff] }
 0x7b1   : > { %8185 = vst.msk [vmem:[#allocation3 + $0x1f8] sm:$0xff] %vm807_vm3, %v8111_v59  ;;  %9679 = vmatmul.mubr.f32.gmra.mrb[78].mxu1 %v9341_v36  ;;  %v15245_v31 = vpop.permute.xlu0 %9148 }
 0x7b2   : > { %10196 = vst.msk [vmem:[%s15207_s17 + $0x8] sm:$0xff] %vm472_vm0, %v10164_v28  ;;  %v10100_v32 = vadd.f32 %v10068_v29, %v9821_v35  ;;  %9683 = vmatprep.mubr.f32.mxu1 %v9345_v24  ;;  %v10037_v35 = vsub.f32 %v9973_v60, %v10005_v15 }
 0x7b4   : > { %v10133_v26 = vmul.f32 %v15194_v21, %v10100_v32  ;;  %v8303_v1 = vpop.permute.xlu1 %8302 }
 0x7b5   : > { %8377 = vst.msk [vmem:[#allocation3 + $0x1f8] sm:$0xff] %vm1000_vm4, %v8303_v1  ;;  %v9344_v13 = vld [vmem:[#allocation3 + $0x1e0] sm:$0xff]  ;;  %v8947_v9 = vpop.permute.xlu0 %8946 }
 0x7b6   : > { %v10165_v23 = vsub.f32 %v9971_v62, %v10133_v26  ;;  %8569 = vst.msk [vmem:[#allocation3 + $0x1f8] sm:$0xff] %vm1193_vm5, %v15162_v46  ;;  %9684 = vmatmul.mubr.f32.gmra.mrb[80].mxu1 %v9344_v13 }
 0x7b7   : > { %9019 = vst.msk [vmem:[#allocation3 + $0x230] sm:$0xff] %vm1000_vm4, %v8947_v9  ;;  %9688 = vmatprep.mubr.f32.mxu1 %v9348_v54 }
 0x7b8   : > { %10197 = vst.msk [vmem:[%s15207_s17 + $0x10] sm:$0xff] %vm472_vm0, %v10165_v23  ;;  %v8499_v30 = vpop.permute.xlu1 %8498  ;;  %v10070_v23 = vmul.f32 %v15177_v63, %v10037_v35  ;;  %v9976_v35 = vld [vmem:[%s11135_s28 + $0x38] sm:$0xff] }
 0x7b9   : > { %8571 = vst.msk [vmem:[#allocation3 + $0x228] sm:$0xff] %vm1193_vm5, %v8499_v30  ;;  %v9139_v61 = vpop.permute.xlu0 %9138 }
 0x7ba   : > { %9211 = vst.msk [vmem:[#allocation3 + $0x230] sm:$0xff] %vm1193_vm5, %v9139_v61  ;;  %v10006_v61 = vld [vmem:[%s15158_s23 + $0x28] sm:$0xff] }
 0x7bc   : > { %v8309_v62 = vpop.permute.xlu1 %8308 }
 0x7bd   : > { %8380 = vst.msk [vmem:[#allocation3 + $0x240] sm:$0xff] %vm1000_vm4, %v8309_v62  ;;  %v9347_v46 = vld [vmem:[#allocation3 + $0x1f8] sm:$0xff]  ;;  %v8757_v55 = vpop.permute.xlu0 %8756 }
 0x7be   : > { %8572 = vst.msk [vmem:[#allocation3 + $0x240] sm:$0xff] %vm1193_vm5, %v15210_v49  ;;  %9689 = vmatmul.mubr.f32.gmra.mrb[82].mxu1 %v9347_v46  ;;  %v15575_v62 = vld [vmem:[#allocation12_spill] sm:$0xff] }
 0x7bf   : > { %8828 = vst.msk [vmem:[#allocation3 + $0x248] sm:$0xff] %vm807_vm3, %v8757_v55  ;;  %9693 = vmatprep.mubr.f32.mxu1 %v9351_v6 }
 0x7c0   : > { %9020 = vst.msk [vmem:[#allocation3 + $0x248] sm:$0xff] %vm1000_vm4, %v8949_v27  ;;  %v8119_v43 = vpop.permute.xlu1 %8118  ;;  %v10069_v27 = vmul.f32 %v15177_v63, %v10036_v19  ;;  %v9353_v53 = vld [vmem:[#allocation3 + $0x228] sm:$0xff]  ;;  %v9975_v19 = vld [vmem:[%s11135_s28 + $0x30] sm:$0xff] }
 0x7c1   : > { %9212 = vst.msk [vmem:[#allocation3 + $0x248] sm:$0xff] %vm1193_vm5, %v9141_v17  ;;  %v8759_v49 = vpop.permute.xlu0 %8758  ;;  %v9354_v44 = vld [vmem:[#allocation3 + $0x230] sm:$0xff] }
 0x7c2   : > { %8189 = vst.msk [vmem:[#allocation3 + $0x258] sm:$0xff] %vm807_vm3, %v8119_v43  ;;  %9694 = vmatmul.mubr.f32.gmra.mrb[84].mxu1 %v9350_v22  ;;  %8829 = vst.msk [vmem:[#allocation3 + $0x260] sm:$0xff] %vm807_vm3, %v8759_v49  ;;  %v10007_v49 = vld [vmem:[%s15158_s23 + $0x30] sm:$0xff] }
 0x7c3   : > { %9698 = vmatprep.mubr.f32.mxu1 %v9354_v44 }
 0x7c4   : > { %v9600_v34 = vpop.f32.mrb[46].mxu1  ;;  %v8311_v42 = vpop.permute.xlu1 %8310 }
 0x7c5   : > { %v9601_v29 = vadd.f32 %v15175_v33, %v9600_v34  ;;  %8381 = vst.msk [vmem:[#allocation3 + $0x258] sm:$0xff] %vm1000_vm4, %v8311_v42  ;;  %v9602_v17 = vpop.f32.mrb[47].mxu1  ;;  %v15271_v28 = vpop.permute.xlu0 %8954  ;;  %v9356_v1 = vld [vmem:[#allocation3 + $0x240] sm:$0xff] }
 0x7c6   : > { %9699 = vmatmul.mubr.f32.gmra.mrb[86].mxu1 %v9353_v53  ;;  %v10039_v53 = vsub.f32 %v9975_v19, %v10007_v49 }
 0x7c7   : > { %v9826_v59 = vadd.f32 %v14549_v7, %v9601_v29  ;;  %v9974_v7 = vld [vmem:[%s11135_s28 + $0x28] sm:$0xff] }
 0x7c8   : > { %v8505_v36 = vpop.permute.xlu1 %8504  ;;  %v9357_v24 = vld [vmem:[#allocation3 + $0x248] sm:$0xff]  ;;  %v10038_v22 = vsub.f32 %v9974_v7, %v10006_v61  ;;  %v10009_v61 = vld [vmem:[%s15158_s23 + $0x40] sm:$0xff] }
 0x7c9   : > { %v10101_v32 = vadd.f32 %v10069_v27, %v9826_v59  ;;  %v9605_v26 = vpop.f32.mrb[48].mxu1  ;;  %9703 = vmatprep.mubr.f32.mxu1 %v9357_v24  ;;  %v15276_v54 = vpop.permute.xlu0 %9146  ;;  %v10008_v59 = vld [vmem:[%s15158_s23 + $0x38] sm:$0xff] }
 0x7ca   : > { %v9606_v13 = vadd.f32 %v15175_v33, %v9605_v26  ;;  %v9607_v9 = vpop.f32.mrb[49].mxu1  ;;  %9704 = vmatmul.mubr.f32.gmra.mrb[88].mxu1 %v9356_v1  ;;  %v10071_v29 = vmul.f32 %v15177_v63, %v10038_v22 }
 0x7cb   : > { %v10134_v30 = vmul.f32 %v15194_v21, %v10101_v32  ;;  %v10040_v32 = vsub.f32 %v9976_v35, %v10008_v59 }
 0x7cc   : > { %v9831_v46 = vadd.f32 %v15575_v62, %v9606_v13  ;;  %v8125_v55 = vpop.permute.xlu1 %8124  ;;  %v10072_v13 = vmul.f32 %v15177_v63, %v10039_v53 }
 0x7cd   : > { %v10166_v6 = vsub.f32 %v9972_v56, %v10134_v30  ;;  %8192 = vst.msk [vmem:[#allocation3 + $0x2a0] sm:$0xff] %vm807_vm3, %v8125_v55  ;;  %v8765_v43 = vpop.permute.xlu0 %8764  ;;  %v9977_v30 = vld [vmem:[%s11135_s28 + $0x40] sm:$0xff] }
 0x7ce   : > { %v10102_v2 = vadd.f32 %v10070_v23, %v9831_v46  ;;  %8832 = vst.msk [vmem:[#allocation3 + $0x2a8] sm:$0xff] %vm807_vm3, %v8765_v43  ;;  %v15577_v46 = vld [vmem:[#allocation14_spill] sm:$0xff]  ;;  %v10073_v43 = vmul.f32 %v15177_v63, %v10040_v32 }
 0x7cf   : > { %10198 = vst.msk [vmem:[%s15207_s17 + $0x18] sm:$0xff] %vm472_vm0, %v10166_v6 }
 0x7d0   : > { %v10135_v44 = vmul.f32 %v15194_v21, %v10102_v2  ;;  %9024 = vst.msk [vmem:[#allocation3 + $0x2a8] sm:$0xff] %vm1000_vm4, %v15239_v18  ;;  %v15291_v56 = vpop.permute.xlu1 %8512  ;;  %v15576_v18 = vld [vmem:[#allocation11_spill] sm:$0xff] }
 0x7d1   : > { %9216 = vst.msk [vmem:[#allocation3 + $0x2a8] sm:$0xff] %vm1193_vm5, %v15245_v31  ;;  %v9610_v15 = vpop.f32.mrb[50].mxu1  ;;  %v8767_v17 = vpop.permute.xlu0 %8766 }
 0x7d2   : > { %v10167_v34 = vsub.f32 %v9973_v60, %v10135_v44  ;;  %v9611_v42 = vadd.f32 %v15175_v33, %v9610_v15  ;;  %v9612_v27 = vpop.f32.mrb[51].mxu1  ;;  %8833 = vst.msk [vmem:[#allocation3 + $0x2c0] sm:$0xff] %vm807_vm3, %v8767_v17 }
 0x7d3   : > { %v15578_v27 = vld [vmem:[#allocation13_spill] sm:$0xff] }
 0x7d4   : > { %10199 = vst.msk [vmem:[%s15207_s17 + $0x20] sm:$0xff] %vm472_vm0, %v10167_v34  ;;  %v9836_v24 = vadd.f32 %v15576_v18, %v9611_v42  ;;  %v8503_v31 = vpop.permute.xlu1 %8502  ;;  %v10041_v42 = vsub.f32 %v9977_v30, %v10009_v61 }
 0x7d5   : > { %8573 = vst.msk [vmem:[#allocation3 + $0x258] sm:$0xff] %vm1193_vm5, %v8503_v31  ;;  %v9615_v60 = vpop.f32.mrb[52].mxu1  ;;  %v8951_v9 = vpop.permute.xlu0 %8950 }
 0x7d6   : > { %v10103_v26 = vadd.f32 %v10071_v29, %v9836_v24  ;;  %v9616_v1 = vadd.f32 %v15175_v33, %v9615_v60  ;;  %v9617_v23 = vpop.f32.mrb[53].mxu1  ;;  %9021 = vst.msk [vmem:[#allocation3 + $0x260] sm:$0xff] %vm1000_vm4, %v8951_v9  ;;  %v10074_v24 = vmul.f32 %v15177_v63, %v10041_v42  ;;  %v15580_v42 = vld [vmem:[#allocation10_spill] sm:$0xff] }
 0x7d8   : > { %v10136_v62 = vmul.f32 %v15194_v21, %v10103_v26  ;;  %v9841_v55 = vadd.f32 %v15577_v46, %v9616_v1  ;;  %v8313_v6 = vpop.permute.xlu1 %8312 }
 0x7d9   : > { %8382 = vst.msk [vmem:[#allocation3 + $0x270] sm:$0xff] %vm1000_vm4, %v8313_v6  ;;  %v9620_v2 = vpop.f32.mrb[54].mxu1  ;;  %v9143_v34 = vpop.permute.xlu0 %9142 }
 0x7da   : > { %v10168_v22 = vsub.f32 %v9974_v7, %v10136_v62  ;;  %v10104_v49 = vadd.f32 %v10072_v13, %v9841_v55  ;;  %8574 = vst.msk [vmem:[#allocation3 + $0x270] sm:$0xff] %vm1193_vm5, %v8505_v36  ;;  %v9621_v44 = vadd.f32 %v15175_v33, %v9620_v2  ;;  %v9622_v15 = vpop.f32.mrb[55].mxu1  ;;  %9213 = vst.msk [vmem:[#allocation3 + $0x260] sm:$0xff] %vm1193_vm5, %v9143_v34 }
 0x7dc   : > { %10200 = vst.msk [vmem:[%s15207_s17 + $0x28] sm:$0xff] %vm472_vm0, %v10168_v22  ;;  %v10137_v29 = vmul.f32 %v15194_v21, %v10104_v49  ;;  %v9846_v17 = vadd.f32 %v15578_v27, %v9621_v44  ;;  %v8123_v53 = vpop.permute.xlu1 %8122  ;;  %v9359_v61 = vld [vmem:[#allocation3 + $0x258] sm:$0xff]  ;;  %v15579_v49 = vld [vmem:[#allocation9_spill] sm:$0xff] }
 0x7dd   : > { %8191 = vst.msk [vmem:[#allocation3 + $0x288] sm:$0xff] %vm807_vm3, %v8123_v53  ;;  %v9625_v7 = vpop.f32.mrb[56].mxu1  ;;  %v8761_v60 = vpop.permute.xlu0 %8760  ;;  %v10010_v22 = vld [vmem:[%s15158_s23 + $0x48] sm:$0xff]  ;;  %v10011_v53 = vld [vmem:[%s15158_s23 + $0x50] sm:$0xff] }
 0x7de   : > { %v10169_v59 = vsub.f32 %v9975_v19, %v10137_v29  ;;  %v10105_v36 = vadd.f32 %v10073_v43, %v9846_v17  ;;  %v9626_v18 = vadd.f32 %v15175_v33, %v9625_v7  ;;  %v9627_v31 = vpop.f32.mrb[57].mxu1  ;;  %8830 = vst.msk [vmem:[#allocation3 + $0x278] sm:$0xff] %vm807_vm3, %v8761_v60  ;;  %v9978_v43 = vld [vmem:[%s11135_s28 + $0x48] sm:$0xff]  ;;  %v9369_v29 = vld [vmem:[#allocation3 + $0x2a8] sm:$0xff]  ;;  %v9979_v17 = vld [vmem:[%s11135_s28 + $0x50] sm:$0xff] }
 0x7df   : > { %9022 = vst.msk [vmem:[#allocation3 + $0x278] sm:$0xff] %vm1000_vm4, %v15143_v50  ;;  %v10042_v34 = vsub.f32 %v9978_v43, %v10010_v22 }
 0x7e0   : > { %10201 = vst.msk [vmem:[%s15207_s17 + $0x30] sm:$0xff] %vm472_vm0, %v10169_v59  ;;  %v10138_v32 = vmul.f32 %v15194_v21, %v10105_v36  ;;  %v9851_v26 = vadd.f32 %v14750_v57, %v9626_v18  ;;  %v8315_v19 = vpop.permute.xlu1 %8314 }
 0x7e1   : > { %9214 = vst.msk [vmem:[#allocation3 + $0x278] sm:$0xff] %vm1193_vm5, %v15149_v25  ;;  %v8763_v23 = vpop.permute.xlu0 %8762  ;;  %v9360_v9 = vld [vmem:[#allocation3 + $0x260] sm:$0xff]  ;;  %v9362_v55 = vld [vmem:[#allocation3 + $0x270] sm:$0xff]  ;;  %v10075_v59 = vmul.f32 %v15177_v63, %v10042_v34 }
 0x7e2   : > { %8383 = vst.msk [vmem:[#allocation3 + $0x288] sm:$0xff] %vm1000_vm4, %v8315_v19  ;;  %v10170_v1 = vsub.f32 %v9976_v35, %v10138_v32  ;;  %v10106_v13 = vadd.f32 %v10074_v24, %v9851_v26  ;;  %9708 = vmatprep.mubr.f32.mxu1 %v9360_v9  ;;  %v10043_v32 = vsub.f32 %v9979_v17, %v10011_v53 }
 0x7e3   : > { %8831 = vst.msk [vmem:[#allocation3 + $0x290] sm:$0xff] %vm807_vm3, %v8763_v23  ;;  %9709 = vmatmul.mubr.f32.gmra.mrb[90].mxu1 %v9359_v61 }
 0x7e4   : > { %10202 = vst.msk [vmem:[%s15207_s17 + $0x38] sm:$0xff] %vm472_vm0, %v10170_v1  ;;  %v10139_v57 = vmul.f32 %v15194_v21, %v10106_v13  ;;  %v8511_v50 = vpop.permute.xlu1 %8510 }
 0x7e5   : > { %9023 = vst.msk [vmem:[#allocation3 + $0x290] sm:$0xff] %vm1000_vm4, %v15271_v28  ;;  %v8959_v35 = vpop.permute.xlu0 %8958 }
 0x7e6   : > { %9215 = vst.msk [vmem:[#allocation3 + $0x290] sm:$0xff] %vm1193_vm5, %v15276_v54  ;;  %v10171_v25 = vsub.f32 %v9977_v30, %v10139_v57 }
 0x7e7   : > { %9025 = vst.msk [vmem:[#allocation3 + $0x2c0] sm:$0xff] %vm1000_vm4, %v8959_v35 }
 0x7e8   : > { %10203 = vst.msk [vmem:[%s15207_s17 + $0x40] sm:$0xff] %vm472_vm0, %v10171_v25  ;;  %v8321_v62 = vpop.permute.xlu1 %8320  ;;  %v9363_v46 = vld [vmem:[#allocation3 + $0x278] sm:$0xff] }
 0x7e9   : > { %8386 = vst.msk [vmem:[#allocation3 + $0x2d0] sm:$0xff] %vm1000_vm4, %v8321_v62  ;;  %9713 = vmatprep.mubr.f32.mxu1 %v9363_v46  ;;  %v8963_v28 = vpop.permute.xlu0 %8962 }
 0x7ea   : > { %8578 = vst.msk [vmem:[#allocation3 + $0x2d0] sm:$0xff] %vm1193_vm5, %v15291_v56  ;;  %9714 = vmatmul.mubr.f32.gmra.mrb[92].mxu1 %v9362_v55 }
 0x7ec   : > { %v8507_v54 = vpop.permute.xlu1 %8506 }
 0x7ed   : > { %v9366_v30 = vld [vmem:[#allocation3 + $0x290] sm:$0xff]  ;;  %8575 = vst.msk [vmem:[#allocation3 + $0x288] sm:$0xff] %vm1193_vm5, %v8507_v54  ;;  %v9151_v6 = vpop.permute.xlu0 %9150 }
 0x7ee   : > { %9718 = vmatprep.mubr.f32.mxu1 %v9366_v30  ;;  %9217 = vst.msk [vmem:[#allocation3 + $0x2c0] sm:$0xff] %vm1193_vm5, %v9151_v6 }
 0x7f0   : > { %v8317_v2 = vpop.permute.xlu1 %8316 }
 0x7f1   : > { %8384 = vst.msk [vmem:[#allocation3 + $0x2a0] sm:$0xff] %vm1000_vm4, %v8317_v2  ;;  %v8769_v56 = vpop.permute.xlu0 %8768  ;;  %v9980_v2 = vld [vmem:[%s11135_s28 + $0x58] sm:$0xff] }
 0x7f2   : > { %8576 = vst.msk [vmem:[#allocation3 + $0x2a0] sm:$0xff] %vm1193_vm5, %v15219_v37 }
 0x7f3   : > { %8834 = vst.msk [vmem:[#allocation3 + $0x2d8] sm:$0xff] %vm807_vm3, %v8769_v56  ;;  %v9981_v56 = vld [vmem:[%s11135_s28 + $0x60] sm:$0xff] }
 0x7f4   : > { %9026 = vst.msk [vmem:[#allocation3 + $0x2d8] sm:$0xff] %vm1000_vm4, %v15579_v49  ;;  %v8127_v44 = vpop.permute.xlu1 %8126  ;;  %v9365_v15 = vld [vmem:[#allocation3 + $0x288] sm:$0xff]  ;;  %v10013_v49 = vld [vmem:[%s15158_s23 + $0x60] sm:$0xff] }
 0x7f5   : > { %9218 = vst.msk [vmem:[#allocation3 + $0x2d8] sm:$0xff] %vm1193_vm5, %v15580_v42  ;;  %9719 = vmatmul.mubr.f32.gmra.mrb[94].mxu1 %v9365_v15  ;;  %v8771_v27 = vpop.permute.xlu0 %8770  ;;  %v9372_v60 = vld [vmem:[#allocation3 + $0x2c0] sm:$0xff] }
 0x7f6   : > { %8193 = vst.msk [vmem:[#allocation3 + $0x2b8] sm:$0xff] %vm807_vm3, %v8127_v44  ;;  %9723 = vmatprep.mubr.f32.mxu1 %v9369_v29  ;;  %8835 = vst.msk [vmem:[#allocation3 + $0x2f0] sm:$0xff] %vm807_vm3, %v8771_v27  ;;  %v9630_v37 = vpop.f32.mrb[58].mxu1  ;;  %v10045_v29 = vsub.f32 %v9981_v56, %v10013_v49  ;;  %v10017_v49 = vld [vmem:[%s15158_s23 + $0x80] sm:$0xff] }
 0x7f7   : > { %9027 = vst.msk [vmem:[#allocation3 + $0x2f0] sm:$0xff] %vm1000_vm4, %v8963_v28  ;;  %v9631_v7 = vadd.f32 %v15175_v33, %v9630_v37  ;;  %v9632_v18 = vpop.f32.mrb[59].mxu1 }
 0x7f8   : > { %v8319_v36 = vpop.permute.xlu1 %8318  ;;  %v9982_v18 = vld [vmem:[%s11135_s28 + $0x68] sm:$0xff] }
 0x7f9   : > { %8385 = vst.msk [vmem:[#allocation3 + $0x2b8] sm:$0xff] %vm1000_vm4, %v8319_v36  ;;  %v9368_v24 = vld [vmem:[#allocation3 + $0x2a0] sm:$0xff]  ;;  %v9856_v31 = vadd.f32 %v14746_v48, %v9631_v7  ;;  %v9155_v26 = vpop.permute.xlu0 %9154  ;;  %v10076_v48 = vmul.f32 %v15177_v63, %v10043_v32  ;;  %v10078_v7 = vmul.f32 %v15177_v63, %v10045_v29 }
 0x7fa   : > { %8577 = vst.msk [vmem:[#allocation3 + $0x2b8] sm:$0xff] %vm1193_vm5, %v8511_v50  ;;  %9724 = vmatmul.mubr.f32.gmra.mrb[96].mxu1 %v9368_v24  ;;  %9219 = vst.msk [vmem:[#allocation3 + $0x2f0] sm:$0xff] %vm1193_vm5, %v9155_v26  ;;  %v10014_v24 = vld [vmem:[%s15158_s23 + $0x68] sm:$0xff] }
 0x7fb   : > { %9728 = vmatprep.mubr.f32.mxu1 %v9372_v60  ;;  %v10107_v19 = vadd.f32 %v10075_v59, %v9856_v31  ;;  %v10046_v26 = vsub.f32 %v9982_v18, %v10014_v24 }
 0x7fc   : > { %v8131_v1 = vpop.permute.xlu1 %8130  ;;  %v9375_v46 = vld [vmem:[#allocation3 + $0x2d8] sm:$0xff] }
 0x7fd   : > { %8195 = vst.msk [vmem:[#allocation3 + $0x2e8] sm:$0xff] %vm807_vm3, %v8131_v1  ;;  %v9635_v13 = vpop.f32.mrb[60].mxu1  ;;  %v10140_v23 = vmul.f32 %v15194_v21, %v10107_v19  ;;  %v10015_v19 = vld [vmem:[%s15158_s23 + $0x70] sm:$0xff] }
 0x7fe   : > { %v9636_v9 = vadd.f32 %v15175_v33, %v9635_v13  ;;  %v9637_v61 = vpop.f32.mrb[61].mxu1 }
 0x7ff   : > { %v10172_v57 = vsub.f32 %v9978_v43, %v10140_v23  ;;  %v10012_v43 = vld [vmem:[%s15158_s23 + $0x58] sm:$0xff] }
 0x800   : > { %v9861_v50 = vadd.f32 %v14760_v38, %v9636_v9  ;;  %v8323_v25 = vpop.permute.xlu1 %8322  ;;  %v9374_v38 = vld [vmem:[#allocation3 + $0x2d0] sm:$0xff]  ;;  %v10044_v22 = vsub.f32 %v9980_v2, %v10012_v43 }
 0x801   : > { %8387 = vst.msk [vmem:[#allocation3 + $0x2e8] sm:$0xff] %vm1000_vm4, %v8323_v25  ;;  %v9371_v35 = vld [vmem:[#allocation3 + $0x2b8] sm:$0xff]  ;;  %v9378_v54 = vld [vmem:[#allocation3 + $0x2f0] sm:$0xff] }
 0x802   : > { %10204 = vst.msk [vmem:[%s15207_s17 + $0x48] sm:$0xff] %vm472_vm0, %v10172_v57  ;;  %v10108_v62 = vadd.f32 %v10076_v48, %v9861_v50  ;;  %9729 = vmatmul.mubr.f32.gmra.mrb[98].mxu1 %v9371_v35  ;;  %v10077_v34 = vmul.f32 %v15177_v63, %v10044_v22  ;;  %v10079_v48 = vmul.f32 %v15177_v63, %v10046_v26 }
 0x803   : > { %9733 = vmatprep.mubr.f32.mxu1 %v9375_v46 }
 0x804   : > { %v10141_v55 = vmul.f32 %v15194_v21, %v10108_v62  ;;  %v8515_v28 = vpop.permute.xlu1 %8514 }
 0x805   : > { %8579 = vst.msk [vmem:[#allocation3 + $0x2e8] sm:$0xff] %vm1193_vm5, %v8515_v28 }
 0x806   : > { %v10173_v30 = vsub.f32 %v9979_v17, %v10141_v55  ;;  %9734 = vmatmul.mubr.f32.gmra.mrb[100].mxu1 %v9374_v38 }
 0x807   : > { %9738 = vmatprep.mubr.f32.mxu1 %v9378_v54 }
 0x808   : > { %10205 = vst.msk [vmem:[%s15207_s17 + $0x50] sm:$0xff] %vm472_vm0, %v10173_v30 }
 0x80c   : > { %v9377_v6 = vld [vmem:[#allocation3 + $0x2e8] sm:$0xff] }
 0x80d   : > { %9739 = vmatmul.mubr.f32.gmra.mrb[102].mxu1 %v9377_v6  ;;  %v9984_v6 = vld [vmem:[%s11135_s28 + $0x78] sm:$0xff] }
 0x814   : > { %v9640_v44 = vpop.f32.mrb[62].mxu1 }
 0x815   : > { %v9641_v15 = vadd.f32 %v15175_v33, %v9640_v44  ;;  %v9642_v42 = vpop.f32.mrb[63].mxu1 }
 0x817   : > { %v9866_v27 = vadd.f32 %v14757_v39, %v9641_v15  ;;  %v9983_v39 = vld [vmem:[%s11135_s28 + $0x70] sm:$0xff] }
 0x818   : > { %v10047_v57 = vsub.f32 %v9983_v39, %v10015_v19 }
 0x819   : > { %v10109_v37 = vadd.f32 %v10077_v34, %v9866_v27  ;;  %v9645_v17 = vpop.f32.mrb[64].mxu1 }
 0x81a   : > { %v9646_v53 = vadd.f32 %v15175_v33, %v9645_v17  ;;  %v9647_v59 = vpop.f32.mrb[65].mxu1  ;;  %v10080_v62 = vmul.f32 %v15177_v63, %v10047_v57 }
 0x81b   : > { %v10142_v36 = vmul.f32 %v15194_v21, %v10109_v37 }
 0x81c   : > { %v9871_v31 = vadd.f32 %v14775_v58, %v9646_v53 }
 0x81d   : > { %v10174_v60 = vsub.f32 %v9980_v2, %v10142_v36  ;;  %v10016_v2 = vld [vmem:[%s15158_s23 + $0x78] sm:$0xff] }
 0x81e   : > { %v10110_v32 = vadd.f32 %v10078_v7, %v9871_v31  ;;  %v10048_v43 = vsub.f32 %v9984_v6, %v10016_v2  ;;  %v10021_v2 = vld [vmem:[%s15158_s23 + $0xa0] sm:$0xff] }
 0x81f   : > { %10206 = vst.msk [vmem:[%s15207_s17 + $0x58] sm:$0xff] %vm472_vm0, %v10174_v60  ;;  %v9986_v60 = vld [vmem:[%s11135_s28 + $0x88] sm:$0xff] }
 0x820   : > { %v10143_v1 = vmul.f32 %v15194_v21, %v10110_v32  ;;  %v10018_v32 = vld [vmem:[%s15158_s23 + $0x88] sm:$0xff] }
 0x821   : > { %v9650_v13 = vpop.f32.mrb[66].mxu1 }
 0x822   : > { %v10175_v23 = vsub.f32 %v9981_v56, %v10143_v1  ;;  %v9651_v9 = vadd.f32 %v15175_v33, %v9650_v13  ;;  %v9652_v61 = vpop.f32.mrb[67].mxu1  ;;  %v9985_v56 = vld [vmem:[%s11135_s28 + $0x80] sm:$0xff]  ;;  %v9987_v1 = vld [vmem:[%s11135_s28 + $0x90] sm:$0xff] }
 0x823   : > { %v10049_v42 = vsub.f32 %v9985_v56, %v10017_v49  ;;  %v10019_v13 = vld [vmem:[%s15158_s23 + $0x90] sm:$0xff] }
 0x824   : > { %10207 = vst.msk [vmem:[%s15207_s17 + $0x60] sm:$0xff] %vm472_vm0, %v10175_v23  ;;  %v9876_v58 = vadd.f32 %v14771_v41, %v9651_v9  ;;  %v10051_v61 = vsub.f32 %v9987_v1, %v10019_v13  ;;  %v10024_v13 = vld [vmem:[%s15158_s23 + $0xb8] sm:$0xff] }
 0x825   : > { %v9655_v50 = vpop.f32.mrb[68].mxu1  ;;  %v10082_v53 = vmul.f32 %v15177_v63, %v10049_v42 }
 0x826   : > { %v10111_v25 = vadd.f32 %v10079_v48, %v9876_v58  ;;  %v9656_v35 = vadd.f32 %v15175_v33, %v9655_v50  ;;  %v9657_v46 = vpop.f32.mrb[69].mxu1 }
 0x828   : > { %v10144_v55 = vmul.f32 %v15194_v21, %v10111_v25  ;;  %v9881_v28 = vadd.f32 %v14920_v11, %v9656_v35  ;;  %v10081_v11 = vmul.f32 %v15177_v63, %v10048_v43  ;;  %v10084_v35 = vmul.f32 %v15177_v63, %v10051_v61 }
 0x82a   : > { %v10176_v54 = vsub.f32 %v9982_v18, %v10144_v55  ;;  %v10112_v38 = vadd.f32 %v10080_v62, %v9881_v28 }
 0x82c   : > { %10208 = vst.msk [vmem:[%s15207_s17 + $0x68] sm:$0xff] %vm472_vm0, %v10176_v54  ;;  %v10145_v30 = vmul.f32 %v15194_v21, %v10112_v38  ;;  %v9988_v38 = vld [vmem:[%s11135_s28 + $0x98] sm:$0xff] }
 0x82e   : > { %v10177_v41 = vsub.f32 %v9983_v39, %v10145_v30  ;;  %v10050_v39 = vsub.f32 %v9986_v60, %v10018_v32  ;;  %v10020_v30 = vld [vmem:[%s15158_s23 + $0x98] sm:$0xff] }
 0x830   : > { %10209 = vst.msk [vmem:[%s15207_s17 + $0x70] sm:$0xff] %vm472_vm0, %v10177_v41  ;;  %v10083_v23 = vmul.f32 %v15177_v63, %v10050_v39  ;;  %v10052_v41 = vsub.f32 %v9988_v38, %v10020_v30 }
 0x832   : > { %v15430_v31 = vpop.f32.mrb[102].mxu0 }
 0x833   : > { %v15434_v26 = vpop.f32.mrb[103].mxu0 }
 0x836   : > { %v9660_v22 = vpop.f32.mrb[70].mxu1 }
 0x837   : > { %v9661_v44 = vadd.f32 %v15175_v33, %v9660_v22  ;;  %v9662_v15 = vpop.f32.mrb[71].mxu1 }
 0x839   : > { %v9886_v34 = vadd.f32 %v14916_v45, %v9661_v44 }
 0x83b   : > { %v10113_v29 = vadd.f32 %v10081_v11, %v9886_v34 }
 0x83c   : > { %v9665_v27 = vpop.f32.mrb[72].mxu1 }
 0x83d   : > { %v10146_v37 = vmul.f32 %v15194_v21, %v10113_v29  ;;  %v9666_v17 = vadd.f32 %v15175_v33, %v9665_v27  ;;  %v9667_v7 = vpop.f32.mrb[73].mxu1 }
 0x83f   : > { %v10178_v59 = vsub.f32 %v9984_v6, %v10146_v37  ;;  %v9891_v36 = vadd.f32 %v15012_v52, %v9666_v17  ;;  %v9989_v6 = vld [vmem:[%s11135_s28 + $0xa0] sm:$0xff]  ;;  %v9990_v37 = vld [vmem:[%s11135_s28 + $0xa8] sm:$0xff] }
 0x840   : > { %v10053_v49 = vsub.f32 %v9989_v6, %v10021_v2  ;;  %v10022_v17 = vld [vmem:[%s15158_s23 + $0xa8] sm:$0xff] }
 0x841   : > { %10210 = vst.msk [vmem:[%s15207_s17 + $0x78] sm:$0xff] %vm472_vm0, %v10178_v59  ;;  %v10114_v45 = vadd.f32 %v10082_v53, %v9891_v36  ;;  %v10054_v36 = vsub.f32 %v9990_v37, %v10022_v17  ;;  %v10027_v17 = vld [vmem:[%s15158_s23 + $0xd0] sm:$0xff] }
 0x842   : > { %v10086_v42 = vmul.f32 %v15177_v63, %v10053_v49 }
 0x843   : > { %v10147_v18 = vmul.f32 %v15194_v21, %v10114_v45  ;;  %v10023_v45 = vld [vmem:[%s15158_s23 + $0xb0] sm:$0xff]  ;;  %v10087_v39 = vmul.f32 %v15177_v63, %v10054_v36 }
 0x845   : > { %v10179_v24 = vsub.f32 %v9985_v56, %v10147_v18 }
 0x847   : > { %10211 = vst.msk [vmem:[%s15207_s17 + $0x80] sm:$0xff] %vm472_vm0, %v10179_v24 }
 0x866   : > { %v9670_v19 = vpop.f32.mrb[74].mxu1 }
 0x867   : > { %v9671_v52 = vadd.f32 %v15175_v33, %v9670_v19  ;;  %v9672_v9 = vpop.f32.mrb[75].mxu1 }
 0x869   : > { %v9896_v48 = vadd.f32 %v15007_v40, %v9671_v52 }
 0x86b   : > { %v10115_v57 = vadd.f32 %v10083_v23, %v9896_v48 }
 0x86d   : > { %v9675_v58 = vpop.f32.mrb[76].mxu1  ;;  %v10148_v50 = vmul.f32 %v15194_v21, %v10115_v57 }
 0x86e   : > { %v9676_v25 = vadd.f32 %v15175_v33, %v9675_v58  ;;  %v9677_v62 = vpop.f32.mrb[77].mxu1 }
 0x86f   : > { %v10180_v46 = vsub.f32 %v9986_v60, %v10148_v50  ;;  %v9993_v50 = vld [vmem:[%s11135_s28 + $0xc0] sm:$0xff] }
 0x870   : > { %v9901_v55 = vadd.f32 %v15025_v14, %v9676_v25  ;;  %v10085_v14 = vmul.f32 %v15177_v63, %v10052_v41  ;;  %v10025_v25 = vld [vmem:[%s15158_s23 + $0xc0] sm:$0xff] }
 0x871   : > { %10212 = vst.msk [vmem:[%s15207_s17 + $0x88] sm:$0xff] %vm472_vm0, %v10180_v46 }
 0x872   : > { %v10116_v28 = vadd.f32 %v10084_v35, %v9901_v55 }
 0x874   : > { %v10149_v40 = vmul.f32 %v15194_v21, %v10116_v28 }
 0x876   : > { %v10181_v54 = vsub.f32 %v9987_v1, %v10149_v40  ;;  %v9992_v1 = vld [vmem:[%s11135_s28 + $0xb8] sm:$0xff] }
 0x877   : > { %v10056_v9 = vsub.f32 %v9992_v1, %v10024_v13 }
 0x878   : > { %10213 = vst.msk [vmem:[%s15207_s17 + $0x90] sm:$0xff] %vm472_vm0, %v10181_v54 }
 0x879   : > { %v10089_v55 = vmul.f32 %v15177_v63, %v10056_v9  ;;  %v9997_v9 = vld [vmem:[%s11135_s28 + $0xe0] sm:$0xff] }
 0x884   : > { %v9680_v43 = vpop.f32.mrb[78].mxu1 }
 0x885   : > { %v9681_v22 = vadd.f32 %v15175_v33, %v9680_v43  ;;  %v9682_v56 = vpop.f32.mrb[79].mxu1 }
 0x887   : > { %v9906_v44 = vadd.f32 %v15021_v8, %v9681_v22  ;;  %v9991_v8 = vld [vmem:[%s11135_s28 + $0xb0] sm:$0xff] }
 0x889   : > { %v10117_v11 = vadd.f32 %v10085_v14, %v9906_v44  ;;  %v9685_v15 = vpop.f32.mrb[80].mxu1 }
 0x88a   : > { %v9686_v34 = vadd.f32 %v15175_v33, %v9685_v15  ;;  %v9687_v29 = vpop.f32.mrb[81].mxu1 }
 0x88b   : > { %v10150_v27 = vmul.f32 %v15194_v21, %v10117_v11 }
 0x88c   : > { %v9911_v53 = vadd.f32 %v15096_v51, %v9686_v34  ;;  %v10055_v51 = vsub.f32 %v9991_v8, %v10023_v45  ;;  %v9994_v34 = vld [vmem:[%s11135_s28 + $0xc8] sm:$0xff] }
 0x88d   : > { %v10182_v7 = vsub.f32 %v9988_v38, %v10150_v27  ;;  %v10057_v38 = vsub.f32 %v9993_v50, %v10025_v25 }
 0x88e   : > { %v10118_v59 = vadd.f32 %v10086_v42, %v9911_v53  ;;  %v10088_v57 = vmul.f32 %v15177_v63, %v10055_v51  ;;  %v10026_v42 = vld [vmem:[%s15158_s23 + $0xc8] sm:$0xff] }
 0x88f   : > { %10214 = vst.msk [vmem:[%s15207_s17 + $0x98] sm:$0xff] %vm472_vm0, %v10182_v7  ;;  %v10090_v22 = vmul.f32 %v15177_v63, %v10057_v38  ;;  %v10058_v29 = vsub.f32 %v9994_v34, %v10026_v42 }
 0x890   : > { %v10151_v18 = vmul.f32 %v15194_v21, %v10118_v59 }
 0x891   : > { %v9690_v24 = vpop.f32.mrb[82].mxu1 }
 0x892   : > { %v10183_v60 = vsub.f32 %v9989_v6, %v10151_v18  ;;  %v9691_v32 = vadd.f32 %v15175_v33, %v9690_v24  ;;  %v9692_v19 = vpop.f32.mrb[83].mxu1 }
 0x894   : > { %10215 = vst.msk [vmem:[%s15207_s17 + $0xa0] sm:$0xff] %vm472_vm0, %v10183_v60  ;;  %v9916_v52 = vadd.f32 %v15093_v3, %v9691_v32 }
 0x895   : > { %v9695_v23 = vpop.f32.mrb[84].mxu1 }
 0x896   : > { %v10119_v48 = vadd.f32 %v10087_v39, %v9916_v52  ;;  %v9696_v61 = vadd.f32 %v15175_v33, %v9695_v23  ;;  %v9697_v58 = vpop.f32.mrb[85].mxu1 }
 0x898   : > { %v10152_v35 = vmul.f32 %v15194_v21, %v10119_v48  ;;  %v9921_v62 = vadd.f32 %v15109_v10, %v9696_v61  ;;  %v10029_v48 = vld [vmem:[%s15158_s23 + $0xe0] sm:$0xff] }
 0x899   : > { %v9700_v46 = vpop.f32.mrb[86].mxu1 }
 0x89a   : > { %v10184_v3 = vsub.f32 %v9990_v37, %v10152_v35  ;;  %v10120_v28 = vadd.f32 %v10088_v57, %v9921_v62  ;;  %v9701_v40 = vadd.f32 %v15175_v33, %v9700_v46  ;;  %v9702_v54 = vpop.f32.mrb[87].mxu1  ;;  %v9995_v37 = vld [vmem:[%s11135_s28 + $0xd0] sm:$0xff] }
 0x89b   : > { %v10059_v36 = vsub.f32 %v9995_v37, %v10027_v17  ;;  %v10030_v54 = vld [vmem:[%s15158_s23 + $0xe8] sm:$0xff] }
 0x89c   : > { %10216 = vst.msk [vmem:[%s15207_s17 + $0xa8] sm:$0xff] %vm472_vm0, %v10184_v3  ;;  %v10153_v30 = vmul.f32 %v15194_v21, %v10120_v28  ;;  %v9926_v41 = vadd.f32 %v15105_v0, %v9701_v40  ;;  %v9998_v40 = vld [vmem:[%s11135_s28 + $0xe8] sm:$0xff] }
 0x89d   : > { %v9705_v10 = vpop.f32.mrb[88].mxu1  ;;  %v10092_v60 = vmul.f32 %v15177_v63, %v10059_v36 }
 0x89e   : > { %v10185_v6 = vsub.f32 %v9991_v8, %v10153_v30  ;;  %v10121_v2 = vadd.f32 %v10089_v55, %v9926_v41  ;;  %v9706_v43 = vadd.f32 %v15175_v33, %v9705_v10  ;;  %v9707_v14 = vpop.f32.mrb[89].mxu1  ;;  %v10062_v10 = vsub.f32 %v9998_v40, %v10030_v54 }
 0x8a0   : > { %10217 = vst.msk [vmem:[%s15207_s17 + $0xb0] sm:$0xff] %vm472_vm0, %v10185_v6  ;;  %v10154_v56 = vmul.f32 %v15194_v21, %v10121_v2  ;;  %v9931_v49 = vadd.f32 %v15120_v12, %v9706_v43  ;;  %v10091_v12 = vmul.f32 %v15177_v63, %v10058_v29  ;;  %v9999_v6 = vld [vmem:[%s11135_s28 + $0xf0] sm:$0xff]  ;;  %v10000_v29 = vld [vmem:[%s11135_s28 + $0xf8] sm:$0xff] }
 0x8a2   : > { %v10186_v44 = vsub.f32 %v9992_v1, %v10154_v56  ;;  %v10122_v0 = vadd.f32 %v10090_v22, %v9931_v49  ;;  %v10028_v1 = vld [vmem:[%s15158_s23 + $0xd8] sm:$0xff]  ;;  %v10095_v56 = vmul.f32 %v15177_v63, %v10062_v10 }
 0x8a4   : > { %10218 = vst.msk [vmem:[%s15207_s17 + $0xb8] sm:$0xff] %vm472_vm0, %v10186_v44  ;;  %v10155_v11 = vmul.f32 %v15194_v21, %v10122_v0 }
 0x8a6   : > { %v10187_v15 = vsub.f32 %v9993_v50, %v10155_v11  ;;  %v10061_v50 = vsub.f32 %v9997_v9, %v10029_v48 }
 0x8a8   : > { %10219 = vst.msk [vmem:[%s15207_s17 + $0xc0] sm:$0xff] %vm472_vm0, %v10187_v15  ;;  %v10094_v55 = vmul.f32 %v15177_v63, %v10061_v50 }
 0x8b6   : > { %v9710_v27 = vpop.f32.mrb[90].mxu1 }
 0x8b7   : > { %v9711_v53 = vadd.f32 %v15175_v33, %v9710_v27  ;;  %v9712_v7 = vpop.f32.mrb[91].mxu1  ;;  %v10032_v27 = vld [vmem:[%s15158_s23 + $0xf8] sm:$0xff] }
 0x8b9   : > { %v9936_v59 = vadd.f32 %v15117_v4, %v9711_v53  ;;  %v9996_v4 = vld [vmem:[%s11135_s28 + $0xd8] sm:$0xff]  ;;  %v10064_v53 = vsub.f32 %v10000_v29, %v10032_v27 }
 0x8ba   : > { %v10060_v52 = vsub.f32 %v9996_v4, %v10028_v1 }
 0x8bb   : > { %v10123_v8 = vadd.f32 %v10091_v12, %v9936_v59 }
 0x8bc   : > { %v10093_v57 = vmul.f32 %v15177_v63, %v10060_v52 }
 0x8bd   : > { %v9715_v45 = vpop.f32.mrb[92].mxu1  ;;  %v10156_v18 = vmul.f32 %v15194_v21, %v10123_v8  ;;  %v10097_v8 = vmul.f32 %v15177_v63, %v10064_v53 }
 0x8be   : > { %v9716_v24 = vadd.f32 %v15175_v33, %v9715_v45  ;;  %v9717_v32 = vpop.f32.mrb[93].mxu1 }
 0x8bf   : > { %v10188_v39 = vsub.f32 %v9994_v34, %v10156_v18 }
 0x8c0   : > { %v9941_v19 = vadd.f32 %v15130_v5, %v9716_v24  ;;  %v10892_v5 = vld [vmem:[%s15565_s10] ss:$0 sm:$0xff] }
 0x8c1   : > { %10220 = vst.msk [vmem:[%s15207_s17 + $0xc8] sm:$0xff] %vm472_vm0, %v10188_v39 }
 0x8c2   : > { %v10124_v51 = vadd.f32 %v10092_v60, %v9941_v19 }
 0x8c4   : > { %v10157_v13 = vmul.f32 %v15194_v21, %v10124_v51 }
 0x8c6   : > { %v10189_v23 = vsub.f32 %v9995_v37, %v10157_v13 }
 0x8c8   : > { %10221 = vst.msk [vmem:[%s15207_s17 + $0xd0] sm:$0xff] %vm472_vm0, %v10189_v23  ;;  %v9720_v33 = vpop.f32.mrb[94].mxu1 }
 0x8c9   : > { %v9721_v61 = vadd.f32 %v10892_v5, %v9720_v33  ;;  %v9722_v58 = vpop.f32.mrb[95].mxu1 }
 0x8cb   : > { %v9946_v25 = vadd.f32 %v15126_v20, %v9721_v61  ;;  %v10031_v20 = vld [vmem:[%s15158_s23 + $0xf0] sm:$0xff] }
 0x8cc   : > { %v10063_v44 = vsub.f32 %v9999_v6, %v10031_v20 }
 0x8cd   : > { %v10125_v35 = vadd.f32 %v10093_v57, %v9946_v25  ;;  %v9725_v62 = vpop.f32.mrb[96].mxu1 }
 0x8ce   : > { %v9726_v46 = vadd.f32 %v10892_v5, %v9725_v62  ;;  %v9727_v3 = vpop.f32.mrb[97].mxu1  ;;  %v10096_v42 = vmul.f32 %v15177_v63, %v10063_v44 }
 0x8cf   : > { %v10158_v28 = vmul.f32 %v15194_v21, %v10125_v35 }
 0x8d0   : > { %v9951_v38 = vadd.f32 %v15141_v47, %v9726_v46 }
 0x8d1   : > { %v10190_v30 = vsub.f32 %v9996_v4, %v10158_v28 }
 0x8d2   : > { %v10126_v41 = vadd.f32 %v10094_v55, %v9951_v38 }
 0x8d3   : > { %10222 = vst.msk [vmem:[%s15207_s17 + $0xd8] sm:$0xff] %vm472_vm0, %v10190_v30 }
 0x8d4   : > { %v10159_v2 = vmul.f32 %v15194_v21, %v10126_v41 }
 0x8d5   : > { %v9730_v43 = vpop.f32.mrb[98].mxu1 }
 0x8d6   : > { %v10191_v22 = vsub.f32 %v9997_v9, %v10159_v2  ;;  %v9731_v14 = vadd.f32 %v10892_v5, %v9730_v43  ;;  %v9732_v49 = vpop.f32.mrb[99].mxu1 }
 0x8d8   : > { %10223 = vst.msk [vmem:[%s15207_s17 + $0xe0] sm:$0xff] %vm472_vm0, %v10191_v22  ;;  %v9956_v47 = vadd.f32 %v15137_v16, %v9731_v14 }
 0x8d9   : > { %v9735_v0 = vpop.f32.mrb[100].mxu1 }
 0x8da   : > { %v10127_v11 = vadd.f32 %v10095_v56, %v9956_v47  ;;  %v9736_v15 = vadd.f32 %v10892_v5, %v9735_v0  ;;  %v9737_v34 = vpop.f32.mrb[101].mxu1 }
 0x8dc   : > { %v10160_v37 = vmul.f32 %v15194_v21, %v10127_v11  ;;  %v9961_v17 = vadd.f32 %v15434_v26, %v9736_v15 }
 0x8de   : > { %v10192_v12 = vsub.f32 %v9998_v40, %v10160_v37  ;;  %v10128_v7 = vadd.f32 %v10096_v42, %v9961_v17 }
 0x8e0   : > { %10224 = vst.msk [vmem:[%s15207_s17 + $0xe8] sm:$0xff] %vm472_vm0, %v10192_v12  ;;  %v10161_v16 = vmul.f32 %v15194_v21, %v10128_v7  ;;  %v9740_v59 = vpop.f32.mrb[102].mxu1 }
 0x8e1   : > { %v9741_v36 = vadd.f32 %v10892_v5, %v9740_v59  ;;  %v9742_v45 = vpop.f32.mrb[103].mxu1 }
 0x8e2   : > { %v10193_v18 = vsub.f32 %v9999_v6, %v10161_v16 }
 0x8e3   : > { %v9966_v24 = vadd.f32 %v15430_v31, %v9741_v36 }
 0x8e4   : > { %10225 = vst.msk [vmem:[%s15207_s17 + $0xf0] sm:$0xff] %vm472_vm0, %v10193_v18 }
 0x8e5   : > { %v10129_v60 = vadd.f32 %v10097_v8, %v9966_v24 }
 0x8e7   : > { %v10162_v26 = vmul.f32 %v15194_v21, %v10129_v60 }
 0x8e9   : > { %v10194_v32 = vsub.f32 %v10000_v29, %v10162_v26 }
 0x8eb   : > { %10226 = vst.msk [vmem:[%s15207_s17 + $0xf8] sm:$0xff] %vm472_vm0, %v10194_v32 }
 0x8ec PF: > { %s23_s21 = sadd.s32 1, %s10918_s21  }
 0x8ed   : > { %p20_p1 = scmp.ge.s32.totalorder %s23_s21, 4  }
 0x8ef   :  { %22 = sbr.rel (!%p20_p1) target bundleno = 1 (0x1), region = 115 }
 0x8f6   :  { %10248 = vsyncpa [#allocation7], 1 }
 0x8f7   :  { %10250 = vsyncpa [#allocation7 + $0x1], 1 }

</bundles_post_ra>
